<compile_context>
chip_gen: v5e
topology: v5e:2x2
jax: 0.10.0
libtpu: 0.0.40
codegen_flags: <defaults>
</compile_context>

<pallas_src>
import numpy as np
import jax
import jax.numpy as jnp
from jax.experimental import pallas as pl
from jax.experimental.pallas import tpu as pltpu


BT = 32  # batch tile (multiple of 8 -> sublane aligned slices everywhere)


# -----------------------------------------------------------------------------
# Fused kernel: conv1+pool+relu -> conv2+pool+relu -> fc1+relu -> fc2+logsoftmax
# for one batch tile of BT images.
# -----------------------------------------------------------------------------
def _kdmtl_fused_kernel(x_ref, m1_ref, b1_ref, m2_ref, b2_ref,
                        wf1_ref, bf1_ref, wf2_ref, bf2_ref,
                        logp_ref, f1_ref):
    # x_ref  : (2, 14, BT, 28)  input tile, layout (H-parity, H//2, batch, W)
    # m1_ref : (5, 28, 256)     conv1 banded matrices per kernel row ki;
    #                           cols = dj*128 + (ow_pool*10 + co), 120 valid/half
    # b1_ref : (1, 128)         conv1 bias tiled over ow_pool (+ zero pad)
    # m2_ref : (5, 128, 256)    conv2 banded matrices; rows = (ow_pool1*10 + ci),
    #                           cols = dj*128 + (ow_pool2*20 + co), 80 valid/half
    # b2_ref : (1, 128)
    # wf1_ref: (4, 128, 50)     fc1 weight split per pooled row i2 (rows 80.. zero)
    # bf1_ref: (1, 50),  wf2_ref: (50, 10),  bf2_ref: (1, 10)
    # logp_ref: (BT, 10), f1_ref: (BT, 50)
    f32 = jnp.float32

    def dot(a, b):
        return jnp.dot(a, b, preferred_element_type=f32)

    # ---- stage 1: conv1(5x5, 1->10) + 2x2 maxpool + relu --------------------
    xp = x_ref[...]                                   # (2, 14, BT, 28)
    p = (xp[0].reshape(14 * BT, 28),                  # parity slabs: rows (rh, b)
         xp[1].reshape(14 * BT, 28))                  # (free leading-dim reshapes)

    def xslab(oh):                                    # rows (op, b), op in [0,12)
        rh, sh = divmod(oh, 2)
        return p[sh][rh * BT:(rh + 12) * BT]          # sublane-aligned slice

    m1 = m1_ref[...]
    acc1 = []
    for di in range(2):                               # pool row offset
        a = dot(xslab(di), m1[0])
        for ki in range(1, 5):
            a = a + dot(xslab(di + ki), m1[ki])
        acc1.append(a)                                # (12*BT, 256)
    c1 = jnp.maximum(jnp.maximum(acc1[0][:, :128], acc1[0][:, 128:]),
                     jnp.maximum(acc1[1][:, :128], acc1[1][:, 128:]))
    h1 = jnp.maximum(c1 + b1_ref[...], 0.0)           # (12*BT, 128), pad cols = 0

    # ---- stage 2: conv2(5x5, 10->20) + 2x2 maxpool + relu -------------------
    h1r = h1.reshape(6, 2, BT, 128)
    q = (h1r[:, 0].reshape(6 * BT, 128),              # parity slabs of h1
         h1r[:, 1].reshape(6 * BT, 128))

    def hslab(oh):                                    # rows (i2, b), i2 in [0,4)
        rh, sh = divmod(oh, 2)
        return q[sh][rh * BT:(rh + 4) * BT]

    m2 = m2_ref[...]
    acc2 = []
    for di in range(2):
        a = dot(hslab(di), m2[0])
        for ki in range(1, 5):
            a = a + dot(hslab(di + ki), m2[ki])
        acc2.append(a)                                # (4*BT, 256)
    c2 = jnp.maximum(jnp.maximum(acc2[0][:, :128], acc2[0][:, 128:]),
                     jnp.maximum(acc2[1][:, :128], acc2[1][:, 128:]))
    h2 = jnp.maximum(c2 + b2_ref[...], 0.0)           # (4*BT, 128), pad cols = 0

    # ---- stage 3: fc1 + relu ------------------------------------------------
    h2r = h2.reshape(4, BT, 128)
    wf1 = wf1_ref[...]
    a = dot(h2r[0], wf1[0])
    for i2 in range(1, 4):
        a = a + dot(h2r[i2], wf1[i2])
    f1 = jnp.maximum(a + bf1_ref[...], 0.0)           # (BT, 50)
    f1_ref[...] = f1

    # ---- stage 4: fc2 + log_softmax ------------------------------------------
    logits = dot(f1, wf2_ref[...]) + bf2_ref[...]     # (BT, 10)
    m = jnp.max(logits, axis=1, keepdims=True)
    s = logits - m
    lse = jnp.log(jnp.sum(jnp.exp(s), axis=1, keepdims=True))
    logp_ref[...] = s - lse


def _fused_call(xp, prepped, b_pad):
    M1, b1p, M2, b2p, Wf1r, bf1r, Wf2t, bf2r = prepped
    return pl.pallas_call(
        _kdmtl_fused_kernel,
        out_shape=(jax.ShapeDtypeStruct((b_pad, 10), jnp.float32),
                   jax.ShapeDtypeStruct((b_pad, 50), jnp.float32)),
        grid=(b_pad // BT,),
        in_specs=[
            pl.BlockSpec((2, 14, BT, 28), lambda i: (0, 0, i, 0)),   # input, batch-tiled
            # weight/bias blocks use a constant index -> DMA'd once, stay resident
            pl.BlockSpec((5, 28, 256), lambda i: (0, 0, 0)),
            pl.BlockSpec((1, 128), lambda i: (0, 0)),
            pl.BlockSpec((5, 128, 256), lambda i: (0, 0, 0)),
            pl.BlockSpec((1, 128), lambda i: (0, 0)),
            pl.BlockSpec((4, 128, 50), lambda i: (0, 0, 0)),
            pl.BlockSpec((1, 50), lambda i: (0, 0)),
            pl.BlockSpec((50, 10), lambda i: (0, 0)),
            pl.BlockSpec((1, 10), lambda i: (0, 0)),
        ],
        out_specs=(pl.BlockSpec((BT, 10), lambda i: (i, 0)),
                   pl.BlockSpec((BT, 50), lambda i: (i, 0))),
        compiler_params=pltpu.CompilerParams(
            dimension_semantics=("parallel",)),        # megacore split on v7x
    )(xp, M1, b1p, M2, b2p, Wf1r, bf1r, Wf2t, bf2r)


@jax.jit
def kdmtl_forward(x_nchw, prepped):
    """x_nchw: (B, 1, 28, 28) float32 -> (log_softmax (B,10), f1 (B,50))."""
    B = x_nchw.shape[0]
    b_pad = max(BT, ((B + BT - 1) // BT) * BT)
    x = x_nchw[:, 0, :, :]                             # (B, 28, 28)
    if b_pad != B:
        x = jnp.pad(x, ((0, b_pad - B), (0, 0), (0, 0)))
    # (b, h, w) -> (parity, h//2, b, w): one fused XLA relayout; in-kernel
    # parity-slab construction is then free leading-dim reshapes.
    xp = jnp.transpose(x.reshape(b_pad, 14, 2, 28), (2, 1, 0, 3))
    logp, f1 = _fused_call(xp, prepped, b_pad)
    return logp[:B], f1[:B]


# -----------------------------------------------------------------------------
# One-time host-side weight preparation (conv -> banded matmul matrices with the
# pool-column pair folded into lanes, FC1 column permutation, padded biases).
# -----------------------------------------------------------------------------
def prepare_params(params):
    W1, b1, W2, b2, Wf1, bf1, Wf2, bf2 = [np.asarray(p, np.float32) for p in params]

    # conv1: M1[ki][w, dj*128 + oq*10 + co] = W1[co, 0, ki, w - 2*oq - dj]
    M1 = np.zeros((5, 28, 256), np.float32)
    for ki in range(5):
        for dj in range(2):
            for oq in range(12):
                for kj in range(5):
                    w = 2 * oq + dj + kj
                    M1[ki, w, dj * 128 + oq * 10: dj * 128 + oq * 10 + 10] = W1[:, 0, ki, kj]
    b1p = np.zeros((1, 128), np.float32)
    b1p[0, :120] = np.tile(b1, 12)

    # conv2: M2[ki][oq*10 + ci, dj*128 + j2*20 + co] = W2[co, ci, ki, oq - 2*j2 - dj]
    M2 = np.zeros((5, 128, 256), np.float32)
    for ki in range(5):
        for dj in range(2):
            for j2 in range(4):
                for kj in range(5):
                    oq = 2 * j2 + dj + kj
                    M2[ki, oq * 10:(oq + 1) * 10,
                       dj * 128 + j2 * 20: dj * 128 + j2 * 20 + 20] = W2[:, :, ki, kj].T
    b2p = np.zeros((1, 128), np.float32)
    b2p[0, :80] = np.tile(b2, 4)

    # fc1: Wf1r[i2, j2*20+co, o] = Wf1[o, co*16 + i2*4 + j2]  (torch c,h,w flatten)
    Wf1r = np.zeros((4, 128, 50), np.float32)
    Wf1r[:, :80, :] = np.transpose(Wf1.reshape(50, 20, 4, 4), (2, 3, 1, 0)).reshape(4, 80, 50)
    bf1r = bf1[None, :]                                # (1, 50)
    Wf2t = Wf2.T                                       # (50, 10)
    bf2r = bf2[None, :]                                # (1, 10)

    return tuple(jnp.asarray(a) for a in (M1, b1p, M2, b2p, Wf1r, bf1r, Wf2t, bf2r))


# -----------------------------------------------------------------------------
# Pure-JAX reference (independent path) for the correctness check
# -----------------------------------------------------------------------------
def reference_forward(x_nchw, params):
    W1, b1, W2, b2, Wf1, bf1, Wf2, bf2 = params
    dn = ('NCHW', 'OIHW', 'NCHW')

    y = jax.lax.conv_general_dilated(x_nchw, W1, (1, 1), 'VALID', dimension_numbers=dn)
    y = y + b1[None, :, None, None]
    y = jax.lax.reduce_window(y, -jnp.inf, jax.lax.max, (1, 1, 2, 2), (1, 1, 2, 2), 'VALID')
    y = jnp.maximum(y, 0.0)

    y = jax.lax.conv_general_dilated(y, W2, (1, 1), 'VALID', dimension_numbers=dn)
    y = y + b2[None, :, None, None]
    y = jax.lax.reduce_window(y, -jnp.inf, jax.lax.max, (1, 1, 2, 2), (1, 1, 2, 2), 'VALID')
    y = jnp.maximum(y, 0.0)

    flat = y.reshape(y.shape[0], -1)                   # (B, 320), torch (c,h,w) order
    f1 = jnp.maximum(flat @ Wf1.T + bf1, 0.0)
    logits = f1 @ Wf2.T + bf2
    return jax.nn.log_softmax(logits, axis=1), f1


# -----------------------------------------------------------------------------
# Deterministic parameter init (PyTorch-default-like uniform(-1/sqrt(fan_in), .))
# -----------------------------------------------------------------------------
def init_params(key):
    def u(k, shape, fan_in):
        bound = 1.0 / np.sqrt(fan_in)
        return jax.random.uniform(k, shape, jnp.float32, -bound, bound)

    ks = jax.random.split(key, 8)
    W1 = u(ks[0], (10, 1, 5, 5), 1 * 25)
    b1 = u(ks[1], (10,), 1 * 25)
    W2 = u(ks[2], (20, 10, 5, 5), 10 * 25)
    b2 = u(ks[3], (20,), 10 * 25)
    Wf1 = u(ks[4], (50, 320), 320)
    bf1 = u(ks[5], (50,), 320)
    Wf2 = u(ks[6], (10, 50), 50)
    bf2 = u(ks[7], (10,), 50)
    return (W1, b1, W2, b2, Wf1, bf1, Wf2, bf2)


if __name__ == "__main__":
    key = jax.random.PRNGKey(0)
    k_x, k_p = jax.random.split(key)

    params = init_params(k_p)
    prepped = prepare_params(params)

    # primary check: small batch (single grid step, padded 2 -> 32)
    B = 2
    x = jax.random.normal(k_x, (B, 1, 28, 28), jnp.float32)
    logp, f1 = kdmtl_forward(x, prepped)
    jax.block_until_ready((logp, f1))

    logp_ref, f1_ref = reference_forward(x, params)
    assert logp.shape == (B, 10) and f1.shape == (B, 50)
    np.testing.assert_allclose(np.asarray(f1), np.asarray(f1_ref), rtol=1e-3, atol=1e-3)
    np.testing.assert_allclose(np.asarray(logp), np.asarray(logp_ref), rtol=1e-3, atol=1e-3)

    # secondary check: multi-tile grid + batch padding path (40 -> 64, 2 steps)
    B2 = 40
    x2 = jax.random.normal(jax.random.PRNGKey(1), (B2, 1, 28, 28), jnp.float32)
    logp2, f12 = kdmtl_forward(x2, prepped)
    jax.block_until_ready((logp2, f12))
    logp2_ref, f12_ref = reference_forward(x2, params)
    np.testing.assert_allclose(np.asarray(f12), np.asarray(f12_ref), rtol=1e-3, atol=1e-3)
    np.testing.assert_allclose(np.asarray(logp2), np.asarray(logp2_ref), rtol=1e-3, atol=1e-3)

    print("KERNEL_OK")
</pallas_src>

<mosaic_0001>
module attributes {stable_mosaic.version = 11 : i64} {
  func.func @_kdmtl_fused_kernel(%arg0: i32, %arg1: memref<2x14x32x28xf32, #tpu.memory_space<vmem>>, %arg2: memref<5x28x256xf32, #tpu.memory_space<vmem>>, %arg3: memref<1x128xf32, #tpu.memory_space<vmem>>, %arg4: memref<5x128x256xf32, #tpu.memory_space<vmem>>, %arg5: memref<1x128xf32, #tpu.memory_space<vmem>>, %arg6: memref<4x128x50xf32, #tpu.memory_space<vmem>>, %arg7: memref<1x50xf32, #tpu.memory_space<vmem>>, %arg8: memref<50x10xf32, #tpu.memory_space<vmem>>, %arg9: memref<1x10xf32, #tpu.memory_space<vmem>>, %arg10: memref<32x10xf32, #tpu.memory_space<vmem>>, %arg11: memref<32x50xf32, #tpu.memory_space<vmem>>) attributes {dimension_semantics = [#tpu.dimension_semantics<parallel>], iteration_bounds = array<i64: 1>, scalar_prefetch = 0 : i64, scratch_operands = 0 : i64, tpu.core_type = #tpu.core_type<tc>, window_params = [{transform_indices = @transform_0, window_bounds = array<i64: 2, 14, 32, 28>}, {pipeline_mode = #tpu.pipeline_mode<synchronous>, transform_indices = @transform_1, window_bounds = array<i64: 5, 28, 256>}, {pipeline_mode = #tpu.pipeline_mode<synchronous>, transform_indices = @transform_2, window_bounds = array<i64: 1, 128>}, {pipeline_mode = #tpu.pipeline_mode<synchronous>, transform_indices = @transform_3, window_bounds = array<i64: 5, 128, 256>}, {pipeline_mode = #tpu.pipeline_mode<synchronous>, transform_indices = @transform_4, window_bounds = array<i64: 1, 128>}, {pipeline_mode = #tpu.pipeline_mode<synchronous>, transform_indices = @transform_5, window_bounds = array<i64: 4, 128, 50>}, {pipeline_mode = #tpu.pipeline_mode<synchronous>, transform_indices = @transform_6, window_bounds = array<i64: 1, 50>}, {pipeline_mode = #tpu.pipeline_mode<synchronous>, transform_indices = @transform_7, window_bounds = array<i64: 50, 10>}, {pipeline_mode = #tpu.pipeline_mode<synchronous>, transform_indices = @transform_8, window_bounds = array<i64: 1, 10>}, {transform_indices = @transform_9, window_bounds = array<i64: 32, 10>}, {transform_indices = @transform_10, window_bounds = array<i64: 32, 50>}]} {
    %c0 = arith.constant 0 : index
    %c0_0 = arith.constant 0 : index
    %c0_1 = arith.constant 0 : index
    %c0_2 = arith.constant 0 : index
    %0 = vector.load %arg1[%c0, %c0_0, %c0_1, %c0_2] : memref<2x14x32x28xf32, #tpu.memory_space<vmem>>, vector<2x14x32x28xf32>
    %1 = vector.extract_strided_slice %0 {offsets = [0, 0, 0, 0], sizes = [1, 14, 32, 28], strides = [1, 1, 1, 1]} : vector<2x14x32x28xf32> to vector<1x14x32x28xf32>
    %2 = vector.shape_cast %1 : vector<1x14x32x28xf32> to vector<14x32x28xf32>
    %3 = vector.shape_cast %2 : vector<14x32x28xf32> to vector<448x28xf32>
    %4 = vector.extract_strided_slice %0 {offsets = [1, 0, 0, 0], sizes = [1, 14, 32, 28], strides = [1, 1, 1, 1]} : vector<2x14x32x28xf32> to vector<1x14x32x28xf32>
    %5 = vector.shape_cast %4 : vector<1x14x32x28xf32> to vector<14x32x28xf32>
    %6 = vector.shape_cast %5 : vector<14x32x28xf32> to vector<448x28xf32>
    %c0_3 = arith.constant 0 : index
    %c0_4 = arith.constant 0 : index
    %c0_5 = arith.constant 0 : index
    %7 = vector.load %arg2[%c0_3, %c0_4, %c0_5] : memref<5x28x256xf32, #tpu.memory_space<vmem>>, vector<5x28x256xf32>
    %8 = vector.extract_strided_slice %3 {offsets = [0, 0], sizes = [384, 28], strides = [1, 1]} : vector<448x28xf32> to vector<384x28xf32>
    %9 = vector.extract_strided_slice %7 {offsets = [0, 0, 0], sizes = [1, 28, 256], strides = [1, 1, 1]} : vector<5x28x256xf32> to vector<1x28x256xf32>
    %10 = vector.shape_cast %9 : vector<1x28x256xf32> to vector<28x256xf32>
    %cst = arith.constant dense<0.000000e+00> : vector<384x256xf32>
    %11 = tpu.matmul %8, %10, %cst {dimension_numbers = #tpu.dot_dimension_numbers<[1], [0], [0], [1], [0, 0, 1, 1], [], []>} : vector<384x28xf32>, vector<28x256xf32>, vector<384x256xf32> -> vector<384x256xf32>
    %12 = vector.extract_strided_slice %6 {offsets = [0, 0], sizes = [384, 28], strides = [1, 1]} : vector<448x28xf32> to vector<384x28xf32>
    %13 = vector.extract_strided_slice %7 {offsets = [1, 0, 0], sizes = [1, 28, 256], strides = [1, 1, 1]} : vector<5x28x256xf32> to vector<1x28x256xf32>
    %14 = vector.shape_cast %13 : vector<1x28x256xf32> to vector<28x256xf32>
    %cst_6 = arith.constant dense<0.000000e+00> : vector<384x256xf32>
    %15 = tpu.matmul %12, %14, %cst_6 {dimension_numbers = #tpu.dot_dimension_numbers<[1], [0], [0], [1], [0, 0, 1, 1], [], []>} : vector<384x28xf32>, vector<28x256xf32>, vector<384x256xf32> -> vector<384x256xf32>
    %16 = arith.addf %11, %15 : vector<384x256xf32>
    %17 = vector.extract_strided_slice %3 {offsets = [32, 0], sizes = [384, 28], strides = [1, 1]} : vector<448x28xf32> to vector<384x28xf32>
    %18 = vector.extract_strided_slice %7 {offsets = [2, 0, 0], sizes = [1, 28, 256], strides = [1, 1, 1]} : vector<5x28x256xf32> to vector<1x28x256xf32>
    %19 = vector.shape_cast %18 : vector<1x28x256xf32> to vector<28x256xf32>
    %cst_7 = arith.constant dense<0.000000e+00> : vector<384x256xf32>
    %20 = tpu.matmul %17, %19, %cst_7 {dimension_numbers = #tpu.dot_dimension_numbers<[1], [0], [0], [1], [0, 0, 1, 1], [], []>} : vector<384x28xf32>, vector<28x256xf32>, vector<384x256xf32> -> vector<384x256xf32>
    %21 = arith.addf %16, %20 : vector<384x256xf32>
    %22 = vector.extract_strided_slice %6 {offsets = [32, 0], sizes = [384, 28], strides = [1, 1]} : vector<448x28xf32> to vector<384x28xf32>
    %23 = vector.extract_strided_slice %7 {offsets = [3, 0, 0], sizes = [1, 28, 256], strides = [1, 1, 1]} : vector<5x28x256xf32> to vector<1x28x256xf32>
    %24 = vector.shape_cast %23 : vector<1x28x256xf32> to vector<28x256xf32>
    %cst_8 = arith.constant dense<0.000000e+00> : vector<384x256xf32>
    %25 = tpu.matmul %22, %24, %cst_8 {dimension_numbers = #tpu.dot_dimension_numbers<[1], [0], [0], [1], [0, 0, 1, 1], [], []>} : vector<384x28xf32>, vector<28x256xf32>, vector<384x256xf32> -> vector<384x256xf32>
    %26 = arith.addf %21, %25 : vector<384x256xf32>
    %27 = vector.extract_strided_slice %3 {offsets = [64, 0], sizes = [384, 28], strides = [1, 1]} : vector<448x28xf32> to vector<384x28xf32>
    %28 = vector.extract_strided_slice %7 {offsets = [4, 0, 0], sizes = [1, 28, 256], strides = [1, 1, 1]} : vector<5x28x256xf32> to vector<1x28x256xf32>
    %29 = vector.shape_cast %28 : vector<1x28x256xf32> to vector<28x256xf32>
    %cst_9 = arith.constant dense<0.000000e+00> : vector<384x256xf32>
    %30 = tpu.matmul %27, %29, %cst_9 {dimension_numbers = #tpu.dot_dimension_numbers<[1], [0], [0], [1], [0, 0, 1, 1], [], []>} : vector<384x28xf32>, vector<28x256xf32>, vector<384x256xf32> -> vector<384x256xf32>
    %31 = arith.addf %26, %30 : vector<384x256xf32>
    %32 = vector.extract_strided_slice %6 {offsets = [0, 0], sizes = [384, 28], strides = [1, 1]} : vector<448x28xf32> to vector<384x28xf32>
    %33 = vector.extract_strided_slice %7 {offsets = [0, 0, 0], sizes = [1, 28, 256], strides = [1, 1, 1]} : vector<5x28x256xf32> to vector<1x28x256xf32>
    %34 = vector.shape_cast %33 : vector<1x28x256xf32> to vector<28x256xf32>
    %cst_10 = arith.constant dense<0.000000e+00> : vector<384x256xf32>
    %35 = tpu.matmul %32, %34, %cst_10 {dimension_numbers = #tpu.dot_dimension_numbers<[1], [0], [0], [1], [0, 0, 1, 1], [], []>} : vector<384x28xf32>, vector<28x256xf32>, vector<384x256xf32> -> vector<384x256xf32>
    %36 = vector.extract_strided_slice %3 {offsets = [32, 0], sizes = [384, 28], strides = [1, 1]} : vector<448x28xf32> to vector<384x28xf32>
    %37 = vector.extract_strided_slice %7 {offsets = [1, 0, 0], sizes = [1, 28, 256], strides = [1, 1, 1]} : vector<5x28x256xf32> to vector<1x28x256xf32>
    %38 = vector.shape_cast %37 : vector<1x28x256xf32> to vector<28x256xf32>
    %cst_11 = arith.constant dense<0.000000e+00> : vector<384x256xf32>
    %39 = tpu.matmul %36, %38, %cst_11 {dimension_numbers = #tpu.dot_dimension_numbers<[1], [0], [0], [1], [0, 0, 1, 1], [], []>} : vector<384x28xf32>, vector<28x256xf32>, vector<384x256xf32> -> vector<384x256xf32>
    %40 = arith.addf %35, %39 : vector<384x256xf32>
    %41 = vector.extract_strided_slice %6 {offsets = [32, 0], sizes = [384, 28], strides = [1, 1]} : vector<448x28xf32> to vector<384x28xf32>
    %42 = vector.extract_strided_slice %7 {offsets = [2, 0, 0], sizes = [1, 28, 256], strides = [1, 1, 1]} : vector<5x28x256xf32> to vector<1x28x256xf32>
    %43 = vector.shape_cast %42 : vector<1x28x256xf32> to vector<28x256xf32>
    %cst_12 = arith.constant dense<0.000000e+00> : vector<384x256xf32>
    %44 = tpu.matmul %41, %43, %cst_12 {dimension_numbers = #tpu.dot_dimension_numbers<[1], [0], [0], [1], [0, 0, 1, 1], [], []>} : vector<384x28xf32>, vector<28x256xf32>, vector<384x256xf32> -> vector<384x256xf32>
    %45 = arith.addf %40, %44 : vector<384x256xf32>
    %46 = vector.extract_strided_slice %3 {offsets = [64, 0], sizes = [384, 28], strides = [1, 1]} : vector<448x28xf32> to vector<384x28xf32>
    %47 = vector.extract_strided_slice %7 {offsets = [3, 0, 0], sizes = [1, 28, 256], strides = [1, 1, 1]} : vector<5x28x256xf32> to vector<1x28x256xf32>
    %48 = vector.shape_cast %47 : vector<1x28x256xf32> to vector<28x256xf32>
    %cst_13 = arith.constant dense<0.000000e+00> : vector<384x256xf32>
    %49 = tpu.matmul %46, %48, %cst_13 {dimension_numbers = #tpu.dot_dimension_numbers<[1], [0], [0], [1], [0, 0, 1, 1], [], []>} : vector<384x28xf32>, vector<28x256xf32>, vector<384x256xf32> -> vector<384x256xf32>
    %50 = arith.addf %45, %49 : vector<384x256xf32>
    %51 = vector.extract_strided_slice %6 {offsets = [64, 0], sizes = [384, 28], strides = [1, 1]} : vector<448x28xf32> to vector<384x28xf32>
    %52 = vector.extract_strided_slice %7 {offsets = [4, 0, 0], sizes = [1, 28, 256], strides = [1, 1, 1]} : vector<5x28x256xf32> to vector<1x28x256xf32>
    %53 = vector.shape_cast %52 : vector<1x28x256xf32> to vector<28x256xf32>
    %cst_14 = arith.constant dense<0.000000e+00> : vector<384x256xf32>
    %54 = tpu.matmul %51, %53, %cst_14 {dimension_numbers = #tpu.dot_dimension_numbers<[1], [0], [0], [1], [0, 0, 1, 1], [], []>} : vector<384x28xf32>, vector<28x256xf32>, vector<384x256xf32> -> vector<384x256xf32>
    %55 = arith.addf %50, %54 : vector<384x256xf32>
    %56 = vector.extract_strided_slice %31 {offsets = [0, 0], sizes = [384, 128], strides = [1, 1]} : vector<384x256xf32> to vector<384x128xf32>
    %57 = vector.extract_strided_slice %31 {offsets = [0, 128], sizes = [384, 128], strides = [1, 1]} : vector<384x256xf32> to vector<384x128xf32>
    %58 = arith.maximumf %56, %57 : vector<384x128xf32>
    %59 = vector.extract_strided_slice %55 {offsets = [0, 0], sizes = [384, 128], strides = [1, 1]} : vector<384x256xf32> to vector<384x128xf32>
    %60 = vector.extract_strided_slice %55 {offsets = [0, 128], sizes = [384, 128], strides = [1, 1]} : vector<384x256xf32> to vector<384x128xf32>
    %61 = arith.maximumf %59, %60 : vector<384x128xf32>
    %62 = arith.maximumf %58, %61 : vector<384x128xf32>
    %c0_15 = arith.constant 0 : index
    %c0_16 = arith.constant 0 : index
    %63 = vector.load %arg3[%c0_15, %c0_16] : memref<1x128xf32, #tpu.memory_space<vmem>>, vector<1x128xf32>
    %64 = vector.broadcast %63 : vector<1x128xf32> to vector<384x128xf32>
    %65 = arith.addf %62, %64 : vector<384x128xf32>
    %cst_17 = arith.constant 0.000000e+00 : f32
    %66 = vector.broadcast %cst_17 : f32 to vector<384x128xf32>
    %67 = arith.maximumf %65, %66 : vector<384x128xf32>
    %68 = vector.shape_cast %67 : vector<384x128xf32> to vector<6x2x32x128xf32>
    %69 = vector.extract_strided_slice %68 {offsets = [0, 0, 0, 0], sizes = [6, 1, 32, 128], strides = [1, 1, 1, 1]} : vector<6x2x32x128xf32> to vector<6x1x32x128xf32>
    %70 = vector.shape_cast %69 : vector<6x1x32x128xf32> to vector<6x32x128xf32>
    %71 = vector.shape_cast %70 : vector<6x32x128xf32> to vector<192x128xf32>
    %72 = vector.extract_strided_slice %68 {offsets = [0, 1, 0, 0], sizes = [6, 1, 32, 128], strides = [1, 1, 1, 1]} : vector<6x2x32x128xf32> to vector<6x1x32x128xf32>
    %73 = vector.shape_cast %72 : vector<6x1x32x128xf32> to vector<6x32x128xf32>
    %74 = vector.shape_cast %73 : vector<6x32x128xf32> to vector<192x128xf32>
    %c0_18 = arith.constant 0 : index
    %c0_19 = arith.constant 0 : index
    %c0_20 = arith.constant 0 : index
    %75 = vector.load %arg4[%c0_18, %c0_19, %c0_20] : memref<5x128x256xf32, #tpu.memory_space<vmem>>, vector<5x128x256xf32>
    %76 = vector.extract_strided_slice %71 {offsets = [0, 0], sizes = [128, 128], strides = [1, 1]} : vector<192x128xf32> to vector<128x128xf32>
    %77 = vector.extract_strided_slice %75 {offsets = [0, 0, 0], sizes = [1, 128, 256], strides = [1, 1, 1]} : vector<5x128x256xf32> to vector<1x128x256xf32>
    %78 = vector.shape_cast %77 : vector<1x128x256xf32> to vector<128x256xf32>
    %cst_21 = arith.constant dense<0.000000e+00> : vector<128x256xf32>
    %79 = tpu.matmul %76, %78, %cst_21 {dimension_numbers = #tpu.dot_dimension_numbers<[1], [0], [0], [1], [0, 0, 1, 1], [], []>} : vector<128x128xf32>, vector<128x256xf32>, vector<128x256xf32> -> vector<128x256xf32>
    %80 = vector.extract_strided_slice %74 {offsets = [0, 0], sizes = [128, 128], strides = [1, 1]} : vector<192x128xf32> to vector<128x128xf32>
    %81 = vector.extract_strided_slice %75 {offsets = [1, 0, 0], sizes = [1, 128, 256], strides = [1, 1, 1]} : vector<5x128x256xf32> to vector<1x128x256xf32>
    %82 = vector.shape_cast %81 : vector<1x128x256xf32> to vector<128x256xf32>
    %cst_22 = arith.constant dense<0.000000e+00> : vector<128x256xf32>
    %83 = tpu.matmul %80, %82, %cst_22 {dimension_numbers = #tpu.dot_dimension_numbers<[1], [0], [0], [1], [0, 0, 1, 1], [], []>} : vector<128x128xf32>, vector<128x256xf32>, vector<128x256xf32> -> vector<128x256xf32>
    %84 = arith.addf %79, %83 : vector<128x256xf32>
    %85 = vector.extract_strided_slice %71 {offsets = [32, 0], sizes = [128, 128], strides = [1, 1]} : vector<192x128xf32> to vector<128x128xf32>
    %86 = vector.extract_strided_slice %75 {offsets = [2, 0, 0], sizes = [1, 128, 256], strides = [1, 1, 1]} : vector<5x128x256xf32> to vector<1x128x256xf32>
    %87 = vector.shape_cast %86 : vector<1x128x256xf32> to vector<128x256xf32>
    %cst_23 = arith.constant dense<0.000000e+00> : vector<128x256xf32>
    %88 = tpu.matmul %85, %87, %cst_23 {dimension_numbers = #tpu.dot_dimension_numbers<[1], [0], [0], [1], [0, 0, 1, 1], [], []>} : vector<128x128xf32>, vector<128x256xf32>, vector<128x256xf32> -> vector<128x256xf32>
    %89 = arith.addf %84, %88 : vector<128x256xf32>
    %90 = vector.extract_strided_slice %74 {offsets = [32, 0], sizes = [128, 128], strides = [1, 1]} : vector<192x128xf32> to vector<128x128xf32>
    %91 = vector.extract_strided_slice %75 {offsets = [3, 0, 0], sizes = [1, 128, 256], strides = [1, 1, 1]} : vector<5x128x256xf32> to vector<1x128x256xf32>
    %92 = vector.shape_cast %91 : vector<1x128x256xf32> to vector<128x256xf32>
    %cst_24 = arith.constant dense<0.000000e+00> : vector<128x256xf32>
    %93 = tpu.matmul %90, %92, %cst_24 {dimension_numbers = #tpu.dot_dimension_numbers<[1], [0], [0], [1], [0, 0, 1, 1], [], []>} : vector<128x128xf32>, vector<128x256xf32>, vector<128x256xf32> -> vector<128x256xf32>
    %94 = arith.addf %89, %93 : vector<128x256xf32>
    %95 = vector.extract_strided_slice %71 {offsets = [64, 0], sizes = [128, 128], strides = [1, 1]} : vector<192x128xf32> to vector<128x128xf32>
    %96 = vector.extract_strided_slice %75 {offsets = [4, 0, 0], sizes = [1, 128, 256], strides = [1, 1, 1]} : vector<5x128x256xf32> to vector<1x128x256xf32>
    %97 = vector.shape_cast %96 : vector<1x128x256xf32> to vector<128x256xf32>
    %cst_25 = arith.constant dense<0.000000e+00> : vector<128x256xf32>
    %98 = tpu.matmul %95, %97, %cst_25 {dimension_numbers = #tpu.dot_dimension_numbers<[1], [0], [0], [1], [0, 0, 1, 1], [], []>} : vector<128x128xf32>, vector<128x256xf32>, vector<128x256xf32> -> vector<128x256xf32>
    %99 = arith.addf %94, %98 : vector<128x256xf32>
    %100 = vector.extract_strided_slice %74 {offsets = [0, 0], sizes = [128, 128], strides = [1, 1]} : vector<192x128xf32> to vector<128x128xf32>
    %101 = vector.extract_strided_slice %75 {offsets = [0, 0, 0], sizes = [1, 128, 256], strides = [1, 1, 1]} : vector<5x128x256xf32> to vector<1x128x256xf32>
    %102 = vector.shape_cast %101 : vector<1x128x256xf32> to vector<128x256xf32>
    %cst_26 = arith.constant dense<0.000000e+00> : vector<128x256xf32>
    %103 = tpu.matmul %100, %102, %cst_26 {dimension_numbers = #tpu.dot_dimension_numbers<[1], [0], [0], [1], [0, 0, 1, 1], [], []>} : vector<128x128xf32>, vector<128x256xf32>, vector<128x256xf32> -> vector<128x256xf32>
    %104 = vector.extract_strided_slice %71 {offsets = [32, 0], sizes = [128, 128], strides = [1, 1]} : vector<192x128xf32> to vector<128x128xf32>
    %105 = vector.extract_strided_slice %75 {offsets = [1, 0, 0], sizes = [1, 128, 256], strides = [1, 1, 1]} : vector<5x128x256xf32> to vector<1x128x256xf32>
    %106 = vector.shape_cast %105 : vector<1x128x256xf32> to vector<128x256xf32>
    %cst_27 = arith.constant dense<0.000000e+00> : vector<128x256xf32>
    %107 = tpu.matmul %104, %106, %cst_27 {dimension_numbers = #tpu.dot_dimension_numbers<[1], [0], [0], [1], [0, 0, 1, 1], [], []>} : vector<128x128xf32>, vector<128x256xf32>, vector<128x256xf32> -> vector<128x256xf32>
    %108 = arith.addf %103, %107 : vector<128x256xf32>
    %109 = vector.extract_strided_slice %74 {offsets = [32, 0], sizes = [128, 128], strides = [1, 1]} : vector<192x128xf32> to vector<128x128xf32>
    %110 = vector.extract_strided_slice %75 {offsets = [2, 0, 0], sizes = [1, 128, 256], strides = [1, 1, 1]} : vector<5x128x256xf32> to vector<1x128x256xf32>
    %111 = vector.shape_cast %110 : vector<1x128x256xf32> to vector<128x256xf32>
    %cst_28 = arith.constant dense<0.000000e+00> : vector<128x256xf32>
    %112 = tpu.matmul %109, %111, %cst_28 {dimension_numbers = #tpu.dot_dimension_numbers<[1], [0], [0], [1], [0, 0, 1, 1], [], []>} : vector<128x128xf32>, vector<128x256xf32>, vector<128x256xf32> -> vector<128x256xf32>
    %113 = arith.addf %108, %112 : vector<128x256xf32>
    %114 = vector.extract_strided_slice %71 {offsets = [64, 0], sizes = [128, 128], strides = [1, 1]} : vector<192x128xf32> to vector<128x128xf32>
    %115 = vector.extract_strided_slice %75 {offsets = [3, 0, 0], sizes = [1, 128, 256], strides = [1, 1, 1]} : vector<5x128x256xf32> to vector<1x128x256xf32>
    %116 = vector.shape_cast %115 : vector<1x128x256xf32> to vector<128x256xf32>
    %cst_29 = arith.constant dense<0.000000e+00> : vector<128x256xf32>
    %117 = tpu.matmul %114, %116, %cst_29 {dimension_numbers = #tpu.dot_dimension_numbers<[1], [0], [0], [1], [0, 0, 1, 1], [], []>} : vector<128x128xf32>, vector<128x256xf32>, vector<128x256xf32> -> vector<128x256xf32>
    %118 = arith.addf %113, %117 : vector<128x256xf32>
    %119 = vector.extract_strided_slice %74 {offsets = [64, 0], sizes = [128, 128], strides = [1, 1]} : vector<192x128xf32> to vector<128x128xf32>
    %120 = vector.extract_strided_slice %75 {offsets = [4, 0, 0], sizes = [1, 128, 256], strides = [1, 1, 1]} : vector<5x128x256xf32> to vector<1x128x256xf32>
    %121 = vector.shape_cast %120 : vector<1x128x256xf32> to vector<128x256xf32>
    %cst_30 = arith.constant dense<0.000000e+00> : vector<128x256xf32>
    %122 = tpu.matmul %119, %121, %cst_30 {dimension_numbers = #tpu.dot_dimension_numbers<[1], [0], [0], [1], [0, 0, 1, 1], [], []>} : vector<128x128xf32>, vector<128x256xf32>, vector<128x256xf32> -> vector<128x256xf32>
    %123 = arith.addf %118, %122 : vector<128x256xf32>
    %124 = vector.extract_strided_slice %99 {offsets = [0, 0], sizes = [128, 128], strides = [1, 1]} : vector<128x256xf32> to vector<128x128xf32>
    %125 = vector.extract_strided_slice %99 {offsets = [0, 128], sizes = [128, 128], strides = [1, 1]} : vector<128x256xf32> to vector<128x128xf32>
    %126 = arith.maximumf %124, %125 : vector<128x128xf32>
    %127 = vector.extract_strided_slice %123 {offsets = [0, 0], sizes = [128, 128], strides = [1, 1]} : vector<128x256xf32> to vector<128x128xf32>
    %128 = vector.extract_strided_slice %123 {offsets = [0, 128], sizes = [128, 128], strides = [1, 1]} : vector<128x256xf32> to vector<128x128xf32>
    %129 = arith.maximumf %127, %128 : vector<128x128xf32>
    %130 = arith.maximumf %126, %129 : vector<128x128xf32>
    %c0_31 = arith.constant 0 : index
    %c0_32 = arith.constant 0 : index
    %131 = vector.load %arg5[%c0_31, %c0_32] : memref<1x128xf32, #tpu.memory_space<vmem>>, vector<1x128xf32>
    %132 = vector.broadcast %131 : vector<1x128xf32> to vector<128x128xf32>
    %133 = arith.addf %130, %132 : vector<128x128xf32>
    %cst_33 = arith.constant 0.000000e+00 : f32
    %134 = vector.broadcast %cst_33 : f32 to vector<128x128xf32>
    %135 = arith.maximumf %133, %134 : vector<128x128xf32>
    %136 = vector.shape_cast %135 : vector<128x128xf32> to vector<4x32x128xf32>
    %c0_34 = arith.constant 0 : index
    %c0_35 = arith.constant 0 : index
    %c0_36 = arith.constant 0 : index
    %137 = vector.load %arg6[%c0_34, %c0_35, %c0_36] : memref<4x128x50xf32, #tpu.memory_space<vmem>>, vector<4x128x50xf32>
    %138 = vector.extract_strided_slice %136 {offsets = [0, 0, 0], sizes = [1, 32, 128], strides = [1, 1, 1]} : vector<4x32x128xf32> to vector<1x32x128xf32>
    %139 = vector.shape_cast %138 : vector<1x32x128xf32> to vector<32x128xf32>
    %140 = vector.extract_strided_slice %137 {offsets = [0, 0, 0], sizes = [1, 128, 50], strides = [1, 1, 1]} : vector<4x128x50xf32> to vector<1x128x50xf32>
    %141 = vector.shape_cast %140 : vector<1x128x50xf32> to vector<128x50xf32>
    %cst_37 = arith.constant dense<0.000000e+00> : vector<32x50xf32>
    %142 = tpu.matmul %139, %141, %cst_37 {dimension_numbers = #tpu.dot_dimension_numbers<[1], [0], [0], [1], [0, 0, 1, 1], [], []>} : vector<32x128xf32>, vector<128x50xf32>, vector<32x50xf32> -> vector<32x50xf32>
    %143 = vector.extract_strided_slice %136 {offsets = [1, 0, 0], sizes = [1, 32, 128], strides = [1, 1, 1]} : vector<4x32x128xf32> to vector<1x32x128xf32>
    %144 = vector.shape_cast %143 : vector<1x32x128xf32> to vector<32x128xf32>
    %145 = vector.extract_strided_slice %137 {offsets = [1, 0, 0], sizes = [1, 128, 50], strides = [1, 1, 1]} : vector<4x128x50xf32> to vector<1x128x50xf32>
    %146 = vector.shape_cast %145 : vector<1x128x50xf32> to vector<128x50xf32>
    %cst_38 = arith.constant dense<0.000000e+00> : vector<32x50xf32>
    %147 = tpu.matmul %144, %146, %cst_38 {dimension_numbers = #tpu.dot_dimension_numbers<[1], [0], [0], [1], [0, 0, 1, 1], [], []>} : vector<32x128xf32>, vector<128x50xf32>, vector<32x50xf32> -> vector<32x50xf32>
    %148 = arith.addf %142, %147 : vector<32x50xf32>
    %149 = vector.extract_strided_slice %136 {offsets = [2, 0, 0], sizes = [1, 32, 128], strides = [1, 1, 1]} : vector<4x32x128xf32> to vector<1x32x128xf32>
    %150 = vector.shape_cast %149 : vector<1x32x128xf32> to vector<32x128xf32>
    %151 = vector.extract_strided_slice %137 {offsets = [2, 0, 0], sizes = [1, 128, 50], strides = [1, 1, 1]} : vector<4x128x50xf32> to vector<1x128x50xf32>
    %152 = vector.shape_cast %151 : vector<1x128x50xf32> to vector<128x50xf32>
    %cst_39 = arith.constant dense<0.000000e+00> : vector<32x50xf32>
    %153 = tpu.matmul %150, %152, %cst_39 {dimension_numbers = #tpu.dot_dimension_numbers<[1], [0], [0], [1], [0, 0, 1, 1], [], []>} : vector<32x128xf32>, vector<128x50xf32>, vector<32x50xf32> -> vector<32x50xf32>
    %154 = arith.addf %148, %153 : vector<32x50xf32>
    %155 = vector.extract_strided_slice %136 {offsets = [3, 0, 0], sizes = [1, 32, 128], strides = [1, 1, 1]} : vector<4x32x128xf32> to vector<1x32x128xf32>
    %156 = vector.shape_cast %155 : vector<1x32x128xf32> to vector<32x128xf32>
    %157 = vector.extract_strided_slice %137 {offsets = [3, 0, 0], sizes = [1, 128, 50], strides = [1, 1, 1]} : vector<4x128x50xf32> to vector<1x128x50xf32>
    %158 = vector.shape_cast %157 : vector<1x128x50xf32> to vector<128x50xf32>
    %cst_40 = arith.constant dense<0.000000e+00> : vector<32x50xf32>
    %159 = tpu.matmul %156, %158, %cst_40 {dimension_numbers = #tpu.dot_dimension_numbers<[1], [0], [0], [1], [0, 0, 1, 1], [], []>} : vector<32x128xf32>, vector<128x50xf32>, vector<32x50xf32> -> vector<32x50xf32>
    %160 = arith.addf %154, %159 : vector<32x50xf32>
    %c0_41 = arith.constant 0 : index
    %c0_42 = arith.constant 0 : index
    %161 = vector.load %arg7[%c0_41, %c0_42] : memref<1x50xf32, #tpu.memory_space<vmem>>, vector<1x50xf32>
    %162 = vector.broadcast %161 : vector<1x50xf32> to vector<32x50xf32>
    %163 = arith.addf %160, %162 : vector<32x50xf32>
    %cst_43 = arith.constant 0.000000e+00 : f32
    %164 = vector.broadcast %cst_43 : f32 to vector<32x50xf32>
    %165 = arith.maximumf %163, %164 : vector<32x50xf32>
    %c0_44 = arith.constant 0 : index
    %c0_45 = arith.constant 0 : index
    %166 = vector.load %arg11[%c0_44, %c0_45] : memref<32x50xf32, #tpu.memory_space<vmem>>, vector<32x50xf32>
    tpu.vector_store %arg11[%c0_44, %c0_45], %165 {strides = array<i32>} : memref<32x50xf32, #tpu.memory_space<vmem>>, vector<32x50xf32>,
    %c0_46 = arith.constant 0 : index
    %c0_47 = arith.constant 0 : index
    %167 = vector.load %arg8[%c0_46, %c0_47] : memref<50x10xf32, #tpu.memory_space<vmem>>, vector<50x10xf32>
    %cst_48 = arith.constant dense<0.000000e+00> : vector<32x10xf32>
    %168 = tpu.matmul %165, %167, %cst_48 {dimension_numbers = #tpu.dot_dimension_numbers<[1], [0], [0], [1], [0, 0, 1, 1], [], []>} : vector<32x50xf32>, vector<50x10xf32>, vector<32x10xf32> -> vector<32x10xf32>
    %c0_49 = arith.constant 0 : index
    %c0_50 = arith.constant 0 : index
    %169 = vector.load %arg9[%c0_49, %c0_50] : memref<1x10xf32, #tpu.memory_space<vmem>>, vector<1x10xf32>
    %170 = vector.broadcast %169 : vector<1x10xf32> to vector<32x10xf32>
    %171 = arith.addf %168, %170 : vector<32x10xf32>
    %cst_51 = arith.constant dense<0xFF800000> : vector<32xf32>
    %172 = vector.multi_reduction <maximumf>, %171, %cst_51 [1] : vector<32x10xf32> to vector<32xf32>
    %173 = vector.shape_cast %172 : vector<32xf32> to vector<32x1xf32>
    %174 = vector.broadcast %173 : vector<32x1xf32> to vector<32x10xf32>
    %175 = arith.subf %171, %174 : vector<32x10xf32>
    %176 = math.exp %175 : vector<32x10xf32>
    %cst_52 = arith.constant dense<0.000000e+00> : vector<32xf32>
    %177 = vector.multi_reduction <add>, %176, %cst_52 [1] : vector<32x10xf32> to vector<32xf32>
    %178 = vector.shape_cast %177 : vector<32xf32> to vector<32x1xf32>
    %179 = math.log %178 : vector<32x1xf32>
    %180 = vector.broadcast %179 : vector<32x1xf32> to vector<32x10xf32>
    %181 = arith.subf %175, %180 : vector<32x10xf32>
    %c0_53 = arith.constant 0 : index
    %c0_54 = arith.constant 0 : index
    %182 = vector.load %arg10[%c0_53, %c0_54] : memref<32x10xf32, #tpu.memory_space<vmem>>, vector<32x10xf32>
    tpu.vector_store %arg10[%c0_53, %c0_54], %181 {strides = array<i32>} : memref<32x10xf32, #tpu.memory_space<vmem>>, vector<32x10xf32>,
    return
  }
  func.func @transform_0(%arg0: i32) -> (i32, i32, i32, i32) {
    %c0_i32 = arith.constant 0 : i32
    %c0_i32_0 = arith.constant 0 : i32
    %c0_i32_1 = arith.constant 0 : i32
    %c0_i32_2 = arith.constant 0 : i32
    return %c0_i32, %c0_i32_0, %arg0, %c0_i32_1 : i32, i32, i32, i32
  }
  func.func @transform_1(%arg0: i32) -> (i32, i32, i32) {
    %c0_i32 = arith.constant 0 : i32
    %c0_i32_0 = arith.constant 0 : i32
    %c0_i32_1 = arith.constant 0 : i32
    %c0_i32_2 = arith.constant 0 : i32
    return %c0_i32, %c0_i32_0, %c0_i32_1 : i32, i32, i32
  }
  func.func @transform_2(%arg0: i32) -> (i32, i32) {
    %c0_i32 = arith.constant 0 : i32
    %c0_i32_0 = arith.constant 0 : i32
    %c0_i32_1 = arith.constant 0 : i32
    return %c0_i32, %c0_i32_0 : i32, i32
  }
  func.func @transform_3(%arg0: i32) -> (i32, i32, i32) {
    %c0_i32 = arith.constant 0 : i32
    %c0_i32_0 = arith.constant 0 : i32
    %c0_i32_1 = arith.constant 0 : i32
    %c0_i32_2 = arith.constant 0 : i32
    return %c0_i32, %c0_i32_0, %c0_i32_1 : i32, i32, i32
  }
  func.func @transform_4(%arg0: i32) -> (i32, i32) {
    %c0_i32 = arith.constant 0 : i32
    %c0_i32_0 = arith.constant 0 : i32
    %c0_i32_1 = arith.constant 0 : i32
    return %c0_i32, %c0_i32_0 : i32, i32
  }
  func.func @transform_5(%arg0: i32) -> (i32, i32, i32) {
    %c0_i32 = arith.constant 0 : i32
    %c0_i32_0 = arith.constant 0 : i32
    %c0_i32_1 = arith.constant 0 : i32
    %c0_i32_2 = arith.constant 0 : i32
    return %c0_i32, %c0_i32_0, %c0_i32_1 : i32, i32, i32
  }
  func.func @transform_6(%arg0: i32) -> (i32, i32) {
    %c0_i32 = arith.constant 0 : i32
    %c0_i32_0 = arith.constant 0 : i32
    %c0_i32_1 = arith.constant 0 : i32
    return %c0_i32, %c0_i32_0 : i32, i32
  }
  func.func @transform_7(%arg0: i32) -> (i32, i32) {
    %c0_i32 = arith.constant 0 : i32
    %c0_i32_0 = arith.constant 0 : i32
    %c0_i32_1 = arith.constant 0 : i32
    return %c0_i32, %c0_i32_0 : i32, i32
  }
  func.func @transform_8(%arg0: i32) -> (i32, i32) {
    %c0_i32 = arith.constant 0 : i32
    %c0_i32_0 = arith.constant 0 : i32
    %c0_i32_1 = arith.constant 0 : i32
    return %c0_i32, %c0_i32_0 : i32, i32
  }
  func.func @transform_9(%arg0: i32) -> (i32, i32) {
    %c0_i32 = arith.constant 0 : i32
    %c0_i32_0 = arith.constant 0 : i32
    return %arg0, %c0_i32 : i32, i32
  }
  func.func @transform_10(%arg0: i32) -> (i32, i32) {
    %c0_i32 = arith.constant 0 : i32
    %c0_i32_0 = arith.constant 0 : i32
    return %arg0, %c0_i32 : i32, i32
  }
}

</mosaic_0001>

<bundles_post_ra>
// kernel: kdmtl_forward.1
= control target key start
LH: loop header
LB: loop body
LE: loop exit
PB: predicated region body
PF: predicated region fallthrough
CT: control target
= control target key end

     0   :  { %vm331_vm0 = vcmask 1043456   ;;  %vm186_vm1 = vcmask 228352   ;;  %vm6558_vm2 = vcmask 1041408   ;;  %vm6530_vm3 = vcmask 408576   ;;  %s15983_s1 = inlined_call_operand.vmem [shape: f32[5,28,256], index: 1, kind: input, shape index: {}]   ;;  %s15984_s0 = inlined_call_operand.vmem [shape: f32[2,14,32,28], index: 0, kind: input, shape index: {}]   ;;  %s15985_s3 = inlined_call_operand.vmem [shape: f32[5,128,256], index: 3, kind: input, shape index: {}]   ;;  %s15986_s2 = inlined_call_operand.vmem [shape: f32[1,128], index: 2, kind: input, shape index: {}]   ;;  %s15987_s4 = inlined_call_operand.vmem [shape: f32[1,128], index: 4, kind: input, shape index: {}]   ;;  %s15988_s5 = inlined_call_operand.vmem [shape: f32[4,128,50], index: 5, kind: input, shape index: {}]   ;;  %s15989_s6 = inlined_call_operand.vmem [shape: f32[1,50], index: 6, kind: input, shape index: {}]   ;;  %s15990_s8 = inlined_call_operand.vmem [shape: f32[1,10], index: 8, kind: input, shape index: {}]   ;;  %s15991_s7 = inlined_call_operand.vmem [shape: f32[50,10], index: 7, kind: input, shape index: {}]   ;;  %s15992_s10 = inlined_call_operand.vmem [shape: f32[32,50], index: 10, kind: output, shape index: {1}]   ;;  %s15993_s9 = inlined_call_operand.vmem [shape: f32[32,10], index: 9, kind: output, shape index: {0}]  }
   0x1   :  { %v8103_v0 = vld [vmem:[%s15983_s1 + $0x70] sm:$0xf]  ;;  %v8108_v1 = vld [vmem:[%s15983_s1 + $0x60] sm:$0xff]  ;;  %v135_v5 = vld [vmem:[%s15984_s0 + $0x328] sm:$0xff]  ;;  %vm6591_vm4 = vcmask 80896  }
   0x2   :  { %6652 = vmatpush.msk.msra.mxu0 %vm331_vm0, %v8103_v0  ;;  %7637 = vmatpush.msk.msra.mxu1 %vm331_vm0, %v8103_v0  ;;  %v8121_v2 = vld [vmem:[%s15983_s1 + $0x50] sm:$0xff]  ;;  %v8130_v3 = vld [vmem:[%s15983_s1 + $0x40] sm:$0xff]  ;;  %v137_v7 = vld [vmem:[%s15984_s0 + $0x338] sm:$0xff] }
   0x3   :  { %7638 = vmatpush.msk.msra.mxu2 %vm331_vm0, %v8103_v0  ;;  %7639 = vmatpush.msk.msra.mxu3 %vm331_vm0, %v8103_v0  ;;  %v90_v4 = vld [vmem:[%s15984_s0 + $0x1c0] sm:$0xff]  ;;  %v136_v6 = vld [vmem:[%s15984_s0 + $0x330] sm:$0xff]  ;;  %v153_v9 = vld [vmem:[%s15983_s1 + $0x38] sm:$0xf] }
   0x4   :  { %351 = vmatpush.msra.mxu0 %v8108_v1  ;;  %7640 = vmatpush.msra.mxu1 %v8108_v1  ;;  %v152_v8 = vld [vmem:[%s15983_s1 + $0x30] sm:$0xf]  ;;  %v8163_v10 = vld [vmem:[%s15983_s1 + $0x78] sm:$0xf]  ;;  %v150_v11 = vld [vmem:[%s15983_s1 + $0x20] sm:$0xff] }
   0x5   :  { %7641 = vmatpush.msra.mxu2 %v8108_v1  ;;  %7642 = vmatpush.msra.mxu3 %v8108_v1  ;;  %v151_v12 = vld [vmem:[%s15983_s1 + $0x28] sm:$0xff]  ;;  %v148_v14 = vld [vmem:[%s15983_s1 + $0x10] sm:$0xff]  ;;  %v149_v15 = vld [vmem:[%s15983_s1 + $0x18] sm:$0xff] }
   0x6   :  { %352 = vmatpush.msra.mxu0 %v8121_v2  ;;  %7643 = vmatpush.msra.mxu1 %v8121_v2  ;;  %v8178_v13 = vld [vmem:[%s15983_s1 + $0x68] sm:$0xff]  ;;  %v168_v16 = vld [vmem:[%s15983_s1 + $0xb0] sm:$0xf]  ;;  %v8194_v17 = vld [vmem:[%s15983_s1 + $0x58] sm:$0xff] }
   0x7   :  { %7644 = vmatpush.msra.mxu2 %v8121_v2  ;;  %7645 = vmatpush.msra.mxu3 %v8121_v2  ;;  %v146_v18 = vld [vmem:[%s15983_s1] sm:$0xff]  ;;  %v147_v19 = vld [vmem:[%s15983_s1 + $0x8] sm:$0xff]  ;;  %v176_v23 = vld [vmem:[%s15983_s1 + $0xf0] sm:$0xf] }
   0x8   :  { %353 = vmatpush.msra.mxu0 %v8130_v3  ;;  %7646 = vmatpush.msra.mxu1 %v8130_v3  ;;  %v8207_v20 = vld [vmem:[%s15983_s1 + $0x48] sm:$0xff]  ;;  %v34_v22 = vld [vmem:[%s15984_s0] sm:$0xff]  ;;  %v177_v24 = vld [vmem:[%s15983_s1 + $0xf8] sm:$0xf] }
   0x9   :  { %7647 = vmatpush.msra.mxu2 %v8130_v3  ;;  %7648 = vmatpush.msra.mxu3 %v8130_v3  ;;  %v91_v21 = vld [vmem:[%s15984_s0 + $0x1c8] sm:$0xff]  ;;  %v169_v25 = vld [vmem:[%s15983_s1 + $0xb8] sm:$0xf]  ;;  %v92_v26 = vld [vmem:[%s15984_s0 + $0x1d0] sm:$0xff] }
   0xa   :  { %6653 = vmatmul.msk.f32.vlgmr.msra.gmra.mxu0 %vm186_vm1, %v90_v4  ;;  %6698 = vmatmul.msk.f32.vlgmr.msra.gmra.mxu1 %vm186_vm1, %v135_v5  ;;  %v35_v27 = vld [vmem:[%s15984_s0 + $0x8] sm:$0xff]  ;;  %v93_v28 = vld [vmem:[%s15984_s0 + $0x1d8] sm:$0xff]  ;;  %v36_v29 = vld [vmem:[%s15984_s0 + $0x10] sm:$0xff] }
   0xb   :  { %6699 = vmatmul.msk.f32.vlgmr.msra.gmra.mxu2 %vm186_vm1, %v136_v6  ;;  %6700 = vmatmul.msk.f32.vlgmr.msra.gmra.mxu3 %vm186_vm1, %v137_v7  ;;  %v8256_v30 = vld [vmem:[%s15984_s0 + $0x1e0] sm:$0xff]  ;;  %v37_v31 = vld [vmem:[%s15984_s0 + $0x18] sm:$0xff]  ;;  %v95_v32 = vld [vmem:[%s15984_s0 + $0x1e8] sm:$0xff] }
   0xc   :  { %6750 = vmatpush.msk.msrb.mxu2 %vm331_vm0, %v152_v8  ;;  %6799 = vmatpush.msk.msrb.mxu3 %vm331_vm0, %v153_v9  ;;  %v8272_v33 = vld [vmem:[%s15984_s0 + $0x20] sm:$0xff]  ;;  %v96_v34 = vld [vmem:[%s15984_s0 + $0x1f0] sm:$0xff]  ;;  %v8287_v35 = vld [vmem:[%s15984_s0 + $0x28] sm:$0xff] }
   0xd   :  { %6701 = vmatpush.msk.msrb.mxu1 %vm331_vm0, %v8163_v10  ;;  %6848 = vmatpush.msk.msrb.mxu0 %vm331_vm0, %v168_v16  ;;  %v97_v36 = vld [vmem:[%s15984_s0 + $0x1f8] sm:$0xff]  ;;  %v8301_v37 = vld [vmem:[%s15984_s0 + $0x30] sm:$0xff]  ;;  %v98_v38 = vld [vmem:[%s15984_s0 + $0x200] sm:$0xff] }
   0xe   :  { %823 = vmatpush.msrb.mxu2 %v150_v11  ;;  %984 = vmatpush.msrb.mxu3 %v151_v12  ;;  %v8315_v39 = vld [vmem:[%s15984_s0 + $0x38] sm:$0xff]  ;;  %v99_v40 = vld [vmem:[%s15984_s0 + $0x208] sm:$0xff]  ;;  %v8329_v41 = vld [vmem:[%s15984_s0 + $0x40] sm:$0xff] }
   0xf   :  { %512 = vmatpush.msrb.mxu1 %v8178_v13  ;;  %v174_v42 = vld [vmem:[%s15983_s1 + $0xe0] sm:$0xff]  ;;  %v175_v43 = vld [vmem:[%s15983_s1 + $0xe8] sm:$0xff]  ;;  %v100_v45 = vld [vmem:[%s15984_s0 + $0x210] sm:$0xff] }
  0x10   :  { %824 = vmatpush.msrb.mxu2 %v148_v14  ;;  %985 = vmatpush.msrb.mxu3 %v149_v15  ;;  %v8346_v44 = vld [vmem:[%s15983_s1 + $0xa8] sm:$0xff]  ;;  %v101_v47 = vld [vmem:[%s15984_s0 + $0x218] sm:$0xff]  ;;  %v8369_v48 = vld [vmem:[%s15984_s0 + $0x50] sm:$0xff] }
  0x11   :  { %513 = vmatpush.msrb.mxu1 %v8194_v17  ;;  %v8355_v46 = vld [vmem:[%s15984_s0 + $0x48] sm:$0xff]  ;;  %v8380_v49 = vld [vmem:[%s15983_s1 + $0xa0] sm:$0xff]  ;;  %v8389_v51 = vld [vmem:[%s15984_s0 + $0x58] sm:$0xff] }
  0x12   :  { %825 = vmatpush.msrb.mxu2 %v146_v18  ;;  %986 = vmatpush.msrb.mxu3 %v147_v19  ;;  %v102_v50 = vld [vmem:[%s15984_s0 + $0x220] sm:$0xff]  ;;  %v103_v52 = vld [vmem:[%s15984_s0 + $0x228] sm:$0xff]  ;;  %v104_v54 = vld [vmem:[%s15984_s0 + $0x230] sm:$0xff] }
  0x13   :  { %514 = vmatpush.msrb.mxu1 %v8207_v20  ;;  %6654 = vmatmul.msk.f32.gmra.mxu0 %vm186_vm1, %v91_v21  ;;  %v8403_v53 = vld [vmem:[%s15984_s0 + $0x60] sm:$0xff]  ;;  %v8417_v55 = vld [vmem:[%s15984_s0 + $0x68] sm:$0xff]  ;;  %v105_v56 = vld [vmem:[%s15984_s0 + $0x238] sm:$0xff] }
  0x14   :  { %6702 = vmatmul.msk.f32.vlgmr.msrb.gmra.mxu1 %vm186_vm1, %v90_v4  ;;  %6751 = vmatmul.msk.f32.vlgmr.msrb.gmra.mxu2 %vm186_vm1, %v34_v22  ;;  %v8431_v57 = vld [vmem:[%s15984_s0 + $0x70] sm:$0xff]  ;;  %v106_v60 = vld [vmem:[%s15984_s0 + $0x240] sm:$0xff]  ;;  %v8447_v61 = vld [vmem:[%s15984_s0 + $0x78] sm:$0xff] }
  0x15   :  { %6800 = vmatmul.msk.f32.vlgmr.msrb.gmra.mxu3 %vm186_vm1, %v34_v22  ;;  %6946 = vmatpush.msk.msra.mxu2 %vm331_vm0, %v176_v23  ;;  %v107_v5 = vld [vmem:[%s15984_s0 + $0x248] sm:$0xff]  ;;  %v8465_v7 = vld [vmem:[%s15984_s0 + $0x80] sm:$0xff]  ;;  %v108_v14 = vld [vmem:[%s15984_s0 + $0x250] sm:$0xff] }
  0x16   :  { %6995 = vmatpush.msk.msra.mxu3 %vm331_vm0, %v177_v24  ;;  %6897 = vmatpush.msk.msra.mxu1 %vm331_vm0, %v169_v25  ;;  %v8483_v18 = vld [vmem:[%s15984_s0 + $0x88] sm:$0xff]  ;;  %v109_v24 = vld [vmem:[%s15984_s0 + $0x258] sm:$0xff] }
  0x17   :  { %1599 = vmatpush.msra.mxu2 %v174_v42  ;;  %1163 = vmatpush.msrb.mxu0 %v8380_v49 }
  0x18   :  { %1760 = vmatpush.msra.mxu3 %v175_v43  ;;  %1324 = vmatpush.msra.mxu1 %v8346_v44 }
  0x1b   :  { %6655 = vmatmul.msk.f32.gmra.mxu0 %vm186_vm1, %v92_v26 }
  0x1c   :  { %6703 = vmatmul.msk.f32.gmra.mxu1 %vm186_vm1, %v91_v21  ;;  %6752 = vmatmul.msk.f32.gmra.mxu2 %vm186_vm1, %v35_v27 }
  0x1d   :  { %6801 = vmatmul.msk.f32.gmra.mxu3 %vm186_vm1, %v35_v27  ;;  %v8501_v27 = vld [vmem:[%s15984_s0 + $0x90] sm:$0xff] }
  0x23   :  { %6656 = vmatmul.msk.f32.gmra.mxu0 %vm186_vm1, %v93_v28 }
  0x24   :  { %6704 = vmatmul.msk.f32.gmra.mxu1 %vm186_vm1, %v92_v26  ;;  %6753 = vmatmul.msk.f32.gmra.mxu2 %vm186_vm1, %v36_v29 }
  0x25   :  { %6802 = vmatmul.msk.f32.gmra.mxu3 %vm186_vm1, %v36_v29 }
  0x2b   :  { %6657 = vmatmul.msk.f32.gmra.mxu0 %vm186_vm1, %v8256_v30 }
  0x2c   :  { %6705 = vmatmul.msk.f32.gmra.mxu1 %vm186_vm1, %v93_v28  ;;  %6754 = vmatmul.msk.f32.gmra.mxu2 %vm186_vm1, %v37_v31 }
  0x2d   :  { %6803 = vmatmul.msk.f32.gmra.mxu3 %vm186_vm1, %v37_v31 }
  0x33   :  { %6658 = vmatmul.msk.f32.gmra.mxu0 %vm186_vm1, %v95_v32 }
  0x34   :  { %6706 = vmatmul.msk.f32.gmra.mxu1 %vm186_vm1, %v8256_v30  ;;  %6755 = vmatmul.msk.f32.gmra.mxu2 %vm186_vm1, %v8272_v33 }
  0x35   :  { %6804 = vmatmul.msk.f32.gmra.mxu3 %vm186_vm1, %v8272_v33 }
  0x3b   :  { %6659 = vmatmul.msk.f32.gmra.mxu0 %vm186_vm1, %v96_v34 }
  0x3c   :  { %6707 = vmatmul.msk.f32.gmra.mxu1 %vm186_vm1, %v95_v32  ;;  %6756 = vmatmul.msk.f32.gmra.mxu2 %vm186_vm1, %v8287_v35 }
  0x3d   :  { %6805 = vmatmul.msk.f32.gmra.mxu3 %vm186_vm1, %v8287_v35 }
  0x43   :  { %6660 = vmatmul.msk.f32.gmra.mxu0 %vm186_vm1, %v97_v36 }
  0x44   :  { %6708 = vmatmul.msk.f32.gmra.mxu1 %vm186_vm1, %v96_v34  ;;  %6757 = vmatmul.msk.f32.gmra.mxu2 %vm186_vm1, %v8301_v37  ;;  %v110_v34 = vld [vmem:[%s15984_s0 + $0x260] sm:$0xff] }
  0x45   :  { %6806 = vmatmul.msk.f32.gmra.mxu3 %vm186_vm1, %v8301_v37 }
  0x4b   :  { %6661 = vmatmul.msk.f32.gmra.mxu0 %vm186_vm1, %v98_v38 }
  0x4c   :  { %6709 = vmatmul.msk.f32.gmra.mxu1 %vm186_vm1, %v97_v36  ;;  %6758 = vmatmul.msk.f32.gmra.mxu2 %vm186_vm1, %v8315_v39 }
  0x4d   :  { %6807 = vmatmul.msk.f32.gmra.mxu3 %vm186_vm1, %v8315_v39 }
  0x53   :  { %6662 = vmatmul.msk.f32.gmra.mxu0 %vm186_vm1, %v99_v40 }
  0x54   :  { %6710 = vmatmul.msk.f32.gmra.mxu1 %vm186_vm1, %v98_v38  ;;  %6759 = vmatmul.msk.f32.gmra.mxu2 %vm186_vm1, %v8329_v41 }
  0x55   :  { %6808 = vmatmul.msk.f32.gmra.mxu3 %vm186_vm1, %v8329_v41 }
  0x5b   :  { %6663 = vmatmul.msk.f32.gmra.mxu0 %vm186_vm1, %v100_v45 }
  0x5c   :  { %6711 = vmatmul.msk.f32.gmra.mxu1 %vm186_vm1, %v99_v40  ;;  %6760 = vmatmul.msk.f32.gmra.mxu2 %vm186_vm1, %v8355_v46  ;;  %v8519_v40 = vld [vmem:[%s15984_s0 + $0x98] sm:$0xff] }
  0x5d   :  { %6809 = vmatmul.msk.f32.gmra.mxu3 %vm186_vm1, %v8355_v46 }
  0x63   :  { %6664 = vmatmul.msk.f32.gmra.mxu0 %vm186_vm1, %v101_v47 }
  0x64   :  { %6712 = vmatmul.msk.f32.gmra.mxu1 %vm186_vm1, %v100_v45  ;;  %6761 = vmatmul.msk.f32.gmra.mxu2 %vm186_vm1, %v8369_v48 }
  0x65   :  { %6810 = vmatmul.msk.f32.gmra.mxu3 %vm186_vm1, %v8369_v48 }
  0x6b   :  { %6665 = vmatmul.msk.f32.gmra.mxu0 %vm186_vm1, %v102_v50 }
  0x6c   :  { %6713 = vmatmul.msk.f32.gmra.mxu1 %vm186_vm1, %v101_v47  ;;  %6762 = vmatmul.msk.f32.gmra.mxu2 %vm186_vm1, %v8389_v51 }
  0x6d   :  { %6811 = vmatmul.msk.f32.gmra.mxu3 %vm186_vm1, %v8389_v51 }
  0x73   :  { %6666 = vmatmul.msk.f32.gmra.mxu0 %vm186_vm1, %v103_v52 }
  0x74   :  { %6714 = vmatmul.msk.f32.gmra.mxu1 %vm186_vm1, %v102_v50  ;;  %6763 = vmatmul.msk.f32.gmra.mxu2 %vm186_vm1, %v8403_v53  ;;  %v111_v50 = vld [vmem:[%s15984_s0 + $0x268] sm:$0xff] }
  0x75   :  { %6812 = vmatmul.msk.f32.gmra.mxu3 %vm186_vm1, %v8403_v53 }
  0x7b   :  { %6667 = vmatmul.msk.f32.gmra.mxu0 %vm186_vm1, %v104_v54 }
  0x7c   :  { %6715 = vmatmul.msk.f32.gmra.mxu1 %vm186_vm1, %v103_v52  ;;  %6764 = vmatmul.msk.f32.gmra.mxu2 %vm186_vm1, %v8417_v55 }
  0x7d   :  { %6813 = vmatmul.msk.f32.gmra.mxu3 %vm186_vm1, %v8417_v55 }
  0x83   :  { %6668 = vmatmul.msk.f32.gmra.mxu0 %vm186_vm1, %v105_v56 }
  0x84   :  { %6716 = vmatmul.msk.f32.gmra.mxu1 %vm186_vm1, %v104_v54  ;;  %6765 = vmatmul.msk.f32.gmra.mxu2 %vm186_vm1, %v8431_v57 }
  0x85   :  { %6814 = vmatmul.msk.f32.gmra.mxu3 %vm186_vm1, %v8431_v57 }
  0x87   :  { %v355_v58 = vpop.f32.mrf.mxu0  ;;  %v8439_v59 = vpop.f32.mrf.mxu1 }
  0x88   :  { %16211 = vst [vmem:[#allocation2_spill] sm:$0xff] %v8439_v59 }
  0x8b   :  { %6669 = vmatmul.msk.f32.gmra.mxu0 %vm186_vm1, %v106_v60 }
  0x8c   :  { %6717 = vmatmul.msk.f32.gmra.mxu1 %vm186_vm1, %v105_v56  ;;  %6766 = vmatmul.msk.f32.gmra.mxu2 %vm186_vm1, %v8447_v61  ;;  %v8537_v56 = vld [vmem:[%s15984_s0 + $0xa0] sm:$0xff] }
  0x8d   :  { %6815 = vmatmul.msk.f32.gmra.mxu3 %vm186_vm1, %v8447_v61 }
  0x8e   :  { %v8455_v62 = vpop.f32.mrf.mxu2  ;;  %v8457_v63 = vpop.f32.mrf.mxu3 }
  0x8f   :  { %16212 = vst [vmem:[#allocation3_spill] sm:$0xff] %v8455_v62  ;;  %v117_v62 = vld [vmem:[%s15984_s0 + $0x298] sm:$0xff] }
  0x90   :  { %16213 = vst [vmem:[#allocation4_spill] sm:$0xff] %v8457_v63  ;;  %v358_v4 = vpop.f32.mrf.mxu0 }
  0x91   :  { %v516_v6 = vpop.f32.mrf.mxu1 }
  0x93   :  { %6670 = vmatmul.msk.f32.gmra.mxu0 %vm186_vm1, %v107_v5 }
  0x94   :  { %6718 = vmatmul.msk.f32.gmra.mxu1 %vm186_vm1, %v106_v60  ;;  %6767 = vmatmul.msk.f32.gmra.mxu2 %vm186_vm1, %v8465_v7  ;;  %v173_v60 = vld [vmem:[%s15983_s1 + $0xd8] sm:$0xff] }
  0x95   :  { %6816 = vmatmul.msk.f32.gmra.mxu3 %vm186_vm1, %v8465_v7 }
  0x96   :  { %1761 = vmatpush.msra.mxu3 %v173_v60 }
  0x97   :  { %v827_v8 = vpop.f32.mrf.mxu2 }
  0x98   :  { %v8473_v9 = vadd.f32 %v827_v8, %v355_v58  ;;  %v988_v11 = vpop.f32.mrf.mxu3  ;;  %v361_v12 = vpop.f32.mrf.mxu0  ;;  %v172_v58 = vld [vmem:[%s15983_s1 + $0xd0] sm:$0xff] }
  0x99   :  { %v8478_v15 = vadd.f32 %v988_v11, %v516_v6  ;;  %v519_v16 = vpop.f32.mrf.mxu1  ;;  %1600 = vmatpush.msra.mxu2 %v172_v58  ;;  %v112_v11 = vld [vmem:[%s15984_s0 + $0x270] sm:$0xff] }
  0x9b   :  { %6671 = vmatmul.msk.f32.gmra.mxu0 %vm186_vm1, %v108_v14 }
  0x9c   :  { %6719 = vmatmul.msk.f32.gmra.mxu1 %vm186_vm1, %v107_v5  ;;  %6768 = vmatmul.msk.f32.gmra.mxu2 %vm186_vm1, %v8483_v18 }
  0x9d   :  { %6817 = vmatmul.msk.f32.gmra.mxu3 %vm186_vm1, %v8483_v18 }
  0x9f   :  { %v830_v19 = vpop.f32.mrf.mxu2 }
  0xa0   :  { %v8491_v21 = vadd.f32 %v830_v19, %v358_v4  ;;  %v991_v22 = vpop.f32.mrf.mxu3  ;;  %v364_v23 = vpop.f32.mrf.mxu0  ;;  %v8566_v19 = vld [vmem:[%s15983_s1 + $0x98] sm:$0xff] }
  0xa1   :  { %v8496_v25 = vadd.f32 %v991_v22, %v519_v16  ;;  %v522_v26 = vpop.f32.mrf.mxu1  ;;  %v8561_v16 = vld [vmem:[%s15984_s0 + $0xa8] sm:$0xff]  ;;  %1325 = vmatpush.msra.mxu1 %v8566_v19 }
  0xa3   :  { %6672 = vmatmul.msk.f32.gmra.mxu0 %vm186_vm1, %v109_v24 }
  0xa4   :  { %6720 = vmatmul.msk.f32.gmra.mxu1 %vm186_vm1, %v108_v14  ;;  %6769 = vmatmul.msk.f32.gmra.mxu2 %vm186_vm1, %v8501_v27 }
  0xa5   :  { %6818 = vmatmul.msk.f32.gmra.mxu3 %vm186_vm1, %v8501_v27 }
  0xa7   :  { %v833_v28 = vpop.f32.mrf.mxu2 }
  0xa8   :  { %v8509_v29 = vadd.f32 %v833_v28, %v361_v12  ;;  %v994_v31 = vpop.f32.mrf.mxu3  ;;  %v367_v32 = vpop.f32.mrf.mxu0  ;;  %v113_v28 = vld [vmem:[%s15984_s0 + $0x278] sm:$0xff] }
  0xa9   :  { %v8514_v36 = vadd.f32 %v994_v31, %v522_v26  ;;  %v525_v38 = vpop.f32.mrf.mxu1 }
  0xab   :  { %6673 = vmatmul.msk.f32.gmra.mxu0 %vm186_vm1, %v110_v34 }
  0xac   :  { %6721 = vmatmul.msk.f32.gmra.mxu1 %vm186_vm1, %v109_v24  ;;  %6770 = vmatmul.msk.f32.gmra.mxu2 %vm186_vm1, %v8519_v40 }
  0xad   :  { %6819 = vmatmul.msk.f32.gmra.mxu3 %vm186_vm1, %v8519_v40 }
  0xaf   :  { %v836_v42 = vpop.f32.mrf.mxu2 }
  0xb0   :  { %v8527_v43 = vadd.f32 %v836_v42, %v364_v23  ;;  %v997_v45 = vpop.f32.mrf.mxu3  ;;  %v370_v47 = vpop.f32.mrf.mxu0 }
  0xb1   :  { %v8532_v52 = vadd.f32 %v997_v45, %v525_v38  ;;  %v528_v54 = vpop.f32.mrf.mxu1  ;;  %v8596_v38 = vld [vmem:[%s15983_s1 + $0x90] sm:$0xff] }
  0xb2   :  { %1164 = vmatpush.msrb.mxu0 %v8596_v38 }
  0xb3   :  { %6674 = vmatmul.msk.f32.gmra.mxu0 %vm186_vm1, %v111_v50 }
  0xb4   :  { %6722 = vmatmul.msk.f32.gmra.mxu1 %vm186_vm1, %v110_v34  ;;  %6771 = vmatmul.msk.f32.gmra.mxu2 %vm186_vm1, %v8537_v56  ;;  %v8585_v34 = vld [vmem:[%s15984_s0 + $0xb0] sm:$0xff] }
  0xb5   :  { %6820 = vmatmul.msk.f32.gmra.mxu3 %vm186_vm1, %v8537_v56 }
  0xb7   :  { %v839_v4 = vpop.f32.mrf.mxu2 }
  0xb8   :  { %v8551_v5 = vadd.f32 %v839_v4, %v367_v32  ;;  %v1000_v6 = vpop.f32.mrf.mxu3  ;;  %v373_v8 = vpop.f32.mrf.mxu0  ;;  %v8609_v4 = vld [vmem:[%s15984_s0 + $0xb8] sm:$0xff] }
  0xb9   :  { %v8556_v12 = vadd.f32 %v1000_v6, %v528_v54  ;;  %v531_v14 = vpop.f32.mrf.mxu1  ;;  %v114_v54 = vld [vmem:[%s15984_s0 + $0x280] sm:$0xff] }
  0xbb   :  { %6675 = vmatmul.msk.f32.gmra.mxu0 %vm186_vm1, %v112_v11 }
  0xbc   :  { %6723 = vmatmul.msk.f32.gmra.mxu1 %vm186_vm1, %v111_v50  ;;  %6772 = vmatmul.msk.f32.gmra.mxu2 %vm186_vm1, %v8561_v16 }
  0xbd   :  { %6821 = vmatmul.msk.f32.gmra.mxu3 %vm186_vm1, %v8561_v16 }
  0xbf   :  { %v842_v22 = vpop.f32.mrf.mxu2 }
  0xc0   :  { %v8575_v23 = vadd.f32 %v842_v22, %v370_v47  ;;  %v1003_v24 = vpop.f32.mrf.mxu3  ;;  %v376_v26 = vpop.f32.mrf.mxu0  ;;  %v115_v22 = vld [vmem:[%s15984_s0 + $0x288] sm:$0xff] }
  0xc1   :  { %v8580_v31 = vadd.f32 %v1003_v24, %v531_v14  ;;  %v534_v32 = vpop.f32.mrf.mxu1 }
  0xc3   :  { %6676 = vmatmul.msk.f32.gmra.mxu0 %vm186_vm1, %v113_v28 }
  0xc4   :  { %6724 = vmatmul.msk.f32.gmra.mxu1 %vm186_vm1, %v112_v11  ;;  %6773 = vmatmul.msk.f32.gmra.mxu2 %vm186_vm1, %v8585_v34 }
  0xc5   :  { %6822 = vmatmul.msk.f32.gmra.mxu3 %vm186_vm1, %v8585_v34 }
  0xc7   :  { %v845_v42 = vpop.f32.mrf.mxu2 }
  0xc8   :  { %v8599_v45 = vadd.f32 %v845_v42, %v373_v8  ;;  %v1006_v47 = vpop.f32.mrf.mxu3  ;;  %v379_v50 = vpop.f32.mrf.mxu0 }
  0xc9   :  { %v8604_v58 = vadd.f32 %v1006_v47, %v534_v32  ;;  %v537_v60 = vpop.f32.mrf.mxu1 }
  0xca   :  { %16214 = vst [vmem:[#allocation5_spill] sm:$0xff] %v8599_v45 }
  0xcb   :  { %16215 = vst [vmem:[#allocation6_spill] sm:$0xff] %v8604_v58  ;;  %6677 = vmatmul.msk.f32.gmra.mxu0 %vm186_vm1, %v114_v54 }
  0xcc   :  { %6725 = vmatmul.msk.f32.gmra.mxu1 %vm186_vm1, %v113_v28  ;;  %6774 = vmatmul.msk.f32.gmra.mxu2 %vm186_vm1, %v8609_v4  ;;  %v8627_v28 = vld [vmem:[%s15984_s0 + $0xc0] sm:$0xff] }
  0xcd   :  { %6823 = vmatmul.msk.f32.gmra.mxu3 %vm186_vm1, %v8609_v4 }
  0xcf   :  { %v848_v6 = vpop.f32.mrf.mxu2 }
  0xd0   :  { %v8617_v8 = vadd.f32 %v848_v6, %v376_v26  ;;  %v1009_v11 = vpop.f32.mrf.mxu3  ;;  %v382_v14 = vpop.f32.mrf.mxu0  ;;  %v116_v6 = vld [vmem:[%s15984_s0 + $0x290] sm:$0xff] }
  0xd1   :  { %v8622_v24 = vadd.f32 %v1009_v11, %v537_v60  ;;  %v540_v32 = vpop.f32.mrf.mxu1 }
  0xd2   :  { %16216 = vst [vmem:[#allocation7_spill] sm:$0xff] %v8617_v8 }
  0xd3   :  { %16217 = vst [vmem:[#allocation8_spill] sm:$0xff] %v8622_v24  ;;  %6678 = vmatmul.msk.f32.gmra.mxu0 %vm186_vm1, %v115_v22 }
  0xd4   :  { %6726 = vmatmul.msk.f32.gmra.mxu1 %vm186_vm1, %v114_v54  ;;  %6775 = vmatmul.msk.f32.gmra.mxu2 %vm186_vm1, %v8627_v28  ;;  %v8645_v54 = vld [vmem:[%s15984_s0 + $0xc8] sm:$0xff] }
  0xd5   :  { %6824 = vmatmul.msk.f32.gmra.mxu3 %vm186_vm1, %v8627_v28 }
  0xd7   :  { %v851_v26 = vpop.f32.mrf.mxu2 }
  0xd8   :  { %v8635_v42 = vadd.f32 %v851_v26, %v379_v50  ;;  %v1012_v47 = vpop.f32.mrf.mxu3  ;;  %v385_v60 = vpop.f32.mrf.mxu0 }
  0xd9   :  { %v8640_v11 = vadd.f32 %v1012_v47, %v540_v32  ;;  %v543_v63 = vpop.f32.mrf.mxu1 }
  0xda   :  { %16218 = vst [vmem:[#allocation9_spill] sm:$0xff] %v8635_v42 }
  0xdb   :  { %16219 = vst [vmem:[#allocation10_spill] sm:$0xff] %v8640_v11  ;;  %6679 = vmatmul.msk.f32.gmra.mxu0 %vm186_vm1, %v116_v6 }
  0xdc   :  { %6727 = vmatmul.msk.f32.gmra.mxu1 %vm186_vm1, %v115_v22  ;;  %6776 = vmatmul.msk.f32.gmra.mxu2 %vm186_vm1, %v8645_v54  ;;  %v8663_v22 = vld [vmem:[%s15984_s0 + $0xd0] sm:$0xff] }
  0xdd   :  { %6825 = vmatmul.msk.f32.gmra.mxu3 %vm186_vm1, %v8645_v54 }
  0xdf   :  { %v854_v50 = vpop.f32.mrf.mxu2 }
  0xe0   :  { %v8653_v26 = vadd.f32 %v854_v50, %v382_v14  ;;  %v1015_v32 = vpop.f32.mrf.mxu3  ;;  %v388_v47 = vpop.f32.mrf.mxu0 }
  0xe1   :  { %v8658_v59 = vadd.f32 %v1015_v32, %v543_v63  ;;  %v546_v11 = vpop.f32.mrf.mxu1 }
  0xe2   :  { %16220 = vst [vmem:[#allocation11_spill] sm:$0xff] %v8653_v26 }
  0xe3   :  { %16221 = vst [vmem:[#allocation12_spill] sm:$0xff] %v8658_v59  ;;  %6680 = vmatmul.msk.f32.gmra.mxu0 %vm186_vm1, %v117_v62  ;;  %v118_v59 = vld [vmem:[%s15984_s0 + $0x2a0] sm:$0xff] }
  0xe4   :  { %6728 = vmatmul.msk.f32.gmra.mxu1 %vm186_vm1, %v116_v6  ;;  %6777 = vmatmul.msk.f32.gmra.mxu2 %vm186_vm1, %v8663_v22  ;;  %v8681_v6 = vld [vmem:[%s15984_s0 + $0xd8] sm:$0xff] }
  0xe5   :  { %6826 = vmatmul.msk.f32.gmra.mxu3 %vm186_vm1, %v8663_v22 }
  0xe7   :  { %v857_v14 = vpop.f32.mrf.mxu2 }
  0xe8   :  { %v8671_v50 = vadd.f32 %v857_v14, %v385_v60  ;;  %v1018_v63 = vpop.f32.mrf.mxu3  ;;  %v391_v32 = vpop.f32.mrf.mxu0 }
  0xe9   :  { %v8676_v26 = vadd.f32 %v1018_v63, %v546_v11  ;;  %v549_v42 = vpop.f32.mrf.mxu1 }
  0xea   :  { %16222 = vst [vmem:[#allocation13_spill] sm:$0xff] %v8671_v50 }
  0xeb   :  { %16223 = vst [vmem:[#allocation14_spill] sm:$0xff] %v8676_v26  ;;  %6681 = vmatmul.msk.f32.gmra.mxu0 %vm186_vm1, %v118_v59  ;;  %v119_v26 = vld [vmem:[%s15984_s0 + $0x2a8] sm:$0xff] }
  0xec   :  { %6729 = vmatmul.msk.f32.gmra.mxu1 %vm186_vm1, %v117_v62  ;;  %6778 = vmatmul.msk.f32.gmra.mxu2 %vm186_vm1, %v8681_v6  ;;  %v8699_v62 = vld [vmem:[%s15984_s0 + $0xe0] sm:$0xff] }
  0xed   :  { %6827 = vmatmul.msk.f32.gmra.mxu3 %vm186_vm1, %v8681_v6 }
  0xef   :  { %v860_v60 = vpop.f32.mrf.mxu2 }
  0xf0   :  { %v8689_v14 = vadd.f32 %v860_v60, %v388_v47  ;;  %v1021_v11 = vpop.f32.mrf.mxu3  ;;  %v394_v63 = vpop.f32.mrf.mxu0 }
  0xf1   :  { %v8694_v50 = vadd.f32 %v1021_v11, %v549_v42  ;;  %v552_v24 = vpop.f32.mrf.mxu1 }
  0xf2   :  { %16224 = vst [vmem:[#allocation15_spill] sm:$0xff] %v8689_v14 }
  0xf3   :  { %16225 = vst [vmem:[#allocation16_spill] sm:$0xff] %v8694_v50  ;;  %6682 = vmatmul.msk.f32.gmra.mxu0 %vm186_vm1, %v119_v26  ;;  %v120_v50 = vld [vmem:[%s15984_s0 + $0x2b0] sm:$0xff] }
  0xf4   :  { %6730 = vmatmul.msk.f32.gmra.mxu1 %vm186_vm1, %v118_v59  ;;  %6779 = vmatmul.msk.f32.gmra.mxu2 %vm186_vm1, %v8699_v62  ;;  %v8717_v59 = vld [vmem:[%s15984_s0 + $0xe8] sm:$0xff] }
  0xf5   :  { %6828 = vmatmul.msk.f32.gmra.mxu3 %vm186_vm1, %v8699_v62 }
  0xf7   :  { %v863_v47 = vpop.f32.mrf.mxu2 }
  0xf8   :  { %v8707_v60 = vadd.f32 %v863_v47, %v391_v32  ;;  %v1024_v42 = vpop.f32.mrf.mxu3  ;;  %v397_v11 = vpop.f32.mrf.mxu0 }
  0xf9   :  { %v8712_v14 = vadd.f32 %v1024_v42, %v552_v24  ;;  %v555_v8 = vpop.f32.mrf.mxu1 }
  0xfa   :  { %16226 = vst [vmem:[#allocation17_spill] sm:$0xff] %v8707_v60 }
  0xfb   :  { %16227 = vst [vmem:[#allocation18_spill] sm:$0xff] %v8712_v14  ;;  %6683 = vmatmul.msk.f32.gmra.mxu0 %vm186_vm1, %v120_v50  ;;  %v121_v14 = vld [vmem:[%s15984_s0 + $0x2b8] sm:$0xff] }
  0xfc   :  { %6731 = vmatmul.msk.f32.gmra.mxu1 %vm186_vm1, %v119_v26  ;;  %6780 = vmatmul.msk.f32.gmra.mxu2 %vm186_vm1, %v8717_v59  ;;  %v8735_v26 = vld [vmem:[%s15984_s0 + $0xf0] sm:$0xff] }
  0xfd   :  { %6829 = vmatmul.msk.f32.gmra.mxu3 %vm186_vm1, %v8717_v59  ;;  %16230 = vst [vmem:[#allocation21_spill] sm:$0xff] %v8735_v26 }
  0xff   :  { %v866_v32 = vpop.f32.mrf.mxu2 }
 0x100   :  { %v8725_v47 = vadd.f32 %v866_v32, %v394_v63  ;;  %v1027_v24 = vpop.f32.mrf.mxu3  ;;  %v400_v42 = vpop.f32.mrf.mxu0 }
 0x101   :  { %v8730_v60 = vadd.f32 %v1027_v24, %v555_v8  ;;  %v558_v58 = vpop.f32.mrf.mxu1 }
 0x102   :  { %16228 = vst [vmem:[#allocation19_spill] sm:$0xff] %v8725_v47 }
 0x103   :  { %16229 = vst [vmem:[#allocation20_spill] sm:$0xff] %v8730_v60  ;;  %6684 = vmatmul.msk.f32.gmra.mxu0 %vm186_vm1, %v121_v14  ;;  %v122_v60 = vld [vmem:[%s15984_s0 + $0x2c0] sm:$0xff] }
 0x104   :  { %6732 = vmatmul.msk.f32.gmra.mxu1 %vm186_vm1, %v120_v50  ;;  %6781 = vmatmul.msk.f32.gmra.mxu2 %vm186_vm1, %v8735_v26  ;;  %v8753_v50 = vld [vmem:[%s15984_s0 + $0xf8] sm:$0xff] }
 0x105   :  { %6830 = vmatmul.msk.f32.gmra.mxu3 %vm186_vm1, %v8735_v26  ;;  %16233 = vst [vmem:[#allocation24_spill] sm:$0xff] %v8753_v50 }
 0x107   :  { %v869_v63 = vpop.f32.mrf.mxu2 }
 0x108   :  { %v8743_v32 = vadd.f32 %v869_v63, %v397_v11  ;;  %v1030_v8 = vpop.f32.mrf.mxu3  ;;  %v403_v24 = vpop.f32.mrf.mxu0 }
 0x109   :  { %v8748_v47 = vadd.f32 %v1030_v8, %v558_v58  ;;  %v561_v45 = vpop.f32.mrf.mxu1 }
 0x10a   :  { %16231 = vst [vmem:[#allocation22_spill] sm:$0xff] %v8743_v32 }
 0x10b   :  { %16232 = vst [vmem:[#allocation23_spill] sm:$0xff] %v8748_v47  ;;  %6685 = vmatmul.msk.f32.gmra.mxu0 %vm186_vm1, %v122_v60  ;;  %v123_v47 = vld [vmem:[%s15984_s0 + $0x2c8] sm:$0xff] }
 0x10c   :  { %6733 = vmatmul.msk.f32.gmra.mxu1 %vm186_vm1, %v121_v14  ;;  %6782 = vmatmul.msk.f32.gmra.mxu2 %vm186_vm1, %v8753_v50  ;;  %v8771_v14 = vld [vmem:[%s15984_s0 + $0x100] sm:$0xff] }
 0x10d   :  { %6831 = vmatmul.msk.f32.gmra.mxu3 %vm186_vm1, %v8753_v50  ;;  %16236 = vst [vmem:[#allocation27_spill] sm:$0xff] %v8771_v14 }
 0x10f   :  { %v872_v11 = vpop.f32.mrf.mxu2 }
 0x110   :  { %v8761_v63 = vadd.f32 %v872_v11, %v400_v42  ;;  %v1033_v58 = vpop.f32.mrf.mxu3  ;;  %v406_v8 = vpop.f32.mrf.mxu0  ;;  %v171_v42 = vld [vmem:[%s15983_s1 + $0xc8] sm:$0xff] }
 0x111   :  { %v8766_v32 = vadd.f32 %v1033_v58, %v561_v45  ;;  %v564_v26 = vpop.f32.mrf.mxu1  ;;  %v170_v45 = vld [vmem:[%s15983_s1 + $0xc0] sm:$0xff]  ;;  %1762 = vmatpush.msra.mxu3 %v171_v42 }
 0x112   :  { %16234 = vst [vmem:[#allocation25_spill] sm:$0xff] %v8761_v63  ;;  %1601 = vmatpush.msra.mxu2 %v170_v45  ;;  %v124_v63 = vld [vmem:[%s15984_s0 + $0x2d0] sm:$0xff]  ;;  %v8799_v45 = vld [vmem:[%s15984_s0 + $0x108] sm:$0xff] }
 0x113   :  { %16235 = vst [vmem:[#allocation26_spill] sm:$0xff] %v8766_v32  ;;  %6686 = vmatmul.msk.f32.gmra.mxu0 %vm186_vm1, %v123_v47  ;;  %7191 = vmatpush.msk.msrb.mxu3 %vm331_vm0, %v8163_v10 }
 0x114   :  { %6734 = vmatmul.msk.f32.gmra.mxu1 %vm186_vm1, %v122_v60  ;;  %6783 = vmatmul.msk.f32.gmra.mxu2 %vm186_vm1, %v8771_v14 }
 0x115   :  { %6832 = vmatmul.msk.f32.gmra.mxu3 %vm186_vm1, %v8771_v14  ;;  %7142 = vmatpush.msk.msrb.mxu2 %vm331_vm0, %v8103_v0  ;;  %v8804_v0 = vld [vmem:[%s15983_s1 + $0x88] sm:$0xff] }
 0x116   :  { %2614 = vmatpush.msrb.mxu3 %v8178_v13  ;;  %1326 = vmatpush.msra.mxu1 %v8804_v0 }
 0x117   :  { %v875_v11 = vpop.f32.mrf.mxu2  ;;  %2453 = vmatpush.msrb.mxu2 %v8108_v1  ;;  %v8819_v1 = vld [vmem:[%s15983_s1 + $0x80] sm:$0xff] }
 0x118   :  { %v8789_v60 = vadd.f32 %v875_v11, %v403_v24  ;;  %v1036_v58 = vpop.f32.mrf.mxu3  ;;  %v409_v32 = vpop.f32.mrf.mxu0  ;;  %1165 = vmatpush.msrb.mxu0 %v8819_v1  ;;  %2615 = vmatpush.msrb.mxu3 %v8194_v17  ;;  %v126_v11 = vld [vmem:[%s15984_s0 + $0x2e0] sm:$0xff] }
 0x119   :  { %v8794_v14 = vadd.f32 %v1036_v58, %v564_v26  ;;  %v567_v50 = vpop.f32.mrf.mxu1  ;;  %2454 = vmatpush.msrb.mxu2 %v8121_v2  ;;  %v125_v26 = vld [vmem:[%s15984_s0 + $0x2d8] sm:$0xff] }
 0x11a   :  { %16237 = vst [vmem:[#allocation28_spill] sm:$0xff] %v8789_v60  ;;  %2616 = vmatpush.msrb.mxu3 %v8207_v20 }
 0x11b   :  { %16238 = vst [vmem:[#allocation29_spill] sm:$0xff] %v8794_v14  ;;  %6687 = vmatmul.msk.f32.gmra.mxu0 %vm186_vm1, %v124_v63  ;;  %2455 = vmatpush.msrb.mxu2 %v8130_v3  ;;  %v8835_v3 = vld [vmem:[%s15984_s0 + $0x110] sm:$0xff] }
 0x11c   :  { %6735 = vmatmul.msk.f32.gmra.mxu1 %vm186_vm1, %v123_v47  ;;  %6784 = vmatmul.msk.f32.gmra.mxu2 %vm186_vm1, %v8799_v45 }
 0x11d   :  { %6833 = vmatmul.msk.f32.gmra.mxu3 %vm186_vm1, %v8799_v45 }
 0x11f   :  { %v878_v2 = vpop.f32.mrf.mxu2 }
 0x120   :  { %v8824_v10 = vadd.f32 %v878_v2, %v406_v8  ;;  %v1039_v13 = vpop.f32.mrf.mxu3  ;;  %v412_v47 = vpop.f32.mrf.mxu0 }
 0x121   :  { %v8830_v24 = vadd.f32 %v1039_v13, %v567_v50  ;;  %v570_v42 = vpop.f32.mrf.mxu1 }
 0x122   :  { %16239 = vst [vmem:[#allocation30_spill] sm:$0xff] %v8824_v10 }
 0x123   :  { %16240 = vst [vmem:[#allocation31_spill] sm:$0xff] %v8830_v24  ;;  %6688 = vmatmul.msk.f32.gmra.mxu0 %vm186_vm1, %v125_v26 }
 0x124   :  { %6736 = vmatmul.msk.f32.gmra.mxu1 %vm186_vm1, %v124_v63  ;;  %6785 = vmatmul.msk.f32.gmra.mxu2 %vm186_vm1, %v8835_v3  ;;  %v8853_v63 = vld [vmem:[%s15984_s0 + $0x118] sm:$0xff] }
 0x125   :  { %6834 = vmatmul.msk.f32.gmra.mxu3 %vm186_vm1, %v8835_v3 }
 0x127   :  { %v881_v17 = vpop.f32.mrf.mxu2 }
 0x128   :  { %v8843_v20 = vadd.f32 %v881_v17, %v409_v32  ;;  %v1042_v50 = vpop.f32.mrf.mxu3  ;;  %v415_v8 = vpop.f32.mrf.mxu0 }
 0x129   :  { %v8848_v58 = vadd.f32 %v1042_v50, %v570_v42  ;;  %v573_v2 = vpop.f32.mrf.mxu1  ;;  %v127_v50 = vld [vmem:[%s15984_s0 + $0x2e8] sm:$0xff] }
 0x12a   :  { %16241 = vst [vmem:[#allocation32_spill] sm:$0xff] %v8843_v20 }
 0x12b   :  { %16242 = vst [vmem:[#allocation33_spill] sm:$0xff] %v8848_v58  ;;  %6689 = vmatmul.msk.f32.gmra.mxu0 %vm186_vm1, %v126_v11 }
 0x12c   :  { %6737 = vmatmul.msk.f32.gmra.mxu1 %vm186_vm1, %v125_v26  ;;  %6786 = vmatmul.msk.f32.gmra.mxu2 %vm186_vm1, %v8853_v63  ;;  %v8871_v26 = vld [vmem:[%s15984_s0 + $0x120] sm:$0xff] }
 0x12d   :  { %6835 = vmatmul.msk.f32.gmra.mxu3 %vm186_vm1, %v8853_v63 }
 0x12f   :  { %v884_v32 = vpop.f32.mrf.mxu2 }
 0x130   :  { %v8861_v13 = vadd.f32 %v884_v32, %v412_v47  ;;  %v1045_v42 = vpop.f32.mrf.mxu3  ;;  %v418_v17 = vpop.f32.mrf.mxu0 }
 0x131   :  { %v8866_v58 = vadd.f32 %v1045_v42, %v573_v2  ;;  %v576_v20 = vpop.f32.mrf.mxu1 }
 0x132   :  { %16243 = vst [vmem:[#allocation34_spill] sm:$0xff] %v8861_v13 }
 0x133   :  { %16244 = vst [vmem:[#allocation35_spill] sm:$0xff] %v8866_v58  ;;  %6690 = vmatmul.msk.f32.gmra.mxu0 %vm186_vm1, %v127_v50  ;;  %v128_v58 = vld [vmem:[%s15984_s0 + $0x2f0] sm:$0xff] }
 0x134   :  { %6738 = vmatmul.msk.f32.gmra.mxu1 %vm186_vm1, %v126_v11  ;;  %6787 = vmatmul.msk.f32.gmra.mxu2 %vm186_vm1, %v8871_v26  ;;  %v8889_v11 = vld [vmem:[%s15984_s0 + $0x128] sm:$0xff] }
 0x135   :  { %6836 = vmatmul.msk.f32.gmra.mxu3 %vm186_vm1, %v8871_v26 }
 0x137   :  { %v887_v47 = vpop.f32.mrf.mxu2 }
 0x138   :  { %v8879_v32 = vadd.f32 %v887_v47, %v415_v8  ;;  %v1048_v2 = vpop.f32.mrf.mxu3  ;;  %v421_v42 = vpop.f32.mrf.mxu0 }
 0x139   :  { %v8884_v13 = vadd.f32 %v1048_v2, %v576_v20  ;;  %v579_v24 = vpop.f32.mrf.mxu1 }
 0x13a   :  { %16245 = vst [vmem:[#allocation36_spill] sm:$0xff] %v8879_v32 }
 0x13b   :  { %16246 = vst [vmem:[#allocation37_spill] sm:$0xff] %v8884_v13  ;;  %6691 = vmatmul.msk.f32.gmra.mxu0 %vm186_vm1, %v128_v58  ;;  %v129_v13 = vld [vmem:[%s15984_s0 + $0x2f8] sm:$0xff] }
 0x13c   :  { %6739 = vmatmul.msk.f32.gmra.mxu1 %vm186_vm1, %v127_v50  ;;  %6788 = vmatmul.msk.f32.gmra.mxu2 %vm186_vm1, %v8889_v11  ;;  %v8907_v50 = vld [vmem:[%s15984_s0 + $0x130] sm:$0xff] }
 0x13d   :  { %6837 = vmatmul.msk.f32.gmra.mxu3 %vm186_vm1, %v8889_v11 }
 0x13f   :  { %v890_v8 = vpop.f32.mrf.mxu2 }
 0x140   :  { %v8897_v47 = vadd.f32 %v890_v8, %v418_v17  ;;  %v1051_v20 = vpop.f32.mrf.mxu3  ;;  %v424_v2 = vpop.f32.mrf.mxu0 }
 0x141   :  { %v8902_v32 = vadd.f32 %v1051_v20, %v579_v24  ;;  %v582_v10 = vpop.f32.mrf.mxu1 }
 0x142   :  { %16247 = vst [vmem:[#allocation38_spill] sm:$0xff] %v8897_v47 }
 0x143   :  { %16248 = vst [vmem:[#allocation39_spill] sm:$0xff] %v8902_v32  ;;  %6692 = vmatmul.msk.f32.gmra.mxu0 %vm186_vm1, %v129_v13  ;;  %v130_v32 = vld [vmem:[%s15984_s0 + $0x300] sm:$0xff] }
 0x144   :  { %6740 = vmatmul.msk.f32.gmra.mxu1 %vm186_vm1, %v128_v58  ;;  %6789 = vmatmul.msk.f32.gmra.mxu2 %vm186_vm1, %v8907_v50  ;;  %v8925_v58 = vld [vmem:[%s15984_s0 + $0x138] sm:$0xff] }
 0x145   :  { %6838 = vmatmul.msk.f32.gmra.mxu3 %vm186_vm1, %v8907_v50  ;;  %16251 = vst [vmem:[#allocation42_spill] sm:$0xff] %v8925_v58 }
 0x147   :  { %v893_v17 = vpop.f32.mrf.mxu2 }
 0x148   :  { %v8915_v8 = vadd.f32 %v893_v17, %v421_v42  ;;  %v1054_v24 = vpop.f32.mrf.mxu3  ;;  %v427_v20 = vpop.f32.mrf.mxu0 }
 0x149   :  { %v8920_v47 = vadd.f32 %v1054_v24, %v582_v10  ;;  %v585_v14 = vpop.f32.mrf.mxu1 }
 0x14a   :  { %16249 = vst [vmem:[#allocation40_spill] sm:$0xff] %v8915_v8 }
 0x14b   :  { %16250 = vst [vmem:[#allocation41_spill] sm:$0xff] %v8920_v47  ;;  %6693 = vmatmul.msk.f32.gmra.mxu0 %vm186_vm1, %v130_v32  ;;  %v131_v47 = vld [vmem:[%s15984_s0 + $0x308] sm:$0xff] }
 0x14c   :  { %6741 = vmatmul.msk.f32.gmra.mxu1 %vm186_vm1, %v129_v13  ;;  %6790 = vmatmul.msk.f32.gmra.mxu2 %vm186_vm1, %v8925_v58  ;;  %v8943_v13 = vld [vmem:[%s15984_s0 + $0x140] sm:$0xff] }
 0x14d   :  { %6839 = vmatmul.msk.f32.gmra.mxu3 %vm186_vm1, %v8925_v58  ;;  %16254 = vst [vmem:[#allocation45_spill] sm:$0xff] %v8943_v13 }
 0x14f   :  { %v896_v42 = vpop.f32.mrf.mxu2 }
 0x150   :  { %v8933_v17 = vadd.f32 %v896_v42, %v424_v2  ;;  %v1057_v10 = vpop.f32.mrf.mxu3  ;;  %v430_v24 = vpop.f32.mrf.mxu0 }
 0x151   :  { %v8938_v8 = vadd.f32 %v1057_v10, %v585_v14  ;;  %v588_v60 = vpop.f32.mrf.mxu1 }
 0x152   :  { %16252 = vst [vmem:[#allocation43_spill] sm:$0xff] %v8933_v17 }
 0x153   :  { %16253 = vst [vmem:[#allocation44_spill] sm:$0xff] %v8938_v8  ;;  %6694 = vmatmul.msk.f32.gmra.mxu0 %vm186_vm1, %v131_v47  ;;  %v132_v8 = vld [vmem:[%s15984_s0 + $0x310] sm:$0xff] }
 0x154   :  { %6742 = vmatmul.msk.f32.gmra.mxu1 %vm186_vm1, %v130_v32  ;;  %6791 = vmatmul.msk.f32.gmra.mxu2 %vm186_vm1, %v8943_v13  ;;  %v8961_v32 = vld [vmem:[%s15984_s0 + $0x148] sm:$0xff] }
 0x155   :  { %6840 = vmatmul.msk.f32.gmra.mxu3 %vm186_vm1, %v8943_v13  ;;  %16257 = vst [vmem:[#allocation48_spill] sm:$0xff] %v8961_v32 }
 0x157   :  { %v899_v2 = vpop.f32.mrf.mxu2 }
 0x158   :  { %v8951_v42 = vadd.f32 %v899_v2, %v427_v20  ;;  %v1060_v14 = vpop.f32.mrf.mxu3  ;;  %v433_v10 = vpop.f32.mrf.mxu0 }
 0x159   :  { %v8956_v17 = vadd.f32 %v1060_v14, %v588_v60  ;;  %v591_v58 = vpop.f32.mrf.mxu1 }
 0x15a   :  { %16255 = vst [vmem:[#allocation46_spill] sm:$0xff] %v8951_v42 }
 0x15b   :  { %16256 = vst [vmem:[#allocation47_spill] sm:$0xff] %v8956_v17  ;;  %6695 = vmatmul.msk.f32.gmra.mxu0 %vm186_vm1, %v132_v8  ;;  %v133_v17 = vld [vmem:[%s15984_s0 + $0x318] sm:$0xff] }
 0x15c   :  { %6743 = vmatmul.msk.f32.gmra.mxu1 %vm186_vm1, %v131_v47  ;;  %6792 = vmatmul.msk.f32.gmra.mxu2 %vm186_vm1, %v8961_v32  ;;  %v8979_v47 = vld [vmem:[%s15984_s0 + $0x150] sm:$0xff] }
 0x15d   :  { %6841 = vmatmul.msk.f32.gmra.mxu3 %vm186_vm1, %v8961_v32  ;;  %16260 = vst [vmem:[#allocation51_spill] sm:$0xff] %v8979_v47 }
 0x15f   :  { %v902_v20 = vpop.f32.mrf.mxu2 }
 0x160   :  { %v8969_v2 = vadd.f32 %v902_v20, %v430_v24  ;;  %v1063_v60 = vpop.f32.mrf.mxu3  ;;  %v436_v14 = vpop.f32.mrf.mxu0 }
 0x161   :  { %v8974_v42 = vadd.f32 %v1063_v60, %v591_v58  ;;  %v594_v13 = vpop.f32.mrf.mxu1 }
 0x162   :  { %16258 = vst [vmem:[#allocation49_spill] sm:$0xff] %v8969_v2 }
 0x163   :  { %16259 = vst [vmem:[#allocation50_spill] sm:$0xff] %v8974_v42  ;;  %6696 = vmatmul.msk.f32.gmra.mxu0 %vm186_vm1, %v133_v17  ;;  %v134_v42 = vld [vmem:[%s15984_s0 + $0x320] sm:$0xff] }
 0x164   :  { %6744 = vmatmul.msk.f32.gmra.mxu1 %vm186_vm1, %v132_v8  ;;  %6793 = vmatmul.msk.f32.gmra.mxu2 %vm186_vm1, %v8979_v47  ;;  %v8997_v8 = vld [vmem:[%s15984_s0 + $0x158] sm:$0xff] }
 0x165   :  { %6842 = vmatmul.msk.f32.gmra.mxu3 %vm186_vm1, %v8979_v47  ;;  %v9012_v47 = vld [vmem:[%s15984_s0 + $0x160] sm:$0xff] }
 0x166   :  { %16265 = vst [vmem:[#allocation56_spill] sm:$0xff] %v9012_v47 }
 0x167   :  { %v905_v24 = vpop.f32.mrf.mxu2 }
 0x168   :  { %v8987_v20 = vadd.f32 %v905_v24, %v433_v10  ;;  %v1066_v58 = vpop.f32.mrf.mxu3  ;;  %v439_v60 = vpop.f32.mrf.mxu0 }
 0x169   :  { %v8992_v2 = vadd.f32 %v1066_v58, %v594_v13  ;;  %v597_v32 = vpop.f32.mrf.mxu1 }
 0x16a   :  { %16261 = vst [vmem:[#allocation52_spill] sm:$0xff] %v8987_v20 }
 0x16b   :  { %16262 = vst [vmem:[#allocation53_spill] sm:$0xff] %v8992_v2  ;;  %6697 = vmatmul.msk.f32.gmra.mxu0 %vm186_vm1, %v134_v42 }
 0x16c   :  { %6745 = vmatmul.msk.f32.gmra.mxu1 %vm186_vm1, %v133_v17  ;;  %6794 = vmatmul.msk.f32.gmra.mxu2 %vm186_vm1, %v8997_v8 }
 0x16d   :  { %6843 = vmatmul.msk.f32.gmra.mxu3 %vm186_vm1, %v8997_v8 }
 0x16f   :  { %v908_v10 = vpop.f32.mrf.mxu2 }
 0x170   :  { %v9005_v24 = vadd.f32 %v908_v10, %v436_v14  ;;  %v1069_v13 = vpop.f32.mrf.mxu3  ;;  %v442_v58 = vpop.f32.mrf.mxu0 }
 0x171   :  { %v9007_v2 = vadd.f32 %v1069_v13, %v597_v32  ;;  %v600_v20 = vpop.f32.mrf.mxu1 }
 0x172   :  { %16263 = vst [vmem:[#allocation54_spill] sm:$0xff] %v9005_v24  ;;  %v9028_v24 = vld [vmem:[%s15984_s0 + $0x168] sm:$0xff] }
 0x173   :  { %16264 = vst [vmem:[#allocation55_spill] sm:$0xff] %v9007_v2  ;;  %6849 = vmatmul.msk.f32.vlgmr.msrb.gmra.mxu0 %vm186_vm1, %v8272_v33 }
 0x174   :  { %6746 = vmatmul.msk.f32.gmra.mxu1 %vm186_vm1, %v134_v42  ;;  %6795 = vmatmul.msk.f32.gmra.mxu2 %vm186_vm1, %v9012_v47  ;;  %16268 = vst [vmem:[#allocation59_spill] sm:$0xff] %v9028_v24  ;;  %v184_v42 = vld [vmem:[%s15983_s1 + $0x130] sm:$0xf] }
 0x175   :  { %6844 = vmatmul.msk.f32.gmra.mxu3 %vm186_vm1, %v9012_v47  ;;  %v185_v47 = vld [vmem:[%s15983_s1 + $0x138] sm:$0xf]  ;;  %7044 = vmatpush.msk.msra.mxu0 %vm331_vm0, %v184_v42 }
 0x176   :  { %7093 = vmatpush.msk.msrb.mxu1 %vm331_vm0, %v185_v47 }
 0x177   :  { %v911_v17 = vpop.f32.mrf.mxu2 }
 0x178   :  { %v9021_v32 = vadd.f32 %v911_v17, %v439_v60  ;;  %v1072_v14 = vpop.f32.mrf.mxu3  ;;  %v445_v10 = vpop.f32.mrf.mxu0 }
 0x179   :  { %v9023_v13 = vadd.f32 %v1072_v14, %v600_v20  ;;  %v603_v2 = vpop.f32.mrf.mxu1  ;;  %v7669_v20 = vld [vmem:[%s15984_s0 + $0x328] sm:$0xff] }
 0x17a   :  { %16266 = vst [vmem:[#allocation57_spill] sm:$0xff] %v9021_v32  ;;  %v9055_v32 = vld [vmem:[%s15984_s0 + $0x170] sm:$0xff] }
 0x17b   :  { %16267 = vst [vmem:[#allocation58_spill] sm:$0xff] %v9023_v13  ;;  %6850 = vmatmul.msk.f32.gmra.mxu0 %vm186_vm1, %v8287_v35 }
 0x17c   :  { %6747 = vmatmul.msk.f32.gmra.mxu1 %vm186_vm1, %v7669_v20  ;;  %6796 = vmatmul.msk.f32.gmra.mxu2 %vm186_vm1, %v9028_v24  ;;  %v7670_v20 = vld [vmem:[%s15984_s0 + $0x330] sm:$0xff] }
 0x17d   :  { %6845 = vmatmul.msk.f32.gmra.mxu3 %vm186_vm1, %v9028_v24  ;;  %v9074_v24 = vld [vmem:[%s15984_s0 + $0x178] sm:$0xff] }
 0x17f   :  { %v914_v60 = vpop.f32.mrf.mxu2 }
 0x180   :  { %v9048_v17 = vadd.f32 %v914_v60, %v442_v58  ;;  %v1075_v14 = vpop.f32.mrf.mxu3  ;;  %v448_v47 = vpop.f32.mrf.mxu0 }
 0x181   :  { %v9050_v42 = vadd.f32 %v1075_v14, %v603_v2  ;;  %v606_v13 = vpop.f32.mrf.mxu1 }
 0x182   :  { %16269 = vst [vmem:[#allocation60_spill] sm:$0xff] %v9048_v17 }
 0x183   :  { %16270 = vst [vmem:[#allocation61_spill] sm:$0xff] %v9050_v42  ;;  %6851 = vmatmul.msk.f32.gmra.mxu0 %vm186_vm1, %v8301_v37 }
 0x184   :  { %6748 = vmatmul.msk.f32.gmra.mxu1 %vm186_vm1, %v7670_v20  ;;  %6797 = vmatmul.msk.f32.gmra.mxu2 %vm186_vm1, %v9055_v32  ;;  %v7671_v20 = vld [vmem:[%s15984_s0 + $0x338] sm:$0xff] }
 0x185   :  { %6846 = vmatmul.msk.f32.gmra.mxu3 %vm186_vm1, %v9055_v32 }
 0x187   :  { %v917_v2 = vpop.f32.mrf.mxu2 }
 0x188   :  { %v9067_v58 = vadd.f32 %v917_v2, %v445_v10  ;;  %v1078_v60 = vpop.f32.mrf.mxu3  ;;  %v451_v14 = vpop.f32.mrf.mxu0 }
 0x189   :  { %v9069_v42 = vadd.f32 %v1078_v60, %v606_v13  ;;  %v609_v17 = vpop.f32.mrf.mxu1 }
 0x18b   :  { %16271 = vst [vmem:[#allocation62_spill] sm:$0xff] %v9069_v42  ;;  %6852 = vmatmul.msk.f32.gmra.mxu0 %vm186_vm1, %v8315_v39 }
 0x18c   :  { %6749 = vmatmul.msk.f32.gmra.mxu1 %vm186_vm1, %v7671_v20  ;;  %6798 = vmatmul.msk.f32.gmra.mxu2 %vm186_vm1, %v9074_v24 }
 0x18d   :  { %6847 = vmatmul.msk.f32.gmra.mxu3 %vm186_vm1, %v9074_v24 }
 0x18f   :  { %v920_v10 = vpop.f32.mrf.mxu2 }
 0x190   :  { %v9086_v13 = vadd.f32 %v920_v10, %v448_v47  ;;  %v1081_v2 = vpop.f32.mrf.mxu3  ;;  %v454_v60 = vpop.f32.mrf.mxu0  ;;  %v7672_v47 = vld [vmem:[%s15983_s1 + $0xb0] sm:$0xf] }
 0x191   :  { %v9088_v42 = vadd.f32 %v1081_v2, %v609_v17  ;;  %v612_v39 = vpop.f32.mrf.mxu1  ;;  %v7673_v17 = vld [vmem:[%s15983_s1 + $0xb8] sm:$0xf] }
 0x193   :  { %6853 = vmatmul.msk.f32.gmra.mxu0 %vm186_vm1, %v8329_v41 }
 0x194   :  { %6898 = vmatmul.msk.f32.vlgmr.msra.gmra.mxu1 %vm186_vm1, %v8272_v33  ;;  %6947 = vmatmul.msk.f32.vlgmr.msra.gmra.mxu2 %vm186_vm1, %v8256_v30 }
 0x195   :  { %6996 = vmatmul.msk.f32.vlgmr.msra.gmra.mxu3 %vm186_vm1, %v8256_v30  ;;  %7338 = vmatpush.msk.msra.mxu2 %vm331_vm0, %v7672_v47 }
 0x196   :  { %7387 = vmatpush.msk.msra.mxu3 %vm331_vm0, %v7673_v17 }
 0x197   :  { %v923_v41 = vpop.f32.mrf.mxu2  ;;  %3097 = vmatpush.msra.mxu2 %v8380_v49  ;;  %v7674_v49 = vld [vmem:[%s15984_s0 + $0x1e8] sm:$0xff] }
 0x198   :  { %v9107_v33 = vadd.f32 %v923_v41, %v451_v14  ;;  %v1084_v20 = vpop.f32.mrf.mxu3  ;;  %v457_v10 = vpop.f32.mrf.mxu0  ;;  %3258 = vmatpush.msra.mxu3 %v8346_v44 }
 0x199   :  { %v9110_v30 = vadd.f32 %v1084_v20, %v612_v39  ;;  %v615_v2 = vpop.f32.mrf.mxu1  ;;  %3098 = vmatpush.msra.mxu2 %v8596_v38 }
 0x19a   :  { %3259 = vmatpush.msra.mxu3 %v8566_v19 }
 0x19b   :  { %6854 = vmatmul.msk.f32.gmra.mxu0 %vm186_vm1, %v8355_v46  ;;  %3099 = vmatpush.msra.mxu2 %v8819_v1 }
 0x19c   :  { %6899 = vmatmul.msk.f32.gmra.mxu1 %vm186_vm1, %v8287_v35  ;;  %6948 = vmatmul.msk.f32.gmra.mxu2 %vm186_vm1, %v7674_v49  ;;  %v7675_v35 = vld [vmem:[%s15984_s0 + $0x1f0] sm:$0xff] }
 0x19d   :  { %6997 = vmatmul.msk.f32.gmra.mxu3 %vm186_vm1, %v7674_v49 }
 0x19e   :  { %3260 = vmatpush.msra.mxu3 %v8804_v0 }
 0x19f   :  { %v926_v44 = vpop.f32.mrf.mxu2 }
 0x1a0   :  { %v9125_v19 = vadd.f32 %v926_v44, %v454_v60  ;;  %v1087_v38 = vpop.f32.mrf.mxu3  ;;  %v460_v46 = vpop.f32.mrf.mxu0 }
 0x1a1   :  { %v9127_v14 = vadd.f32 %v1087_v38, %v615_v2  ;;  %v618_v1 = vpop.f32.mrf.mxu1  ;;  %v9162_v38 = vld [vmem:[%s15984_s0 + $0x40] sm:$0xff] }
 0x1a3   :  { %6855 = vmatmul.msk.f32.gmra.mxu0 %vm186_vm1, %v8369_v48  ;;  %v7677_v48 = vld [vmem:[%s15984_s0 + $0x1f8] sm:$0xff] }
 0x1a4   :  { %6900 = vmatmul.msk.f32.gmra.mxu1 %vm186_vm1, %v8301_v37  ;;  %6949 = vmatmul.msk.f32.gmra.mxu2 %vm186_vm1, %v7675_v35  ;;  %v7676_v37 = vld [vmem:[%s15984_s0 + $0x38] sm:$0xff] }
 0x1a5   :  { %6998 = vmatmul.msk.f32.gmra.mxu3 %vm186_vm1, %v7675_v35 }
 0x1a7   :  { %v929_v0 = vpop.f32.mrf.mxu2 }
 0x1a8   :  { %v9138_v60 = vadd.f32 %v929_v0, %v457_v10  ;;  %v1090_v39 = vpop.f32.mrf.mxu3  ;;  %v463_v47 = vpop.f32.mrf.mxu0 }
 0x1a9   :  { %v9140_v17 = vadd.f32 %v1090_v39, %v618_v1  ;;  %v621_v41 = vpop.f32.mrf.mxu1 }
 0x1ab   :  { %6856 = vmatmul.msk.f32.gmra.mxu0 %vm186_vm1, %v8389_v51 }
 0x1ac   :  { %6901 = vmatmul.msk.f32.gmra.mxu1 %vm186_vm1, %v7676_v37  ;;  %6950 = vmatmul.msk.f32.gmra.mxu2 %vm186_vm1, %v7677_v48  ;;  %v9180_v37 = vld [vmem:[%s15984_s0 + $0x48] sm:$0xff] }
 0x1ad   :  { %6999 = vmatmul.msk.f32.gmra.mxu3 %vm186_vm1, %v7677_v48 }
 0x1af   :  { %v932_v20 = vpop.f32.mrf.mxu2 }
 0x1b0   :  { %v9153_v10 = vadd.f32 %v932_v20, %v460_v46  ;;  %v1093_v2 = vpop.f32.mrf.mxu3  ;;  %v466_v49 = vpop.f32.mrf.mxu0  ;;  %v7679_v46 = vld [vmem:[%s15984_s0 + $0x200] sm:$0xff] }
 0x1b1   :  { %v9155_v51 = vadd.f32 %v1093_v2, %v621_v41  ;;  %v624_v44 = vpop.f32.mrf.mxu1 }
 0x1b3   :  { %6857 = vmatmul.msk.f32.gmra.mxu0 %vm186_vm1, %v8403_v53 }
 0x1b4   :  { %6902 = vmatmul.msk.f32.gmra.mxu1 %vm186_vm1, %v9162_v38  ;;  %6951 = vmatmul.msk.f32.gmra.mxu2 %vm186_vm1, %v7679_v46 }
 0x1b5   :  { %7000 = vmatmul.msk.f32.gmra.mxu3 %vm186_vm1, %v7679_v46 }
 0x1b7   :  { %v935_v1 = vpop.f32.mrf.mxu2 }
 0x1b8   :  { %v9171_v35 = vadd.f32 %v935_v1, %v463_v47  ;;  %v1096_v53 = vpop.f32.mrf.mxu3  ;;  %v469_v0 = vpop.f32.mrf.mxu0  ;;  %v7681_v47 = vld [vmem:[%s15984_s0 + $0x208] sm:$0xff]  ;;  %v9198_v1 = vld [vmem:[%s15984_s0 + $0x50] sm:$0xff] }
 0x1b9   :  { %v9173_v39 = vadd.f32 %v1096_v53, %v624_v44  ;;  %v627_v41 = vpop.f32.mrf.mxu1 }
 0x1bb   :  { %16272 = vst [vmem:[#allocation63_spill] sm:$0xff] %v9173_v39  ;;  %6858 = vmatmul.msk.f32.gmra.mxu0 %vm186_vm1, %v8417_v55  ;;  %v9282_v39 = vld [vmem:[%s15984_s0 + $0x70] sm:$0xff] }
 0x1bc   :  { %6903 = vmatmul.msk.f32.gmra.mxu1 %vm186_vm1, %v9180_v37  ;;  %6952 = vmatmul.msk.f32.gmra.mxu2 %vm186_vm1, %v7681_v47 }
 0x1bd   :  { %7001 = vmatmul.msk.f32.gmra.mxu3 %vm186_vm1, %v7681_v47 }
 0x1bf   :  { %v938_v48 = vpop.f32.mrf.mxu2 }
 0x1c0   :  { %v9189_v20 = vadd.f32 %v938_v48, %v466_v49  ;;  %v1099_v55 = vpop.f32.mrf.mxu3  ;;  %v472_v2 = vpop.f32.mrf.mxu0  ;;  %v7683_v49 = vld [vmem:[%s15984_s0 + $0x210] sm:$0xff] }
 0x1c1   :  { %v9191_v44 = vadd.f32 %v1099_v55, %v627_v41  ;;  %v630_v46 = vpop.f32.mrf.mxu1 }
 0x1c2   :  { %16273 = vst [vmem:[#allocation64_spill] sm:$0xff] %v9189_v20  ;;  %v9255_v20 = vld [vmem:[%s15983_s1 + $0x128] sm:$0xff] }
 0x1c3   :  { %16274 = vst [vmem:[#allocation65_spill] sm:$0xff] %v9191_v44  ;;  %6859 = vmatmul.msk.f32.gmra.mxu0 %vm186_vm1, %v8431_v57  ;;  %v9216_v44 = vld [vmem:[%s15984_s0 + $0x58] sm:$0xff]  ;;  %2196 = vmatpush.msrb.mxu1 %v9255_v20 }
 0x1c4   :  { %6904 = vmatmul.msk.f32.gmra.mxu1 %vm186_vm1, %v9198_v1  ;;  %6953 = vmatmul.msk.f32.gmra.mxu2 %vm186_vm1, %v7683_v49 }
 0x1c5   :  { %7002 = vmatmul.msk.f32.gmra.mxu3 %vm186_vm1, %v7683_v49 }
 0x1c7   :  { %v941_v53 = vpop.f32.mrf.mxu2 }
 0x1c8   :  { %v9207_v41 = vadd.f32 %v941_v53, %v469_v0  ;;  %v1102_v57 = vpop.f32.mrf.mxu3  ;;  %v475_v47 = vpop.f32.mrf.mxu0  ;;  %v7685_v0 = vld [vmem:[%s15984_s0 + $0x218] sm:$0xff] }
 0x1c9   :  { %v9209_v48 = vadd.f32 %v1102_v57, %v630_v46  ;;  %v633_v55 = vpop.f32.mrf.mxu1 }
 0x1ca   :  { %16275 = vst [vmem:[#allocation66_spill] sm:$0xff] %v9207_v41  ;;  %v9234_v41 = vld [vmem:[%s15984_s0 + $0x60] sm:$0xff] }
 0x1cb   :  { %16276 = vst [vmem:[#allocation67_spill] sm:$0xff] %v9209_v48  ;;  %6860 = vmatmul.msk.f32.gmra.mxu0 %vm186_vm1, %v8447_v61 }
 0x1cc   :  { %6905 = vmatmul.msk.f32.gmra.mxu1 %vm186_vm1, %v9216_v44  ;;  %6954 = vmatmul.msk.f32.gmra.mxu2 %vm186_vm1, %v7685_v0 }
 0x1cd   :  { %7003 = vmatmul.msk.f32.gmra.mxu3 %vm186_vm1, %v7685_v0 }
 0x1cf   :  { %v944_v46 = vpop.f32.mrf.mxu2 }
 0x1d0   :  { %v9225_v49 = vadd.f32 %v944_v46, %v472_v2  ;;  %v1105_v61 = vpop.f32.mrf.mxu3  ;;  %v478_v53 = vpop.f32.mrf.mxu0  ;;  %v7687_v2 = vld [vmem:[%s15984_s0 + $0x220] sm:$0xff] }
 0x1d1   :  { %v9227_v57 = vadd.f32 %v1105_v61, %v633_v55  ;;  %v636_v48 = vpop.f32.mrf.mxu1 }
 0x1d2   :  { %16277 = vst [vmem:[#allocation68_spill] sm:$0xff] %v9225_v49  ;;  %v9250_v49 = vld [vmem:[%s15983_s1 + $0x120] sm:$0xff] }
 0x1d3   :  { %16278 = vst [vmem:[#allocation69_spill] sm:$0xff] %v9227_v57  ;;  %6861 = vmatmul.msk.f32.gmra.mxu0 %vm186_vm1, %v8465_v7 }
 0x1d4   :  { %6906 = vmatmul.msk.f32.gmra.mxu1 %vm186_vm1, %v9234_v41  ;;  %6955 = vmatmul.msk.f32.gmra.mxu2 %vm186_vm1, %v7687_v2 }
 0x1d5   :  { %7004 = vmatmul.msk.f32.gmra.mxu3 %vm186_vm1, %v7687_v2  ;;  %2035 = vmatpush.msra.mxu0 %v9250_v49 }
 0x1d7   :  { %v947_v55 = vpop.f32.mrf.mxu2 }
 0x1d8   :  { %v9243_v0 = vadd.f32 %v947_v55, %v475_v47  ;;  %v1108_v7 = vpop.f32.mrf.mxu3  ;;  %v481_v46 = vpop.f32.mrf.mxu0  ;;  %v9264_v47 = vld [vmem:[%s15984_s0 + $0x68] sm:$0xff] }
 0x1d9   :  { %v9245_v61 = vadd.f32 %v1108_v7, %v636_v48  ;;  %v639_v57 = vpop.f32.mrf.mxu1  ;;  %v7689_v48 = vld [vmem:[%s15984_s0 + $0x228] sm:$0xff] }
 0x1da   :  { %16279 = vst [vmem:[#allocation70_spill] sm:$0xff] %v9243_v0 }
 0x1db   :  { %16280 = vst [vmem:[#allocation71_spill] sm:$0xff] %v9245_v61  ;;  %6862 = vmatmul.msk.f32.gmra.mxu0 %vm186_vm1, %v8483_v18 }
 0x1dc   :  { %6907 = vmatmul.msk.f32.gmra.mxu1 %vm186_vm1, %v9264_v47  ;;  %6956 = vmatmul.msk.f32.gmra.mxu2 %vm186_vm1, %v7689_v48 }
 0x1dd   :  { %7005 = vmatmul.msk.f32.gmra.mxu3 %vm186_vm1, %v7689_v48 }
 0x1df   :  { %v950_v2 = vpop.f32.mrf.mxu2 }
 0x1e0   :  { %v9273_v55 = vadd.f32 %v950_v2, %v478_v53  ;;  %v1111_v18 = vpop.f32.mrf.mxu3  ;;  %v484_v7 = vpop.f32.mrf.mxu0  ;;  %v7691_v53 = vld [vmem:[%s15984_s0 + $0x230] sm:$0xff] }
 0x1e1   :  { %v9275_v61 = vadd.f32 %v1111_v18, %v639_v57  ;;  %v642_v0 = vpop.f32.mrf.mxu1 }
 0x1e2   :  { %16281 = vst [vmem:[#allocation72_spill] sm:$0xff] %v9273_v55  ;;  %v9300_v55 = vld [vmem:[%s15984_s0 + $0x78] sm:$0xff] }
 0x1e3   :  { %16282 = vst [vmem:[#allocation73_spill] sm:$0xff] %v9275_v61  ;;  %6863 = vmatmul.msk.f32.gmra.mxu0 %vm186_vm1, %v8501_v27 }
 0x1e4   :  { %6908 = vmatmul.msk.f32.gmra.mxu1 %vm186_vm1, %v9282_v39  ;;  %6957 = vmatmul.msk.f32.gmra.mxu2 %vm186_vm1, %v7691_v53 }
 0x1e5   :  { %7006 = vmatmul.msk.f32.gmra.mxu3 %vm186_vm1, %v7691_v53 }
 0x1e7   :  { %v953_v57 = vpop.f32.mrf.mxu2 }
 0x1e8   :  { %v9291_v48 = vadd.f32 %v953_v57, %v481_v46  ;;  %v1114_v27 = vpop.f32.mrf.mxu3  ;;  %v487_v2 = vpop.f32.mrf.mxu0  ;;  %v7693_v46 = vld [vmem:[%s15984_s0 + $0x238] sm:$0xff] }
 0x1e9   :  { %v9293_v18 = vadd.f32 %v1114_v27, %v642_v0  ;;  %v645_v61 = vpop.f32.mrf.mxu1 }
 0x1ea   :  { %16283 = vst [vmem:[#allocation74_spill] sm:$0xff] %v9291_v48  ;;  %v9318_v48 = vld [vmem:[%s15984_s0 + $0x80] sm:$0xff] }
 0x1eb   :  { %16284 = vst [vmem:[#allocation75_spill] sm:$0xff] %v9293_v18  ;;  %6864 = vmatmul.msk.f32.gmra.mxu0 %vm186_vm1, %v8519_v40 }
 0x1ec   :  { %6909 = vmatmul.msk.f32.gmra.mxu1 %vm186_vm1, %v9300_v55  ;;  %6958 = vmatmul.msk.f32.gmra.mxu2 %vm186_vm1, %v7693_v46 }
 0x1ed   :  { %7007 = vmatmul.msk.f32.gmra.mxu3 %vm186_vm1, %v7693_v46 }
 0x1ef   :  { %v956_v0 = vpop.f32.mrf.mxu2 }
 0x1f0   :  { %v9309_v53 = vadd.f32 %v956_v0, %v484_v7  ;;  %v1117_v40 = vpop.f32.mrf.mxu3  ;;  %v1167_v57 = vpop.f32.mrf.mxu0  ;;  %v7695_v7 = vld [vmem:[%s15984_s0 + $0x240] sm:$0xff] }
 0x1f1   :  { %v9311_v27 = vadd.f32 %v1117_v40, %v645_v61  ;;  %v648_v18 = vpop.f32.mrf.mxu1 }
 0x1f2   :  { %16285 = vst [vmem:[#allocation76_spill] sm:$0xff] %v9309_v53  ;;  %v9336_v53 = vld [vmem:[%s15984_s0 + $0x88] sm:$0xff] }
 0x1f3   :  { %16286 = vst [vmem:[#allocation77_spill] sm:$0xff] %v9311_v27  ;;  %6865 = vmatmul.msk.f32.gmra.mxu0 %vm186_vm1, %v8537_v56 }
 0x1f4   :  { %6910 = vmatmul.msk.f32.gmra.mxu1 %vm186_vm1, %v9318_v48  ;;  %6959 = vmatmul.msk.f32.gmra.mxu2 %vm186_vm1, %v7695_v7  ;;  %16289 = vst [vmem:[#allocation80_spill] sm:$0xff] %v9336_v53 }
 0x1f5   :  { %7008 = vmatmul.msk.f32.gmra.mxu3 %vm186_vm1, %v7695_v7 }
 0x1f7   :  { %v959_v61 = vpop.f32.mrf.mxu2 }
 0x1f8   :  { %v9327_v46 = vadd.f32 %v959_v61, %v487_v2  ;;  %v1120_v56 = vpop.f32.mrf.mxu3  ;;  %v1170_v0 = vpop.f32.mrf.mxu0  ;;  %v7697_v2 = vld [vmem:[%s15984_s0 + $0x248] sm:$0xff] }
 0x1f9   :  { %v9329_v40 = vadd.f32 %v1120_v56, %v648_v18  ;;  %v651_v27 = vpop.f32.mrf.mxu1 }
 0x1fa   :  { %16287 = vst [vmem:[#allocation78_spill] sm:$0xff] %v9327_v46 }
 0x1fb   :  { %16288 = vst [vmem:[#allocation79_spill] sm:$0xff] %v9329_v40  ;;  %6866 = vmatmul.msk.f32.gmra.mxu0 %vm186_vm1, %v8561_v16  ;;  %v7698_v40 = vld [vmem:[%s15984_s0 + $0x90] sm:$0xff] }
 0x1fc   :  { %6911 = vmatmul.msk.f32.gmra.mxu1 %vm186_vm1, %v9336_v53  ;;  %6960 = vmatmul.msk.f32.gmra.mxu2 %vm186_vm1, %v7697_v2 }
 0x1fd   :  { %7009 = vmatmul.msk.f32.gmra.mxu3 %vm186_vm1, %v7697_v2  ;;  %v7699_v2 = vld [vmem:[%s15984_s0 + $0x250] sm:$0xff] }
 0x1ff   :  { %v9345_v18 = vpop.f32.mrf.mxu2 }
 0x200   :  { %16290 = vst [vmem:[#allocation81_spill] sm:$0xff] %v9345_v18  ;;  %v1123_v7 = vpop.f32.mrf.mxu3  ;;  %v1173_v16 = vpop.f32.mrf.mxu0 }
 0x201   :  { %v9347_v61 = vadd.f32 %v1123_v7, %v651_v27  ;;  %v654_v56 = vpop.f32.mrf.mxu1 }
 0x203   :  { %16291 = vst [vmem:[#allocation82_spill] sm:$0xff] %v9347_v61  ;;  %6867 = vmatmul.msk.f32.gmra.mxu0 %vm186_vm1, %v8585_v34 }
 0x204   :  { %6912 = vmatmul.msk.f32.gmra.mxu1 %vm186_vm1, %v7698_v40  ;;  %6961 = vmatmul.msk.f32.gmra.mxu2 %vm186_vm1, %v7699_v2  ;;  %v7700_v40 = vld [vmem:[%s15984_s0 + $0x98] sm:$0xff] }
 0x205   :  { %7010 = vmatmul.msk.f32.gmra.mxu3 %vm186_vm1, %v7699_v2  ;;  %v7701_v2 = vld [vmem:[%s15984_s0 + $0x258] sm:$0xff] }
 0x207   :  { %v9360_v27 = vpop.f32.mrf.mxu2 }
 0x208   :  { %16292 = vst [vmem:[#allocation83_spill] sm:$0xff] %v9360_v27  ;;  %v1126_v7 = vpop.f32.mrf.mxu3  ;;  %v1176_v61 = vpop.f32.mrf.mxu0 }
 0x209   :  { %v9362_v18 = vadd.f32 %v1126_v7, %v654_v56  ;;  %v657_v34 = vpop.f32.mrf.mxu1 }
 0x20b   :  { %16293 = vst [vmem:[#allocation84_spill] sm:$0xff] %v9362_v18  ;;  %6868 = vmatmul.msk.f32.gmra.mxu0 %vm186_vm1, %v8609_v4 }
 0x20c   :  { %6913 = vmatmul.msk.f32.gmra.mxu1 %vm186_vm1, %v7700_v40  ;;  %6962 = vmatmul.msk.f32.gmra.mxu2 %vm186_vm1, %v7701_v2  ;;  %v7702_v40 = vld [vmem:[%s15984_s0 + $0xa0] sm:$0xff] }
 0x20d   :  { %7011 = vmatmul.msk.f32.gmra.mxu3 %vm186_vm1, %v7701_v2  ;;  %v7703_v2 = vld [vmem:[%s15984_s0 + $0x260] sm:$0xff] }
 0x20f   :  { %v9375_v56 = vpop.f32.mrf.mxu2 }
 0x210   :  { %16294 = vst [vmem:[#allocation85_spill] sm:$0xff] %v9375_v56  ;;  %v1129_v7 = vpop.f32.mrf.mxu3  ;;  %v9377_v18 = vpop.f32.mrf.mxu0 }
 0x211   :  { %v9379_v4 = vadd.f32 %v1129_v7, %v657_v34  ;;  %v1328_v27 = vpop.f32.mrf.mxu1  ;;  %v1472_v34 = vadd.f32 %v1167_v57, %v8473_v9  ;;  %v7705_v9 = vld [vmem:[%s15984_s0 + $0x268] sm:$0xff] }
 0x212   :  { %v1473_v7 = vadd.f32 %v1328_v27, %v8478_v15  ;;  %v1474_v15 = vadd.f32 %v1170_v0, %v8491_v21  ;;  %v7707_v21 = vld [vmem:[%s15984_s0 + $0x270] sm:$0xff] }
 0x213   :  { %16295 = vst [vmem:[#allocation86_spill] sm:$0xff] %v9379_v4  ;;  %6869 = vmatmul.msk.f32.gmra.mxu0 %vm186_vm1, %v8627_v28 }
 0x214   :  { %6914 = vmatmul.msk.f32.gmra.mxu1 %vm186_vm1, %v7702_v40  ;;  %6963 = vmatmul.msk.f32.gmra.mxu2 %vm186_vm1, %v7703_v2 }
 0x215   :  { %7012 = vmatmul.msk.f32.gmra.mxu3 %vm186_vm1, %v7703_v2  ;;  %v7704_v2 = vld [vmem:[%s15984_s0 + $0xa8] sm:$0xff] }
 0x217   :  { %v1603_v4 = vpop.f32.mrf.mxu2 }
 0x218   :  { %v9394_v28 = vadd.f32 %v1603_v4, %v1472_v34  ;;  %v1764_v56 = vpop.f32.mrf.mxu3  ;;  %v9396_v46 = vpop.f32.mrf.mxu0 }
 0x219   :  { %v9398_v53 = vadd.f32 %v1764_v56, %v1473_v7  ;;  %v1331_v40 = vpop.f32.mrf.mxu1 }
 0x21a   :  { %v1475_v57 = vadd.f32 %v1331_v40, %v8496_v25  ;;  %v1476_v25 = vadd.f32 %v1173_v16, %v8509_v29  ;;  %v7709_v29 = vld [vmem:[%s15984_s0 + $0x278] sm:$0xff] }
 0x21b   :  { %6870 = vmatmul.msk.f32.gmra.mxu0 %vm186_vm1, %v8645_v54 }
 0x21c   :  { %6915 = vmatmul.msk.f32.gmra.mxu1 %vm186_vm1, %v7704_v2  ;;  %6964 = vmatmul.msk.f32.gmra.mxu2 %vm186_vm1, %v7705_v9  ;;  %v7706_v2 = vld [vmem:[%s15984_s0 + $0xb0] sm:$0xff] }
 0x21d   :  { %7013 = vmatmul.msk.f32.gmra.mxu3 %vm186_vm1, %v7705_v9 }
 0x21f   :  { %v1606_v27 = vpop.f32.mrf.mxu2 }
 0x220   :  { %v9413_v54 = vadd.f32 %v1606_v27, %v1474_v15  ;;  %v1767_v56 = vpop.f32.mrf.mxu3  ;;  %v9415_v4 = vpop.f32.mrf.mxu0 }
 0x221   :  { %v9417_v34 = vadd.f32 %v1767_v56, %v1475_v57  ;;  %v1334_v7 = vpop.f32.mrf.mxu1  ;;  %v7708_v56 = vld [vmem:[%s15984_s0 + $0xb8] sm:$0xff] }
 0x222   :  { %v1477_v0 = vadd.f32 %v1334_v7, %v8514_v36  ;;  %v1478_v36 = vadd.f32 %v1176_v61, %v8527_v43  ;;  %v7711_v43 = vld [vmem:[%s15984_s0 + $0x280] sm:$0xff] }
 0x223   :  { %6871 = vmatmul.msk.f32.gmra.mxu0 %vm186_vm1, %v8663_v22 }
 0x224   :  { %6916 = vmatmul.msk.f32.gmra.mxu1 %vm186_vm1, %v7706_v2  ;;  %6965 = vmatmul.msk.f32.gmra.mxu2 %vm186_vm1, %v7707_v21 }
 0x225   :  { %7014 = vmatmul.msk.f32.gmra.mxu3 %vm186_vm1, %v7707_v21 }
 0x227   :  { %v1609_v40 = vpop.f32.mrf.mxu2 }
 0x228   :  { %v9432_v22 = vadd.f32 %v1609_v40, %v1476_v25  ;;  %v1770_v9 = vpop.f32.mrf.mxu3  ;;  %v9434_v15 = vpop.f32.mrf.mxu0  ;;  %v7710_v40 = vld [vmem:[%s15984_s0 + $0xc0] sm:$0xff] }
 0x229   :  { %v9436_v57 = vadd.f32 %v1770_v9, %v1477_v0  ;;  %v1337_v27 = vpop.f32.mrf.mxu1 }
 0x22a   :  { %v1479_v16 = vadd.f32 %v1337_v27, %v8532_v52  ;;  %v1480_v52 = vadd.f32 %v9377_v18, %v8551_v5  ;;  %v9485_v5 = vld [vmem:[%s15983_s1 + $0x118] sm:$0xff]  ;;  %v7713_v18 = vld [vmem:[%s15984_s0 + $0x288] sm:$0xff] }
 0x22b   :  { %6872 = vmatmul.msk.f32.gmra.mxu0 %vm186_vm1, %v8681_v6  ;;  %2197 = vmatpush.msrb.mxu1 %v9485_v5 }
 0x22c   :  { %6917 = vmatmul.msk.f32.gmra.mxu1 %vm186_vm1, %v7708_v56  ;;  %6966 = vmatmul.msk.f32.gmra.mxu2 %vm186_vm1, %v7709_v29 }
 0x22d   :  { %7015 = vmatmul.msk.f32.gmra.mxu3 %vm186_vm1, %v7709_v29 }
 0x22f   :  { %v1612_v7 = vpop.f32.mrf.mxu2 }
 0x230   :  { %v9451_v6 = vadd.f32 %v1612_v7, %v1478_v36  ;;  %v1773_v2 = vpop.f32.mrf.mxu3  ;;  %v9453_v21 = vpop.f32.mrf.mxu0  ;;  %v1482_v7 = vadd.f32 %v9396_v46, %v8575_v23  ;;  %v7715_v23 = vld [vmem:[%s15984_s0 + $0x290] sm:$0xff] }
 0x231   :  { %v9455_v25 = vadd.f32 %v1773_v2, %v1479_v16  ;;  %v1340_v0 = vpop.f32.mrf.mxu1  ;;  %v9480_v16 = vld [vmem:[%s15983_s1 + $0x110] sm:$0xff] }
 0x232   :  { %v1481_v61 = vadd.f32 %v1340_v0, %v8556_v12  ;;  %2036 = vmatpush.msra.mxu0 %v9480_v16  ;;  %v7712_v12 = vld [vmem:[%s15984_s0 + $0xc8] sm:$0xff] }
 0x233   :  { %6873 = vmatmul.msk.f32.gmra.mxu0 %vm186_vm1, %v8699_v62 }
 0x234   :  { %6918 = vmatmul.msk.f32.gmra.mxu1 %vm186_vm1, %v7710_v40  ;;  %6967 = vmatmul.msk.f32.gmra.mxu2 %vm186_vm1, %v7711_v43 }
 0x235   :  { %7016 = vmatmul.msk.f32.gmra.mxu3 %vm186_vm1, %v7711_v43 }
 0x237   :  { %v1615_v62 = vpop.f32.mrf.mxu2 }
 0x238   :  { %v9471_v9 = vadd.f32 %v1615_v62, %v1480_v52  ;;  %v1776_v27 = vpop.f32.mrf.mxu3  ;;  %v9473_v56 = vpop.f32.mrf.mxu0  ;;  %v16296_v62 = vld [vmem:[#allocation21_spill] sm:$0xff] }
 0x239   :  { %v9475_v29 = vadd.f32 %v1776_v27, %v1481_v61  ;;  %v1343_v36 = vpop.f32.mrf.mxu1  ;;  %v7714_v27 = vld [vmem:[%s15984_s0 + $0xd0] sm:$0xff] }
 0x23a   :  { %v1483_v2 = vadd.f32 %v1343_v36, %v8580_v31  ;;  %v16297_v31 = vld [vmem:[#allocation5_spill] sm:$0xff]  ;;  %v16298_v36 = vld [vmem:[#allocation6_spill] sm:$0xff] }
 0x23b   :  { %6874 = vmatmul.msk.f32.gmra.mxu0 %vm186_vm1, %v8717_v59  ;;  %v1484_v46 = vadd.f32 %v9415_v4, %v16297_v31  ;;  %v7717_v4 = vld [vmem:[%s15984_s0 + $0x298] sm:$0xff] }
 0x23c   :  { %6919 = vmatmul.msk.f32.gmra.mxu1 %vm186_vm1, %v7712_v12  ;;  %6968 = vmatmul.msk.f32.gmra.mxu2 %vm186_vm1, %v7713_v18 }
 0x23d   :  { %7017 = vmatmul.msk.f32.gmra.mxu3 %vm186_vm1, %v7713_v18 }
 0x23f   :  { %v1618_v59 = vpop.f32.mrf.mxu2 }
 0x240   :  { %v9503_v0 = vadd.f32 %v1618_v59, %v1482_v7  ;;  %v1779_v40 = vpop.f32.mrf.mxu3  ;;  %v9505_v43 = vpop.f32.mrf.mxu0 }
 0x241   :  { %v9507_v52 = vadd.f32 %v1779_v40, %v1483_v2  ;;  %v1346_v61 = vpop.f32.mrf.mxu1 }
 0x242   :  { %v1485_v12 = vadd.f32 %v1346_v61, %v16298_v36  ;;  %v16302_v61 = vld [vmem:[#allocation7_spill] sm:$0xff] }
 0x243   :  { %6875 = vmatmul.msk.f32.gmra.mxu0 %vm186_vm1, %v16296_v62  ;;  %v1486_v31 = vadd.f32 %v9434_v15, %v16302_v61  ;;  %v7719_v15 = vld [vmem:[%s15984_s0 + $0x2a0] sm:$0xff] }
 0x244   :  { %6920 = vmatmul.msk.f32.gmra.mxu1 %vm186_vm1, %v7714_v27  ;;  %6969 = vmatmul.msk.f32.gmra.mxu2 %vm186_vm1, %v7715_v23  ;;  %v16301_v27 = vld [vmem:[#allocation24_spill] sm:$0xff] }
 0x245   :  { %7018 = vmatmul.msk.f32.gmra.mxu3 %vm186_vm1, %v7715_v23  ;;  %v7716_v23 = vld [vmem:[%s15984_s0 + $0xd8] sm:$0xff] }
 0x247   :  { %v1621_v18 = vpop.f32.mrf.mxu2 }
 0x248   :  { %v9523_v7 = vadd.f32 %v1621_v18, %v1484_v46  ;;  %v1782_v2 = vpop.f32.mrf.mxu3  ;;  %v9525_v59 = vpop.f32.mrf.mxu0  ;;  %v16303_v46 = vld [vmem:[#allocation8_spill] sm:$0xff] }
 0x249   :  { %v9527_v40 = vadd.f32 %v1782_v2, %v1485_v12  ;;  %v1349_v62 = vpop.f32.mrf.mxu1 }
 0x24a   :  { %16299 = vst [vmem:[#allocation21_spill] sm:$0xff] %v9523_v7  ;;  %v1487_v36 = vadd.f32 %v1349_v62, %v16303_v46  ;;  %v16305_v7 = vld [vmem:[#allocation27_spill] sm:$0xff]  ;;  %v16306_v62 = vld [vmem:[#allocation9_spill] sm:$0xff] }
 0x24b   :  { %16300 = vst [vmem:[#allocation5_spill] sm:$0xff] %v9527_v40  ;;  %6876 = vmatmul.msk.f32.gmra.mxu0 %vm186_vm1, %v16301_v27  ;;  %v1488_v61 = vadd.f32 %v9453_v21, %v16306_v62  ;;  %v7721_v21 = vld [vmem:[%s15984_s0 + $0x2a8] sm:$0xff] }
 0x24c   :  { %6921 = vmatmul.msk.f32.gmra.mxu1 %vm186_vm1, %v7716_v23  ;;  %6970 = vmatmul.msk.f32.gmra.mxu2 %vm186_vm1, %v7717_v4 }
 0x24d   :  { %7019 = vmatmul.msk.f32.gmra.mxu3 %vm186_vm1, %v7717_v4  ;;  %v7718_v4 = vld [vmem:[%s15984_s0 + $0xe0] sm:$0xff] }
 0x24f   :  { %v1624_v12 = vpop.f32.mrf.mxu2 }
 0x250   :  { %v9543_v18 = vadd.f32 %v1624_v12, %v1486_v31  ;;  %v1785_v2 = vpop.f32.mrf.mxu3  ;;  %v9545_v27 = vpop.f32.mrf.mxu0  ;;  %v16307_v31 = vld [vmem:[#allocation10_spill] sm:$0xff] }
 0x251   :  { %v9547_v23 = vadd.f32 %v1785_v2, %v1487_v36  ;;  %v1352_v40 = vpop.f32.mrf.mxu1 }
 0x252   :  { %v1489_v46 = vadd.f32 %v1352_v40, %v16307_v31  ;;  %v16309_v40 = vld [vmem:[#allocation11_spill] sm:$0xff] }
 0x253   :  { %16304 = vst [vmem:[#allocation6_spill] sm:$0xff] %v9547_v23  ;;  %6877 = vmatmul.msk.f32.gmra.mxu0 %vm186_vm1, %v16305_v7  ;;  %v1490_v62 = vadd.f32 %v9473_v56, %v16309_v40  ;;  %v7723_v56 = vld [vmem:[%s15984_s0 + $0x2b0] sm:$0xff] }
 0x254   :  { %6922 = vmatmul.msk.f32.gmra.mxu1 %vm186_vm1, %v7718_v4  ;;  %6971 = vmatmul.msk.f32.gmra.mxu2 %vm186_vm1, %v7719_v15 }
 0x255   :  { %7020 = vmatmul.msk.f32.gmra.mxu3 %vm186_vm1, %v7719_v15  ;;  %v7720_v15 = vld [vmem:[%s15984_s0 + $0xe8] sm:$0xff] }
 0x257   :  { %v1627_v7 = vpop.f32.mrf.mxu2 }
 0x258   :  { %v9563_v36 = vadd.f32 %v1627_v7, %v1488_v61  ;;  %v1788_v12 = vpop.f32.mrf.mxu3  ;;  %v9565_v2 = vpop.f32.mrf.mxu0  ;;  %v16310_v61 = vld [vmem:[#allocation12_spill] sm:$0xff] }
 0x259   :  { %v9567_v4 = vadd.f32 %v1788_v12, %v1489_v46  ;;  %v1355_v23 = vpop.f32.mrf.mxu1 }
 0x25a   :  { %v1491_v31 = vadd.f32 %v1355_v23, %v16310_v61  ;;  %v16313_v23 = vld [vmem:[#allocation13_spill] sm:$0xff] }
 0x25b   :  { %16308 = vst [vmem:[#allocation24_spill] sm:$0xff] %v9567_v4  ;;  %6878 = vmatmul.msk.f32.gmra.mxu0 %vm186_vm1, %v8799_v45  ;;  %v1492_v40 = vadd.f32 %v9505_v43, %v16313_v23  ;;  %v7725_v43 = vld [vmem:[%s15984_s0 + $0x2b8] sm:$0xff] }
 0x25c   :  { %6923 = vmatmul.msk.f32.gmra.mxu1 %vm186_vm1, %v7720_v15  ;;  %6972 = vmatmul.msk.f32.gmra.mxu2 %vm186_vm1, %v7721_v21 }
 0x25d   :  { %7021 = vmatmul.msk.f32.gmra.mxu3 %vm186_vm1, %v7721_v21  ;;  %v7722_v21 = vld [vmem:[%s15984_s0 + $0xf0] sm:$0xff] }
 0x25f   :  { %v1630_v45 = vpop.f32.mrf.mxu2 }
 0x260   :  { %v9583_v46 = vadd.f32 %v1630_v45, %v1490_v62  ;;  %v1791_v7 = vpop.f32.mrf.mxu3  ;;  %v9585_v12 = vpop.f32.mrf.mxu0  ;;  %v16314_v62 = vld [vmem:[#allocation14_spill] sm:$0xff] }
 0x261   :  { %v9587_v15 = vadd.f32 %v1791_v7, %v1491_v31  ;;  %v1358_v4 = vpop.f32.mrf.mxu1 }
 0x262   :  { %16311 = vst [vmem:[#allocation7_spill] sm:$0xff] %v9583_v46  ;;  %v1493_v61 = vadd.f32 %v1358_v4, %v16314_v62  ;;  %v16317_v4 = vld [vmem:[#allocation15_spill] sm:$0xff] }
 0x263   :  { %16312 = vst [vmem:[#allocation8_spill] sm:$0xff] %v9587_v15  ;;  %6879 = vmatmul.msk.f32.gmra.mxu0 %vm186_vm1, %v8835_v3  ;;  %v1494_v23 = vadd.f32 %v9525_v59, %v16317_v4  ;;  %v7727_v59 = vld [vmem:[%s15984_s0 + $0x2c0] sm:$0xff] }
 0x264   :  { %6924 = vmatmul.msk.f32.gmra.mxu1 %vm186_vm1, %v7722_v21  ;;  %6973 = vmatmul.msk.f32.gmra.mxu2 %vm186_vm1, %v7723_v56 }
 0x265   :  { %7022 = vmatmul.msk.f32.gmra.mxu3 %vm186_vm1, %v7723_v56  ;;  %v7724_v56 = vld [vmem:[%s15984_s0 + $0xf8] sm:$0xff] }
 0x267   :  { %v1633_v31 = vpop.f32.mrf.mxu2 }
 0x268   :  { %v9603_v45 = vadd.f32 %v1633_v31, %v1492_v40  ;;  %v1794_v7 = vpop.f32.mrf.mxu3  ;;  %v9605_v15 = vpop.f32.mrf.mxu0  ;;  %v16318_v40 = vld [vmem:[#allocation16_spill] sm:$0xff] }
 0x269   :  { %v9607_v21 = vadd.f32 %v1794_v7, %v1493_v61  ;;  %v1361_v46 = vpop.f32.mrf.mxu1 }
 0x26a   :  { %16315 = vst [vmem:[#allocation27_spill] sm:$0xff] %v9603_v45  ;;  %v1495_v62 = vadd.f32 %v1361_v46, %v16318_v40  ;;  %v16321_v46 = vld [vmem:[#allocation17_spill] sm:$0xff] }
 0x26b   :  { %16316 = vst [vmem:[#allocation9_spill] sm:$0xff] %v9607_v21  ;;  %6880 = vmatmul.msk.f32.gmra.mxu0 %vm186_vm1, %v8853_v63  ;;  %v1496_v4 = vadd.f32 %v9545_v27, %v16321_v46  ;;  %v7729_v27 = vld [vmem:[%s15984_s0 + $0x2c8] sm:$0xff] }
 0x26c   :  { %6925 = vmatmul.msk.f32.gmra.mxu1 %vm186_vm1, %v7724_v56  ;;  %6974 = vmatmul.msk.f32.gmra.mxu2 %vm186_vm1, %v7725_v43 }
 0x26d   :  { %7023 = vmatmul.msk.f32.gmra.mxu3 %vm186_vm1, %v7725_v43  ;;  %v7726_v43 = vld [vmem:[%s15984_s0 + $0x100] sm:$0xff] }
 0x26f   :  { %v1636_v61 = vpop.f32.mrf.mxu2 }
 0x270   :  { %v9623_v31 = vadd.f32 %v1636_v61, %v1494_v23  ;;  %v1797_v7 = vpop.f32.mrf.mxu3  ;;  %v1215_v21 = vpop.f32.mrf.mxu0  ;;  %v16322_v23 = vld [vmem:[#allocation18_spill] sm:$0xff] }
 0x271   :  { %v9625_v45 = vadd.f32 %v1797_v7, %v1495_v62  ;;  %v1364_v56 = vpop.f32.mrf.mxu1 }
 0x272   :  { %16319 = vst [vmem:[#allocation10_spill] sm:$0xff] %v9623_v31  ;;  %v1497_v40 = vadd.f32 %v1364_v56, %v16322_v23  ;;  %v16325_v56 = vld [vmem:[#allocation19_spill] sm:$0xff] }
 0x273   :  { %16320 = vst [vmem:[#allocation11_spill] sm:$0xff] %v9625_v45  ;;  %6881 = vmatmul.msk.f32.gmra.mxu0 %vm186_vm1, %v8871_v26  ;;  %v1498_v46 = vadd.f32 %v9565_v2, %v16325_v56  ;;  %v7730_v2 = vld [vmem:[%s15984_s0 + $0x2d0] sm:$0xff]  ;;  %v16330_v56 = vld [vmem:[#allocation23_spill] sm:$0xff] }
 0x274   :  { %6926 = vmatmul.msk.f32.gmra.mxu1 %vm186_vm1, %v7726_v43  ;;  %6975 = vmatmul.msk.f32.gmra.mxu2 %vm186_vm1, %v7727_v59 }
 0x275   :  { %7024 = vmatmul.msk.f32.gmra.mxu3 %vm186_vm1, %v7727_v59  ;;  %v7728_v59 = vld [vmem:[%s15984_s0 + $0x108] sm:$0xff] }
 0x277   :  { %v1639_v62 = vpop.f32.mrf.mxu2 }
 0x278   :  { %v9641_v61 = vadd.f32 %v1639_v62, %v1496_v4  ;;  %v1800_v7 = vpop.f32.mrf.mxu3  ;;  %v9643_v45 = vpop.f32.mrf.mxu0  ;;  %v16326_v4 = vld [vmem:[#allocation20_spill] sm:$0xff] }
 0x279   :  { %v9645_v43 = vadd.f32 %v1800_v7, %v1497_v40  ;;  %v1367_v31 = vpop.f32.mrf.mxu1 }
 0x27a   :  { %16323 = vst [vmem:[#allocation12_spill] sm:$0xff] %v9641_v61  ;;  %v1499_v23 = vadd.f32 %v1367_v31, %v16326_v4  ;;  %v16329_v31 = vld [vmem:[#allocation22_spill] sm:$0xff] }
 0x27b   :  { %16324 = vst [vmem:[#allocation13_spill] sm:$0xff] %v9645_v43  ;;  %6882 = vmatmul.msk.f32.gmra.mxu0 %vm186_vm1, %v8889_v11 }
 0x27c   :  { %6927 = vmatmul.msk.f32.gmra.mxu1 %vm186_vm1, %v7728_v59  ;;  %6976 = vmatmul.msk.f32.gmra.mxu2 %vm186_vm1, %v7729_v27 }
 0x27d   :  { %7025 = vmatmul.msk.f32.gmra.mxu3 %vm186_vm1, %v7729_v27  ;;  %v1500_v27 = vadd.f32 %v9585_v12, %v16329_v31  ;;  %v7731_v12 = vld [vmem:[%s15984_s0 + $0x2d8] sm:$0xff]  ;;  %v16335_v31 = vld [vmem:[#allocation26_spill] sm:$0xff] }
 0x27f   :  { %v1642_v11 = vpop.f32.mrf.mxu2 }
 0x280   :  { %v9661_v40 = vadd.f32 %v1642_v11, %v1498_v46  ;;  %v1803_v62 = vpop.f32.mrf.mxu3  ;;  %v9663_v7 = vpop.f32.mrf.mxu0 }
 0x281   :  { %v9665_v59 = vadd.f32 %v1803_v62, %v1499_v23  ;;  %v1370_v43 = vpop.f32.mrf.mxu1 }
 0x282   :  { %16327 = vst [vmem:[#allocation14_spill] sm:$0xff] %v9661_v40  ;;  %v1501_v46 = vadd.f32 %v1370_v43, %v16330_v56  ;;  %v16334_v43 = vld [vmem:[#allocation25_spill] sm:$0xff] }
 0x283   :  { %16328 = vst [vmem:[#allocation15_spill] sm:$0xff] %v9665_v59  ;;  %6883 = vmatmul.msk.f32.gmra.mxu0 %vm186_vm1, %v8907_v50  ;;  %v16333_v59 = vld [vmem:[#allocation42_spill] sm:$0xff] }
 0x284   :  { %6928 = vmatmul.msk.f32.gmra.mxu1 %vm186_vm1, %v8835_v3  ;;  %6977 = vmatmul.msk.f32.gmra.mxu2 %vm186_vm1, %v7730_v2 }
 0x285   :  { %7026 = vmatmul.msk.f32.gmra.mxu3 %vm186_vm1, %v7730_v2  ;;  %v1502_v2 = vadd.f32 %v9605_v15, %v16334_v43  ;;  %v7732_v15 = vld [vmem:[%s15984_s0 + $0x2e0] sm:$0xff]  ;;  %v16340_v43 = vld [vmem:[#allocation29_spill] sm:$0xff] }
 0x287   :  { %v1645_v4 = vpop.f32.mrf.mxu2 }
 0x288   :  { %v9679_v23 = vadd.f32 %v1645_v4, %v1500_v27  ;;  %v1806_v50 = vpop.f32.mrf.mxu3  ;;  %v9681_v11 = vpop.f32.mrf.mxu0 }
 0x289   :  { %v9683_v3 = vadd.f32 %v1806_v50, %v1501_v46  ;;  %v1373_v62 = vpop.f32.mrf.mxu1 }
 0x28a   :  { %16331 = vst [vmem:[#allocation16_spill] sm:$0xff] %v9679_v23  ;;  %v1503_v27 = vadd.f32 %v1373_v62, %v16335_v31  ;;  %v16339_v62 = vld [vmem:[#allocation28_spill] sm:$0xff] }
 0x28b   :  { %16332 = vst [vmem:[#allocation17_spill] sm:$0xff] %v9683_v3  ;;  %6884 = vmatmul.msk.f32.gmra.mxu0 %vm186_vm1, %v16333_v59  ;;  %v16338_v3 = vld [vmem:[#allocation45_spill] sm:$0xff] }
 0x28c   :  { %6929 = vmatmul.msk.f32.gmra.mxu1 %vm186_vm1, %v8853_v63  ;;  %6978 = vmatmul.msk.f32.gmra.mxu2 %vm186_vm1, %v7731_v12 }
 0x28d   :  { %7027 = vmatmul.msk.f32.gmra.mxu3 %vm186_vm1, %v7731_v12  ;;  %v1504_v12 = vadd.f32 %v1215_v21, %v16339_v62  ;;  %v9728_v21 = vld [vmem:[%s15983_s1 + $0x108] sm:$0xff] }
 0x28e   :  { %2198 = vmatpush.msrb.mxu1 %v9728_v21  ;;  %v9741_v62 = vld [vmem:[%s15984_s0 + $0x128] sm:$0xff] }
 0x28f   :  { %v1648_v56 = vpop.f32.mrf.mxu2 }
 0x290   :  { %v9697_v46 = vadd.f32 %v1648_v56, %v1502_v2  ;;  %v1809_v59 = vpop.f32.mrf.mxu3  ;;  %v9699_v4 = vpop.f32.mrf.mxu0 }
 0x291   :  { %v9701_v63 = vadd.f32 %v1809_v59, %v1503_v27  ;;  %v1376_v50 = vpop.f32.mrf.mxu1 }
 0x292   :  { %16336 = vst [vmem:[#allocation18_spill] sm:$0xff] %v9697_v46  ;;  %v1505_v2 = vadd.f32 %v1376_v50, %v16340_v43  ;;  %v16343_v50 = vld [vmem:[#allocation48_spill] sm:$0xff] }
 0x293   :  { %16337 = vst [vmem:[#allocation19_spill] sm:$0xff] %v9701_v63  ;;  %6885 = vmatmul.msk.f32.gmra.mxu0 %vm186_vm1, %v16338_v3  ;;  %v9723_v63 = vld [vmem:[%s15983_s1 + $0x100] sm:$0xff]  ;;  %v7736_v43 = vld [vmem:[%s15983_s1 + $0x30] sm:$0xf] }
 0x294   :  { %6930 = vmatmul.msk.f32.gmra.mxu1 %vm186_vm1, %v8871_v26  ;;  %6979 = vmatmul.msk.f32.gmra.mxu2 %vm186_vm1, %v7732_v15 }
 0x295   :  { %7028 = vmatmul.msk.f32.gmra.mxu3 %vm186_vm1, %v7732_v15  ;;  %2037 = vmatpush.msra.mxu0 %v9723_v63  ;;  %v7733_v15 = vld [vmem:[%s15983_s1 + $0x38] sm:$0xf] }
 0x296   :  { %7289 = vmatpush.msk.msra.mxu1 %vm331_vm0, %v7733_v15 }
 0x297   :  { %v1651_v31 = vpop.f32.mrf.mxu2  ;;  %7240 = vmatpush.msk.msrb.mxu0 %vm331_vm0, %v7736_v43 }
 0x298   :  { %v9714_v27 = vadd.f32 %v1651_v31, %v1504_v12  ;;  %v1812_v56 = vpop.f32.mrf.mxu3  ;;  %v9716_v3 = vpop.f32.mrf.mxu0  ;;  %v7735_v12 = vld [vmem:[%s15984_s0 + $0x2e8] sm:$0xff] }
 0x299   :  { %v9718_v59 = vadd.f32 %v1812_v56, %v1505_v2  ;;  %v1379_v26 = vpop.f32.mrf.mxu1  ;;  %v16344_v2 = vld [vmem:[#allocation30_spill] sm:$0xff]  ;;  %v7737_v56 = vld [vmem:[%s15983_s1 + $0x28] sm:$0xff] }
 0x29a   :  { %16341 = vst [vmem:[#allocation20_spill] sm:$0xff] %v9714_v27  ;;  %v1506_v31 = vadd.f32 %v9643_v45, %v16344_v2  ;;  %2936 = vmatpush.msra.mxu1 %v7737_v56  ;;  %v7739_v45 = vld [vmem:[%s15983_s1 + $0x18] sm:$0xff] }
 0x29b   :  { %16342 = vst [vmem:[#allocation22_spill] sm:$0xff] %v9718_v59  ;;  %6886 = vmatmul.msk.f32.gmra.mxu0 %vm186_vm1, %v16343_v50  ;;  %v16345_v50 = vld [vmem:[#allocation31_spill] sm:$0xff] }
 0x29c   :  { %6931 = vmatmul.msk.f32.gmra.mxu1 %vm186_vm1, %v9741_v62  ;;  %6980 = vmatmul.msk.f32.gmra.mxu2 %vm186_vm1, %v7735_v12  ;;  %v1507_v15 = vadd.f32 %v1379_v26, %v16345_v50  ;;  %v7740_v26 = vld [vmem:[%s15983_s1 + $0x10] sm:$0xff] }
 0x29d   :  { %7029 = vmatmul.msk.f32.gmra.mxu3 %vm186_vm1, %v7735_v12  ;;  %v7738_v12 = vld [vmem:[%s15983_s1 + $0x20] sm:$0xff]  ;;  %2937 = vmatpush.msra.mxu1 %v7739_v45  ;;  %v9783_v50 = vld [vmem:[%s15984_s0 + $0x130] sm:$0xff] }
 0x29e   :  { %2775 = vmatpush.msrb.mxu0 %v7738_v12  ;;  %16349 = vst [vmem:[#allocation25_spill] sm:$0xff] %v9783_v50  ;;  %v16350_v12 = vld [vmem:[#allocation32_spill] sm:$0xff] }
 0x29f   :  { %v1654_v59 = vpop.f32.mrf.mxu2  ;;  %v1508_v45 = vadd.f32 %v9663_v7, %v16350_v12  ;;  %v7746_v7 = vld [vmem:[%s15984_s0 + $0x2f8] sm:$0xff] }
 0x2a0   :  { %v9763_v27 = vadd.f32 %v1654_v59, %v1506_v31  ;;  %v1815_v46 = vpop.f32.mrf.mxu3  ;;  %v9765_v43 = vpop.f32.mrf.mxu0  ;;  %2776 = vmatpush.msrb.mxu0 %v7740_v26  ;;  %v7741_v59 = vld [vmem:[%s15983_s1 + $0x8] sm:$0xff]  ;;  %v16351_v26 = vld [vmem:[#allocation33_spill] sm:$0xff] }
 0x2a1   :  { %v9770_v2 = vadd.f32 %v1815_v46, %v1507_v15  ;;  %v1382_v56 = vpop.f32.mrf.mxu1  ;;  %2938 = vmatpush.msra.mxu1 %v7741_v59  ;;  %v16348_v31 = vld [vmem:[#allocation51_spill] sm:$0xff]  ;;  %v7743_v46 = vld [vmem:[%s15984_s0 + $0x2f0] sm:$0xff]  ;;  %v7744_v15 = vld [vmem:[%s15983_s1] sm:$0xff] }
 0x2a2   :  { %16346 = vst [vmem:[#allocation23_spill] sm:$0xff] %v9763_v27  ;;  %2777 = vmatpush.msrb.mxu0 %v7744_v15  ;;  %v1509_v59 = vadd.f32 %v1382_v56, %v16351_v26 }
 0x2a3   :  { %16347 = vst [vmem:[#allocation42_spill] sm:$0xff] %v9770_v2  ;;  %6887 = vmatmul.msk.f32.gmra.mxu0 %vm186_vm1, %v16348_v31 }
 0x2a4   :  { %6932 = vmatmul.msk.f32.gmra.mxu1 %vm186_vm1, %v9783_v50  ;;  %6981 = vmatmul.msk.f32.gmra.mxu2 %vm186_vm1, %v7743_v46  ;;  %v138_v50 = vld [vmem:[%s15984_s0 + $0x340] sm:$0xff] }
 0x2a5   :  { %7030 = vmatmul.msk.f32.gmra.mxu3 %vm186_vm1, %v7743_v46  ;;  %v9809_v46 = vld [vmem:[%s15984_s0 + $0x138] sm:$0xff] }
 0x2a6   :  { %16354 = vst [vmem:[#allocation28_spill] sm:$0xff] %v9809_v46 }
 0x2a7   :  { %v1657_v31 = vpop.f32.mrf.mxu2 }
 0x2a8   :  { %v9798_v2 = vadd.f32 %v1657_v31, %v1508_v45  ;;  %v1818_v27 = vpop.f32.mrf.mxu3  ;;  %v9800_v23 = vpop.f32.mrf.mxu0 }
 0x2a9   :  { %v9802_v40 = vadd.f32 %v1818_v27, %v1509_v59  ;;  %v1385_v61 = vpop.f32.mrf.mxu1  ;;  %v16355_v27 = vld [vmem:[#allocation34_spill] sm:$0xff] }
 0x2aa   :  { %16352 = vst [vmem:[#allocation26_spill] sm:$0xff] %v9798_v2  ;;  %v1510_v56 = vadd.f32 %v9681_v11, %v16355_v27  ;;  %v16359_v2 = vld [vmem:[#allocation56_spill] sm:$0xff] }
 0x2ab   :  { %16353 = vst [vmem:[#allocation45_spill] sm:$0xff] %v9802_v40  ;;  %6888 = vmatmul.msk.f32.gmra.mxu0 %vm186_vm1, %v8997_v8  ;;  %v16356_v8 = vld [vmem:[#allocation35_spill] sm:$0xff]  ;;  %v16361_v11 = vld [vmem:[#allocation36_spill] sm:$0xff] }
 0x2ac   :  { %6933 = vmatmul.msk.f32.gmra.mxu1 %vm186_vm1, %v9809_v46  ;;  %6982 = vmatmul.msk.f32.gmra.mxu2 %vm186_vm1, %v7746_v7  ;;  %v1511_v15 = vadd.f32 %v1385_v61, %v16356_v8  ;;  %v7748_v61 = vld [vmem:[%s15984_s0 + $0x300] sm:$0xff]  ;;  %v1512_v27 = vadd.f32 %v9699_v4, %v16361_v11 }
 0x2ad   :  { %7031 = vmatmul.msk.f32.gmra.mxu3 %vm186_vm1, %v7746_v7  ;;  %v9832_v7 = vld [vmem:[%s15984_s0 + $0x140] sm:$0xff] }
 0x2ae   :  { %16360 = vst [vmem:[#allocation30_spill] sm:$0xff] %v9832_v7  ;;  %v16367_v4 = vld [vmem:[#allocation38_spill] sm:$0xff] }
 0x2af   :  { %v1660_v12 = vpop.f32.mrf.mxu2  ;;  %v1514_v11 = vadd.f32 %v9716_v3, %v16367_v4  ;;  %v7752_v3 = vld [vmem:[%s15984_s0 + $0x310] sm:$0xff] }
 0x2b0   :  { %v9821_v45 = vadd.f32 %v1660_v12, %v1510_v56  ;;  %v1821_v26 = vpop.f32.mrf.mxu3  ;;  %v9823_v59 = vpop.f32.mrf.mxu0 }
 0x2b1   :  { %v9825_v31 = vadd.f32 %v1821_v26, %v1511_v15  ;;  %v1388_v40 = vpop.f32.mrf.mxu1 }
 0x2b2   :  { %16357 = vst [vmem:[#allocation29_spill] sm:$0xff] %v9821_v45 }
 0x2b3   :  { %16358 = vst [vmem:[#allocation48_spill] sm:$0xff] %v9825_v31  ;;  %6889 = vmatmul.msk.f32.gmra.mxu0 %vm186_vm1, %v16359_v2  ;;  %v16362_v2 = vld [vmem:[#allocation37_spill] sm:$0xff] }
 0x2b4   :  { %6934 = vmatmul.msk.f32.gmra.mxu1 %vm186_vm1, %v9832_v7  ;;  %6983 = vmatmul.msk.f32.gmra.mxu2 %vm186_vm1, %v7748_v61  ;;  %v1513_v56 = vadd.f32 %v1388_v40, %v16362_v2  ;;  %v16365_v7 = vld [vmem:[#allocation59_spill] sm:$0xff] }
 0x2b5   :  { %7032 = vmatmul.msk.f32.gmra.mxu3 %vm186_vm1, %v7748_v61  ;;  %v9855_v61 = vld [vmem:[%s15984_s0 + $0x148] sm:$0xff] }
 0x2b6   :  { %16366 = vst [vmem:[#allocation32_spill] sm:$0xff] %v9855_v61  ;;  %v7750_v40 = vld [vmem:[%s15984_s0 + $0x308] sm:$0xff] }
 0x2b7   :  { %v1663_v8 = vpop.f32.mrf.mxu2 }
 0x2b8   :  { %v9844_v15 = vadd.f32 %v1663_v8, %v1512_v27  ;;  %v1824_v12 = vpop.f32.mrf.mxu3  ;;  %v9846_v26 = vpop.f32.mrf.mxu0 }
 0x2b9   :  { %v9848_v31 = vadd.f32 %v1824_v12, %v1513_v56  ;;  %v1391_v45 = vpop.f32.mrf.mxu1 }
 0x2ba   :  { %16363 = vst [vmem:[#allocation31_spill] sm:$0xff] %v9844_v15 }
 0x2bb   :  { %16364 = vst [vmem:[#allocation51_spill] sm:$0xff] %v9848_v31  ;;  %6890 = vmatmul.msk.f32.gmra.mxu0 %vm186_vm1, %v16365_v7  ;;  %v16368_v7 = vld [vmem:[#allocation39_spill] sm:$0xff] }
 0x2bc   :  { %6935 = vmatmul.msk.f32.gmra.mxu1 %vm186_vm1, %v9855_v61  ;;  %6984 = vmatmul.msk.f32.gmra.mxu2 %vm186_vm1, %v7750_v40  ;;  %v1515_v27 = vadd.f32 %v1391_v45, %v16368_v7  ;;  %v16372_v45 = vld [vmem:[#allocation40_spill] sm:$0xff] }
 0x2bd   :  { %7033 = vmatmul.msk.f32.gmra.mxu3 %vm186_vm1, %v7750_v40  ;;  %v9878_v40 = vld [vmem:[%s15984_s0 + $0x150] sm:$0xff]  ;;  %v1516_v4 = vadd.f32 %v9765_v43, %v16372_v45  ;;  %v7754_v43 = vld [vmem:[%s15984_s0 + $0x318] sm:$0xff] }
 0x2be   :  { %16371 = vst [vmem:[#allocation35_spill] sm:$0xff] %v9878_v40 }
 0x2bf   :  { %v1666_v2 = vpop.f32.mrf.mxu2 }
 0x2c0   :  { %v9867_v56 = vadd.f32 %v1666_v2, %v1514_v11  ;;  %v1827_v8 = vpop.f32.mrf.mxu3  ;;  %v9869_v12 = vpop.f32.mrf.mxu0 }
 0x2c1   :  { %v9871_v31 = vadd.f32 %v1827_v8, %v1515_v27  ;;  %v1394_v15 = vpop.f32.mrf.mxu1 }
 0x2c2   :  { %16369 = vst [vmem:[#allocation33_spill] sm:$0xff] %v9867_v56 }
 0x2c3   :  { %16370 = vst [vmem:[#allocation34_spill] sm:$0xff] %v9871_v31  ;;  %6891 = vmatmul.msk.f32.gmra.mxu0 %vm186_vm1, %v9055_v32  ;;  %v16373_v32 = vld [vmem:[#allocation41_spill] sm:$0xff] }
 0x2c4   :  { %6936 = vmatmul.msk.f32.gmra.mxu1 %vm186_vm1, %v9878_v40  ;;  %6985 = vmatmul.msk.f32.gmra.mxu2 %vm186_vm1, %v7752_v3  ;;  %v1517_v11 = vadd.f32 %v1394_v15, %v16373_v32  ;;  %v16377_v15 = vld [vmem:[#allocation43_spill] sm:$0xff] }
 0x2c5   :  { %7034 = vmatmul.msk.f32.gmra.mxu3 %vm186_vm1, %v7752_v3  ;;  %v9901_v3 = vld [vmem:[%s15984_s0 + $0x158] sm:$0xff]  ;;  %v1518_v45 = vadd.f32 %v9800_v23, %v16377_v15  ;;  %v9929_v23 = vld [vmem:[%s15984_s0 + $0x160] sm:$0xff] }
 0x2c6   :  { %16376 = vst [vmem:[#allocation37_spill] sm:$0xff] %v9901_v3 }
 0x2c7   :  { %v1669_v7 = vpop.f32.mrf.mxu2  ;;  %16381 = vst [vmem:[#allocation39_spill] sm:$0xff] %v9929_v23 }
 0x2c8   :  { %v9890_v27 = vadd.f32 %v1669_v7, %v1516_v4  ;;  %v1830_v2 = vpop.f32.mrf.mxu3  ;;  %v9892_v8 = vpop.f32.mrf.mxu0 }
 0x2c9   :  { %v9894_v31 = vadd.f32 %v1830_v2, %v1517_v11  ;;  %v1397_v56 = vpop.f32.mrf.mxu1 }
 0x2ca   :  { %16374 = vst [vmem:[#allocation56_spill] sm:$0xff] %v9890_v27 }
 0x2cb   :  { %16375 = vst [vmem:[#allocation36_spill] sm:$0xff] %v9894_v31  ;;  %6892 = vmatmul.msk.f32.gmra.mxu0 %vm186_vm1, %v9074_v24  ;;  %v16378_v24 = vld [vmem:[#allocation44_spill] sm:$0xff]  ;;  %v9920_v31 = vld [vmem:[%s15984_s0 + $0x180] sm:$0xff] }
 0x2cc   :  { %6937 = vmatmul.msk.f32.gmra.mxu1 %vm186_vm1, %v9901_v3  ;;  %6986 = vmatmul.msk.f32.gmra.mxu2 %vm186_vm1, %v7754_v43  ;;  %v1519_v4 = vadd.f32 %v1397_v56, %v16378_v24  ;;  %v7756_v56 = vld [vmem:[%s15984_s0 + $0x320] sm:$0xff] }
 0x2cd   :  { %7035 = vmatmul.msk.f32.gmra.mxu3 %vm186_vm1, %v7754_v43  ;;  %v16382_v43 = vld [vmem:[#allocation46_spill] sm:$0xff] }
 0x2ce   :  { %v1520_v15 = vadd.f32 %v9823_v59, %v16382_v43  ;;  %v9957_v59 = vld [vmem:[%s15984_s0 + $0x168] sm:$0xff] }
 0x2cf   :  { %v1672_v32 = vpop.f32.mrf.mxu2  ;;  %16386 = vst [vmem:[#allocation43_spill] sm:$0xff] %v9957_v59 }
 0x2d0   :  { %v9913_v11 = vadd.f32 %v1672_v32, %v1518_v45  ;;  %v1833_v7 = vpop.f32.mrf.mxu3  ;;  %v9915_v2 = vpop.f32.mrf.mxu0  ;;  %v16383_v45 = vld [vmem:[#allocation47_spill] sm:$0xff] }
 0x2d1   :  { %v9922_v27 = vadd.f32 %v1833_v7, %v1519_v4  ;;  %v1400_v3 = vpop.f32.mrf.mxu1 }
 0x2d2   :  { %16379 = vst [vmem:[#allocation59_spill] sm:$0xff] %v9913_v11  ;;  %v1521_v24 = vadd.f32 %v1400_v3, %v16383_v45  ;;  %v9948_v11 = vld [vmem:[%s15984_s0 + $0x188] sm:$0xff] }
 0x2d3   :  { %16380 = vst [vmem:[#allocation38_spill] sm:$0xff] %v9922_v27  ;;  %6893 = vmatmul.msk.f32.gmra.mxu0 %vm186_vm1, %v9920_v31  ;;  %v7758_v3 = vld [vmem:[%s15984_s0 + $0x328] sm:$0xff] }
 0x2d4   :  { %6938 = vmatmul.msk.f32.gmra.mxu1 %vm186_vm1, %v9929_v23  ;;  %6987 = vmatmul.msk.f32.gmra.mxu2 %vm186_vm1, %v7756_v56 }
 0x2d5   :  { %7036 = vmatmul.msk.f32.gmra.mxu3 %vm186_vm1, %v7756_v56  ;;  %v16387_v56 = vld [vmem:[#allocation49_spill] sm:$0xff] }
 0x2d6   :  { %v1522_v43 = vadd.f32 %v9846_v26, %v16387_v56  ;;  %v9985_v26 = vld [vmem:[%s15984_s0 + $0x170] sm:$0xff] }
 0x2d7   :  { %v1675_v4 = vpop.f32.mrf.mxu2  ;;  %16391 = vst [vmem:[#allocation47_spill] sm:$0xff] %v9985_v26 }
 0x2d8   :  { %v9941_v32 = vadd.f32 %v1675_v4, %v1520_v15  ;;  %v1836_v7 = vpop.f32.mrf.mxu3  ;;  %v9943_v27 = vpop.f32.mrf.mxu0  ;;  %v16388_v15 = vld [vmem:[#allocation50_spill] sm:$0xff] }
 0x2d9   :  { %v9950_v23 = vadd.f32 %v1836_v7, %v1521_v24  ;;  %v1403_v40 = vpop.f32.mrf.mxu1 }
 0x2da   :  { %16384 = vst [vmem:[#allocation40_spill] sm:$0xff] %v9941_v32  ;;  %v1523_v45 = vadd.f32 %v1403_v40, %v16388_v15  ;;  %v9976_v32 = vld [vmem:[%s15984_s0 + $0x190] sm:$0xff] }
 0x2db   :  { %16385 = vst [vmem:[#allocation41_spill] sm:$0xff] %v9950_v23  ;;  %6894 = vmatmul.msk.f32.gmra.mxu0 %vm186_vm1, %v9948_v11  ;;  %v7760_v40 = vld [vmem:[%s15984_s0 + $0x330] sm:$0xff] }
 0x2dc   :  { %6939 = vmatmul.msk.f32.gmra.mxu1 %vm186_vm1, %v9957_v59  ;;  %6988 = vmatmul.msk.f32.gmra.mxu2 %vm186_vm1, %v7758_v3 }
 0x2dd   :  { %7037 = vmatmul.msk.f32.gmra.mxu3 %vm186_vm1, %v7758_v3  ;;  %v16392_v3 = vld [vmem:[#allocation52_spill] sm:$0xff] }
 0x2de   :  { %v1524_v56 = vadd.f32 %v9869_v12, %v16392_v3  ;;  %v7762_v12 = vld [vmem:[%s15984_s0 + $0x338] sm:$0xff] }
 0x2df   :  { %v1678_v24 = vpop.f32.mrf.mxu2 }
 0x2e0   :  { %v9969_v4 = vadd.f32 %v1678_v24, %v1522_v43  ;;  %v1839_v7 = vpop.f32.mrf.mxu3  ;;  %v9971_v23 = vpop.f32.mrf.mxu0  ;;  %v16393_v43 = vld [vmem:[#allocation53_spill] sm:$0xff] }
 0x2e1   :  { %v9978_v59 = vadd.f32 %v1839_v7, %v1523_v45  ;;  %v1406_v61 = vpop.f32.mrf.mxu1 }
 0x2e2   :  { %16389 = vst [vmem:[#allocation44_spill] sm:$0xff] %v9969_v4  ;;  %v1525_v15 = vadd.f32 %v1406_v61, %v16393_v43  ;;  %v10004_v4 = vld [vmem:[%s15984_s0 + $0x198] sm:$0xff] }
 0x2e3   :  { %16390 = vst [vmem:[#allocation46_spill] sm:$0xff] %v9978_v59  ;;  %6895 = vmatmul.msk.f32.gmra.mxu0 %vm186_vm1, %v9976_v32  ;;  %v10013_v61 = vld [vmem:[%s15984_s0 + $0x178] sm:$0xff] }
 0x2e4   :  { %6940 = vmatmul.msk.f32.gmra.mxu1 %vm186_vm1, %v9985_v26  ;;  %6989 = vmatmul.msk.f32.gmra.mxu2 %vm186_vm1, %v7760_v40  ;;  %16396 = vst [vmem:[#allocation52_spill] sm:$0xff] %v10013_v61 }
 0x2e5   :  { %7038 = vmatmul.msk.f32.gmra.mxu3 %vm186_vm1, %v7760_v40  ;;  %v16397_v40 = vld [vmem:[#allocation54_spill] sm:$0xff] }
 0x2e6   :  { %v1526_v3 = vadd.f32 %v9892_v8, %v16397_v40  ;;  %v16399_v8 = vld [vmem:[#allocation57_spill] sm:$0xff]  ;;  %v16400_v40 = vld [vmem:[#allocation58_spill] sm:$0xff] }
 0x2e7   :  { %v1681_v45 = vpop.f32.mrf.mxu2 }
 0x2e8   :  { %v9997_v24 = vadd.f32 %v1681_v45, %v1524_v56  ;;  %v1842_v7 = vpop.f32.mrf.mxu3  ;;  %v9999_v59 = vpop.f32.mrf.mxu0  ;;  %v16398_v56 = vld [vmem:[#allocation55_spill] sm:$0xff] }
 0x2e9   :  { %v10006_v26 = vadd.f32 %v1842_v7, %v1525_v15  ;;  %v1409_v46 = vpop.f32.mrf.mxu1 }
 0x2ea   :  { %16394 = vst [vmem:[#allocation49_spill] sm:$0xff] %v9997_v24  ;;  %v1527_v43 = vadd.f32 %v1409_v46, %v16398_v56  ;;  %v7763_v46 = vld [vmem:[%s15983_s1 + $0xf0] sm:$0xf] }
 0x2eb   :  { %16395 = vst [vmem:[#allocation50_spill] sm:$0xff] %v10006_v26  ;;  %6896 = vmatmul.msk.f32.gmra.mxu0 %vm186_vm1, %v10004_v4 }
 0x2ec   :  { %6941 = vmatmul.msk.f32.gmra.mxu1 %vm186_vm1, %v10013_v61  ;;  %6990 = vmatmul.msk.f32.gmra.mxu2 %vm186_vm1, %v7762_v12 }
 0x2ed   :  { %7039 = vmatmul.msk.f32.gmra.mxu3 %vm186_vm1, %v7762_v12  ;;  %v1528_v12 = vadd.f32 %v9915_v2, %v16399_v8  ;;  %v139_v2 = vld [vmem:[%s15984_s0 + $0x348] sm:$0xff]  ;;  %v16401_v8 = vld [vmem:[#allocation60_spill] sm:$0xff] }
 0x2ef   :  { %v1684_v15 = vpop.f32.mrf.mxu2 }
 0x2f0   :  { %v10025_v45 = vadd.f32 %v1684_v15, %v1526_v3  ;;  %v1845_v7 = vpop.f32.mrf.mxu3  ;;  %v10027_v26 = vpop.f32.mrf.mxu0 }
 0x2f1   :  { %v10029_v24 = vadd.f32 %v1845_v7, %v1527_v43  ;;  %v1412_v61 = vpop.f32.mrf.mxu1 }
 0x2f2   :  { %v1529_v3 = vadd.f32 %v1412_v61, %v16400_v40  ;;  %v7765_v61 = vld [vmem:[%s15983_s1 + $0xd0] sm:$0xff]  ;;  %v16402_v40 = vld [vmem:[#allocation61_spill] sm:$0xff] }
 0x2f3   :  { %7045 = vmatmul.msk.f32.vlgmr.msra.gmra.mxu0 %vm186_vm1, %v9162_v38  ;;  %v7764_v38 = vld [vmem:[%s15983_s1 + $0xe0] sm:$0xff] }
 0x2f4   :  { %6942 = vmatmul.msk.f32.gmra.mxu1 %vm186_vm1, %v9920_v31  ;;  %6991 = vmatmul.msk.f32.gmra.mxu2 %vm186_vm1, %v138_v50 }
 0x2f5   :  { %7040 = vmatmul.msk.f32.gmra.mxu3 %vm186_vm1, %v138_v50  ;;  %7436 = vmatpush.msk.msra.mxu0 %vm331_vm0, %v7763_v46  ;;  %v7766_v46 = vld [vmem:[%s15983_s1 + $0xc0] sm:$0xff] }
 0x2f7   :  { %v1687_v56 = vpop.f32.mrf.mxu2  ;;  %3515 = vmatpush.msra.mxu0 %v7764_v38 }
 0x2f8   :  { %v10050_v31 = vadd.f32 %v1687_v56, %v1528_v12  ;;  %v1848_v50 = vpop.f32.mrf.mxu3  ;;  %v10052_v43 = vpop.f32.mrf.mxu0  ;;  %v1530_v12 = vadd.f32 %v9943_v27, %v16401_v8  ;;  %v1532_v27 = vadd.f32 %v9971_v23, %v9067_v58  ;;  %v1534_v58 = vadd.f32 %v9999_v59, %v9086_v13  ;;  %v7769_v13 = vld [vmem:[%s15983_s1 + $0x130] sm:$0xf]  ;;  %v7770_v59 = vld [vmem:[%s15983_s1 + $0x138] sm:$0xf] }
 0x2f9   :  { %v10054_v15 = vadd.f32 %v1848_v50, %v1529_v3  ;;  %v1415_v7 = vpop.f32.mrf.mxu1  ;;  %3516 = vmatpush.msra.mxu0 %v7765_v61 }
 0x2fa   :  { %v1531_v3 = vadd.f32 %v1415_v7, %v16402_v40  ;;  %v16403_v7 = vld [vmem:[#allocation62_spill] sm:$0xff] }
 0x2fb   :  { %7046 = vmatmul.msk.f32.gmra.mxu0 %vm186_vm1, %v9180_v37 }
 0x2fc   :  { %6943 = vmatmul.msk.f32.gmra.mxu1 %vm186_vm1, %v9948_v11  ;;  %6992 = vmatmul.msk.f32.gmra.mxu2 %vm186_vm1, %v139_v2 }
 0x2fd   :  { %7041 = vmatmul.msk.f32.gmra.mxu3 %vm186_vm1, %v139_v2  ;;  %3517 = vmatpush.msra.mxu0 %v7766_v46  ;;  %v140_v2 = vld [vmem:[%s15984_s0 + $0x350] sm:$0xff] }
 0x2ff   :  { %v1690_v56 = vpop.f32.mrf.mxu2 }
 0x300   :  { %v10074_v38 = vadd.f32 %v1690_v56, %v1530_v12  ;;  %v1851_v37 = vpop.f32.mrf.mxu3  ;;  %v10076_v50 = vpop.f32.mrf.mxu0 }
 0x301   :  { %v10078_v11 = vadd.f32 %v1851_v37, %v1531_v3  ;;  %v1418_v61 = vpop.f32.mrf.mxu1 }
 0x302   :  { %v1533_v46 = vadd.f32 %v1418_v61, %v16403_v7 }
 0x303   :  { %7047 = vmatmul.msk.f32.gmra.mxu0 %vm186_vm1, %v9198_v1 }
 0x304   :  { %6944 = vmatmul.msk.f32.gmra.mxu1 %vm186_vm1, %v9976_v32  ;;  %6993 = vmatmul.msk.f32.gmra.mxu2 %vm186_vm1, %v140_v2  ;;  %v141_v32 = vld [vmem:[%s15984_s0 + $0x358] sm:$0xff] }
 0x305   :  { %7042 = vmatmul.msk.f32.gmra.mxu3 %vm186_vm1, %v140_v2 }
 0x307   :  { %v1693_v8 = vpop.f32.mrf.mxu2 }
 0x308   :  { %v10092_v12 = vadd.f32 %v1693_v8, %v1532_v27  ;;  %v1854_v40 = vpop.f32.mrf.mxu3  ;;  %v10094_v3 = vpop.f32.mrf.mxu0 }
 0x309   :  { %v10096_v56 = vadd.f32 %v1854_v40, %v1533_v46  ;;  %v1421_v1 = vpop.f32.mrf.mxu1  ;;  %v7771_v46 = vld [vmem:[%s15983_s1 + $0xf8] sm:$0xf] }
 0x30a   :  { %v1535_v23 = vadd.f32 %v1421_v1, %v9088_v42  ;;  %v7768_v42 = vld [vmem:[%s15984_s0 + $0x20] sm:$0xff] }
 0x30b   :  { %7048 = vmatmul.msk.f32.gmra.mxu0 %vm186_vm1, %v9216_v44 }
 0x30c   :  { %6945 = vmatmul.msk.f32.gmra.mxu1 %vm186_vm1, %v10004_v4  ;;  %6994 = vmatmul.msk.f32.gmra.mxu2 %vm186_vm1, %v141_v32  ;;  %v10121_v4 = vld [vmem:[%s15984_s0 + $0x40] sm:$0xff] }
 0x30d   :  { %7043 = vmatmul.msk.f32.gmra.mxu3 %vm186_vm1, %v141_v32  ;;  %v7772_v32 = vld [vmem:[%s15983_s1 + $0xe8] sm:$0xff] }
 0x30f   :  { %v1696_v37 = vpop.f32.mrf.mxu2 }
 0x310   :  { %v10110_v61 = vadd.f32 %v1696_v37, %v1534_v58  ;;  %v1857_v2 = vpop.f32.mrf.mxu3  ;;  %v10112_v27 = vpop.f32.mrf.mxu0 }
 0x311   :  { %v10114_v7 = vadd.f32 %v1857_v2, %v1535_v23  ;;  %v1424_v44 = vpop.f32.mrf.mxu1 }
 0x312   :  { %v1537_v8 = vadd.f32 %v1424_v44, %v9110_v30  ;;  %v7773_v30 = vld [vmem:[%s15983_s1 + $0xd8] sm:$0xff] }
 0x313   :  { %7049 = vmatmul.msk.f32.gmra.mxu0 %vm186_vm1, %v9234_v41  ;;  %v1536_v41 = vadd.f32 %v10027_v26, %v9107_v33 }
 0x314   :  { %7094 = vmatmul.msk.f32.vlgmr.msrb.gmra.mxu1 %vm186_vm1, %v10121_v4  ;;  %7143 = vmatmul.msk.f32.vlgmr.msrb.gmra.mxu2 %vm186_vm1, %v7768_v42 }
 0x315   :  { %7192 = vmatmul.msk.f32.vlgmr.msrb.gmra.mxu3 %vm186_vm1, %v7768_v42  ;;  %7534 = vmatpush.msk.msrb.mxu2 %vm331_vm0, %v7769_v13 }
 0x316   :  { %7583 = vmatpush.msk.msrb.mxu3 %vm331_vm0, %v7770_v59  ;;  %7485 = vmatpush.msk.msrb.mxu1 %vm331_vm0, %v7771_v46 }
 0x317   :  { %v1699_v40 = vpop.f32.mrf.mxu2  ;;  %3945 = vmatpush.msrb.mxu2 %v9250_v49  ;;  %v7775_v49 = vld [vmem:[%s15984_s0 + $0x28] sm:$0xff] }
 0x318   :  { %v10146_v1 = vadd.f32 %v1699_v40, %v1536_v41  ;;  %v1860_v33 = vpop.f32.mrf.mxu3  ;;  %v10148_v26 = vpop.f32.mrf.mxu0  ;;  %4106 = vmatpush.msrb.mxu3 %v9255_v20  ;;  %3676 = vmatpush.msrb.mxu1 %v7772_v32  ;;  %v7774_v20 = vld [vmem:[%s15984_s0 + $0x48] sm:$0xff] }
 0x319   :  { %v10154_v58 = vadd.f32 %v1860_v33, %v1537_v8  ;;  %v1427_v23 = vpop.f32.mrf.mxu1  ;;  %3946 = vmatpush.msrb.mxu2 %v9480_v16  ;;  %v1538_v16 = vadd.f32 %v10052_v43, %v9125_v19  ;;  %v7777_v19 = vld [vmem:[%s15984_s0 + $0x50] sm:$0xff]  ;;  %v7779_v33 = vld [vmem:[%s15984_s0 + $0x58] sm:$0xff] }
 0x31a   :  { %4107 = vmatpush.msrb.mxu3 %v9485_v5  ;;  %3677 = vmatpush.msrb.mxu1 %v7773_v30  ;;  %v1539_v5 = vadd.f32 %v1427_v23, %v9127_v14  ;;  %v7778_v14 = vld [vmem:[%s15984_s0 + $0x30] sm:$0xff] }
 0x31b   :  { %7050 = vmatmul.msk.f32.gmra.mxu0 %vm186_vm1, %v9264_v47  ;;  %3947 = vmatpush.msrb.mxu2 %v9723_v63  ;;  %v7776_v47 = vld [vmem:[%s15983_s1 + $0xc8] sm:$0xff] }
 0x31c   :  { %7095 = vmatmul.msk.f32.gmra.mxu1 %vm186_vm1, %v7774_v20  ;;  %7144 = vmatmul.msk.f32.gmra.mxu2 %vm186_vm1, %v7775_v49 }
 0x31d   :  { %7193 = vmatmul.msk.f32.gmra.mxu3 %vm186_vm1, %v7775_v49  ;;  %3678 = vmatpush.msrb.mxu1 %v7776_v47 }
 0x31e   :  { %4108 = vmatpush.msrb.mxu3 %v9728_v21  ;;  %v1540_v21 = vadd.f32 %v10076_v50, %v9138_v60  ;;  %v7780_v60 = vld [vmem:[%s15984_s0 + $0x38] sm:$0xff] }
 0x31f   :  { %v1702_v63 = vpop.f32.mrf.mxu2 }
 0x320   :  { %v10180_v37 = vadd.f32 %v1702_v63, %v1538_v16  ;;  %v1863_v2 = vpop.f32.mrf.mxu3  ;;  %v10182_v44 = vpop.f32.mrf.mxu0  ;;  %v7781_v16 = vld [vmem:[%s15984_s0 + $0x60] sm:$0xff] }
 0x321   :  { %v10184_v42 = vadd.f32 %v1863_v2, %v1539_v5  ;;  %v1430_v13 = vpop.f32.mrf.mxu1 }
 0x322   :  { %v1541_v43 = vadd.f32 %v1430_v13, %v9140_v17  ;;  %v1542_v17 = vadd.f32 %v10094_v3, %v9153_v10  ;;  %v1544_v10 = vadd.f32 %v10112_v27, %v9171_v35  ;;  %v16406_v35 = vld [vmem:[#allocation64_spill] sm:$0xff] }
 0x323   :  { %7051 = vmatmul.msk.f32.gmra.mxu0 %vm186_vm1, %v9282_v39  ;;  %v1546_v27 = vadd.f32 %v10148_v26, %v16406_v35  ;;  %v7784_v26 = vld [vmem:[%s15984_s0 + $0x70] sm:$0xff] }
 0x324   :  { %7096 = vmatmul.msk.f32.gmra.mxu1 %vm186_vm1, %v7777_v19  ;;  %7145 = vmatmul.msk.f32.gmra.mxu2 %vm186_vm1, %v7778_v14 }
 0x325   :  { %7194 = vmatmul.msk.f32.gmra.mxu3 %vm186_vm1, %v7778_v14 }
 0x327   :  { %v1705_v39 = vpop.f32.mrf.mxu2 }
 0x328   :  { %v10200_v41 = vadd.f32 %v1705_v39, %v1540_v21  ;;  %v1866_v59 = vpop.f32.mrf.mxu3  ;;  %v10202_v46 = vpop.f32.mrf.mxu0  ;;  %v16405_v21 = vld [vmem:[#allocation80_spill] sm:$0xff] }
 0x329   :  { %v10204_v8 = vadd.f32 %v1866_v59, %v1541_v43  ;;  %v1433_v40 = vpop.f32.mrf.mxu1  ;;  %v16407_v43 = vld [vmem:[#allocation65_spill] sm:$0xff] }
 0x32a   :  { %v1543_v50 = vadd.f32 %v1433_v40, %v9155_v51  ;;  %v16404_v51 = vld [vmem:[#allocation63_spill] sm:$0xff] }
 0x32b   :  { %7052 = vmatmul.msk.f32.gmra.mxu0 %vm186_vm1, %v9300_v55 }
 0x32c   :  { %7097 = vmatmul.msk.f32.gmra.mxu1 %vm186_vm1, %v7779_v33  ;;  %7146 = vmatmul.msk.f32.gmra.mxu2 %vm186_vm1, %v7780_v60 }
 0x32d   :  { %7195 = vmatmul.msk.f32.gmra.mxu3 %vm186_vm1, %v7780_v60 }
 0x32f   :  { %v1708_v55 = vpop.f32.mrf.mxu2 }
 0x330   :  { %v10220_v32 = vadd.f32 %v1708_v55, %v1542_v17  ;;  %v1869_v23 = vpop.f32.mrf.mxu3  ;;  %v10222_v30 = vpop.f32.mrf.mxu0 }
 0x331   :  { %v10224_v49 = vadd.f32 %v1869_v23, %v1543_v50  ;;  %v1436_v47 = vpop.f32.mrf.mxu1  ;;  %v10265_v23 = vld [vmem:[%s15984_s0 + $0x90] sm:$0xff] }
 0x332   :  { %v1545_v3 = vadd.f32 %v1436_v47, %v16404_v51 }
 0x333   :  { %7053 = vmatmul.msk.f32.gmra.mxu0 %vm186_vm1, %v9318_v48 }
 0x334   :  { %7098 = vmatmul.msk.f32.gmra.mxu1 %vm186_vm1, %v7781_v16  ;;  %7147 = vmatmul.msk.f32.gmra.mxu2 %vm186_vm1, %v10121_v4 }
 0x335   :  { %7196 = vmatmul.msk.f32.gmra.mxu3 %vm186_vm1, %v10121_v4  ;;  %v7782_v4 = vld [vmem:[%s15984_s0 + $0x68] sm:$0xff] }
 0x337   :  { %v1711_v5 = vpop.f32.mrf.mxu2 }
 0x338   :  { %v10239_v63 = vadd.f32 %v1711_v5, %v1544_v10  ;;  %v1872_v48 = vpop.f32.mrf.mxu3  ;;  %v10241_v2 = vpop.f32.mrf.mxu0  ;;  %v16409_v10 = vld [vmem:[#allocation67_spill] sm:$0xff] }
 0x339   :  { %v10243_v13 = vadd.f32 %v1872_v48, %v1545_v3  ;;  %v1439_v14 = vpop.f32.mrf.mxu1 }
 0x33a   :  { %v1547_v39 = vadd.f32 %v1439_v14, %v16407_v43 }
 0x33b   :  { %7054 = vmatmul.msk.f32.gmra.mxu0 %vm186_vm1, %v16405_v21 }
 0x33c   :  { %7099 = vmatmul.msk.f32.gmra.mxu1 %vm186_vm1, %v7782_v4  ;;  %7148 = vmatmul.msk.f32.gmra.mxu2 %vm186_vm1, %v7774_v20 }
 0x33d   :  { %7197 = vmatmul.msk.f32.gmra.mxu3 %vm186_vm1, %v7774_v20  ;;  %v16408_v20 = vld [vmem:[#allocation66_spill] sm:$0xff] }
 0x33e   :  { %v1548_v47 = vadd.f32 %v10182_v44, %v16408_v20  ;;  %v7786_v44 = vld [vmem:[%s15984_s0 + $0x78] sm:$0xff] }
 0x33f   :  { %v1714_v59 = vpop.f32.mrf.mxu2 }
 0x340   :  { %v10256_v40 = vadd.f32 %v1714_v59, %v1546_v27  ;;  %v1875_v60 = vpop.f32.mrf.mxu3  ;;  %v10258_v17 = vpop.f32.mrf.mxu0  ;;  %v10287_v27 = vld [vmem:[%s15984_s0 + $0x98] sm:$0xff] }
 0x341   :  { %v10260_v50 = vadd.f32 %v1875_v60, %v1547_v39  ;;  %v1442_v55 = vpop.f32.mrf.mxu1  ;;  %v16413_v39 = vld [vmem:[#allocation69_spill] sm:$0xff] }
 0x342   :  { %v1549_v51 = vadd.f32 %v1442_v55, %v16409_v10 }
 0x343   :  { %7055 = vmatmul.msk.f32.gmra.mxu0 %vm186_vm1, %v10265_v23 }
 0x344   :  { %7100 = vmatmul.msk.f32.gmra.mxu1 %vm186_vm1, %v7784_v26  ;;  %7149 = vmatmul.msk.f32.gmra.mxu2 %vm186_vm1, %v7777_v19 }
 0x345   :  { %7198 = vmatmul.msk.f32.gmra.mxu3 %vm186_vm1, %v7777_v19  ;;  %v16412_v19 = vld [vmem:[#allocation68_spill] sm:$0xff] }
 0x346   :  { %v1550_v43 = vadd.f32 %v10202_v46, %v16412_v19  ;;  %v7788_v46 = vld [vmem:[%s15984_s0 + $0x80] sm:$0xff] }
 0x347   :  { %v1717_v3 = vpop.f32.mrf.mxu2 }
 0x348   :  { %v10278_v5 = vadd.f32 %v1717_v3, %v1548_v47  ;;  %v1878_v48 = vpop.f32.mrf.mxu3  ;;  %v10280_v14 = vpop.f32.mrf.mxu0  ;;  %v10307_v3 = vld [vmem:[%s15984_s0 + $0xa0] sm:$0xff] }
 0x349   :  { %v10282_v21 = vadd.f32 %v1878_v48, %v1549_v51  ;;  %v1445_v35 = vpop.f32.mrf.mxu1 }
 0x34a   :  { %16410 = vst [vmem:[#allocation53_spill] sm:$0xff] %v10278_v5  ;;  %v1551_v59 = vadd.f32 %v1445_v35, %v16413_v39  ;;  %v16417_v35 = vld [vmem:[#allocation71_spill] sm:$0xff] }
 0x34b   :  { %16411 = vst [vmem:[#allocation54_spill] sm:$0xff] %v10282_v21  ;;  %7056 = vmatmul.msk.f32.gmra.mxu0 %vm186_vm1, %v10287_v27  ;;  %v10347_v21 = vld [vmem:[%s15984_s0 + $0xb0] sm:$0xff] }
 0x34c   :  { %7101 = vmatmul.msk.f32.gmra.mxu1 %vm186_vm1, %v7786_v44  ;;  %7150 = vmatmul.msk.f32.gmra.mxu2 %vm186_vm1, %v7779_v33 }
 0x34d   :  { %7199 = vmatmul.msk.f32.gmra.mxu3 %vm186_vm1, %v7779_v33  ;;  %v16416_v33 = vld [vmem:[#allocation70_spill] sm:$0xff] }
 0x34e   :  { %v1552_v48 = vadd.f32 %v10222_v30, %v16416_v33  ;;  %v7790_v30 = vld [vmem:[%s15984_s0 + $0x88] sm:$0xff]  ;;  %v16421_v33 = vld [vmem:[#allocation73_spill] sm:$0xff] }
 0x34f   :  { %v1720_v60 = vpop.f32.mrf.mxu2 }
 0x350   :  { %v10300_v55 = vadd.f32 %v1720_v60, %v1550_v43  ;;  %v1881_v20 = vpop.f32.mrf.mxu3  ;;  %v1299_v47 = vpop.f32.mrf.mxu0 }
 0x351   :  { %v10302_v10 = vadd.f32 %v1881_v20, %v1551_v59  ;;  %v1448_v51 = vpop.f32.mrf.mxu1 }
 0x352   :  { %16414 = vst [vmem:[#allocation55_spill] sm:$0xff] %v10300_v55  ;;  %v1553_v19 = vadd.f32 %v1448_v51, %v16417_v35  ;;  %v10327_v55 = vld [vmem:[%s15984_s0 + $0xa8] sm:$0xff] }
 0x353   :  { %16415 = vst [vmem:[#allocation57_spill] sm:$0xff] %v10302_v10  ;;  %7057 = vmatmul.msk.f32.gmra.mxu0 %vm186_vm1, %v10307_v3 }
 0x354   :  { %7102 = vmatmul.msk.f32.gmra.mxu1 %vm186_vm1, %v7788_v46  ;;  %7151 = vmatmul.msk.f32.gmra.mxu2 %vm186_vm1, %v7781_v16 }
 0x355   :  { %7200 = vmatmul.msk.f32.gmra.mxu3 %vm186_vm1, %v7781_v16  ;;  %v16420_v16 = vld [vmem:[#allocation72_spill] sm:$0xff] }
 0x356   :  { %v1554_v51 = vadd.f32 %v10241_v2, %v16420_v16  ;;  %v16424_v2 = vld [vmem:[#allocation74_spill] sm:$0xff] }
 0x357   :  { %v1723_v43 = vpop.f32.mrf.mxu2 }
 0x358   :  { %v10320_v39 = vadd.f32 %v1723_v43, %v1552_v48  ;;  %v1884_v59 = vpop.f32.mrf.mxu3  ;;  %v1302_v60 = vpop.f32.mrf.mxu0 }
 0x359   :  { %v10322_v20 = vadd.f32 %v1884_v59, %v1553_v19  ;;  %v1451_v10 = vpop.f32.mrf.mxu1 }
 0x35a   :  { %16418 = vst [vmem:[#allocation58_spill] sm:$0xff] %v10320_v39  ;;  %v1555_v48 = vadd.f32 %v1451_v10, %v16421_v33  ;;  %v16425_v10 = vld [vmem:[#allocation75_spill] sm:$0xff] }
 0x35b   :  { %16419 = vst [vmem:[#allocation60_spill] sm:$0xff] %v10322_v20  ;;  %7058 = vmatmul.msk.f32.gmra.mxu0 %vm186_vm1, %v10327_v55 }
 0x35c   :  { %7103 = vmatmul.msk.f32.gmra.mxu1 %vm186_vm1, %v7790_v30  ;;  %7152 = vmatmul.msk.f32.gmra.mxu2 %vm186_vm1, %v7782_v4 }
 0x35d   :  { %7201 = vmatmul.msk.f32.gmra.mxu3 %vm186_vm1, %v7782_v4  ;;  %v1556_v4 = vadd.f32 %v10258_v17, %v16424_v2  ;;  %v16428_v17 = vld [vmem:[#allocation76_spill] sm:$0xff] }
 0x35f   :  { %v1726_v35 = vpop.f32.mrf.mxu2 }
 0x360   :  { %v10340_v19 = vadd.f32 %v1726_v35, %v1554_v51  ;;  %v1887_v43 = vpop.f32.mrf.mxu3  ;;  %v1305_v59 = vpop.f32.mrf.mxu0 }
 0x361   :  { %v10342_v20 = vadd.f32 %v1887_v43, %v1555_v48  ;;  %v1454_v39 = vpop.f32.mrf.mxu1 }
 0x362   :  { %16422 = vst [vmem:[#allocation61_spill] sm:$0xff] %v10340_v19  ;;  %v1557_v16 = vadd.f32 %v1454_v39, %v16425_v10  ;;  %v10367_v19 = vld [vmem:[%s15984_s0 + $0xb8] sm:$0xff] }
 0x363   :  { %16423 = vst [vmem:[#allocation62_spill] sm:$0xff] %v10342_v20  ;;  %7059 = vmatmul.msk.f32.gmra.mxu0 %vm186_vm1, %v10347_v21  ;;  %v16429_v39 = vld [vmem:[#allocation77_spill] sm:$0xff] }
 0x364   :  { %7104 = vmatmul.msk.f32.gmra.mxu1 %vm186_vm1, %v10265_v23  ;;  %7153 = vmatmul.msk.f32.gmra.mxu2 %vm186_vm1, %v7784_v26 }
 0x365   :  { %7202 = vmatmul.msk.f32.gmra.mxu3 %vm186_vm1, %v7784_v26  ;;  %v1558_v26 = vadd.f32 %v10280_v14, %v16428_v17  ;;  %v16432_v14 = vld [vmem:[#allocation78_spill] sm:$0xff] }
 0x367   :  { %v1729_v51 = vpop.f32.mrf.mxu2 }
 0x368   :  { %v10358_v33 = vadd.f32 %v1729_v51, %v1556_v4  ;;  %v1890_v48 = vpop.f32.mrf.mxu3  ;;  %v10360_v35 = vpop.f32.mrf.mxu0 }
 0x369   :  { %v10362_v43 = vadd.f32 %v1890_v48, %v1557_v16  ;;  %v1457_v20 = vpop.f32.mrf.mxu1 }
 0x36a   :  { %16426 = vst [vmem:[#allocation63_spill] sm:$0xff] %v10358_v33  ;;  %v1559_v2 = vadd.f32 %v1457_v20, %v16429_v39  ;;  %v10385_v33 = vld [vmem:[%s15984_s0 + $0xc0] sm:$0xff]  ;;  %v16433_v20 = vld [vmem:[#allocation79_spill] sm:$0xff] }
 0x36b   :  { %16427 = vst [vmem:[#allocation80_spill] sm:$0xff] %v10362_v43  ;;  %7060 = vmatmul.msk.f32.gmra.mxu0 %vm186_vm1, %v10367_v19 }
 0x36c   :  { %7105 = vmatmul.msk.f32.gmra.mxu1 %vm186_vm1, %v10287_v27  ;;  %7154 = vmatmul.msk.f32.gmra.mxu2 %vm186_vm1, %v7786_v44 }
 0x36d   :  { %7203 = vmatmul.msk.f32.gmra.mxu3 %vm186_vm1, %v7786_v44  ;;  %v1560_v44 = vadd.f32 %v1299_v47, %v16432_v14  ;;  %v16437_v47 = vld [vmem:[#allocation81_spill] sm:$0xff] }
 0x36f   :  { %v1732_v4 = vpop.f32.mrf.mxu2 }
 0x370   :  { %v10378_v10 = vadd.f32 %v1732_v4, %v1558_v26  ;;  %v1893_v16 = vpop.f32.mrf.mxu3  ;;  %v2039_v51 = vpop.f32.mrf.mxu0 }
 0x371   :  { %v10380_v48 = vadd.f32 %v1893_v16, %v1559_v2  ;;  %v1460_v43 = vpop.f32.mrf.mxu1 }
 0x372   :  { %16430 = vst [vmem:[#allocation64_spill] sm:$0xff] %v10378_v10  ;;  %v1561_v17 = vadd.f32 %v1460_v43, %v16433_v20  ;;  %v10402_v10 = vld [vmem:[%s15984_s0 + $0xc8] sm:$0xff] }
 0x373   :  { %16431 = vst [vmem:[#allocation65_spill] sm:$0xff] %v10380_v48  ;;  %7061 = vmatmul.msk.f32.gmra.mxu0 %vm186_vm1, %v10385_v33 }
 0x374   :  { %7106 = vmatmul.msk.f32.gmra.mxu1 %vm186_vm1, %v10307_v3  ;;  %7155 = vmatmul.msk.f32.gmra.mxu2 %vm186_vm1, %v7788_v46 }
 0x375   :  { %7204 = vmatmul.msk.f32.gmra.mxu3 %vm186_vm1, %v7788_v46  ;;  %v16436_v46 = vld [vmem:[#allocation2_spill] sm:$0xff] }
 0x376   :  { %v963_v14 = vadd.f32 %v16437_v47, %v16436_v46  ;;  %v10420_v46 = vld [vmem:[%s15984_s0 + $0xd0] sm:$0xff] }
 0x377   :  { %v1735_v26 = vpop.f32.mrf.mxu2 }
 0x378   :  { %v10395_v39 = vadd.f32 %v1735_v26, %v1560_v44  ;;  %v1896_v2 = vpop.f32.mrf.mxu3  ;;  %v2042_v4 = vpop.f32.mrf.mxu0  ;;  %v1562_v43 = vadd.f32 %v1302_v60, %v963_v14  ;;  %v16438_v44 = vld [vmem:[#allocation82_spill] sm:$0xff]  ;;  %v16442_v60 = vld [vmem:[#allocation83_spill] sm:$0xff]  ;;  %v16443_v14 = vld [vmem:[#allocation84_spill] sm:$0xff] }
 0x379   :  { %v10397_v16 = vadd.f32 %v1896_v2, %v1561_v17  ;;  %v1463_v48 = vpop.f32.mrf.mxu1 }
 0x37a   :  { %16434 = vst [vmem:[#allocation66_spill] sm:$0xff] %v10395_v39  ;;  %v1563_v20 = vadd.f32 %v1463_v48, %v16438_v44 }
 0x37b   :  { %16435 = vst [vmem:[#allocation67_spill] sm:$0xff] %v10397_v16  ;;  %7062 = vmatmul.msk.f32.gmra.mxu0 %vm186_vm1, %v10402_v10 }
 0x37c   :  { %7107 = vmatmul.msk.f32.gmra.mxu1 %vm186_vm1, %v10327_v55  ;;  %7156 = vmatmul.msk.f32.gmra.mxu2 %vm186_vm1, %v7790_v30 }
 0x37d   :  { %7205 = vmatmul.msk.f32.gmra.mxu3 %vm186_vm1, %v7790_v30  ;;  %v16441_v30 = vld [vmem:[#allocation3_spill] sm:$0xff] }
 0x37e   :  { %v966_v47 = vadd.f32 %v16442_v60, %v16441_v30  ;;  %v10440_v60 = vld [vmem:[%s15984_s0 + $0xd8] sm:$0xff] }
 0x37f   :  { %v1738_v17 = vpop.f32.mrf.mxu2 }
 0x380   :  { %v10413_v26 = vadd.f32 %v1738_v17, %v1562_v43  ;;  %v1899_v2 = vpop.f32.mrf.mxu3  ;;  %v2045_v16 = vpop.f32.mrf.mxu0  ;;  %v1564_v48 = vadd.f32 %v1305_v59, %v966_v47  ;;  %v16447_v59 = vld [vmem:[#allocation85_spill] sm:$0xff] }
 0x381   :  { %v10415_v39 = vadd.f32 %v1899_v2, %v1563_v20  ;;  %v1466_v5 = vpop.f32.mrf.mxu1 }
 0x382   :  { %16439 = vst [vmem:[#allocation68_spill] sm:$0xff] %v10413_v26  ;;  %v1565_v43 = vadd.f32 %v1466_v5, %v16443_v14 }
 0x383   :  { %16440 = vst [vmem:[#allocation69_spill] sm:$0xff] %v10415_v39  ;;  %7063 = vmatmul.msk.f32.gmra.mxu0 %vm186_vm1, %v10420_v46 }
 0x384   :  { %7108 = vmatmul.msk.f32.gmra.mxu1 %vm186_vm1, %v10347_v21  ;;  %7157 = vmatmul.msk.f32.gmra.mxu2 %vm186_vm1, %v10265_v23 }
 0x385   :  { %7206 = vmatmul.msk.f32.gmra.mxu3 %vm186_vm1, %v10265_v23  ;;  %v16446_v23 = vld [vmem:[#allocation4_spill] sm:$0xff] }
 0x386   :  { %v969_v47 = vadd.f32 %v16447_v59, %v16446_v23  ;;  %v10459_v59 = vadd.f32 %v2039_v51, %v9394_v28 }
 0x387   :  { %v1741_v44 = vpop.f32.mrf.mxu2 }
 0x388   :  { %v10433_v20 = vadd.f32 %v1741_v44, %v1564_v48  ;;  %v1902_v17 = vpop.f32.mrf.mxu3  ;;  %v2048_v2 = vpop.f32.mrf.mxu0  ;;  %v1566_v5 = vadd.f32 %v10360_v35, %v969_v47  ;;  %v16448_v48 = vld [vmem:[#allocation86_spill] sm:$0xff]  ;;  %v10484_v47 = vadd.f32 %v2042_v4, %v9413_v54 }
 0x389   :  { %v10435_v39 = vadd.f32 %v1902_v17, %v1565_v43  ;;  %v1469_v30 = vpop.f32.mrf.mxu1 }
 0x38a   :  { %16444 = vst [vmem:[#allocation70_spill] sm:$0xff] %v10433_v20  ;;  %v1567_v14 = vadd.f32 %v1469_v30, %v16448_v48  ;;  %v10492_v48 = vld [vmem:[%s15984_s0 + $0xe8] sm:$0xff] }
 0x38b   :  { %16445 = vst [vmem:[#allocation71_spill] sm:$0xff] %v10435_v39  ;;  %7064 = vmatmul.msk.f32.gmra.mxu0 %vm186_vm1, %v10440_v60 }
 0x38c   :  { %7109 = vmatmul.msk.f32.gmra.mxu1 %vm186_vm1, %v10367_v19  ;;  %7158 = vmatmul.msk.f32.gmra.mxu2 %vm186_vm1, %v10287_v27 }
 0x38d   :  { %7207 = vmatmul.msk.f32.gmra.mxu3 %vm186_vm1, %v10287_v27  ;;  %v10467_v27 = vld [vmem:[%s15984_s0 + $0xe0] sm:$0xff] }
 0x38f   :  { %v1744_v43 = vpop.f32.mrf.mxu2 }
 0x390   :  { %v10454_v44 = vadd.f32 %v1744_v43, %v1566_v5  ;;  %v1905_v17 = vpop.f32.mrf.mxu3  ;;  %v2051_v39 = vpop.f32.mrf.mxu0  ;;  %v10509_v43 = vadd.f32 %v2045_v16, %v9432_v22 }
 0x391   :  { %v10456_v20 = vadd.f32 %v1905_v17, %v1567_v14  ;;  %v2200_v23 = vpop.f32.mrf.mxu1  ;;  %v10559_v35 = vadd.f32 %v2051_v39, %v9471_v9 }
 0x392   :  { %v10462_v26 = vadd.f32 %v2200_v23, %v9398_v53  ;;  %v10517_v23 = vld [vmem:[%s15984_s0 + $0xf0] sm:$0xff] }
 0x393   :  { %7065 = vmatmul.msk.f32.gmra.mxu0 %vm186_vm1, %v10467_v27  ;;  %16451 = vst [vmem:[#allocation74_spill] sm:$0xff] %v10559_v35  ;;  %v16459_v35 = vld [vmem:[#allocation21_spill] sm:$0xff] }
 0x394   :  { %7110 = vmatmul.msk.f32.gmra.mxu1 %vm186_vm1, %v10385_v33  ;;  %7159 = vmatmul.msk.f32.gmra.mxu2 %vm186_vm1, %v10307_v3 }
 0x395   :  { %7208 = vmatmul.msk.f32.gmra.mxu3 %vm186_vm1, %v10307_v3  ;;  %v10542_v3 = vld [vmem:[%s15984_s0 + $0xf8] sm:$0xff] }
 0x397   :  { %v10479_v53 = vpop.f32.mrf.mxu2 }
 0x398   :  { %v10481_v28 = vpop.f32.mrf.mxu3  ;;  %v2054_v51 = vpop.f32.mrf.mxu0 }
 0x399   :  { %v2203_v30 = vpop.f32.mrf.mxu1 }
 0x39a   :  { %v10487_v5 = vadd.f32 %v2203_v30, %v9417_v34 }
 0x39b   :  { %7066 = vmatmul.msk.f32.gmra.mxu0 %vm186_vm1, %v10492_v48 }
 0x39c   :  { %7111 = vmatmul.msk.f32.gmra.mxu1 %vm186_vm1, %v10402_v10  ;;  %7160 = vmatmul.msk.f32.gmra.mxu2 %vm186_vm1, %v10327_v55 }
 0x39d   :  { %7209 = vmatmul.msk.f32.gmra.mxu3 %vm186_vm1, %v10327_v55 }
 0x39f   :  { %v10504_v54 = vpop.f32.mrf.mxu2 }
 0x3a0   :  { %v10506_v34 = vpop.f32.mrf.mxu3  ;;  %v2057_v4 = vpop.f32.mrf.mxu0 }
 0x3a1   :  { %v2206_v14 = vpop.f32.mrf.mxu1 }
 0x3a2   :  { %v10512_v17 = vadd.f32 %v2206_v14, %v9436_v57  ;;  %v10534_v14 = vadd.f32 %v2048_v2, %v9451_v6 }
 0x3a3   :  { %7067 = vmatmul.msk.f32.gmra.mxu0 %vm186_vm1, %v10517_v23 }
 0x3a4   :  { %7112 = vmatmul.msk.f32.gmra.mxu1 %vm186_vm1, %v10420_v46  ;;  %7161 = vmatmul.msk.f32.gmra.mxu2 %vm186_vm1, %v10347_v21  ;;  %16449 = vst [vmem:[#allocation72_spill] sm:$0xff] %v10534_v14  ;;  %v10584_v14 = vadd.f32 %v2054_v51, %v9503_v0 }
 0x3a5   :  { %7210 = vmatmul.msk.f32.gmra.mxu3 %vm186_vm1, %v10347_v21 }
 0x3a6   :  { %16455 = vst [vmem:[#allocation78_spill] sm:$0xff] %v10584_v14 }
 0x3a7   :  { %v10529_v22 = vpop.f32.mrf.mxu2 }
 0x3a8   :  { %v10531_v57 = vpop.f32.mrf.mxu3  ;;  %v2060_v16 = vpop.f32.mrf.mxu0 }
 0x3a9   :  { %v2209_v30 = vpop.f32.mrf.mxu1  ;;  %v10634_v14 = vadd.f32 %v2060_v16, %v9543_v18 }
 0x3aa   :  { %v10537_v55 = vadd.f32 %v2209_v30, %v9455_v25 }
 0x3ab   :  { %7068 = vmatmul.msk.f32.gmra.mxu0 %vm186_vm1, %v10542_v3  ;;  %16465 = vst [vmem:[#allocation4_spill] sm:$0xff] %v10634_v14  ;;  %v16475_v14 = vld [vmem:[#allocation7_spill] sm:$0xff] }
 0x3ac   :  { %16450 = vst [vmem:[#allocation73_spill] sm:$0xff] %v10537_v55  ;;  %7113 = vmatmul.msk.f32.gmra.mxu1 %vm186_vm1, %v10440_v60  ;;  %7162 = vmatmul.msk.f32.gmra.mxu2 %vm186_vm1, %v10367_v19  ;;  %v10567_v55 = vld [vmem:[%s15984_s0 + $0x100] sm:$0xff] }
 0x3ad   :  { %7211 = vmatmul.msk.f32.gmra.mxu3 %vm186_vm1, %v10367_v19 }
 0x3af   :  { %v10554_v6 = vpop.f32.mrf.mxu2 }
 0x3b0   :  { %v10556_v25 = vpop.f32.mrf.mxu3  ;;  %v2063_v2 = vpop.f32.mrf.mxu0 }
 0x3b1   :  { %v2212_v30 = vpop.f32.mrf.mxu1 }
 0x3b2   :  { %v10562_v21 = vadd.f32 %v2212_v30, %v9475_v29 }
 0x3b3   :  { %7069 = vmatmul.msk.f32.gmra.mxu0 %vm186_vm1, %v10567_v55 }
 0x3b4   :  { %16452 = vst [vmem:[#allocation75_spill] sm:$0xff] %v10562_v21  ;;  %7114 = vmatmul.msk.f32.gmra.mxu1 %vm186_vm1, %v10467_v27  ;;  %7163 = vmatmul.msk.f32.gmra.mxu2 %vm186_vm1, %v10385_v33  ;;  %v10592_v21 = vld [vmem:[%s15984_s0 + $0x108] sm:$0xff] }
 0x3b5   :  { %7212 = vmatmul.msk.f32.gmra.mxu3 %vm186_vm1, %v10385_v33 }
 0x3b7   :  { %v10579_v9 = vpop.f32.mrf.mxu2 }
 0x3b8   :  { %16453 = vst [vmem:[#allocation76_spill] sm:$0xff] %v10579_v9  ;;  %v10581_v29 = vpop.f32.mrf.mxu3  ;;  %v2066_v39 = vpop.f32.mrf.mxu0  ;;  %v16461_v9 = vld [vmem:[#allocation5_spill] sm:$0xff] }
 0x3b9   :  { %16454 = vst [vmem:[#allocation77_spill] sm:$0xff] %v10581_v29  ;;  %v2215_v30 = vpop.f32.mrf.mxu1  ;;  %v10609_v29 = vadd.f32 %v2057_v4, %v16459_v35 }
 0x3ba   :  { %v10587_v19 = vadd.f32 %v2215_v30, %v9507_v52 }
 0x3bb   :  { %7070 = vmatmul.msk.f32.gmra.mxu0 %vm186_vm1, %v10592_v21  ;;  %16460 = vst [vmem:[#allocation82_spill] sm:$0xff] %v10609_v29  ;;  %v10659_v29 = vadd.f32 %v2063_v2, %v9563_v36 }
 0x3bc   :  { %16456 = vst [vmem:[#allocation79_spill] sm:$0xff] %v10587_v19  ;;  %7115 = vmatmul.msk.f32.gmra.mxu1 %vm186_vm1, %v10492_v48  ;;  %7164 = vmatmul.msk.f32.gmra.mxu2 %vm186_vm1, %v10402_v10  ;;  %v10617_v19 = vld [vmem:[%s15984_s0 + $0x110] sm:$0xff] }
 0x3bd   :  { %7213 = vmatmul.msk.f32.gmra.mxu3 %vm186_vm1, %v10402_v10  ;;  %16470 = vst [vmem:[#allocation5_spill] sm:$0xff] %v10659_v29  ;;  %v16483_v29 = vld [vmem:[#allocation9_spill] sm:$0xff] }
 0x3bf   :  { %v10604_v0 = vpop.f32.mrf.mxu2 }
 0x3c0   :  { %16457 = vst [vmem:[#allocation2_spill] sm:$0xff] %v10604_v0  ;;  %v10606_v52 = vpop.f32.mrf.mxu3  ;;  %v2069_v51 = vpop.f32.mrf.mxu0  ;;  %v7854_v0 = vld [vmem:[%s15984_s0 + $0x2c8] sm:$0xff] }
 0x3c1   :  { %16458 = vst [vmem:[#allocation81_spill] sm:$0xff] %v10606_v52  ;;  %v2218_v30 = vpop.f32.mrf.mxu1  ;;  %v16466_v52 = vld [vmem:[#allocation6_spill] sm:$0xff] }
 0x3c2   :  { %v10612_v33 = vadd.f32 %v2218_v30, %v16461_v9 }
 0x3c3   :  { %7071 = vmatmul.msk.f32.gmra.mxu0 %vm186_vm1, %v10617_v19 }
 0x3c4   :  { %16462 = vst [vmem:[#allocation3_spill] sm:$0xff] %v10612_v33  ;;  %7116 = vmatmul.msk.f32.gmra.mxu1 %vm186_vm1, %v10517_v23  ;;  %7165 = vmatmul.msk.f32.gmra.mxu2 %vm186_vm1, %v10420_v46  ;;  %v10642_v33 = vld [vmem:[%s15984_s0 + $0x118] sm:$0xff] }
 0x3c5   :  { %7214 = vmatmul.msk.f32.gmra.mxu3 %vm186_vm1, %v10420_v46 }
 0x3c7   :  { %v10629_v35 = vpop.f32.mrf.mxu2 }
 0x3c8   :  { %16463 = vst [vmem:[#allocation83_spill] sm:$0xff] %v10629_v35  ;;  %v10631_v4 = vpop.f32.mrf.mxu3  ;;  %v2072_v9 = vpop.f32.mrf.mxu0  ;;  %v11730_v35 = vld [vmem:[%s15984_s0 + $0x2a0] sm:$0xff] }
 0x3c9   :  { %16464 = vst [vmem:[#allocation84_spill] sm:$0xff] %v10631_v4  ;;  %v2221_v30 = vpop.f32.mrf.mxu1  ;;  %v16471_v4 = vld [vmem:[#allocation24_spill] sm:$0xff] }
 0x3ca   :  { %v10637_v10 = vadd.f32 %v2221_v30, %v16466_v52  ;;  %16715 = vst [vmem:[#allocation200_spill] sm:$0xff] %v11730_v35 }
 0x3cb   :  { %7072 = vmatmul.msk.f32.gmra.mxu0 %vm186_vm1, %v10642_v33 }
 0x3cc   :  { %16467 = vst [vmem:[#allocation85_spill] sm:$0xff] %v10637_v10  ;;  %7117 = vmatmul.msk.f32.gmra.mxu1 %vm186_vm1, %v10542_v3  ;;  %7166 = vmatmul.msk.f32.gmra.mxu2 %vm186_vm1, %v10440_v60  ;;  %v10667_v10 = vld [vmem:[%s15984_s0 + $0x120] sm:$0xff] }
 0x3cd   :  { %7215 = vmatmul.msk.f32.gmra.mxu3 %vm186_vm1, %v10440_v60 }
 0x3cf   :  { %v10654_v18 = vpop.f32.mrf.mxu2 }
 0x3d0   :  { %16468 = vst [vmem:[#allocation86_spill] sm:$0xff] %v10654_v18  ;;  %v10656_v16 = vpop.f32.mrf.mxu3  ;;  %v2075_v52 = vpop.f32.mrf.mxu0  ;;  %v16477_v18 = vld [vmem:[#allocation8_spill] sm:$0xff] }
 0x3d1   :  { %16469 = vst [vmem:[#allocation21_spill] sm:$0xff] %v10656_v16  ;;  %v2224_v30 = vpop.f32.mrf.mxu1  ;;  %v10684_v16 = vadd.f32 %v2066_v39, %v16475_v14 }
 0x3d2   :  { %v10662_v46 = vadd.f32 %v2224_v30, %v16471_v4 }
 0x3d3   :  { %7073 = vmatmul.msk.f32.gmra.mxu0 %vm186_vm1, %v10667_v10  ;;  %16476 = vst [vmem:[#allocation7_spill] sm:$0xff] %v10684_v16 }
 0x3d4   :  { %16472 = vst [vmem:[#allocation6_spill] sm:$0xff] %v10662_v46  ;;  %7118 = vmatmul.msk.f32.gmra.mxu1 %vm186_vm1, %v10567_v55  ;;  %7167 = vmatmul.msk.f32.gmra.mxu2 %vm186_vm1, %v10467_v27 }
 0x3d5   :  { %7216 = vmatmul.msk.f32.gmra.mxu3 %vm186_vm1, %v10467_v27 }
 0x3d7   :  { %v10679_v36 = vpop.f32.mrf.mxu2 }
 0x3d8   :  { %16473 = vst [vmem:[#allocation24_spill] sm:$0xff] %v10679_v36  ;;  %v10681_v2 = vpop.f32.mrf.mxu3  ;;  %v2078_v4 = vpop.f32.mrf.mxu0 }
 0x3d9   :  { %16474 = vst [vmem:[#allocation87_spill] sm:$0xff] %v10681_v2  ;;  %v2227_v30 = vpop.f32.mrf.mxu1 }
 0x3da   :  { %v10687_v60 = vadd.f32 %v2227_v30, %v16477_v18  ;;  %v16481_v30 = vld [vmem:[#allocation27_spill] sm:$0xff] }
 0x3db   :  { %7074 = vmatmul.msk.f32.gmra.mxu0 %vm186_vm1, %v9741_v62  ;;  %v10704_v62 = vadd.f32 %v2069_v51, %v16481_v30  ;;  %v16488_v30 = vld [vmem:[#allocation10_spill] sm:$0xff] }
 0x3dc   :  { %16478 = vst [vmem:[#allocation8_spill] sm:$0xff] %v10687_v60  ;;  %7119 = vmatmul.msk.f32.gmra.mxu1 %vm186_vm1, %v10592_v21  ;;  %7168 = vmatmul.msk.f32.gmra.mxu2 %vm186_vm1, %v10492_v48  ;;  %v16485_v60 = vld [vmem:[#allocation25_spill] sm:$0xff] }
 0x3dd   :  { %7217 = vmatmul.msk.f32.gmra.mxu3 %vm186_vm1, %v10492_v48  ;;  %16482 = vst [vmem:[#allocation27_spill] sm:$0xff] %v10704_v62 }
 0x3df   :  { %v10699_v27 = vpop.f32.mrf.mxu2 }
 0x3e0   :  { %16479 = vst [vmem:[#allocation88_spill] sm:$0xff] %v10699_v27  ;;  %v10701_v14 = vpop.f32.mrf.mxu3  ;;  %v2081_v39 = vpop.f32.mrf.mxu0 }
 0x3e1   :  { %16480 = vst [vmem:[#allocation89_spill] sm:$0xff] %v10701_v14  ;;  %v2230_v18 = vpop.f32.mrf.mxu1  ;;  %v16490_v14 = vld [vmem:[#allocation11_spill] sm:$0xff] }
 0x3e2   :  { %v10707_v46 = vadd.f32 %v2230_v18, %v16483_v29 }
 0x3e3   :  { %7075 = vmatmul.msk.f32.gmra.mxu0 %vm186_vm1, %v16485_v60  ;;  %v10724_v60 = vadd.f32 %v2072_v9, %v16488_v30  ;;  %v16495_v30 = vld [vmem:[#allocation12_spill] sm:$0xff] }
 0x3e4   :  { %16484 = vst [vmem:[#allocation9_spill] sm:$0xff] %v10707_v46  ;;  %7120 = vmatmul.msk.f32.gmra.mxu1 %vm186_vm1, %v10617_v19  ;;  %7169 = vmatmul.msk.f32.gmra.mxu2 %vm186_vm1, %v10517_v23  ;;  %v16492_v46 = vld [vmem:[#allocation28_spill] sm:$0xff] }
 0x3e5   :  { %7218 = vmatmul.msk.f32.gmra.mxu3 %vm186_vm1, %v10517_v23  ;;  %16489 = vst [vmem:[#allocation10_spill] sm:$0xff] %v10724_v60 }
 0x3e7   :  { %v10719_v48 = vpop.f32.mrf.mxu2 }
 0x3e8   :  { %16486 = vst [vmem:[#allocation25_spill] sm:$0xff] %v10719_v48  ;;  %v10721_v51 = vpop.f32.mrf.mxu3  ;;  %v2084_v29 = vpop.f32.mrf.mxu0 }
 0x3e9   :  { %16487 = vst [vmem:[#allocation90_spill] sm:$0xff] %v10721_v51  ;;  %v2233_v18 = vpop.f32.mrf.mxu1  ;;  %v16497_v51 = vld [vmem:[#allocation13_spill] sm:$0xff] }
 0x3ea   :  { %v10727_v16 = vadd.f32 %v2233_v18, %v16490_v14 }
 0x3eb   :  { %7076 = vmatmul.msk.f32.gmra.mxu0 %vm186_vm1, %v16492_v46  ;;  %v10744_v46 = vadd.f32 %v2075_v52, %v16495_v30  ;;  %v16502_v30 = vld [vmem:[#allocation14_spill] sm:$0xff] }
 0x3ec   :  { %16491 = vst [vmem:[#allocation11_spill] sm:$0xff] %v10727_v16  ;;  %7121 = vmatmul.msk.f32.gmra.mxu1 %vm186_vm1, %v10642_v33  ;;  %7170 = vmatmul.msk.f32.gmra.mxu2 %vm186_vm1, %v10542_v3  ;;  %v16499_v16 = vld [vmem:[#allocation30_spill] sm:$0xff] }
 0x3ed   :  { %7219 = vmatmul.msk.f32.gmra.mxu3 %vm186_vm1, %v10542_v3  ;;  %16496 = vst [vmem:[#allocation12_spill] sm:$0xff] %v10744_v46 }
 0x3ef   :  { %v10739_v23 = vpop.f32.mrf.mxu2 }
 0x3f0   :  { %16493 = vst [vmem:[#allocation28_spill] sm:$0xff] %v10739_v23  ;;  %v10741_v9 = vpop.f32.mrf.mxu3  ;;  %v2087_v14 = vpop.f32.mrf.mxu0 }
 0x3f1   :  { %16494 = vst [vmem:[#allocation91_spill] sm:$0xff] %v10741_v9  ;;  %v2236_v18 = vpop.f32.mrf.mxu1  ;;  %v16504_v9 = vld [vmem:[#allocation15_spill] sm:$0xff] }
 0x3f2   :  { %v10747_v62 = vadd.f32 %v2236_v18, %v16497_v51 }
 0x3f3   :  { %7077 = vmatmul.msk.f32.gmra.mxu0 %vm186_vm1, %v16499_v16  ;;  %v10764_v16 = vadd.f32 %v2078_v4, %v16502_v30  ;;  %v16509_v30 = vld [vmem:[#allocation16_spill] sm:$0xff] }
 0x3f4   :  { %16498 = vst [vmem:[#allocation13_spill] sm:$0xff] %v10747_v62  ;;  %7122 = vmatmul.msk.f32.gmra.mxu1 %vm186_vm1, %v10667_v10  ;;  %7171 = vmatmul.msk.f32.gmra.mxu2 %vm186_vm1, %v10567_v55  ;;  %v16506_v62 = vld [vmem:[#allocation32_spill] sm:$0xff]  ;;  %v10786_v46 = vadd.f32 %v2081_v39, %v16509_v30  ;;  %v16516_v30 = vld [vmem:[#allocation18_spill] sm:$0xff] }
 0x3f5   :  { %7220 = vmatmul.msk.f32.gmra.mxu3 %vm186_vm1, %v10567_v55  ;;  %16503 = vst [vmem:[#allocation14_spill] sm:$0xff] %v10764_v16  ;;  %v7806_v55 = vld [vmem:[%s15984_s0 + $0x128] sm:$0xff] }
 0x3f6   :  { %16510 = vst [vmem:[#allocation16_spill] sm:$0xff] %v10786_v46 }
 0x3f7   :  { %v10759_v3 = vpop.f32.mrf.mxu2 }
 0x3f8   :  { %16500 = vst [vmem:[#allocation30_spill] sm:$0xff] %v10759_v3  ;;  %v10761_v52 = vpop.f32.mrf.mxu3  ;;  %v2090_v51 = vpop.f32.mrf.mxu0  ;;  %v10808_v3 = vadd.f32 %v2084_v29, %v16516_v30  ;;  %v16523_v30 = vld [vmem:[#allocation20_spill] sm:$0xff] }
 0x3f9   :  { %16501 = vst [vmem:[#allocation92_spill] sm:$0xff] %v10761_v52  ;;  %v2239_v18 = vpop.f32.mrf.mxu1  ;;  %v16513_v52 = vld [vmem:[#allocation35_spill] sm:$0xff] }
 0x3fa   :  { %v10767_v60 = vadd.f32 %v2239_v18, %v16504_v9  ;;  %16517 = vst [vmem:[#allocation18_spill] sm:$0xff] %v10808_v3 }
 0x3fb   :  { %7078 = vmatmul.msk.f32.gmra.mxu0 %vm186_vm1, %v16506_v62 }
 0x3fc   :  { %16505 = vst [vmem:[#allocation15_spill] sm:$0xff] %v10767_v60  ;;  %7123 = vmatmul.msk.f32.gmra.mxu1 %vm186_vm1, %v7806_v55  ;;  %7172 = vmatmul.msk.f32.gmra.mxu2 %vm186_vm1, %v10592_v21  ;;  %v16511_v60 = vld [vmem:[#allocation17_spill] sm:$0xff] }
 0x3fd   :  { %7221 = vmatmul.msk.f32.gmra.mxu3 %vm186_vm1, %v10592_v21  ;;  %v7807_v21 = vld [vmem:[%s15984_s0 + $0x130] sm:$0xff] }
 0x3ff   :  { %v10781_v4 = vpop.f32.mrf.mxu2 }
 0x400   :  { %16507 = vst [vmem:[#allocation32_spill] sm:$0xff] %v10781_v4  ;;  %v10783_v9 = vpop.f32.mrf.mxu3  ;;  %v2093_v62 = vpop.f32.mrf.mxu0  ;;  %v10830_v4 = vadd.f32 %v2087_v14, %v16523_v30  ;;  %v16530_v30 = vld [vmem:[#allocation23_spill] sm:$0xff] }
 0x401   :  { %16508 = vst [vmem:[#allocation93_spill] sm:$0xff] %v10783_v9  ;;  %v2242_v18 = vpop.f32.mrf.mxu1  ;;  %v16520_v9 = vld [vmem:[#allocation37_spill] sm:$0xff] }
 0x402   :  { %v10789_v16 = vadd.f32 %v2242_v18, %v16511_v60  ;;  %16524 = vst [vmem:[#allocation20_spill] sm:$0xff] %v10830_v4 }
 0x403   :  { %7079 = vmatmul.msk.f32.gmra.mxu0 %vm186_vm1, %v16513_v52 }
 0x404   :  { %16512 = vst [vmem:[#allocation17_spill] sm:$0xff] %v10789_v16  ;;  %7124 = vmatmul.msk.f32.gmra.mxu1 %vm186_vm1, %v7807_v21  ;;  %7173 = vmatmul.msk.f32.gmra.mxu2 %vm186_vm1, %v10617_v19  ;;  %v16518_v16 = vld [vmem:[#allocation19_spill] sm:$0xff] }
 0x405   :  { %7222 = vmatmul.msk.f32.gmra.mxu3 %vm186_vm1, %v10617_v19  ;;  %v7808_v19 = vld [vmem:[%s15984_s0 + $0x138] sm:$0xff] }
 0x407   :  { %v10803_v39 = vpop.f32.mrf.mxu2 }
 0x408   :  { %16514 = vst [vmem:[#allocation35_spill] sm:$0xff] %v10803_v39  ;;  %v10805_v60 = vpop.f32.mrf.mxu3  ;;  %v2096_v52 = vpop.f32.mrf.mxu0  ;;  %v10852_v39 = vadd.f32 %v2090_v51, %v16530_v30 }
 0x409   :  { %16515 = vst [vmem:[#allocation94_spill] sm:$0xff] %v10805_v60  ;;  %v2245_v18 = vpop.f32.mrf.mxu1  ;;  %v16527_v60 = vld [vmem:[#allocation39_spill] sm:$0xff] }
 0x40a   :  { %v10811_v46 = vadd.f32 %v2245_v18, %v16518_v16  ;;  %16531 = vst [vmem:[#allocation23_spill] sm:$0xff] %v10852_v39  ;;  %v16541_v39 = vld [vmem:[#allocation47_spill] sm:$0xff] }
 0x40b   :  { %7080 = vmatmul.msk.f32.gmra.mxu0 %vm186_vm1, %v16520_v9 }
 0x40c   :  { %16519 = vst [vmem:[#allocation19_spill] sm:$0xff] %v10811_v46  ;;  %7125 = vmatmul.msk.f32.gmra.mxu1 %vm186_vm1, %v7808_v19  ;;  %7174 = vmatmul.msk.f32.gmra.mxu2 %vm186_vm1, %v10642_v33  ;;  %v16525_v46 = vld [vmem:[#allocation22_spill] sm:$0xff] }
 0x40d   :  { %7223 = vmatmul.msk.f32.gmra.mxu3 %vm186_vm1, %v10642_v33  ;;  %v7809_v33 = vld [vmem:[%s15984_s0 + $0x140] sm:$0xff] }
 0x40f   :  { %v10825_v29 = vpop.f32.mrf.mxu2 }
 0x410   :  { %16521 = vst [vmem:[#allocation37_spill] sm:$0xff] %v10825_v29  ;;  %v10827_v16 = vpop.f32.mrf.mxu3  ;;  %v2099_v9 = vpop.f32.mrf.mxu0  ;;  %v16539_v29 = vld [vmem:[#allocation45_spill] sm:$0xff] }
 0x411   :  { %16522 = vst [vmem:[#allocation95_spill] sm:$0xff] %v10827_v16  ;;  %v2248_v18 = vpop.f32.mrf.mxu1  ;;  %v16534_v16 = vld [vmem:[#allocation43_spill] sm:$0xff] }
 0x412   :  { %v10833_v3 = vadd.f32 %v2248_v18, %v16525_v46 }
 0x413   :  { %7081 = vmatmul.msk.f32.gmra.mxu0 %vm186_vm1, %v16527_v60 }
 0x414   :  { %16526 = vst [vmem:[#allocation22_spill] sm:$0xff] %v10833_v3  ;;  %7126 = vmatmul.msk.f32.gmra.mxu1 %vm186_vm1, %v7809_v33  ;;  %7175 = vmatmul.msk.f32.gmra.mxu2 %vm186_vm1, %v10667_v10  ;;  %v16532_v3 = vld [vmem:[#allocation42_spill] sm:$0xff] }
 0x415   :  { %7224 = vmatmul.msk.f32.gmra.mxu3 %vm186_vm1, %v10667_v10  ;;  %v7810_v10 = vld [vmem:[%s15984_s0 + $0x148] sm:$0xff] }
 0x417   :  { %v10847_v14 = vpop.f32.mrf.mxu2 }
 0x418   :  { %16528 = vst [vmem:[#allocation39_spill] sm:$0xff] %v10847_v14  ;;  %v10849_v46 = vpop.f32.mrf.mxu3  ;;  %v2102_v60 = vpop.f32.mrf.mxu0  ;;  %v16546_v14 = vld [vmem:[#allocation48_spill] sm:$0xff] }
 0x419   :  { %16529 = vst [vmem:[#allocation96_spill] sm:$0xff] %v10849_v46  ;;  %v2251_v18 = vpop.f32.mrf.mxu1 }
 0x41a   :  { %v10855_v4 = vadd.f32 %v2251_v18, %v16532_v3 }
 0x41b   :  { %7082 = vmatmul.msk.f32.gmra.mxu0 %vm186_vm1, %v16534_v16  ;;  %v16537_v16 = vld [vmem:[#allocation26_spill] sm:$0xff] }
 0x41c   :  { %16533 = vst [vmem:[#allocation42_spill] sm:$0xff] %v10855_v4  ;;  %7127 = vmatmul.msk.f32.gmra.mxu1 %vm186_vm1, %v7810_v10  ;;  %7176 = vmatmul.msk.f32.gmra.mxu2 %vm186_vm1, %v7806_v55  ;;  %v10872_v46 = vadd.f32 %v2093_v62, %v16537_v16 }
 0x41d   :  { %7225 = vmatmul.msk.f32.gmra.mxu3 %vm186_vm1, %v7806_v55  ;;  %v7811_v55 = vld [vmem:[%s15984_s0 + $0x150] sm:$0xff] }
 0x41e   :  { %16538 = vst [vmem:[#allocation26_spill] sm:$0xff] %v10872_v46  ;;  %v16548_v46 = vld [vmem:[#allocation52_spill] sm:$0xff] }
 0x41f   :  { %v10867_v51 = vpop.f32.mrf.mxu2 }
 0x420   :  { %16535 = vst [vmem:[#allocation43_spill] sm:$0xff] %v10867_v51  ;;  %v10869_v3 = vpop.f32.mrf.mxu3  ;;  %v2105_v18 = vpop.f32.mrf.mxu0  ;;  %v16553_v51 = vld [vmem:[#allocation51_spill] sm:$0xff] }
 0x421   :  { %16536 = vst [vmem:[#allocation97_spill] sm:$0xff] %v10869_v3  ;;  %v2254_v30 = vpop.f32.mrf.mxu1 }
 0x422   :  { %v10875_v4 = vadd.f32 %v2254_v30, %v16539_v29 }
 0x423   :  { %7083 = vmatmul.msk.f32.gmra.mxu0 %vm186_vm1, %v16541_v39  ;;  %v16544_v39 = vld [vmem:[#allocation29_spill] sm:$0xff] }
 0x424   :  { %16540 = vst [vmem:[#allocation45_spill] sm:$0xff] %v10875_v4  ;;  %7128 = vmatmul.msk.f32.gmra.mxu1 %vm186_vm1, %v7811_v55  ;;  %7177 = vmatmul.msk.f32.gmra.mxu2 %vm186_vm1, %v7807_v21  ;;  %v10892_v3 = vadd.f32 %v2096_v52, %v16544_v39 }
 0x425   :  { %7226 = vmatmul.msk.f32.gmra.mxu3 %vm186_vm1, %v7807_v21  ;;  %v7812_v21 = vld [vmem:[%s15984_s0 + $0x158] sm:$0xff] }
 0x426   :  { %16545 = vst [vmem:[#allocation29_spill] sm:$0xff] %v10892_v3  ;;  %v10920_v3 = vld [vmem:[%s15984_s0 + $0x180] sm:$0xff] }
 0x427   :  { %v10887_v62 = vpop.f32.mrf.mxu2 }
 0x428   :  { %16542 = vst [vmem:[#allocation47_spill] sm:$0xff] %v10887_v62  ;;  %v10889_v29 = vpop.f32.mrf.mxu3  ;;  %v2108_v30 = vpop.f32.mrf.mxu0 }
 0x429   :  { %16543 = vst [vmem:[#allocation98_spill] sm:$0xff] %v10889_v29  ;;  %v2257_v16 = vpop.f32.mrf.mxu1 }
 0x42a   :  { %v10895_v4 = vadd.f32 %v2257_v16, %v16546_v14 }
 0x42b   :  { %7084 = vmatmul.msk.f32.gmra.mxu0 %vm186_vm1, %v16548_v46  ;;  %v16551_v46 = vld [vmem:[#allocation31_spill] sm:$0xff] }
 0x42c   :  { %16547 = vst [vmem:[#allocation48_spill] sm:$0xff] %v10895_v4  ;;  %7129 = vmatmul.msk.f32.gmra.mxu1 %vm186_vm1, %v7812_v21  ;;  %7178 = vmatmul.msk.f32.gmra.mxu2 %vm186_vm1, %v7808_v19  ;;  %v10912_v29 = vadd.f32 %v2099_v9, %v16551_v46 }
 0x42d   :  { %7227 = vmatmul.msk.f32.gmra.mxu3 %vm186_vm1, %v7808_v19  ;;  %v16559_v19 = vld [vmem:[#allocation34_spill] sm:$0xff] }
 0x42e   :  { %16552 = vst [vmem:[#allocation31_spill] sm:$0xff] %v10912_v29  ;;  %v10945_v29 = vld [vmem:[%s15984_s0 + $0x188] sm:$0xff] }
 0x42f   :  { %v10907_v52 = vpop.f32.mrf.mxu2 }
 0x430   :  { %16549 = vst [vmem:[#allocation52_spill] sm:$0xff] %v10907_v52  ;;  %v10909_v14 = vpop.f32.mrf.mxu3  ;;  %v2111_v16 = vpop.f32.mrf.mxu0  ;;  %v16557_v52 = vld [vmem:[#allocation33_spill] sm:$0xff] }
 0x431   :  { %16550 = vst [vmem:[#allocation99_spill] sm:$0xff] %v10909_v14  ;;  %v2260_v39 = vpop.f32.mrf.mxu1  ;;  %v7814_v14 = vld [vmem:[%s15984_s0 + $0x160] sm:$0xff]  ;;  %v10937_v62 = vadd.f32 %v2102_v60, %v16557_v52 }
 0x432   :  { %v10915_v4 = vadd.f32 %v2260_v39, %v16553_v51 }
 0x433   :  { %7085 = vmatmul.msk.f32.gmra.mxu0 %vm186_vm1, %v10920_v3  ;;  %16558 = vst [vmem:[#allocation33_spill] sm:$0xff] %v10937_v62  ;;  %v10970_v62 = vld [vmem:[%s15984_s0 + $0x190] sm:$0xff] }
 0x434   :  { %16554 = vst [vmem:[#allocation51_spill] sm:$0xff] %v10915_v4  ;;  %7130 = vmatmul.msk.f32.gmra.mxu1 %vm186_vm1, %v7814_v14  ;;  %7179 = vmatmul.msk.f32.gmra.mxu2 %vm186_vm1, %v7809_v33 }
 0x435   :  { %7228 = vmatmul.msk.f32.gmra.mxu3 %vm186_vm1, %v7809_v33  ;;  %v16565_v33 = vld [vmem:[#allocation36_spill] sm:$0xff] }
 0x437   :  { %v10932_v9 = vpop.f32.mrf.mxu2 }
 0x438   :  { %16555 = vst [vmem:[#allocation100_spill] sm:$0xff] %v10932_v9  ;;  %v10934_v51 = vpop.f32.mrf.mxu3  ;;  %v2114_v39 = vpop.f32.mrf.mxu0  ;;  %v16563_v9 = vld [vmem:[#allocation56_spill] sm:$0xff] }
 0x439   :  { %16556 = vst [vmem:[#allocation101_spill] sm:$0xff] %v10934_v51  ;;  %v2263_v46 = vpop.f32.mrf.mxu1  ;;  %v7816_v51 = vld [vmem:[%s15984_s0 + $0x168] sm:$0xff]  ;;  %v10962_v23 = vadd.f32 %v2105_v18, %v16563_v9 }
 0x43a   :  { %v10940_v4 = vadd.f32 %v2263_v46, %v16559_v19 }
 0x43b   :  { %7086 = vmatmul.msk.f32.gmra.mxu0 %vm186_vm1, %v10945_v29  ;;  %16564 = vst [vmem:[#allocation56_spill] sm:$0xff] %v10962_v23  ;;  %v10995_v23 = vld [vmem:[%s15984_s0 + $0x198] sm:$0xff] }
 0x43c   :  { %16560 = vst [vmem:[#allocation34_spill] sm:$0xff] %v10940_v4  ;;  %7131 = vmatmul.msk.f32.gmra.mxu1 %vm186_vm1, %v7816_v51  ;;  %7180 = vmatmul.msk.f32.gmra.mxu2 %vm186_vm1, %v7810_v10 }
 0x43d   :  { %7229 = vmatmul.msk.f32.gmra.mxu3 %vm186_vm1, %v7810_v10  ;;  %v16571_v10 = vld [vmem:[#allocation38_spill] sm:$0xff] }
 0x43f   :  { %v10957_v60 = vpop.f32.mrf.mxu2 }
 0x440   :  { %16561 = vst [vmem:[#allocation102_spill] sm:$0xff] %v10957_v60  ;;  %v10959_v52 = vpop.f32.mrf.mxu3  ;;  %v2117_v19 = vpop.f32.mrf.mxu0  ;;  %v16569_v60 = vld [vmem:[#allocation59_spill] sm:$0xff] }
 0x441   :  { %16562 = vst [vmem:[#allocation103_spill] sm:$0xff] %v10959_v52  ;;  %v2266_v46 = vpop.f32.mrf.mxu1  ;;  %v7818_v52 = vld [vmem:[%s15984_s0 + $0x170] sm:$0xff]  ;;  %v10987_v48 = vadd.f32 %v2108_v30, %v16569_v60 }
 0x442   :  { %v10965_v4 = vadd.f32 %v2266_v46, %v16565_v33 }
 0x443   :  { %7087 = vmatmul.msk.f32.gmra.mxu0 %vm186_vm1, %v10970_v62  ;;  %16570 = vst [vmem:[#allocation59_spill] sm:$0xff] %v10987_v48 }
 0x444   :  { %16566 = vst [vmem:[#allocation36_spill] sm:$0xff] %v10965_v4  ;;  %7132 = vmatmul.msk.f32.gmra.mxu1 %vm186_vm1, %v7818_v52  ;;  %7181 = vmatmul.msk.f32.gmra.mxu2 %vm186_vm1, %v7811_v55 }
 0x445   :  { %7230 = vmatmul.msk.f32.gmra.mxu3 %vm186_vm1, %v7811_v55 }
 0x447   :  { %v10982_v18 = vpop.f32.mrf.mxu2 }
 0x448   :  { %16567 = vst [vmem:[#allocation104_spill] sm:$0xff] %v10982_v18  ;;  %v10984_v9 = vpop.f32.mrf.mxu3  ;;  %v2120_v33 = vpop.f32.mrf.mxu0  ;;  %v16577_v18 = vld [vmem:[#allocation41_spill] sm:$0xff] }
 0x449   :  { %16568 = vst [vmem:[#allocation105_spill] sm:$0xff] %v10984_v9  ;;  %v2269_v46 = vpop.f32.mrf.mxu1  ;;  %v7820_v9 = vld [vmem:[%s15984_s0 + $0x178] sm:$0xff] }
 0x44a   :  { %v10990_v4 = vadd.f32 %v2269_v46, %v16571_v10  ;;  %v86_v46 = vld [vmem:[%s15984_s0 + $0x1a0] sm:$0xff] }
 0x44b   :  { %7088 = vmatmul.msk.f32.gmra.mxu0 %vm186_vm1, %v10995_v23 }
 0x44c   :  { %16572 = vst [vmem:[#allocation38_spill] sm:$0xff] %v10990_v4  ;;  %7133 = vmatmul.msk.f32.gmra.mxu1 %vm186_vm1, %v7820_v9  ;;  %7182 = vmatmul.msk.f32.gmra.mxu2 %vm186_vm1, %v7812_v21  ;;  %v16575_v4 = vld [vmem:[#allocation40_spill] sm:$0xff] }
 0x44d   :  { %7231 = vmatmul.msk.f32.gmra.mxu3 %vm186_vm1, %v7812_v21  ;;  %v11015_v48 = vadd.f32 %v2111_v16, %v16575_v4  ;;  %v87_v16 = vld [vmem:[%s15984_s0 + $0x1a8] sm:$0xff]  ;;  %v16583_v21 = vld [vmem:[#allocation46_spill] sm:$0xff] }
 0x44f   :  { %v11007_v30 = vpop.f32.mrf.mxu2  ;;  %16576 = vst [vmem:[#allocation40_spill] sm:$0xff] %v11015_v48 }
 0x450   :  { %16573 = vst [vmem:[#allocation106_spill] sm:$0xff] %v11007_v30  ;;  %v11009_v60 = vpop.f32.mrf.mxu3  ;;  %v2123_v10 = vpop.f32.mrf.mxu0 }
 0x451   :  { %16574 = vst [vmem:[#allocation107_spill] sm:$0xff] %v11009_v60  ;;  %v2272_v55 = vpop.f32.mrf.mxu1 }
 0x452   :  { %v11018_v27 = vadd.f32 %v2272_v55, %v16577_v18  ;;  %v16581_v55 = vld [vmem:[#allocation44_spill] sm:$0xff] }
 0x453   :  { %7089 = vmatmul.msk.f32.gmra.mxu0 %vm186_vm1, %v86_v46  ;;  %v11035_v2 = vadd.f32 %v2114_v39, %v16581_v55  ;;  %v16587_v55 = vld [vmem:[#allocation49_spill] sm:$0xff] }
 0x454   :  { %16578 = vst [vmem:[#allocation41_spill] sm:$0xff] %v11018_v27  ;;  %7134 = vmatmul.msk.f32.gmra.mxu1 %vm186_vm1, %v10920_v3  ;;  %7183 = vmatmul.msk.f32.gmra.mxu2 %vm186_vm1, %v7814_v14 }
 0x455   :  { %7232 = vmatmul.msk.f32.gmra.mxu3 %vm186_vm1, %v7814_v14  ;;  %16582 = vst [vmem:[#allocation44_spill] sm:$0xff] %v11035_v2  ;;  %v16589_v14 = vld [vmem:[#allocation50_spill] sm:$0xff] }
 0x457   :  { %v11027_v60 = vpop.f32.mrf.mxu2 }
 0x458   :  { %16579 = vst [vmem:[#allocation108_spill] sm:$0xff] %v11027_v60  ;;  %v11029_v30 = vpop.f32.mrf.mxu3  ;;  %v2126_v4 = vpop.f32.mrf.mxu0  ;;  %v11055_v60 = vadd.f32 %v2117_v19, %v16587_v55  ;;  %v11075_v55 = vadd.f32 %v2120_v33, %v10025_v45 }
 0x459   :  { %16580 = vst [vmem:[#allocation109_spill] sm:$0xff] %v11029_v30  ;;  %v2275_v18 = vpop.f32.mrf.mxu1 }
 0x45a   :  { %v11038_v27 = vadd.f32 %v2275_v18, %v16583_v21  ;;  %v88_v21 = vld [vmem:[%s15984_s0 + $0x1b0] sm:$0xff]  ;;  %16588 = vst [vmem:[#allocation49_spill] sm:$0xff] %v11055_v60 }
 0x45b   :  { %7090 = vmatmul.msk.f32.gmra.mxu0 %vm186_vm1, %v87_v16  ;;  %16593 = vst [vmem:[#allocation114_spill] sm:$0xff] %v11075_v55 }
 0x45c   :  { %16584 = vst [vmem:[#allocation46_spill] sm:$0xff] %v11038_v27  ;;  %7135 = vmatmul.msk.f32.gmra.mxu1 %vm186_vm1, %v10945_v29  ;;  %7184 = vmatmul.msk.f32.gmra.mxu2 %vm186_vm1, %v7816_v51 }
 0x45d   :  { %7233 = vmatmul.msk.f32.gmra.mxu3 %vm186_vm1, %v7816_v51 }
 0x45f   :  { %v11047_v48 = vpop.f32.mrf.mxu2 }
 0x460   :  { %16585 = vst [vmem:[#allocation110_spill] sm:$0xff] %v11047_v48  ;;  %v11049_v30 = vpop.f32.mrf.mxu3  ;;  %v2129_v39 = vpop.f32.mrf.mxu0 }
 0x461   :  { %16586 = vst [vmem:[#allocation111_spill] sm:$0xff] %v11049_v30  ;;  %v2278_v18 = vpop.f32.mrf.mxu1 }
 0x462   :  { %v11058_v27 = vadd.f32 %v2278_v18, %v16589_v14  ;;  %v89_v14 = vld [vmem:[%s15984_s0 + $0x1b8] sm:$0xff] }
 0x463   :  { %7091 = vmatmul.msk.f32.gmra.mxu0 %vm186_vm1, %v88_v21 }
 0x464   :  { %16590 = vst [vmem:[#allocation50_spill] sm:$0xff] %v11058_v27  ;;  %7136 = vmatmul.msk.f32.gmra.mxu1 %vm186_vm1, %v10970_v62  ;;  %7185 = vmatmul.msk.f32.gmra.mxu2 %vm186_vm1, %v7818_v52 }
 0x465   :  { %7234 = vmatmul.msk.f32.gmra.mxu3 %vm186_vm1, %v7818_v52  ;;  %v7821_v52 = vld [vmem:[%s15984_s0 + $0x1c0] sm:$0xff] }
 0x467   :  { %v11067_v2 = vpop.f32.mrf.mxu2 }
 0x468   :  { %16591 = vst [vmem:[#allocation112_spill] sm:$0xff] %v11067_v2  ;;  %v11069_v30 = vpop.f32.mrf.mxu3  ;;  %v2132_v19 = vpop.f32.mrf.mxu0 }
 0x469   :  { %16592 = vst [vmem:[#allocation113_spill] sm:$0xff] %v11069_v30  ;;  %v2281_v18 = vpop.f32.mrf.mxu1 }
 0x46a   :  { %v11078_v51 = vadd.f32 %v2281_v18, %v10029_v24  ;;  %v11092_v24 = vadd.f32 %v2123_v10, %v10050_v31 }
 0x46b   :  { %7092 = vmatmul.msk.f32.gmra.mxu0 %vm186_vm1, %v89_v14 }
 0x46c   :  { %16594 = vst [vmem:[#allocation115_spill] sm:$0xff] %v11078_v51  ;;  %7137 = vmatmul.msk.f32.gmra.mxu1 %vm186_vm1, %v10995_v23  ;;  %7186 = vmatmul.msk.f32.gmra.mxu2 %vm186_vm1, %v7820_v9  ;;  %v11113_v51 = vadd.f32 %v2126_v4, %v10074_v38 }
 0x46d   :  { %7235 = vmatmul.msk.f32.gmra.mxu3 %vm186_vm1, %v7820_v9  ;;  %16597 = vst [vmem:[#allocation118_spill] sm:$0xff] %v11092_v24  ;;  %v11134_v9 = vadd.f32 %v2129_v39, %v10092_v12 }
 0x46e   :  { %16601 = vst [vmem:[#allocation122_spill] sm:$0xff] %v11113_v51 }
 0x46f   :  { %v11087_v27 = vpop.f32.mrf.mxu2  ;;  %16605 = vst [vmem:[#allocation126_spill] sm:$0xff] %v11134_v9 }
 0x470   :  { %16595 = vst [vmem:[#allocation116_spill] sm:$0xff] %v11087_v27  ;;  %v11089_v60 = vpop.f32.mrf.mxu3  ;;  %v2135_v45 = vpop.f32.mrf.mxu0  ;;  %v11667_v27 = vld [vmem:[%s15984_s0 + $0x288] sm:$0xff] }
 0x471   :  { %16596 = vst [vmem:[#allocation117_spill] sm:$0xff] %v11089_v60  ;;  %v2284_v33 = vpop.f32.mrf.mxu1 }
 0x472   :  { %v11095_v18 = vadd.f32 %v2284_v33, %v10054_v15 }
 0x473   :  { %7241 = vmatmul.msk.f32.vlgmr.msrb.gmra.mxu0 %vm186_vm1, %v7821_v52 }
 0x474   :  { %16598 = vst [vmem:[#allocation119_spill] sm:$0xff] %v11095_v18  ;;  %7138 = vmatmul.msk.f32.gmra.mxu1 %vm186_vm1, %v86_v46  ;;  %7187 = vmatmul.msk.f32.gmra.mxu2 %vm186_vm1, %v10920_v3  ;;  %v7822_v46 = vld [vmem:[%s15984_s0 + $0x1c8] sm:$0xff] }
 0x475   :  { %7236 = vmatmul.msk.f32.gmra.mxu3 %vm186_vm1, %v10920_v3  ;;  %v11155_v3 = vadd.f32 %v2132_v19, %v10110_v61 }
 0x477   :  { %v11108_v31 = vpop.f32.mrf.mxu2  ;;  %16609 = vst [vmem:[#allocation130_spill] sm:$0xff] %v11155_v3  ;;  %v11604_v3 = vld [vmem:[%s15984_s0 + $0x270] sm:$0xff] }
 0x478   :  { %16599 = vst [vmem:[#allocation120_spill] sm:$0xff] %v11108_v31  ;;  %v11110_v15 = vpop.f32.mrf.mxu3  ;;  %v2138_v10 = vpop.f32.mrf.mxu0 }
 0x479   :  { %16600 = vst [vmem:[#allocation121_spill] sm:$0xff] %v11110_v15  ;;  %v2287_v33 = vpop.f32.mrf.mxu1 }
 0x47a   :  { %v11116_v55 = vadd.f32 %v2287_v33, %v10078_v11 }
 0x47b   :  { %7242 = vmatmul.msk.f32.gmra.mxu0 %vm186_vm1, %v7822_v46 }
 0x47c   :  { %16602 = vst [vmem:[#allocation123_spill] sm:$0xff] %v11116_v55  ;;  %7139 = vmatmul.msk.f32.gmra.mxu1 %vm186_vm1, %v87_v16  ;;  %7188 = vmatmul.msk.f32.gmra.mxu2 %vm186_vm1, %v10945_v29  ;;  %v7823_v16 = vld [vmem:[%s15984_s0 + $0x1d0] sm:$0xff] }
 0x47d   :  { %7237 = vmatmul.msk.f32.gmra.mxu3 %vm186_vm1, %v10945_v29  ;;  %v11176_v29 = vadd.f32 %v2135_v45, %v10146_v1 }
 0x47f   :  { %v11129_v38 = vpop.f32.mrf.mxu2  ;;  %16613 = vst [vmem:[#allocation134_spill] sm:$0xff] %v11176_v29 }
 0x480   :  { %16603 = vst [vmem:[#allocation124_spill] sm:$0xff] %v11129_v38  ;;  %v11131_v11 = vpop.f32.mrf.mxu3  ;;  %v2141_v4 = vpop.f32.mrf.mxu0 }
 0x481   :  { %16604 = vst [vmem:[#allocation125_spill] sm:$0xff] %v11131_v11  ;;  %v2290_v33 = vpop.f32.mrf.mxu1  ;;  %v11646_v11 = vld [vmem:[%s15984_s0 + $0x280] sm:$0xff] }
 0x482   :  { %v11137_v18 = vadd.f32 %v2290_v33, %v10096_v56 }
 0x483   :  { %7243 = vmatmul.msk.f32.gmra.mxu0 %vm186_vm1, %v7823_v16 }
 0x484   :  { %16606 = vst [vmem:[#allocation127_spill] sm:$0xff] %v11137_v18  ;;  %7140 = vmatmul.msk.f32.gmra.mxu1 %vm186_vm1, %v88_v21  ;;  %7189 = vmatmul.msk.f32.gmra.mxu2 %vm186_vm1, %v10970_v62  ;;  %v7824_v21 = vld [vmem:[%s15984_s0 + $0x1d8] sm:$0xff] }
 0x485   :  { %7238 = vmatmul.msk.f32.gmra.mxu3 %vm186_vm1, %v10970_v62  ;;  %v11195_v62 = vadd.f32 %v2138_v10, %v10180_v37 }
 0x487   :  { %v11150_v12 = vpop.f32.mrf.mxu2  ;;  %16617 = vst [vmem:[#allocation138_spill] sm:$0xff] %v11195_v62 }
 0x488   :  { %16607 = vst [vmem:[#allocation128_spill] sm:$0xff] %v11150_v12  ;;  %v11152_v56 = vpop.f32.mrf.mxu3  ;;  %v2144_v39 = vpop.f32.mrf.mxu0 }
 0x489   :  { %16608 = vst [vmem:[#allocation129_spill] sm:$0xff] %v11152_v56  ;;  %v2293_v33 = vpop.f32.mrf.mxu1 }
 0x48a   :  { %v11158_v55 = vadd.f32 %v2293_v33, %v10114_v7 }
 0x48b   :  { %7244 = vmatmul.msk.f32.gmra.mxu0 %vm186_vm1, %v7824_v21 }
 0x48c   :  { %16610 = vst [vmem:[#allocation131_spill] sm:$0xff] %v11158_v55  ;;  %7141 = vmatmul.msk.f32.gmra.mxu1 %vm186_vm1, %v89_v14  ;;  %7190 = vmatmul.msk.f32.gmra.mxu2 %vm186_vm1, %v10995_v23  ;;  %v7825_v14 = vld [vmem:[%s15984_s0 + $0x1e0] sm:$0xff] }
 0x48d   :  { %7239 = vmatmul.msk.f32.gmra.mxu3 %vm186_vm1, %v10995_v23 }
 0x48f   :  { %v11171_v61 = vpop.f32.mrf.mxu2 }
 0x490   :  { %16611 = vst [vmem:[#allocation132_spill] sm:$0xff] %v11171_v61  ;;  %v11173_v7 = vpop.f32.mrf.mxu3  ;;  %v2147_v19 = vpop.f32.mrf.mxu0  ;;  %v11625_v61 = vld [vmem:[%s15984_s0 + $0x278] sm:$0xff] }
 0x491   :  { %16612 = vst [vmem:[#allocation133_spill] sm:$0xff] %v11173_v7  ;;  %v2296_v33 = vpop.f32.mrf.mxu1 }
 0x492   :  { %v11179_v18 = vadd.f32 %v2296_v33, %v10154_v58 }
 0x493   :  { %7245 = vmatmul.msk.f32.gmra.mxu0 %vm186_vm1, %v7825_v14 }
 0x494   :  { %16614 = vst [vmem:[#allocation135_spill] sm:$0xff] %v11179_v18  ;;  %7290 = vmatmul.msk.f32.vlgmr.msra.gmra.mxu1 %vm186_vm1, %v7821_v52  ;;  %7339 = vmatmul.msk.f32.vlgmr.msra.gmra.mxu2 %vm186_vm1, %v7825_v14  ;;  %v7826_v52 = vld [vmem:[%s15984_s0 + $0x1e8] sm:$0xff]  ;;  %v11214_v18 = vadd.f32 %v2141_v4, %v10200_v41 }
 0x495   :  { %7388 = vmatmul.msk.f32.vlgmr.msra.gmra.mxu3 %vm186_vm1, %v7825_v14 }
 0x496   :  { %16621 = vst [vmem:[#allocation142_spill] sm:$0xff] %v11214_v18 }
 0x497   :  { %v11190_v1 = vpop.f32.mrf.mxu2 }
 0x498   :  { %16615 = vst [vmem:[#allocation136_spill] sm:$0xff] %v11190_v1  ;;  %v11192_v45 = vpop.f32.mrf.mxu3  ;;  %v2150_v58 = vpop.f32.mrf.mxu0 }
 0x499   :  { %16616 = vst [vmem:[#allocation137_spill] sm:$0xff] %v11192_v45  ;;  %v2299_v33 = vpop.f32.mrf.mxu1 }
 0x49a   :  { %v11198_v55 = vadd.f32 %v2299_v33, %v10184_v42 }
 0x49b   :  { %7246 = vmatmul.msk.f32.gmra.mxu0 %vm186_vm1, %v7826_v52 }
 0x49c   :  { %16618 = vst [vmem:[#allocation139_spill] sm:$0xff] %v11198_v55  ;;  %7291 = vmatmul.msk.f32.gmra.mxu1 %vm186_vm1, %v7822_v46  ;;  %7340 = vmatmul.msk.f32.gmra.mxu2 %vm186_vm1, %v7826_v52  ;;  %v7827_v46 = vld [vmem:[%s15984_s0 + $0x1f0] sm:$0xff]  ;;  %v11233_v55 = vadd.f32 %v2144_v39, %v10220_v32 }
 0x49d   :  { %7389 = vmatmul.msk.f32.gmra.mxu3 %vm186_vm1, %v7826_v52 }
 0x49e   :  { %16625 = vst [vmem:[#allocation146_spill] sm:$0xff] %v11233_v55 }
 0x49f   :  { %v11209_v37 = vpop.f32.mrf.mxu2 }
 0x4a0   :  { %16619 = vst [vmem:[#allocation140_spill] sm:$0xff] %v11209_v37  ;;  %v11211_v10 = vpop.f32.mrf.mxu3  ;;  %v2153_v42 = vpop.f32.mrf.mxu0 }
 0x4a1   :  { %16620 = vst [vmem:[#allocation141_spill] sm:$0xff] %v11211_v10  ;;  %v2302_v33 = vpop.f32.mrf.mxu1 }
 0x4a2   :  { %v11217_v29 = vadd.f32 %v2302_v33, %v10204_v8 }
 0x4a3   :  { %7247 = vmatmul.msk.f32.gmra.mxu0 %vm186_vm1, %v7827_v46 }
 0x4a4   :  { %16622 = vst [vmem:[#allocation143_spill] sm:$0xff] %v11217_v29  ;;  %7292 = vmatmul.msk.f32.gmra.mxu1 %vm186_vm1, %v7823_v16  ;;  %7341 = vmatmul.msk.f32.gmra.mxu2 %vm186_vm1, %v7827_v46  ;;  %v7828_v16 = vld [vmem:[%s15984_s0 + $0x1f8] sm:$0xff]  ;;  %v11252_v29 = vadd.f32 %v2147_v19, %v10239_v63 }
 0x4a5   :  { %7390 = vmatmul.msk.f32.gmra.mxu3 %vm186_vm1, %v7827_v46 }
 0x4a6   :  { %16629 = vst [vmem:[#allocation150_spill] sm:$0xff] %v11252_v29 }
 0x4a7   :  { %v11228_v41 = vpop.f32.mrf.mxu2 }
 0x4a8   :  { %16623 = vst [vmem:[#allocation144_spill] sm:$0xff] %v11228_v41  ;;  %v11230_v4 = vpop.f32.mrf.mxu3  ;;  %v2156_v8 = vpop.f32.mrf.mxu0 }
 0x4a9   :  { %16624 = vst [vmem:[#allocation145_spill] sm:$0xff] %v11230_v4  ;;  %v2305_v33 = vpop.f32.mrf.mxu1 }
 0x4aa   :  { %v11236_v62 = vadd.f32 %v2305_v33, %v10224_v49 }
 0x4ab   :  { %7248 = vmatmul.msk.f32.gmra.mxu0 %vm186_vm1, %v7828_v16 }
 0x4ac   :  { %16626 = vst [vmem:[#allocation147_spill] sm:$0xff] %v11236_v62  ;;  %7293 = vmatmul.msk.f32.gmra.mxu1 %vm186_vm1, %v7824_v21  ;;  %7342 = vmatmul.msk.f32.gmra.mxu2 %vm186_vm1, %v7828_v16  ;;  %v11260_v21 = vld [vmem:[%s15984_s0 + $0x200] sm:$0xff]  ;;  %v11276_v62 = vadd.f32 %v2150_v58, %v10256_v40 }
 0x4ad   :  { %7391 = vmatmul.msk.f32.gmra.mxu3 %vm186_vm1, %v7828_v16 }
 0x4ae   :  { %16633 = vst [vmem:[#allocation154_spill] sm:$0xff] %v11276_v62 }
 0x4af   :  { %v11247_v32 = vpop.f32.mrf.mxu2 }
 0x4b0   :  { %16627 = vst [vmem:[#allocation148_spill] sm:$0xff] %v11247_v32  ;;  %v11249_v39 = vpop.f32.mrf.mxu3  ;;  %v2159_v49 = vpop.f32.mrf.mxu0 }
 0x4b1   :  { %16628 = vst [vmem:[#allocation149_spill] sm:$0xff] %v11249_v39  ;;  %v2308_v33 = vpop.f32.mrf.mxu1  ;;  %v16669_v39 = vld [vmem:[#allocation65_spill] sm:$0xff] }
 0x4b2   :  { %v11255_v18 = vadd.f32 %v2308_v33, %v10243_v13 }
 0x4b3   :  { %7249 = vmatmul.msk.f32.gmra.mxu0 %vm186_vm1, %v11260_v21 }
 0x4b4   :  { %16630 = vst [vmem:[#allocation151_spill] sm:$0xff] %v11255_v18  ;;  %7294 = vmatmul.msk.f32.gmra.mxu1 %vm186_vm1, %v7825_v14  ;;  %7343 = vmatmul.msk.f32.gmra.mxu2 %vm186_vm1, %v11260_v21  ;;  %v11284_v14 = vld [vmem:[%s15984_s0 + $0x208] sm:$0xff]  ;;  %v16637_v18 = vld [vmem:[#allocation53_spill] sm:$0xff] }
 0x4b5   :  { %7392 = vmatmul.msk.f32.gmra.mxu3 %vm186_vm1, %v11260_v21  ;;  %v11300_v29 = vadd.f32 %v2153_v42, %v16637_v18 }
 0x4b7   :  { %v11271_v63 = vpop.f32.mrf.mxu2  ;;  %16638 = vst [vmem:[#allocation53_spill] sm:$0xff] %v11300_v29 }
 0x4b8   :  { %16631 = vst [vmem:[#allocation152_spill] sm:$0xff] %v11271_v63  ;;  %v11273_v13 = vpop.f32.mrf.mxu3  ;;  %v2162_v19 = vpop.f32.mrf.mxu0 }
 0x4b9   :  { %16632 = vst [vmem:[#allocation153_spill] sm:$0xff] %v11273_v13  ;;  %v2311_v33 = vpop.f32.mrf.mxu1  ;;  %v16639_v13 = vld [vmem:[#allocation54_spill] sm:$0xff] }
 0x4ba   :  { %v11279_v55 = vadd.f32 %v2311_v33, %v10260_v50 }
 0x4bb   :  { %7250 = vmatmul.msk.f32.gmra.mxu0 %vm186_vm1, %v11284_v14 }
 0x4bc   :  { %16634 = vst [vmem:[#allocation155_spill] sm:$0xff] %v11279_v55  ;;  %7295 = vmatmul.msk.f32.gmra.mxu1 %vm186_vm1, %v7826_v52  ;;  %7344 = vmatmul.msk.f32.gmra.mxu2 %vm186_vm1, %v11284_v14  ;;  %v11308_v52 = vld [vmem:[%s15984_s0 + $0x210] sm:$0xff]  ;;  %v16643_v55 = vld [vmem:[#allocation55_spill] sm:$0xff] }
 0x4bd   :  { %7393 = vmatmul.msk.f32.gmra.mxu3 %vm186_vm1, %v11284_v14  ;;  %v11324_v62 = vadd.f32 %v2156_v8, %v16643_v55 }
 0x4bf   :  { %v11295_v40 = vpop.f32.mrf.mxu2  ;;  %16644 = vst [vmem:[#allocation55_spill] sm:$0xff] %v11324_v62 }
 0x4c0   :  { %16635 = vst [vmem:[#allocation156_spill] sm:$0xff] %v11295_v40  ;;  %v11297_v50 = vpop.f32.mrf.mxu3  ;;  %v2165_v58 = vpop.f32.mrf.mxu0 }
 0x4c1   :  { %16636 = vst [vmem:[#allocation157_spill] sm:$0xff] %v11297_v50  ;;  %v2314_v33 = vpop.f32.mrf.mxu1  ;;  %v16645_v50 = vld [vmem:[#allocation57_spill] sm:$0xff] }
 0x4c2   :  { %v11303_v63 = vadd.f32 %v2314_v33, %v16639_v13 }
 0x4c3   :  { %7251 = vmatmul.msk.f32.gmra.mxu0 %vm186_vm1, %v11308_v52 }
 0x4c4   :  { %16640 = vst [vmem:[#allocation54_spill] sm:$0xff] %v11303_v63  ;;  %7296 = vmatmul.msk.f32.gmra.mxu1 %vm186_vm1, %v7827_v46  ;;  %7345 = vmatmul.msk.f32.gmra.mxu2 %vm186_vm1, %v11308_v52  ;;  %v11332_v46 = vld [vmem:[%s15984_s0 + $0x218] sm:$0xff]  ;;  %v16649_v63 = vld [vmem:[#allocation58_spill] sm:$0xff] }
 0x4c5   :  { %7394 = vmatmul.msk.f32.gmra.mxu3 %vm186_vm1, %v11308_v52  ;;  %v11348_v29 = vadd.f32 %v2159_v49, %v16649_v63 }
 0x4c7   :  { %v11319_v18 = vpop.f32.mrf.mxu2  ;;  %16650 = vst [vmem:[#allocation58_spill] sm:$0xff] %v11348_v29 }
 0x4c8   :  { %16641 = vst [vmem:[#allocation158_spill] sm:$0xff] %v11319_v18  ;;  %v11321_v42 = vpop.f32.mrf.mxu3  ;;  %v2168_v13 = vpop.f32.mrf.mxu0 }
 0x4c9   :  { %16642 = vst [vmem:[#allocation159_spill] sm:$0xff] %v11321_v42  ;;  %v2317_v33 = vpop.f32.mrf.mxu1  ;;  %v16651_v42 = vld [vmem:[#allocation60_spill] sm:$0xff] }
 0x4ca   :  { %v11327_v40 = vadd.f32 %v2317_v33, %v16645_v50 }
 0x4cb   :  { %7252 = vmatmul.msk.f32.gmra.mxu0 %vm186_vm1, %v11332_v46 }
 0x4cc   :  { %16646 = vst [vmem:[#allocation57_spill] sm:$0xff] %v11327_v40  ;;  %7297 = vmatmul.msk.f32.gmra.mxu1 %vm186_vm1, %v7828_v16  ;;  %7346 = vmatmul.msk.f32.gmra.mxu2 %vm186_vm1, %v11332_v46  ;;  %v11356_v16 = vld [vmem:[%s15984_s0 + $0x220] sm:$0xff]  ;;  %v16655_v40 = vld [vmem:[#allocation61_spill] sm:$0xff] }
 0x4cd   :  { %7395 = vmatmul.msk.f32.gmra.mxu3 %vm186_vm1, %v11332_v46  ;;  %v11373_v62 = vadd.f32 %v2162_v19, %v16655_v40 }
 0x4cf   :  { %v11343_v55 = vpop.f32.mrf.mxu2  ;;  %16656 = vst [vmem:[#allocation61_spill] sm:$0xff] %v11373_v62 }
 0x4d0   :  { %16647 = vst [vmem:[#allocation160_spill] sm:$0xff] %v11343_v55  ;;  %v11345_v8 = vpop.f32.mrf.mxu3  ;;  %v2171_v50 = vpop.f32.mrf.mxu0  ;;  %v16663_v55 = vld [vmem:[#allocation80_spill] sm:$0xff] }
 0x4d1   :  { %16648 = vst [vmem:[#allocation161_spill] sm:$0xff] %v11345_v8  ;;  %v2320_v33 = vpop.f32.mrf.mxu1  ;;  %v16657_v8 = vld [vmem:[#allocation62_spill] sm:$0xff] }
 0x4d2   :  { %v11351_v18 = vadd.f32 %v2320_v33, %v16651_v42 }
 0x4d3   :  { %7253 = vmatmul.msk.f32.gmra.mxu0 %vm186_vm1, %v11356_v16 }
 0x4d4   :  { %16652 = vst [vmem:[#allocation60_spill] sm:$0xff] %v11351_v18  ;;  %7298 = vmatmul.msk.f32.gmra.mxu1 %vm186_vm1, %v11260_v21  ;;  %7347 = vmatmul.msk.f32.gmra.mxu2 %vm186_vm1, %v11356_v16  ;;  %v11381_v18 = vld [vmem:[%s15984_s0 + $0x228] sm:$0xff] }
 0x4d5   :  { %7396 = vmatmul.msk.f32.gmra.mxu3 %vm186_vm1, %v11356_v16 }
 0x4d7   :  { %v11368_v49 = vpop.f32.mrf.mxu2 }
 0x4d8   :  { %16653 = vst [vmem:[#allocation162_spill] sm:$0xff] %v11368_v49  ;;  %v11370_v63 = vpop.f32.mrf.mxu3  ;;  %v2174_v42 = vpop.f32.mrf.mxu0 }
 0x4d9   :  { %16654 = vst [vmem:[#allocation163_spill] sm:$0xff] %v11370_v63  ;;  %v2323_v33 = vpop.f32.mrf.mxu1  ;;  %v16661_v63 = vld [vmem:[#allocation63_spill] sm:$0xff] }
 0x4da   :  { %v11376_v23 = vadd.f32 %v2323_v33, %v16657_v8  ;;  %v11398_v49 = vadd.f32 %v2165_v58, %v16661_v63 }
 0x4db   :  { %7254 = vmatmul.msk.f32.gmra.mxu0 %vm186_vm1, %v11381_v18 }
 0x4dc   :  { %16658 = vst [vmem:[#allocation62_spill] sm:$0xff] %v11376_v23  ;;  %7299 = vmatmul.msk.f32.gmra.mxu1 %vm186_vm1, %v11284_v14  ;;  %7348 = vmatmul.msk.f32.gmra.mxu2 %vm186_vm1, %v11381_v18  ;;  %v11406_v23 = vld [vmem:[%s15984_s0 + $0x230] sm:$0xff] }
 0x4dd   :  { %7397 = vmatmul.msk.f32.gmra.mxu3 %vm186_vm1, %v11381_v18  ;;  %16662 = vst [vmem:[#allocation63_spill] sm:$0xff] %v11398_v49  ;;  %v16675_v49 = vld [vmem:[#allocation67_spill] sm:$0xff] }
 0x4df   :  { %v11393_v19 = vpop.f32.mrf.mxu2 }
 0x4e0   :  { %16659 = vst [vmem:[#allocation164_spill] sm:$0xff] %v11393_v19  ;;  %v11395_v40 = vpop.f32.mrf.mxu3  ;;  %v2177_v8 = vpop.f32.mrf.mxu0 }
 0x4e1   :  { %16660 = vst [vmem:[#allocation165_spill] sm:$0xff] %v11395_v40  ;;  %v2326_v33 = vpop.f32.mrf.mxu1  ;;  %v16667_v40 = vld [vmem:[#allocation64_spill] sm:$0xff] }
 0x4e2   :  { %v11401_v29 = vadd.f32 %v2326_v33, %v16663_v55  ;;  %v11423_v19 = vadd.f32 %v2168_v13, %v16667_v40 }
 0x4e3   :  { %7255 = vmatmul.msk.f32.gmra.mxu0 %vm186_vm1, %v11406_v23 }
 0x4e4   :  { %16664 = vst [vmem:[#allocation80_spill] sm:$0xff] %v11401_v29  ;;  %7300 = vmatmul.msk.f32.gmra.mxu1 %vm186_vm1, %v11308_v52  ;;  %7349 = vmatmul.msk.f32.gmra.mxu2 %vm186_vm1, %v11406_v23  ;;  %v11431_v29 = vld [vmem:[%s15984_s0 + $0x238] sm:$0xff] }
 0x4e5   :  { %7398 = vmatmul.msk.f32.gmra.mxu3 %vm186_vm1, %v11406_v23  ;;  %16668 = vst [vmem:[#allocation64_spill] sm:$0xff] %v11423_v19  ;;  %v11458_v19 = vld [vmem:[%s15984_s0 + $0x240] sm:$0xff] }
 0x4e7   :  { %v11418_v58 = vpop.f32.mrf.mxu2 }
 0x4e8   :  { %16665 = vst [vmem:[#allocation166_spill] sm:$0xff] %v11418_v58  ;;  %v11420_v55 = vpop.f32.mrf.mxu3  ;;  %v2180_v63 = vpop.f32.mrf.mxu0 }
 0x4e9   :  { %16666 = vst [vmem:[#allocation167_spill] sm:$0xff] %v11420_v55  ;;  %v2329_v33 = vpop.f32.mrf.mxu1  ;;  %v16673_v55 = vld [vmem:[#allocation66_spill] sm:$0xff] }
 0x4ea   :  { %v11426_v62 = vadd.f32 %v2329_v33, %v16669_v39  ;;  %v11450_v58 = vadd.f32 %v2171_v50, %v16673_v55 }
 0x4eb   :  { %7256 = vmatmul.msk.f32.gmra.mxu0 %vm186_vm1, %v11431_v29 }
 0x4ec   :  { %16670 = vst [vmem:[#allocation65_spill] sm:$0xff] %v11426_v62  ;;  %7301 = vmatmul.msk.f32.gmra.mxu1 %vm186_vm1, %v11332_v46  ;;  %7350 = vmatmul.msk.f32.gmra.mxu2 %vm186_vm1, %v11431_v29 }
 0x4ed   :  { %7399 = vmatmul.msk.f32.gmra.mxu3 %vm186_vm1, %v11431_v29  ;;  %16674 = vst [vmem:[#allocation66_spill] sm:$0xff] %v11450_v58  ;;  %v11485_v58 = vld [vmem:[%s15984_s0 + $0x248] sm:$0xff] }
 0x4ef   :  { %v11443_v39 = vpop.f32.mrf.mxu2 }
 0x4f0   :  { %16671 = vst [vmem:[#allocation168_spill] sm:$0xff] %v11443_v39  ;;  %v11445_v13 = vpop.f32.mrf.mxu3  ;;  %v11447_v40 = vpop.f32.mrf.mxu0  ;;  %v16679_v39 = vld [vmem:[#allocation68_spill] sm:$0xff] }
 0x4f1   :  { %16672 = vst [vmem:[#allocation169_spill] sm:$0xff] %v11445_v13  ;;  %v2332_v33 = vpop.f32.mrf.mxu1  ;;  %v11477_v32 = vadd.f32 %v2174_v42, %v16679_v39  ;;  %v16681_v13 = vld [vmem:[#allocation69_spill] sm:$0xff] }
 0x4f2   :  { %v11453_v62 = vadd.f32 %v2332_v33, %v16675_v49 }
 0x4f3   :  { %7257 = vmatmul.msk.f32.gmra.mxu0 %vm186_vm1, %v11458_v19  ;;  %16680 = vst [vmem:[#allocation68_spill] sm:$0xff] %v11477_v32  ;;  %v11512_v32 = vld [vmem:[%s15984_s0 + $0x250] sm:$0xff] }
 0x4f4   :  { %16676 = vst [vmem:[#allocation67_spill] sm:$0xff] %v11453_v62  ;;  %7302 = vmatmul.msk.f32.gmra.mxu1 %vm186_vm1, %v11356_v16  ;;  %7351 = vmatmul.msk.f32.gmra.mxu2 %vm186_vm1, %v11458_v19 }
 0x4f5   :  { %7400 = vmatmul.msk.f32.gmra.mxu3 %vm186_vm1, %v11458_v19 }
 0x4f7   :  { %v11470_v50 = vpop.f32.mrf.mxu2 }
 0x4f8   :  { %16677 = vst [vmem:[#allocation170_spill] sm:$0xff] %v11470_v50  ;;  %v11472_v49 = vpop.f32.mrf.mxu3  ;;  %v11474_v55 = vpop.f32.mrf.mxu0  ;;  %v16685_v50 = vld [vmem:[#allocation70_spill] sm:$0xff] }
 0x4f9   :  { %16678 = vst [vmem:[#allocation171_spill] sm:$0xff] %v11472_v49  ;;  %v2335_v33 = vpop.f32.mrf.mxu1  ;;  %v11504_v4 = vadd.f32 %v2177_v8, %v16685_v50  ;;  %v16687_v49 = vld [vmem:[#allocation71_spill] sm:$0xff] }
 0x4fa   :  { %v11480_v62 = vadd.f32 %v2335_v33, %v16681_v13 }
 0x4fb   :  { %7258 = vmatmul.msk.f32.gmra.mxu0 %vm186_vm1, %v11485_v58  ;;  %16686 = vst [vmem:[#allocation70_spill] sm:$0xff] %v11504_v4  ;;  %v11562_v4 = vld [vmem:[%s15984_s0 + $0x260] sm:$0xff] }
 0x4fc   :  { %16682 = vst [vmem:[#allocation69_spill] sm:$0xff] %v11480_v62  ;;  %7303 = vmatmul.msk.f32.gmra.mxu1 %vm186_vm1, %v11381_v18  ;;  %7352 = vmatmul.msk.f32.gmra.mxu2 %vm186_vm1, %v11485_v58 }
 0x4fd   :  { %7401 = vmatmul.msk.f32.gmra.mxu3 %vm186_vm1, %v11485_v58 }
 0x4ff   :  { %v11497_v42 = vpop.f32.mrf.mxu2 }
 0x500   :  { %16683 = vst [vmem:[#allocation172_spill] sm:$0xff] %v11497_v42  ;;  %v11499_v39 = vpop.f32.mrf.mxu3  ;;  %v11501_v13 = vpop.f32.mrf.mxu0  ;;  %v11531_v42 = vadd.f32 %v2180_v63, %v10454_v44 }
 0x501   :  { %16684 = vst [vmem:[#allocation173_spill] sm:$0xff] %v11499_v39  ;;  %v2338_v33 = vpop.f32.mrf.mxu1 }
 0x502   :  { %v11507_v62 = vadd.f32 %v2338_v33, %v16687_v49  ;;  %16691 = vst [vmem:[#allocation176_spill] sm:$0xff] %v11531_v42 }
 0x503   :  { %7259 = vmatmul.msk.f32.gmra.mxu0 %vm186_vm1, %v11512_v32 }
 0x504   :  { %16688 = vst [vmem:[#allocation71_spill] sm:$0xff] %v11507_v62  ;;  %7304 = vmatmul.msk.f32.gmra.mxu1 %vm186_vm1, %v11406_v23  ;;  %7353 = vmatmul.msk.f32.gmra.mxu2 %vm186_vm1, %v11512_v32  ;;  %v11539_v62 = vld [vmem:[%s15984_s0 + $0x258] sm:$0xff] }
 0x505   :  { %7402 = vmatmul.msk.f32.gmra.mxu3 %vm186_vm1, %v11512_v32 }
 0x507   :  { %v11524_v8 = vpop.f32.mrf.mxu2 }
 0x508   :  { %16689 = vst [vmem:[#allocation174_spill] sm:$0xff] %v11524_v8  ;;  %v11526_v50 = vpop.f32.mrf.mxu3  ;;  %v11528_v49 = vpop.f32.mrf.mxu0 }
 0x509   :  { %16690 = vst [vmem:[#allocation175_spill] sm:$0xff] %v11526_v50  ;;  %v2341_v33 = vpop.f32.mrf.mxu1  ;;  %v11583_v50 = vld [vmem:[%s15984_s0 + $0x268] sm:$0xff] }
 0x50a   :  { %v11534_v39 = vadd.f32 %v2341_v33, %v10456_v20 }
 0x50b   :  { %7260 = vmatmul.msk.f32.gmra.mxu0 %vm186_vm1, %v11539_v62 }
 0x50c   :  { %16692 = vst [vmem:[#allocation177_spill] sm:$0xff] %v11534_v39  ;;  %7305 = vmatmul.msk.f32.gmra.mxu1 %vm186_vm1, %v11431_v29  ;;  %7354 = vmatmul.msk.f32.gmra.mxu2 %vm186_vm1, %v11539_v62 }
 0x50d   :  { %7403 = vmatmul.msk.f32.gmra.mxu3 %vm186_vm1, %v11539_v62 }
 0x50f   :  { %v11551_v20 = vpop.f32.mrf.mxu2 }
 0x510   :  { %16693 = vst [vmem:[#allocation178_spill] sm:$0xff] %v11551_v20  ;;  %v11553_v44 = vpop.f32.mrf.mxu3  ;;  %v11555_v63 = vpop.f32.mrf.mxu0 }
 0x511   :  { %16694 = vst [vmem:[#allocation179_spill] sm:$0xff] %v11553_v44  ;;  %v11557_v33 = vpop.f32.mrf.mxu1 }
 0x513   :  { %7261 = vmatmul.msk.f32.gmra.mxu0 %vm186_vm1, %v11562_v4 }
 0x514   :  { %7306 = vmatmul.msk.f32.gmra.mxu1 %vm186_vm1, %v11458_v19  ;;  %7355 = vmatmul.msk.f32.gmra.mxu2 %vm186_vm1, %v11562_v4 }
 0x515   :  { %7404 = vmatmul.msk.f32.gmra.mxu3 %vm186_vm1, %v11562_v4 }
 0x517   :  { %v11572_v39 = vpop.f32.mrf.mxu2 }
 0x518   :  { %v11574_v42 = vpop.f32.mrf.mxu3  ;;  %v11576_v44 = vpop.f32.mrf.mxu0 }
 0x519   :  { %16695 = vst [vmem:[#allocation180_spill] sm:$0xff] %v11576_v44  ;;  %v11578_v20 = vpop.f32.mrf.mxu1  ;;  %v7853_v44 = vld [vmem:[%s15984_s0 + $0x2c0] sm:$0xff] }
 0x51b   :  { %7262 = vmatmul.msk.f32.gmra.mxu0 %vm186_vm1, %v11583_v50 }
 0x51c   :  { %7307 = vmatmul.msk.f32.gmra.mxu1 %vm186_vm1, %v11485_v58  ;;  %7356 = vmatmul.msk.f32.gmra.mxu2 %vm186_vm1, %v11583_v50 }
 0x51d   :  { %7405 = vmatmul.msk.f32.gmra.mxu3 %vm186_vm1, %v11583_v50 }
 0x51f   :  { %v11593_v8 = vpop.f32.mrf.mxu2 }
 0x520   :  { %v11595_v41 = vpop.f32.mrf.mxu3  ;;  %v11597_v10 = vpop.f32.mrf.mxu0 }
 0x521   :  { %16696 = vst [vmem:[#allocation181_spill] sm:$0xff] %v11597_v10  ;;  %v11599_v37 = vpop.f32.mrf.mxu1  ;;  %v11709_v10 = vld [vmem:[%s15984_s0 + $0x298] sm:$0xff] }
 0x523   :  { %7263 = vmatmul.msk.f32.gmra.mxu0 %vm186_vm1, %v11604_v3 }
 0x524   :  { %7308 = vmatmul.msk.f32.gmra.mxu1 %vm186_vm1, %v11512_v32  ;;  %7357 = vmatmul.msk.f32.gmra.mxu2 %vm186_vm1, %v11604_v3 }
 0x525   :  { %7406 = vmatmul.msk.f32.gmra.mxu3 %vm186_vm1, %v11604_v3 }
 0x527   :  { %v11614_v45 = vpop.f32.mrf.mxu2 }
 0x528   :  { %v11616_v1 = vpop.f32.mrf.mxu3  ;;  %v11618_v9 = vpop.f32.mrf.mxu0 }
 0x529   :  { %16697 = vst [vmem:[#allocation182_spill] sm:$0xff] %v11618_v9  ;;  %v11620_v7 = vpop.f32.mrf.mxu1 }
 0x52b   :  { %7264 = vmatmul.msk.f32.gmra.mxu0 %vm186_vm1, %v11625_v61 }
 0x52c   :  { %7309 = vmatmul.msk.f32.gmra.mxu1 %vm186_vm1, %v11539_v62  ;;  %7358 = vmatmul.msk.f32.gmra.mxu2 %vm186_vm1, %v11625_v61 }
 0x52d   :  { %7407 = vmatmul.msk.f32.gmra.mxu3 %vm186_vm1, %v11625_v61 }
 0x52f   :  { %v11635_v51 = vpop.f32.mrf.mxu2 }
 0x530   :  { %v11637_v56 = vpop.f32.mrf.mxu3  ;;  %v11639_v12 = vpop.f32.mrf.mxu0 }
 0x531   :  { %16698 = vst [vmem:[#allocation183_spill] sm:$0xff] %v11639_v12  ;;  %v11641_v24 = vpop.f32.mrf.mxu1  ;;  %v11688_v12 = vld [vmem:[%s15984_s0 + $0x290] sm:$0xff] }
 0x533   :  { %7265 = vmatmul.msk.f32.gmra.mxu0 %vm186_vm1, %v11646_v11 }
 0x534   :  { %7310 = vmatmul.msk.f32.gmra.mxu1 %vm186_vm1, %v11562_v4  ;;  %7359 = vmatmul.msk.f32.gmra.mxu2 %vm186_vm1, %v11646_v11 }
 0x535   :  { %7408 = vmatmul.msk.f32.gmra.mxu3 %vm186_vm1, %v11646_v11 }
 0x537   :  { %v11656_v38 = vpop.f32.mrf.mxu2 }
 0x538   :  { %16699 = vst [vmem:[#allocation184_spill] sm:$0xff] %v11656_v38  ;;  %v11658_v15 = vpop.f32.mrf.mxu3  ;;  %v11660_v31 = vpop.f32.mrf.mxu0  ;;  %v4657_v38 = vld [vmem:[%s15985_s3 + $0x1f8] sm:$0xff] }
 0x539   :  { %16700 = vst [vmem:[#allocation185_spill] sm:$0xff] %v11658_v15  ;;  %v11662_v60 = vpop.f32.mrf.mxu1  ;;  %v7855_v15 = vld [vmem:[%s15984_s0 + $0x2d0] sm:$0xff]  ;;  %4819 = vmatpush.msra.mxu1 %v4657_v38 }
 0x53a   :  { %16701 = vst [vmem:[#allocation186_spill] sm:$0xff] %v11660_v31 }
 0x53b   :  { %16702 = vst [vmem:[#allocation187_spill] sm:$0xff] %v11662_v60  ;;  %7266 = vmatmul.msk.f32.gmra.mxu0 %vm186_vm1, %v11667_v27  ;;  %v11793_v60 = vld [vmem:[%s15984_s0 + $0x2b8] sm:$0xff] }
 0x53c   :  { %7311 = vmatmul.msk.f32.gmra.mxu1 %vm186_vm1, %v11583_v50  ;;  %7360 = vmatmul.msk.f32.gmra.mxu2 %vm186_vm1, %v11667_v27  ;;  %16730 = vst [vmem:[#allocation215_spill] sm:$0xff] %v11793_v60 }
 0x53d   :  { %7409 = vmatmul.msk.f32.gmra.mxu3 %vm186_vm1, %v11667_v27 }
 0x53f   :  { %v11677_v30 = vpop.f32.mrf.mxu2 }
 0x540   :  { %16703 = vst [vmem:[#allocation188_spill] sm:$0xff] %v11677_v30  ;;  %v11679_v2 = vpop.f32.mrf.mxu3  ;;  %v11681_v48 = vpop.f32.mrf.mxu0  ;;  %v11772_v30 = vld [vmem:[%s15984_s0 + $0x2b0] sm:$0xff] }
 0x541   :  { %16704 = vst [vmem:[#allocation189_spill] sm:$0xff] %v11679_v2  ;;  %v11683_v31 = vpop.f32.mrf.mxu1  ;;  %v11751_v2 = vld [vmem:[%s15984_s0 + $0x2a8] sm:$0xff] }
 0x542   :  { %16705 = vst [vmem:[#allocation190_spill] sm:$0xff] %v11681_v48 }
 0x543   :  { %16706 = vst [vmem:[#allocation191_spill] sm:$0xff] %v11683_v31  ;;  %7267 = vmatmul.msk.f32.gmra.mxu0 %vm186_vm1, %v11688_v12 }
 0x544   :  { %7312 = vmatmul.msk.f32.gmra.mxu1 %vm186_vm1, %v11604_v3  ;;  %7361 = vmatmul.msk.f32.gmra.mxu2 %vm186_vm1, %v11688_v12  ;;  %16720 = vst [vmem:[#allocation205_spill] sm:$0xff] %v11751_v2 }
 0x545   :  { %7410 = vmatmul.msk.f32.gmra.mxu3 %vm186_vm1, %v11688_v12  ;;  %16725 = vst [vmem:[#allocation210_spill] sm:$0xff] %v11772_v30 }
 0x547   :  { %v11698_v48 = vpop.f32.mrf.mxu2 }
 0x548   :  { %16707 = vst [vmem:[#allocation192_spill] sm:$0xff] %v11698_v48  ;;  %v11700_v36 = vpop.f32.mrf.mxu3  ;;  %v11702_v9 = vpop.f32.mrf.mxu0 }
 0x549   :  { %16708 = vst [vmem:[#allocation193_spill] sm:$0xff] %v11700_v36  ;;  %v11704_v31 = vpop.f32.mrf.mxu1 }
 0x54a   :  { %16709 = vst [vmem:[#allocation194_spill] sm:$0xff] %v11702_v9 }
 0x54b   :  { %16710 = vst [vmem:[#allocation195_spill] sm:$0xff] %v11704_v31  ;;  %7268 = vmatmul.msk.f32.gmra.mxu0 %vm186_vm1, %v11709_v10 }
 0x54c   :  { %7313 = vmatmul.msk.f32.gmra.mxu1 %vm186_vm1, %v11625_v61  ;;  %7362 = vmatmul.msk.f32.gmra.mxu2 %vm186_vm1, %v11709_v10 }
 0x54d   :  { %7411 = vmatmul.msk.f32.gmra.mxu3 %vm186_vm1, %v11709_v10 }
 0x54f   :  { %v11719_v9 = vpop.f32.mrf.mxu2 }
 0x550   :  { %16711 = vst [vmem:[#allocation196_spill] sm:$0xff] %v11719_v9  ;;  %v11721_v31 = vpop.f32.mrf.mxu3  ;;  %v11723_v36 = vpop.f32.mrf.mxu0 }
 0x551   :  { %16712 = vst [vmem:[#allocation197_spill] sm:$0xff] %v11721_v31  ;;  %v11725_v48 = vpop.f32.mrf.mxu1 }
 0x552   :  { %16713 = vst [vmem:[#allocation198_spill] sm:$0xff] %v11723_v36 }
 0x553   :  { %16714 = vst [vmem:[#allocation199_spill] sm:$0xff] %v11725_v48  ;;  %7269 = vmatmul.msk.f32.gmra.mxu0 %vm186_vm1, %v11730_v35 }
 0x554   :  { %7314 = vmatmul.msk.f32.gmra.mxu1 %vm186_vm1, %v11646_v11  ;;  %7363 = vmatmul.msk.f32.gmra.mxu2 %vm186_vm1, %v11730_v35 }
 0x555   :  { %7412 = vmatmul.msk.f32.gmra.mxu3 %vm186_vm1, %v11730_v35 }
 0x557   :  { %v11740_v36 = vpop.f32.mrf.mxu2 }
 0x558   :  { %16716 = vst [vmem:[#allocation201_spill] sm:$0xff] %v11740_v36  ;;  %v11742_v48 = vpop.f32.mrf.mxu3  ;;  %v11744_v31 = vpop.f32.mrf.mxu0 }
 0x559   :  { %16717 = vst [vmem:[#allocation202_spill] sm:$0xff] %v11742_v48  ;;  %v11746_v9 = vpop.f32.mrf.mxu1 }
 0x55a   :  { %16718 = vst [vmem:[#allocation203_spill] sm:$0xff] %v11744_v31 }
 0x55b   :  { %16719 = vst [vmem:[#allocation204_spill] sm:$0xff] %v11746_v9  ;;  %7270 = vmatmul.msk.f32.gmra.mxu0 %vm186_vm1, %v11751_v2 }
 0x55c   :  { %7315 = vmatmul.msk.f32.gmra.mxu1 %vm186_vm1, %v11667_v27  ;;  %7364 = vmatmul.msk.f32.gmra.mxu2 %vm186_vm1, %v11751_v2 }
 0x55d   :  { %7413 = vmatmul.msk.f32.gmra.mxu3 %vm186_vm1, %v11751_v2 }
 0x55f   :  { %v11761_v31 = vpop.f32.mrf.mxu2 }
 0x560   :  { %16721 = vst [vmem:[#allocation206_spill] sm:$0xff] %v11761_v31  ;;  %v11763_v9 = vpop.f32.mrf.mxu3  ;;  %v11765_v48 = vpop.f32.mrf.mxu0 }
 0x561   :  { %16722 = vst [vmem:[#allocation207_spill] sm:$0xff] %v11763_v9  ;;  %v11767_v36 = vpop.f32.mrf.mxu1 }
 0x562   :  { %16723 = vst [vmem:[#allocation208_spill] sm:$0xff] %v11765_v48 }
 0x563   :  { %16724 = vst [vmem:[#allocation209_spill] sm:$0xff] %v11767_v36  ;;  %7271 = vmatmul.msk.f32.gmra.mxu0 %vm186_vm1, %v11772_v30 }
 0x564   :  { %7316 = vmatmul.msk.f32.gmra.mxu1 %vm186_vm1, %v11688_v12  ;;  %7365 = vmatmul.msk.f32.gmra.mxu2 %vm186_vm1, %v11772_v30 }
 0x565   :  { %7414 = vmatmul.msk.f32.gmra.mxu3 %vm186_vm1, %v11772_v30 }
 0x567   :  { %v11782_v48 = vpop.f32.mrf.mxu2 }
 0x568   :  { %16726 = vst [vmem:[#allocation211_spill] sm:$0xff] %v11782_v48  ;;  %v11784_v36 = vpop.f32.mrf.mxu3  ;;  %v11786_v9 = vpop.f32.mrf.mxu0 }
 0x569   :  { %16727 = vst [vmem:[#allocation212_spill] sm:$0xff] %v11784_v36  ;;  %v11788_v31 = vpop.f32.mrf.mxu1 }
 0x56a   :  { %16728 = vst [vmem:[#allocation213_spill] sm:$0xff] %v11786_v9 }
 0x56b   :  { %16729 = vst [vmem:[#allocation214_spill] sm:$0xff] %v11788_v31  ;;  %7272 = vmatmul.msk.f32.gmra.mxu0 %vm186_vm1, %v11793_v60 }
 0x56c   :  { %7317 = vmatmul.msk.f32.gmra.mxu1 %vm186_vm1, %v11709_v10  ;;  %7366 = vmatmul.msk.f32.gmra.mxu2 %vm186_vm1, %v11793_v60 }
 0x56d   :  { %7415 = vmatmul.msk.f32.gmra.mxu3 %vm186_vm1, %v11793_v60 }
 0x56f   :  { %v11803_v9 = vpop.f32.mrf.mxu2 }
 0x570   :  { %16731 = vst [vmem:[#allocation216_spill] sm:$0xff] %v11803_v9  ;;  %v11805_v31 = vpop.f32.mrf.mxu3  ;;  %v11807_v36 = vpop.f32.mrf.mxu0 }
 0x571   :  { %16732 = vst [vmem:[#allocation217_spill] sm:$0xff] %v11805_v31  ;;  %v11809_v48 = vpop.f32.mrf.mxu1 }
 0x572   :  { %16733 = vst [vmem:[#allocation218_spill] sm:$0xff] %v11807_v36 }
 0x573   :  { %16734 = vst [vmem:[#allocation219_spill] sm:$0xff] %v11809_v48  ;;  %7273 = vmatmul.msk.f32.gmra.mxu0 %vm186_vm1, %v7853_v44 }
 0x574   :  { %7318 = vmatmul.msk.f32.gmra.mxu1 %vm186_vm1, %v11730_v35  ;;  %7367 = vmatmul.msk.f32.gmra.mxu2 %vm186_vm1, %v7853_v44 }
 0x575   :  { %7416 = vmatmul.msk.f32.gmra.mxu3 %vm186_vm1, %v7853_v44 }
 0x577   :  { %v11819_v9 = vpop.f32.mrf.mxu2 }
 0x578   :  { %16735 = vst [vmem:[#allocation220_spill] sm:$0xff] %v11819_v9  ;;  %v11821_v31 = vpop.f32.mrf.mxu3  ;;  %v11823_v36 = vpop.f32.mrf.mxu0 }
 0x579   :  { %16736 = vst [vmem:[#allocation221_spill] sm:$0xff] %v11821_v31  ;;  %v11825_v48 = vpop.f32.mrf.mxu1 }
 0x57a   :  { %16737 = vst [vmem:[#allocation222_spill] sm:$0xff] %v11823_v36 }
 0x57b   :  { %16738 = vst [vmem:[#allocation223_spill] sm:$0xff] %v11825_v48  ;;  %7274 = vmatmul.msk.f32.gmra.mxu0 %vm186_vm1, %v7854_v0 }
 0x57c   :  { %7319 = vmatmul.msk.f32.gmra.mxu1 %vm186_vm1, %v11751_v2  ;;  %7368 = vmatmul.msk.f32.gmra.mxu2 %vm186_vm1, %v7854_v0  ;;  %v7856_v2 = vld [vmem:[%s15984_s0 + $0x2d8] sm:$0xff] }
 0x57d   :  { %7417 = vmatmul.msk.f32.gmra.mxu3 %vm186_vm1, %v7854_v0 }
 0x57f   :  { %v11835_v9 = vpop.f32.mrf.mxu2 }
 0x580   :  { %16739 = vst [vmem:[#allocation224_spill] sm:$0xff] %v11835_v9  ;;  %v11837_v31 = vpop.f32.mrf.mxu3  ;;  %v11839_v36 = vpop.f32.mrf.mxu0 }
 0x581   :  { %16740 = vst [vmem:[#allocation225_spill] sm:$0xff] %v11837_v31  ;;  %v11841_v48 = vpop.f32.mrf.mxu1 }
 0x582   :  { %16741 = vst [vmem:[#allocation226_spill] sm:$0xff] %v11839_v36 }
 0x583   :  { %16742 = vst [vmem:[#allocation227_spill] sm:$0xff] %v11841_v48  ;;  %7275 = vmatmul.msk.f32.gmra.mxu0 %vm186_vm1, %v7855_v15 }
 0x584   :  { %7320 = vmatmul.msk.f32.gmra.mxu1 %vm186_vm1, %v11772_v30  ;;  %7369 = vmatmul.msk.f32.gmra.mxu2 %vm186_vm1, %v7855_v15  ;;  %v7857_v30 = vld [vmem:[%s15984_s0 + $0x2e0] sm:$0xff] }
 0x585   :  { %7418 = vmatmul.msk.f32.gmra.mxu3 %vm186_vm1, %v7855_v15 }
 0x587   :  { %v11851_v9 = vpop.f32.mrf.mxu2 }
 0x588   :  { %16743 = vst [vmem:[#allocation228_spill] sm:$0xff] %v11851_v9  ;;  %v11853_v31 = vpop.f32.mrf.mxu3  ;;  %v11855_v36 = vpop.f32.mrf.mxu0 }
 0x589   :  { %16744 = vst [vmem:[#allocation229_spill] sm:$0xff] %v11853_v31  ;;  %v11857_v48 = vpop.f32.mrf.mxu1 }
 0x58a   :  { %16745 = vst [vmem:[#allocation230_spill] sm:$0xff] %v11855_v36 }
 0x58b   :  { %16746 = vst [vmem:[#allocation231_spill] sm:$0xff] %v11857_v48  ;;  %7276 = vmatmul.msk.f32.gmra.mxu0 %vm186_vm1, %v7856_v2 }
 0x58c   :  { %7321 = vmatmul.msk.f32.gmra.mxu1 %vm186_vm1, %v11793_v60  ;;  %7370 = vmatmul.msk.f32.gmra.mxu2 %vm186_vm1, %v7856_v2 }
 0x58d   :  { %7419 = vmatmul.msk.f32.gmra.mxu3 %vm186_vm1, %v7856_v2 }
 0x58f   :  { %v11867_v9 = vpop.f32.mrf.mxu2 }
 0x590   :  { %16747 = vst [vmem:[#allocation232_spill] sm:$0xff] %v11867_v9  ;;  %v11869_v31 = vpop.f32.mrf.mxu3  ;;  %v11871_v36 = vpop.f32.mrf.mxu0 }
 0x591   :  { %16748 = vst [vmem:[#allocation233_spill] sm:$0xff] %v11869_v31  ;;  %v11873_v48 = vpop.f32.mrf.mxu1 }
 0x592   :  { %16749 = vst [vmem:[#allocation234_spill] sm:$0xff] %v11871_v36 }
 0x593   :  { %16750 = vst [vmem:[#allocation235_spill] sm:$0xff] %v11873_v48  ;;  %7277 = vmatmul.msk.f32.gmra.mxu0 %vm186_vm1, %v7857_v30  ;;  %v7858_v48 = vld [vmem:[%s15984_s0 + $0x2e8] sm:$0xff] }
 0x594   :  { %7322 = vmatmul.msk.f32.gmra.mxu1 %vm186_vm1, %v7853_v44  ;;  %7371 = vmatmul.msk.f32.gmra.mxu2 %vm186_vm1, %v7857_v30 }
 0x595   :  { %7420 = vmatmul.msk.f32.gmra.mxu3 %vm186_vm1, %v7857_v30 }
 0x597   :  { %v11882_v60 = vpop.f32.mrf.mxu2 }
 0x598   :  { %16751 = vst [vmem:[#allocation236_spill] sm:$0xff] %v11882_v60  ;;  %v11884_v9 = vpop.f32.mrf.mxu3  ;;  %v11886_v31 = vpop.f32.mrf.mxu0 }
 0x599   :  { %16752 = vst [vmem:[#allocation237_spill] sm:$0xff] %v11884_v9  ;;  %v11888_v36 = vpop.f32.mrf.mxu1 }
 0x59a   :  { %16753 = vst [vmem:[#allocation238_spill] sm:$0xff] %v11886_v31 }
 0x59b   :  { %16754 = vst [vmem:[#allocation239_spill] sm:$0xff] %v11888_v36  ;;  %7278 = vmatmul.msk.f32.gmra.mxu0 %vm186_vm1, %v7858_v48  ;;  %v7859_v36 = vld [vmem:[%s15984_s0 + $0x2f0] sm:$0xff] }
 0x59c   :  { %7323 = vmatmul.msk.f32.gmra.mxu1 %vm186_vm1, %v7854_v0  ;;  %7372 = vmatmul.msk.f32.gmra.mxu2 %vm186_vm1, %v7858_v48 }
 0x59d   :  { %7421 = vmatmul.msk.f32.gmra.mxu3 %vm186_vm1, %v7858_v48 }
 0x59f   :  { %v11897_v44 = vpop.f32.mrf.mxu2 }
 0x5a0   :  { %16755 = vst [vmem:[#allocation240_spill] sm:$0xff] %v11897_v44  ;;  %v11899_v60 = vpop.f32.mrf.mxu3  ;;  %v11901_v9 = vpop.f32.mrf.mxu0 }
 0x5a1   :  { %16756 = vst [vmem:[#allocation241_spill] sm:$0xff] %v11899_v60  ;;  %v11903_v31 = vpop.f32.mrf.mxu1 }
 0x5a2   :  { %16757 = vst [vmem:[#allocation242_spill] sm:$0xff] %v11901_v9 }
 0x5a3   :  { %16758 = vst [vmem:[#allocation243_spill] sm:$0xff] %v11903_v31  ;;  %7279 = vmatmul.msk.f32.gmra.mxu0 %vm186_vm1, %v7859_v36  ;;  %v7860_v31 = vld [vmem:[%s15984_s0 + $0x2f8] sm:$0xff] }
 0x5a4   :  { %7324 = vmatmul.msk.f32.gmra.mxu1 %vm186_vm1, %v7855_v15  ;;  %7373 = vmatmul.msk.f32.gmra.mxu2 %vm186_vm1, %v7859_v36 }
 0x5a5   :  { %7422 = vmatmul.msk.f32.gmra.mxu3 %vm186_vm1, %v7859_v36 }
 0x5a7   :  { %v11912_v0 = vpop.f32.mrf.mxu2 }
 0x5a8   :  { %16759 = vst [vmem:[#allocation244_spill] sm:$0xff] %v11912_v0  ;;  %v11914_v44 = vpop.f32.mrf.mxu3  ;;  %v11916_v60 = vpop.f32.mrf.mxu0 }
 0x5a9   :  { %16760 = vst [vmem:[#allocation245_spill] sm:$0xff] %v11914_v44  ;;  %v11918_v9 = vpop.f32.mrf.mxu1 }
 0x5aa   :  { %16761 = vst [vmem:[#allocation246_spill] sm:$0xff] %v11916_v60 }
 0x5ab   :  { %16762 = vst [vmem:[#allocation247_spill] sm:$0xff] %v11918_v9  ;;  %7280 = vmatmul.msk.f32.gmra.mxu0 %vm186_vm1, %v7860_v31  ;;  %v7861_v9 = vld [vmem:[%s15984_s0 + $0x300] sm:$0xff] }
 0x5ac   :  { %7325 = vmatmul.msk.f32.gmra.mxu1 %vm186_vm1, %v7856_v2  ;;  %7374 = vmatmul.msk.f32.gmra.mxu2 %vm186_vm1, %v7860_v31 }
 0x5ad   :  { %7423 = vmatmul.msk.f32.gmra.mxu3 %vm186_vm1, %v7860_v31 }
 0x5af   :  { %v11927_v15 = vpop.f32.mrf.mxu2 }
 0x5b0   :  { %16763 = vst [vmem:[#allocation248_spill] sm:$0xff] %v11927_v15  ;;  %v11929_v0 = vpop.f32.mrf.mxu3  ;;  %v11931_v44 = vpop.f32.mrf.mxu0 }
 0x5b1   :  { %16764 = vst [vmem:[#allocation249_spill] sm:$0xff] %v11929_v0  ;;  %v11933_v60 = vpop.f32.mrf.mxu1 }
 0x5b2   :  { %16765 = vst [vmem:[#allocation250_spill] sm:$0xff] %v11931_v44 }
 0x5b3   :  { %16766 = vst [vmem:[#allocation251_spill] sm:$0xff] %v11933_v60  ;;  %7281 = vmatmul.msk.f32.gmra.mxu0 %vm186_vm1, %v7861_v9  ;;  %v7862_v60 = vld [vmem:[%s15984_s0 + $0x308] sm:$0xff] }
 0x5b4   :  { %7326 = vmatmul.msk.f32.gmra.mxu1 %vm186_vm1, %v7857_v30  ;;  %7375 = vmatmul.msk.f32.gmra.mxu2 %vm186_vm1, %v7861_v9 }
 0x5b5   :  { %7424 = vmatmul.msk.f32.gmra.mxu3 %vm186_vm1, %v7861_v9 }
 0x5b7   :  { %v11942_v2 = vpop.f32.mrf.mxu2 }
 0x5b8   :  { %16767 = vst [vmem:[#allocation252_spill] sm:$0xff] %v11942_v2  ;;  %v11944_v15 = vpop.f32.mrf.mxu3  ;;  %v11946_v0 = vpop.f32.mrf.mxu0 }
 0x5b9   :  { %16768 = vst [vmem:[#allocation253_spill] sm:$0xff] %v11944_v15  ;;  %v11948_v44 = vpop.f32.mrf.mxu1 }
 0x5ba   :  { %16769 = vst [vmem:[#allocation254_spill] sm:$0xff] %v11946_v0 }
 0x5bb   :  { %16770 = vst [vmem:[#allocation255_spill] sm:$0xff] %v11948_v44  ;;  %7282 = vmatmul.msk.f32.gmra.mxu0 %vm186_vm1, %v7862_v60  ;;  %v7863_v44 = vld [vmem:[%s15984_s0 + $0x310] sm:$0xff] }
 0x5bc   :  { %7327 = vmatmul.msk.f32.gmra.mxu1 %vm186_vm1, %v7858_v48  ;;  %7376 = vmatmul.msk.f32.gmra.mxu2 %vm186_vm1, %v7862_v60 }
 0x5bd   :  { %7425 = vmatmul.msk.f32.gmra.mxu3 %vm186_vm1, %v7862_v60 }
 0x5bf   :  { %v11957_v30 = vpop.f32.mrf.mxu2 }
 0x5c0   :  { %16771 = vst [vmem:[#allocation256_spill] sm:$0xff] %v11957_v30  ;;  %v11959_v2 = vpop.f32.mrf.mxu3  ;;  %v11961_v15 = vpop.f32.mrf.mxu0 }
 0x5c1   :  { %16772 = vst [vmem:[#allocation257_spill] sm:$0xff] %v11959_v2  ;;  %v11963_v0 = vpop.f32.mrf.mxu1 }
 0x5c2   :  { %16773 = vst [vmem:[#allocation258_spill] sm:$0xff] %v11961_v15 }
 0x5c3   :  { %16774 = vst [vmem:[#allocation259_spill] sm:$0xff] %v11963_v0  ;;  %7283 = vmatmul.msk.f32.gmra.mxu0 %vm186_vm1, %v7863_v44  ;;  %v7864_v0 = vld [vmem:[%s15984_s0 + $0x318] sm:$0xff] }
 0x5c4   :  { %7328 = vmatmul.msk.f32.gmra.mxu1 %vm186_vm1, %v7859_v36  ;;  %7377 = vmatmul.msk.f32.gmra.mxu2 %vm186_vm1, %v7863_v44 }
 0x5c5   :  { %7426 = vmatmul.msk.f32.gmra.mxu3 %vm186_vm1, %v7863_v44 }
 0x5c7   :  { %v11972_v48 = vpop.f32.mrf.mxu2 }
 0x5c8   :  { %16775 = vst [vmem:[#allocation260_spill] sm:$0xff] %v11972_v48  ;;  %v11974_v30 = vpop.f32.mrf.mxu3  ;;  %v11976_v2 = vpop.f32.mrf.mxu0 }
 0x5c9   :  { %16776 = vst [vmem:[#allocation261_spill] sm:$0xff] %v11974_v30  ;;  %v11978_v15 = vpop.f32.mrf.mxu1 }
 0x5ca   :  { %16777 = vst [vmem:[#allocation262_spill] sm:$0xff] %v11976_v2 }
 0x5cb   :  { %16778 = vst [vmem:[#allocation263_spill] sm:$0xff] %v11978_v15  ;;  %7284 = vmatmul.msk.f32.gmra.mxu0 %vm186_vm1, %v7864_v0  ;;  %v7865_v15 = vld [vmem:[%s15984_s0 + $0x320] sm:$0xff] }
 0x5cc   :  { %7329 = vmatmul.msk.f32.gmra.mxu1 %vm186_vm1, %v7860_v31  ;;  %7378 = vmatmul.msk.f32.gmra.mxu2 %vm186_vm1, %v7864_v0 }
 0x5cd   :  { %7427 = vmatmul.msk.f32.gmra.mxu3 %vm186_vm1, %v7864_v0 }
 0x5cf   :  { %v11987_v36 = vpop.f32.mrf.mxu2 }
 0x5d0   :  { %16779 = vst [vmem:[#allocation264_spill] sm:$0xff] %v11987_v36  ;;  %v11989_v48 = vpop.f32.mrf.mxu3  ;;  %v11991_v30 = vpop.f32.mrf.mxu0 }
 0x5d1   :  { %16780 = vst [vmem:[#allocation265_spill] sm:$0xff] %v11989_v48  ;;  %v11993_v2 = vpop.f32.mrf.mxu1 }
 0x5d2   :  { %16781 = vst [vmem:[#allocation266_spill] sm:$0xff] %v11991_v30 }
 0x5d3   :  { %16782 = vst [vmem:[#allocation267_spill] sm:$0xff] %v11993_v2  ;;  %7285 = vmatmul.msk.f32.gmra.mxu0 %vm186_vm1, %v7865_v15  ;;  %v7866_v2 = vld [vmem:[%s15984_s0 + $0x328] sm:$0xff] }
 0x5d4   :  { %7330 = vmatmul.msk.f32.gmra.mxu1 %vm186_vm1, %v7861_v9  ;;  %7379 = vmatmul.msk.f32.gmra.mxu2 %vm186_vm1, %v7865_v15 }
 0x5d5   :  { %7428 = vmatmul.msk.f32.gmra.mxu3 %vm186_vm1, %v7865_v15 }
 0x5d7   :  { %v12002_v31 = vpop.f32.mrf.mxu2 }
 0x5d8   :  { %16783 = vst [vmem:[#allocation268_spill] sm:$0xff] %v12002_v31  ;;  %v12004_v36 = vpop.f32.mrf.mxu3  ;;  %v12006_v48 = vpop.f32.mrf.mxu0 }
 0x5d9   :  { %16784 = vst [vmem:[#allocation269_spill] sm:$0xff] %v12004_v36  ;;  %v12008_v30 = vpop.f32.mrf.mxu1 }
 0x5da   :  { %16785 = vst [vmem:[#allocation270_spill] sm:$0xff] %v12006_v48 }
 0x5db   :  { %16786 = vst [vmem:[#allocation271_spill] sm:$0xff] %v12008_v30  ;;  %7286 = vmatmul.msk.f32.gmra.mxu0 %vm186_vm1, %v7866_v2  ;;  %v7867_v30 = vld [vmem:[%s15984_s0 + $0x330] sm:$0xff] }
 0x5dc   :  { %7331 = vmatmul.msk.f32.gmra.mxu1 %vm186_vm1, %v7862_v60  ;;  %7380 = vmatmul.msk.f32.gmra.mxu2 %vm186_vm1, %v7866_v2 }
 0x5dd   :  { %7429 = vmatmul.msk.f32.gmra.mxu3 %vm186_vm1, %v7866_v2 }
 0x5df   :  { %v12017_v9 = vpop.f32.mrf.mxu2 }
 0x5e0   :  { %16787 = vst [vmem:[#allocation272_spill] sm:$0xff] %v12017_v9  ;;  %v12019_v31 = vpop.f32.mrf.mxu3  ;;  %v12021_v36 = vpop.f32.mrf.mxu0 }
 0x5e1   :  { %16788 = vst [vmem:[#allocation273_spill] sm:$0xff] %v12019_v31  ;;  %v12023_v48 = vpop.f32.mrf.mxu1 }
 0x5e2   :  { %16789 = vst [vmem:[#allocation274_spill] sm:$0xff] %v12021_v36 }
 0x5e3   :  { %16790 = vst [vmem:[#allocation275_spill] sm:$0xff] %v12023_v48  ;;  %7287 = vmatmul.msk.f32.gmra.mxu0 %vm186_vm1, %v7867_v30  ;;  %v7868_v48 = vld [vmem:[%s15984_s0 + $0x338] sm:$0xff] }
 0x5e4   :  { %7332 = vmatmul.msk.f32.gmra.mxu1 %vm186_vm1, %v7863_v44  ;;  %7381 = vmatmul.msk.f32.gmra.mxu2 %vm186_vm1, %v7867_v30 }
 0x5e5   :  { %7430 = vmatmul.msk.f32.gmra.mxu3 %vm186_vm1, %v7867_v30 }
 0x5e7   :  { %v12032_v60 = vpop.f32.mrf.mxu2 }
 0x5e8   :  { %16791 = vst [vmem:[#allocation276_spill] sm:$0xff] %v12032_v60  ;;  %v12034_v9 = vpop.f32.mrf.mxu3  ;;  %v12036_v31 = vpop.f32.mrf.mxu0 }
 0x5e9   :  { %16792 = vst [vmem:[#allocation277_spill] sm:$0xff] %v12034_v9  ;;  %v12038_v36 = vpop.f32.mrf.mxu1 }
 0x5ea   :  { %16793 = vst [vmem:[#allocation278_spill] sm:$0xff] %v12036_v31 }
 0x5eb   :  { %16794 = vst [vmem:[#allocation279_spill] sm:$0xff] %v12038_v36  ;;  %7288 = vmatmul.msk.f32.gmra.mxu0 %vm186_vm1, %v7868_v48  ;;  %v7869_v36 = vld [vmem:[%s15984_s0 + $0x40] sm:$0xff] }
 0x5ec   :  { %7333 = vmatmul.msk.f32.gmra.mxu1 %vm186_vm1, %v7864_v0  ;;  %7382 = vmatmul.msk.f32.gmra.mxu2 %vm186_vm1, %v7868_v48  ;;  %v7870_v0 = vld [vmem:[%s15984_s0 + $0x340] sm:$0xff] }
 0x5ed   :  { %7431 = vmatmul.msk.f32.gmra.mxu3 %vm186_vm1, %v7868_v48 }
 0x5ef   :  { %v12047_v44 = vpop.f32.mrf.mxu2 }
 0x5f0   :  { %16795 = vst [vmem:[#allocation280_spill] sm:$0xff] %v12047_v44  ;;  %v12049_v60 = vpop.f32.mrf.mxu3  ;;  %v12051_v9 = vpop.f32.mrf.mxu0 }
 0x5f1   :  { %16796 = vst [vmem:[#allocation281_spill] sm:$0xff] %v12049_v60  ;;  %v12053_v31 = vpop.f32.mrf.mxu1 }
 0x5f2   :  { %16797 = vst [vmem:[#allocation282_spill] sm:$0xff] %v12051_v9  ;;  %v4624_v9 = vld [vmem:[%s15985_s3 + $0xf0] sm:$0xff] }
 0x5f3   :  { %16798 = vst [vmem:[#allocation283_spill] sm:$0xff] %v12053_v31  ;;  %7437 = vmatmul.msk.f32.vlgmr.msra.gmra.mxu0 %vm186_vm1, %v7869_v36  ;;  %v4625_v31 = vld [vmem:[%s15985_s3 + $0xf8] sm:$0xff]  ;;  %4884 = vmatpush.msra.mxu2 %v4624_v9  ;;  %v7872_v9 = vld [vmem:[%s15984_s0 + $0x348] sm:$0xff] }
 0x5f4   :  { %7334 = vmatmul.msk.f32.gmra.mxu1 %vm186_vm1, %v7865_v15  ;;  %7383 = vmatmul.msk.f32.gmra.mxu2 %vm186_vm1, %v7870_v0 }
 0x5f5   :  { %7432 = vmatmul.msk.f32.gmra.mxu3 %vm186_vm1, %v7870_v0  ;;  %v4656_v0 = vld [vmem:[%s15985_s3 + $0x1f0] sm:$0xff] }
 0x5f6   :  { %4949 = vmatpush.msra.mxu3 %v4625_v31  ;;  %4754 = vmatpush.msrb.mxu0 %v4656_v0  ;;  %v7871_v31 = vld [vmem:[%s15984_s0 + $0x48] sm:$0xff] }
 0x5f7   :  { %v12071_v60 = vpop.f32.mrf.mxu2 }
 0x5f8   :  { %16799 = vst [vmem:[#allocation284_spill] sm:$0xff] %v12071_v60  ;;  %v12073_v15 = vpop.f32.mrf.mxu3  ;;  %v12075_v44 = vpop.f32.mrf.mxu0  ;;  %v4655_v60 = vld [vmem:[%s15985_s3 + $0x1e8] sm:$0xff] }
 0x5f9   :  { %16800 = vst [vmem:[#allocation285_spill] sm:$0xff] %v12073_v15  ;;  %v12077_v35 = vpop.f32.mrf.mxu1  ;;  %4820 = vmatpush.msra.mxu1 %v4655_v60 }
 0x5fa   :  { %16801 = vst [vmem:[#allocation286_spill] sm:$0xff] %v12075_v44 }
 0x5fb   :  { %16802 = vst [vmem:[#allocation287_spill] sm:$0xff] %v12077_v35  ;;  %7438 = vmatmul.msk.f32.gmra.mxu0 %vm186_vm1, %v7871_v31 }
 0x5fc   :  { %7335 = vmatmul.msk.f32.gmra.mxu1 %vm186_vm1, %v7866_v2  ;;  %7384 = vmatmul.msk.f32.gmra.mxu2 %vm186_vm1, %v7872_v9  ;;  %v7873_v2 = vld [vmem:[%s15984_s0 + $0x50] sm:$0xff] }
 0x5fd   :  { %7433 = vmatmul.msk.f32.gmra.mxu3 %vm186_vm1, %v7872_v9  ;;  %v7874_v9 = vld [vmem:[%s15984_s0 + $0x350] sm:$0xff] }
 0x5ff   :  { %v12095_v44 = vpop.f32.mrf.mxu2 }
 0x600   :  { %16803 = vst [vmem:[#allocation288_spill] sm:$0xff] %v12095_v44  ;;  %v12097_v0 = vpop.f32.mrf.mxu3  ;;  %v12099_v38 = vpop.f32.mrf.mxu0 }
 0x601   :  { %16804 = vst [vmem:[#allocation289_spill] sm:$0xff] %v12097_v0  ;;  %v12101_v35 = vpop.f32.mrf.mxu1 }
 0x602   :  { %16805 = vst [vmem:[#allocation290_spill] sm:$0xff] %v12099_v38 }
 0x603   :  { %16806 = vst [vmem:[#allocation291_spill] sm:$0xff] %v12101_v35  ;;  %7439 = vmatmul.msk.f32.gmra.mxu0 %vm186_vm1, %v7873_v2 }
 0x604   :  { %7336 = vmatmul.msk.f32.gmra.mxu1 %vm186_vm1, %v7867_v30  ;;  %7385 = vmatmul.msk.f32.gmra.mxu2 %vm186_vm1, %v7874_v9  ;;  %v7875_v30 = vld [vmem:[%s15984_s0 + $0x58] sm:$0xff] }
 0x605   :  { %7434 = vmatmul.msk.f32.gmra.mxu3 %vm186_vm1, %v7874_v9  ;;  %v7876_v9 = vld [vmem:[%s15984_s0 + $0x358] sm:$0xff] }
 0x607   :  { %v12113_v0 = vpop.f32.mrf.mxu2 }
 0x608   :  { %16807 = vst [vmem:[#allocation292_spill] sm:$0xff] %v12113_v0  ;;  %v12115_v38 = vpop.f32.mrf.mxu3  ;;  %v12117_v35 = vpop.f32.mrf.mxu0 }
 0x609   :  { %16808 = vst [vmem:[#allocation293_spill] sm:$0xff] %v12115_v38  ;;  %v12119_v44 = vpop.f32.mrf.mxu1 }
 0x60a   :  { %16809 = vst [vmem:[#allocation294_spill] sm:$0xff] %v12117_v35  ;;  %v4622_v35 = vld [vmem:[%s15985_s3 + $0xe0] sm:$0xff] }
 0x60b   :  { %16810 = vst [vmem:[#allocation295_spill] sm:$0xff] %v12119_v44  ;;  %7440 = vmatmul.msk.f32.gmra.mxu0 %vm186_vm1, %v7875_v30  ;;  %v4623_v44 = vld [vmem:[%s15985_s3 + $0xe8] sm:$0xff]  ;;  %4885 = vmatpush.msra.mxu2 %v4622_v35  ;;  %v7877_v35 = vld [vmem:[%s15984_s0 + $0x60] sm:$0xff] }
 0x60c   :  { %7337 = vmatmul.msk.f32.gmra.mxu1 %vm186_vm1, %v7868_v48  ;;  %7386 = vmatmul.msk.f32.gmra.mxu2 %vm186_vm1, %v7876_v9 }
 0x60d   :  { %7435 = vmatmul.msk.f32.gmra.mxu3 %vm186_vm1, %v7876_v9  ;;  %v4654_v9 = vld [vmem:[%s15985_s3 + $0x1e0] sm:$0xff] }
 0x60e   :  { %4950 = vmatpush.msra.mxu3 %v4623_v44  ;;  %4755 = vmatpush.msrb.mxu0 %v4654_v9 }
 0x60f   :  { %v12137_v38 = vpop.f32.mrf.mxu2 }
 0x610   :  { %v12139_v48 = vpop.f32.mrf.mxu3  ;;  %v12141_v0 = vpop.f32.mrf.mxu0 }
 0x611   :  { %16811 = vst [vmem:[#allocation296_spill] sm:$0xff] %v12141_v0  ;;  %v12143_v15 = vpop.f32.mrf.mxu1 }
 0x612   :  { %16812 = vst [vmem:[#allocation297_spill] sm:$0xff] %v12143_v15  ;;  %v7878_v15 = vld [vmem:[%s15984_s0 + $0x68] sm:$0xff] }
 0x613   :  { %7441 = vmatmul.msk.f32.gmra.mxu0 %vm186_vm1, %v7877_v35 }
 0x614   :  { %7486 = vmatmul.msk.f32.vlgmr.msrb.gmra.mxu1 %vm186_vm1, %v7869_v36  ;;  %7535 = vmatmul.msk.f32.vlgmr.msrb.gmra.mxu2 %vm186_vm1, %v11260_v21 }
 0x615   :  { %7584 = vmatmul.msk.f32.vlgmr.msrb.gmra.mxu3 %vm186_vm1, %v11260_v21 }
 0x617   :  { %v12160_v44 = vpop.f32.mrf.mxu2 }
 0x618   :  { %v12162_v0 = vpop.f32.mrf.mxu3  ;;  %v12164_v9 = vpop.f32.mrf.mxu0 }
 0x619   :  { %16813 = vst [vmem:[#allocation298_spill] sm:$0xff] %v12162_v0  ;;  %v12166_v60 = vpop.f32.mrf.mxu1  ;;  %v7879_v0 = vld [vmem:[%s15984_s0 + $0x70] sm:$0xff] }
 0x61a   :  { %16814 = vst [vmem:[#allocation299_spill] sm:$0xff] %v12164_v9 }
 0x61b   :  { %16815 = vst [vmem:[#allocation300_spill] sm:$0xff] %v12166_v60  ;;  %7442 = vmatmul.msk.f32.gmra.mxu0 %vm186_vm1, %v7878_v15 }
 0x61c   :  { %7487 = vmatmul.msk.f32.gmra.mxu1 %vm186_vm1, %v7871_v31  ;;  %7536 = vmatmul.msk.f32.gmra.mxu2 %vm186_vm1, %v11284_v14  ;;  %v4621_v31 = vld [vmem:[%s15985_s3 + $0xd8] sm:$0xff] }
 0x61d   :  { %7585 = vmatmul.msk.f32.gmra.mxu3 %vm186_vm1, %v11284_v14  ;;  %v4620_v14 = vld [vmem:[%s15985_s3 + $0xd0] sm:$0xff] }
 0x61e   :  { %4886 = vmatpush.msra.mxu2 %v4620_v14  ;;  %4951 = vmatpush.msra.mxu3 %v4621_v31  ;;  %v7880_v14 = vld [vmem:[%s15984_s0 + $0x78] sm:$0xff] }
 0x61f   :  { %v12177_v21 = vpop.f32.mrf.mxu2 }
 0x620   :  { %16816 = vst [vmem:[#allocation301_spill] sm:$0xff] %v12177_v21  ;;  %v12179_v36 = vpop.f32.mrf.mxu3  ;;  %v12181_v9 = vpop.f32.mrf.mxu0  ;;  %v4653_v21 = vld [vmem:[%s15985_s3 + $0x1d8] sm:$0xff] }
 0x621   :  { %16817 = vst [vmem:[#allocation302_spill] sm:$0xff] %v12179_v36  ;;  %v12183_v60 = vpop.f32.mrf.mxu1  ;;  %4821 = vmatpush.msra.mxu1 %v4653_v21 }
 0x622   :  { %16818 = vst [vmem:[#allocation303_spill] sm:$0xff] %v12181_v9 }
 0x623   :  { %16819 = vst [vmem:[#allocation304_spill] sm:$0xff] %v12183_v60  ;;  %7443 = vmatmul.msk.f32.gmra.mxu0 %vm186_vm1, %v7879_v0 }
 0x624   :  { %7488 = vmatmul.msk.f32.gmra.mxu1 %vm186_vm1, %v7873_v2  ;;  %7537 = vmatmul.msk.f32.gmra.mxu2 %vm186_vm1, %v11308_v52 }
 0x625   :  { %7586 = vmatmul.msk.f32.gmra.mxu3 %vm186_vm1, %v11308_v52  ;;  %v4652_v52 = vld [vmem:[%s15985_s3 + $0x1d0] sm:$0xff] }
 0x626   :  { %4756 = vmatpush.msrb.mxu0 %v4652_v52 }
 0x627   :  { %v12200_v9 = vpop.f32.mrf.mxu2 }
 0x628   :  { %v12202_v60 = vpop.f32.mrf.mxu3  ;;  %v12204_v2 = vpop.f32.mrf.mxu0 }
 0x629   :  { %16820 = vst [vmem:[#allocation305_spill] sm:$0xff] %v12204_v2  ;;  %v12206_v36 = vpop.f32.mrf.mxu1 }
 0x62a   :  { %16821 = vst [vmem:[#allocation306_spill] sm:$0xff] %v12206_v36  ;;  %v7881_v36 = vld [vmem:[%s15984_s0 + $0x80] sm:$0xff] }
 0x62b   :  { %7444 = vmatmul.msk.f32.gmra.mxu0 %vm186_vm1, %v7880_v14 }
 0x62c   :  { %7489 = vmatmul.msk.f32.gmra.mxu1 %vm186_vm1, %v7875_v30  ;;  %7538 = vmatmul.msk.f32.gmra.mxu2 %vm186_vm1, %v11332_v46 }
 0x62d   :  { %7587 = vmatmul.msk.f32.gmra.mxu3 %vm186_vm1, %v11332_v46 }
 0x62f   :  { %v12223_v31 = vpop.f32.mrf.mxu2 }
 0x630   :  { %v12225_v2 = vpop.f32.mrf.mxu3  ;;  %v12227_v52 = vpop.f32.mrf.mxu0 }
 0x631   :  { %16822 = vst [vmem:[#allocation307_spill] sm:$0xff] %v12225_v2  ;;  %v12229_v21 = vpop.f32.mrf.mxu1  ;;  %v7882_v2 = vld [vmem:[%s15984_s0 + $0x88] sm:$0xff] }
 0x632   :  { %16823 = vst [vmem:[#allocation308_spill] sm:$0xff] %v12227_v52 }
 0x633   :  { %16824 = vst [vmem:[#allocation309_spill] sm:$0xff] %v12229_v21  ;;  %7445 = vmatmul.msk.f32.gmra.mxu0 %vm186_vm1, %v7881_v36 }
 0x634   :  { %7490 = vmatmul.msk.f32.gmra.mxu1 %vm186_vm1, %v7877_v35  ;;  %7539 = vmatmul.msk.f32.gmra.mxu2 %vm186_vm1, %v11356_v16  ;;  %v4619_v35 = vld [vmem:[%s15985_s3 + $0xc8] sm:$0xff] }
 0x635   :  { %7588 = vmatmul.msk.f32.gmra.mxu3 %vm186_vm1, %v11356_v16  ;;  %v4618_v16 = vld [vmem:[%s15985_s3 + $0xc0] sm:$0xff] }
 0x636   :  { %4887 = vmatpush.msra.mxu2 %v4618_v16  ;;  %4952 = vmatpush.msra.mxu3 %v4619_v35  ;;  %v7883_v16 = vld [vmem:[%s15984_s0 + $0x90] sm:$0xff] }
 0x637   :  { %v12240_v46 = vpop.f32.mrf.mxu2 }
 0x638   :  { %16825 = vst [vmem:[#allocation310_spill] sm:$0xff] %v12240_v46  ;;  %v12242_v30 = vpop.f32.mrf.mxu3  ;;  %v12244_v52 = vpop.f32.mrf.mxu0  ;;  %v4651_v46 = vld [vmem:[%s15985_s3 + $0x1c8] sm:$0xff] }
 0x639   :  { %16826 = vst [vmem:[#allocation311_spill] sm:$0xff] %v12242_v30  ;;  %v12246_v21 = vpop.f32.mrf.mxu1  ;;  %4822 = vmatpush.msra.mxu1 %v4651_v46 }
 0x63a   :  { %16827 = vst [vmem:[#allocation312_spill] sm:$0xff] %v12244_v52 }
 0x63b   :  { %16828 = vst [vmem:[#allocation313_spill] sm:$0xff] %v12246_v21  ;;  %7446 = vmatmul.msk.f32.gmra.mxu0 %vm186_vm1, %v7882_v2 }
 0x63c   :  { %7491 = vmatmul.msk.f32.gmra.mxu1 %vm186_vm1, %v7878_v15  ;;  %7540 = vmatmul.msk.f32.gmra.mxu2 %vm186_vm1, %v11381_v18 }
 0x63d   :  { %7589 = vmatmul.msk.f32.gmra.mxu3 %vm186_vm1, %v11381_v18  ;;  %v4650_v18 = vld [vmem:[%s15985_s3 + $0x1c0] sm:$0xff] }
 0x63e   :  { %4757 = vmatpush.msrb.mxu0 %v4650_v18 }
 0x63f   :  { %v12263_v52 = vpop.f32.mrf.mxu2 }
 0x640   :  { %v12265_v21 = vpop.f32.mrf.mxu3  ;;  %v12267_v15 = vpop.f32.mrf.mxu0 }
 0x641   :  { %16829 = vst [vmem:[#allocation314_spill] sm:$0xff] %v12267_v15  ;;  %v12269_v30 = vpop.f32.mrf.mxu1 }
 0x642   :  { %16830 = vst [vmem:[#allocation315_spill] sm:$0xff] %v12269_v30  ;;  %v7884_v30 = vld [vmem:[%s15984_s0 + $0x98] sm:$0xff] }
 0x643   :  { %7447 = vmatmul.msk.f32.gmra.mxu0 %vm186_vm1, %v7883_v16 }
 0x644   :  { %7492 = vmatmul.msk.f32.gmra.mxu1 %vm186_vm1, %v7879_v0  ;;  %7541 = vmatmul.msk.f32.gmra.mxu2 %vm186_vm1, %v11406_v23 }
 0x645   :  { %7590 = vmatmul.msk.f32.gmra.mxu3 %vm186_vm1, %v11406_v23 }
 0x647   :  { %v12286_v35 = vpop.f32.mrf.mxu2 }
 0x648   :  { %v12288_v15 = vpop.f32.mrf.mxu3  ;;  %v12290_v18 = vpop.f32.mrf.mxu0 }
 0x649   :  { %16831 = vst [vmem:[#allocation316_spill] sm:$0xff] %v12288_v15  ;;  %v12292_v46 = vpop.f32.mrf.mxu1  ;;  %v7885_v15 = vld [vmem:[%s15984_s0 + $0xa0] sm:$0xff] }
 0x64a   :  { %16832 = vst [vmem:[#allocation317_spill] sm:$0xff] %v12290_v18 }
 0x64b   :  { %16833 = vst [vmem:[#allocation318_spill] sm:$0xff] %v12292_v46  ;;  %7448 = vmatmul.msk.f32.gmra.mxu0 %vm186_vm1, %v7884_v30 }
 0x64c   :  { %7493 = vmatmul.msk.f32.gmra.mxu1 %vm186_vm1, %v7880_v14  ;;  %7542 = vmatmul.msk.f32.gmra.mxu2 %vm186_vm1, %v11431_v29  ;;  %v4617_v14 = vld [vmem:[%s15985_s3 + $0xb8] sm:$0xff] }
 0x64d   :  { %7591 = vmatmul.msk.f32.gmra.mxu3 %vm186_vm1, %v11431_v29  ;;  %v4616_v29 = vld [vmem:[%s15985_s3 + $0xb0] sm:$0xff] }
 0x64e   :  { %4888 = vmatpush.msra.mxu2 %v4616_v29  ;;  %4953 = vmatpush.msra.mxu3 %v4617_v14  ;;  %v7886_v29 = vld [vmem:[%s15984_s0 + $0xa8] sm:$0xff] }
 0x64f   :  { %v12303_v23 = vpop.f32.mrf.mxu2 }
 0x650   :  { %16834 = vst [vmem:[#allocation319_spill] sm:$0xff] %v12303_v23  ;;  %v12305_v0 = vpop.f32.mrf.mxu3  ;;  %v12307_v18 = vpop.f32.mrf.mxu0  ;;  %v4649_v23 = vld [vmem:[%s15985_s3 + $0x1b8] sm:$0xff] }
 0x651   :  { %16835 = vst [vmem:[#allocation320_spill] sm:$0xff] %v12305_v0  ;;  %v12309_v46 = vpop.f32.mrf.mxu1  ;;  %4823 = vmatpush.msra.mxu1 %v4649_v23 }
 0x652   :  { %16836 = vst [vmem:[#allocation321_spill] sm:$0xff] %v12307_v18 }
 0x653   :  { %16837 = vst [vmem:[#allocation322_spill] sm:$0xff] %v12309_v46  ;;  %7449 = vmatmul.msk.f32.gmra.mxu0 %vm186_vm1, %v7885_v15 }
 0x654   :  { %7494 = vmatmul.msk.f32.gmra.mxu1 %vm186_vm1, %v7881_v36  ;;  %7543 = vmatmul.msk.f32.gmra.mxu2 %vm186_vm1, %v11458_v19 }
 0x655   :  { %7592 = vmatmul.msk.f32.gmra.mxu3 %vm186_vm1, %v11458_v19  ;;  %v4648_v19 = vld [vmem:[%s15985_s3 + $0x1b0] sm:$0xff] }
 0x656   :  { %4758 = vmatpush.msrb.mxu0 %v4648_v19 }
 0x657   :  { %v12326_v18 = vpop.f32.mrf.mxu2 }
 0x658   :  { %16838 = vst [vmem:[#allocation323_spill] sm:$0xff] %v12326_v18  ;;  %v12328_v46 = vpop.f32.mrf.mxu3  ;;  %v12330_v36 = vpop.f32.mrf.mxu0 }
 0x659   :  { %16839 = vst [vmem:[#allocation324_spill] sm:$0xff] %v12328_v46  ;;  %v12332_v0 = vpop.f32.mrf.mxu1 }
 0x65a   :  { %16840 = vst [vmem:[#allocation325_spill] sm:$0xff] %v12330_v36 }
 0x65b   :  { %16841 = vst [vmem:[#allocation326_spill] sm:$0xff] %v12332_v0  ;;  %7450 = vmatmul.msk.f32.gmra.mxu0 %vm186_vm1, %v7886_v29  ;;  %v7887_v0 = vld [vmem:[%s15984_s0 + $0xb0] sm:$0xff] }
 0x65c   :  { %7495 = vmatmul.msk.f32.gmra.mxu1 %vm186_vm1, %v7882_v2  ;;  %7544 = vmatmul.msk.f32.gmra.mxu2 %vm186_vm1, %v11485_v58 }
 0x65d   :  { %7593 = vmatmul.msk.f32.gmra.mxu3 %vm186_vm1, %v11485_v58 }
 0x65f   :  { %v12349_v14 = vpop.f32.mrf.mxu2 }
 0x660   :  { %16842 = vst [vmem:[#allocation327_spill] sm:$0xff] %v12349_v14  ;;  %v12351_v36 = vpop.f32.mrf.mxu3  ;;  %v12353_v19 = vpop.f32.mrf.mxu0  ;;  %v12492_v14 = vld [vmem:[%s15984_s0 + $0xe0] sm:$0xff] }
 0x661   :  { %16843 = vst [vmem:[#allocation328_spill] sm:$0xff] %v12351_v36  ;;  %v12355_v23 = vpop.f32.mrf.mxu1  ;;  %v7888_v36 = vld [vmem:[%s15984_s0 + $0xb8] sm:$0xff] }
 0x662   :  { %16844 = vst [vmem:[#allocation329_spill] sm:$0xff] %v12353_v19 }
 0x663   :  { %16845 = vst [vmem:[#allocation330_spill] sm:$0xff] %v12355_v23  ;;  %7451 = vmatmul.msk.f32.gmra.mxu0 %vm186_vm1, %v7887_v0 }
 0x664   :  { %7496 = vmatmul.msk.f32.gmra.mxu1 %vm186_vm1, %v7883_v16  ;;  %7545 = vmatmul.msk.f32.gmra.mxu2 %vm186_vm1, %v11512_v32  ;;  %v4615_v16 = vld [vmem:[%s15985_s3 + $0xa8] sm:$0xff] }
 0x665   :  { %7594 = vmatmul.msk.f32.gmra.mxu3 %vm186_vm1, %v11512_v32  ;;  %v4614_v32 = vld [vmem:[%s15985_s3 + $0xa0] sm:$0xff] }
 0x666   :  { %4889 = vmatpush.msra.mxu2 %v4614_v32  ;;  %4954 = vmatpush.msra.mxu3 %v4615_v16  ;;  %v7889_v32 = vld [vmem:[%s15984_s0 + $0xc0] sm:$0xff] }
 0x667   :  { %v12366_v58 = vpop.f32.mrf.mxu2 }
 0x668   :  { %16846 = vst [vmem:[#allocation331_spill] sm:$0xff] %v12366_v58  ;;  %v12368_v2 = vpop.f32.mrf.mxu3  ;;  %v12370_v19 = vpop.f32.mrf.mxu0  ;;  %v4647_v58 = vld [vmem:[%s15985_s3 + $0x1a8] sm:$0xff] }
 0x669   :  { %16847 = vst [vmem:[#allocation332_spill] sm:$0xff] %v12368_v2  ;;  %v12372_v23 = vpop.f32.mrf.mxu1  ;;  %4824 = vmatpush.msra.mxu1 %v4647_v58 }
 0x66a   :  { %16848 = vst [vmem:[#allocation333_spill] sm:$0xff] %v12370_v19 }
 0x66b   :  { %16849 = vst [vmem:[#allocation334_spill] sm:$0xff] %v12372_v23  ;;  %7452 = vmatmul.msk.f32.gmra.mxu0 %vm186_vm1, %v7888_v36 }
 0x66c   :  { %7497 = vmatmul.msk.f32.gmra.mxu1 %vm186_vm1, %v7884_v30  ;;  %7546 = vmatmul.msk.f32.gmra.mxu2 %vm186_vm1, %v11539_v62 }
 0x66d   :  { %7595 = vmatmul.msk.f32.gmra.mxu3 %vm186_vm1, %v11539_v62  ;;  %v4646_v62 = vld [vmem:[%s15985_s3 + $0x1a0] sm:$0xff] }
 0x66e   :  { %4759 = vmatpush.msrb.mxu0 %v4646_v62 }
 0x66f   :  { %v12389_v19 = vpop.f32.mrf.mxu2 }
 0x670   :  { %16850 = vst [vmem:[#allocation335_spill] sm:$0xff] %v12389_v19  ;;  %v12391_v23 = vpop.f32.mrf.mxu3  ;;  %v3519_v30 = vpop.f32.mrf.mxu0  ;;  %v2941_v19 = vadd.f32 %v11557_v33, %v10481_v28 }
 0x671   :  { %16851 = vst [vmem:[#allocation336_spill] sm:$0xff] %v12391_v23  ;;  %v12393_v2 = vpop.f32.mrf.mxu1  ;;  %v7890_v23 = vld [vmem:[%s15984_s0 + $0xc8] sm:$0xff] }
 0x672   :  { %16852 = vst [vmem:[#allocation337_spill] sm:$0xff] %v12393_v2 }
 0x673   :  { %7453 = vmatmul.msk.f32.gmra.mxu0 %vm186_vm1, %v7889_v32 }
 0x674   :  { %7498 = vmatmul.msk.f32.gmra.mxu1 %vm186_vm1, %v7885_v15  ;;  %7547 = vmatmul.msk.f32.gmra.mxu2 %vm186_vm1, %v11562_v4 }
 0x675   :  { %7596 = vmatmul.msk.f32.gmra.mxu3 %vm186_vm1, %v11562_v4 }
 0x677   :  { %v12410_v16 = vpop.f32.mrf.mxu2 }
 0x678   :  { %16853 = vst [vmem:[#allocation338_spill] sm:$0xff] %v12410_v16  ;;  %v12412_v2 = vpop.f32.mrf.mxu3  ;;  %v12414_v62 = vpop.f32.mrf.mxu0  ;;  %v12438_v16 = vld [vmem:[%s15984_s0 + $0xd0] sm:$0xff] }
 0x679   :  { %16854 = vst [vmem:[#allocation339_spill] sm:$0xff] %v12412_v2  ;;  %v12416_v58 = vpop.f32.mrf.mxu1 }
 0x67a   :  { %16855 = vst [vmem:[#allocation340_spill] sm:$0xff] %v12416_v58 }
 0x67b   :  { %7454 = vmatmul.msk.f32.gmra.mxu0 %vm186_vm1, %v7890_v23 }
 0x67c   :  { %7499 = vmatmul.msk.f32.gmra.mxu1 %vm186_vm1, %v7886_v29  ;;  %7548 = vmatmul.msk.f32.gmra.mxu2 %vm186_vm1, %v11583_v50  ;;  %v4613_v29 = vld [vmem:[%s15985_s3 + $0x98] sm:$0xff] }
 0x67d   :  { %7597 = vmatmul.msk.f32.gmra.mxu3 %vm186_vm1, %v11583_v50  ;;  %v4612_v50 = vld [vmem:[%s15985_s3 + $0x90] sm:$0xff] }
 0x67e   :  { %4890 = vmatpush.msra.mxu2 %v4612_v50  ;;  %4955 = vmatpush.msra.mxu3 %v4613_v29  ;;  %v4644_v50 = vld [vmem:[%s15985_s3 + $0x190] sm:$0xff]  ;;  %v4645_v29 = vld [vmem:[%s15985_s3 + $0x198] sm:$0xff] }
 0x67f   :  { %v12427_v4 = vpop.f32.mrf.mxu2  ;;  %4760 = vmatpush.msrb.mxu0 %v4644_v50  ;;  %4825 = vmatpush.msra.mxu1 %v4645_v29 }
 0x680   :  { %16856 = vst [vmem:[#allocation341_spill] sm:$0xff] %v12427_v4  ;;  %v12429_v15 = vpop.f32.mrf.mxu3  ;;  %v12431_v2 = vpop.f32.mrf.mxu0 }
 0x681   :  { %16857 = vst [vmem:[#allocation342_spill] sm:$0xff] %v12429_v15  ;;  %v12433_v58 = vpop.f32.mrf.mxu1 }
 0x682   :  { %16858 = vst [vmem:[#allocation343_spill] sm:$0xff] %v12433_v58 }
 0x683   :  { %7455 = vmatmul.msk.f32.gmra.mxu0 %vm186_vm1, %v12438_v16 }
 0x684   :  { %7500 = vmatmul.msk.f32.gmra.mxu1 %vm186_vm1, %v7887_v0  ;;  %7549 = vmatmul.msk.f32.gmra.mxu2 %vm186_vm1, %v11604_v3 }
 0x685   :  { %7598 = vmatmul.msk.f32.gmra.mxu3 %vm186_vm1, %v11604_v3  ;;  %v12464_v3 = vld [vmem:[%s15984_s0 + $0xd8] sm:$0xff] }
 0x687   :  { %v12453_v58 = vpop.f32.mrf.mxu2 }
 0x688   :  { %16859 = vst [vmem:[#allocation344_spill] sm:$0xff] %v12453_v58  ;;  %v12455_v15 = vpop.f32.mrf.mxu3  ;;  %v12457_v0 = vpop.f32.mrf.mxu0 }
 0x689   :  { %16860 = vst [vmem:[#allocation345_spill] sm:$0xff] %v12455_v15  ;;  %v12459_v4 = vpop.f32.mrf.mxu1 }
 0x68a   :  { %16861 = vst [vmem:[#allocation346_spill] sm:$0xff] %v12459_v4 }
 0x68b   :  { %7456 = vmatmul.msk.f32.gmra.mxu0 %vm186_vm1, %v12464_v3 }
 0x68c   :  { %7501 = vmatmul.msk.f32.gmra.mxu1 %vm186_vm1, %v7888_v36  ;;  %7550 = vmatmul.msk.f32.gmra.mxu2 %vm186_vm1, %v11625_v61 }
 0x68d   :  { %7599 = vmatmul.msk.f32.gmra.mxu3 %vm186_vm1, %v11625_v61  ;;  %v2780_v61 = vadd.f32 %v11447_v40, %v10479_v53  ;;  %v3407_v53 = vadd.f32 %v11574_v42, %v2941_v19 }
 0x68f   :  { %v12479_v4 = vpop.f32.mrf.mxu2  ;;  %v3406_v50 = vadd.f32 %v11572_v39, %v2780_v61  ;;  %v2783_v39 = vadd.f32 %v11474_v55, %v10504_v54 }
 0x690   :  { %16862 = vst [vmem:[#allocation347_spill] sm:$0xff] %v12479_v4  ;;  %v12481_v15 = vpop.f32.mrf.mxu3  ;;  %v12483_v36 = vpop.f32.mrf.mxu0 }
 0x691   :  { %16863 = vst [vmem:[#allocation348_spill] sm:$0xff] %v12481_v15  ;;  %v3680_v58 = vpop.f32.mrf.mxu1  ;;  %v3824_v28 = vadd.f32 %v3519_v30, %v3406_v50  ;;  %v3408_v42 = vadd.f32 %v11593_v8, %v2783_v39  ;;  %v12577_v39 = vld [vmem:[%s15984_s0 + $0xf8] sm:$0xff] }
 0x692   :  { %v3825_v40 = vadd.f32 %v3680_v58, %v3407_v53 }
 0x693   :  { %7457 = vmatmul.msk.f32.gmra.mxu0 %vm186_vm1, %v12492_v14 }
 0x694   :  { %7502 = vmatmul.msk.f32.gmra.mxu1 %vm186_vm1, %v7889_v32  ;;  %7551 = vmatmul.msk.f32.gmra.mxu2 %vm186_vm1, %v11646_v11  ;;  %v2944_v32 = vadd.f32 %v11578_v20, %v10506_v34  ;;  %v16864_v34 = vmax.f32 %v10459_v59, %v10462_v26  ;;  %v3826_v20 = vadd.f32 %v12414_v62, %v3408_v42  ;;  %v4611_v26 = vld [vmem:[%s15985_s3 + $0x88] sm:$0xff]  ;;  %v12544_v62 = vld [vmem:[%s15984_s0 + $0xf0] sm:$0xff] }
 0x695   :  { %7600 = vmatmul.msk.f32.gmra.mxu3 %vm186_vm1, %v11646_v11  ;;  %v12512_v11 = vld [vmem:[%s15984_s0 + $0xe8] sm:$0xff]  ;;  %v2786_v59 = vadd.f32 %v11501_v13, %v10529_v22 }
 0x696   :  { %v3409_v54 = vadd.f32 %v11595_v41, %v2944_v32  ;;  %v4610_v41 = vld [vmem:[%s15985_s3 + $0x80] sm:$0xff]  ;;  %4956 = vmatpush.msra.mxu3 %v4611_v26 }
 0x697   :  { %v3949_v33 = vpop.f32.mrf.mxu2  ;;  %4891 = vmatpush.msra.mxu2 %v4610_v41  ;;  %v3410_v50 = vadd.f32 %v11614_v45, %v2786_v59 }
 0x698   :  { %v4254_v29 = vadd.f32 %v3949_v33, %v3824_v28  ;;  %v4110_v15 = vpop.f32.mrf.mxu3  ;;  %v12503_v4 = vpop.f32.mrf.mxu0  ;;  %v2950_v33 = vadd.f32 %v11620_v7, %v10556_v25  ;;  %v16866_v25 = vmax.f32 %v10509_v43, %v10512_v17 }
 0x699   :  { %v4255_v46 = vadd.f32 %v4110_v15, %v3825_v40  ;;  %v3683_v18 = vpop.f32.mrf.mxu1  ;;  %v3828_v13 = vadd.f32 %v12431_v2, %v3410_v50  ;;  %v2789_v2 = vadd.f32 %v11528_v49, %v10554_v6  ;;  %v4609_v50 = vld [vmem:[%s15985_s3 + $0x78] sm:$0xff] }
 0x69a   :  { %v3413_v6 = vadd.f32 %v11637_v56, %v2950_v33  ;;  %4957 = vmatpush.msra.mxu3 %v4609_v50  ;;  %v16879_v33 = vld [vmem:[#allocation188_spill] sm:$0xff] }
 0x69b   :  { %v4398_v61 = vmax.f32 %v4254_v29, %v4255_v46  ;;  %7458 = vmatmul.msk.f32.gmra.mxu0 %vm186_vm1, %v12512_v11  ;;  %v3827_v46 = vadd.f32 %v3683_v18, %v3409_v54  ;;  %v3412_v32 = vadd.f32 %v11635_v51, %v2789_v2  ;;  %v12637_v2 = vld [vmem:[%s15984_s0 + $0x108] sm:$0xff] }
 0x69c   :  { %7503 = vmatmul.msk.f32.gmra.mxu1 %vm186_vm1, %v7890_v23  ;;  %7552 = vmatmul.msk.f32.gmra.mxu2 %vm186_vm1, %v11667_v27 }
 0x69d   :  { %v12524_v55 = vmax.f32 %v16864_v34, %v4398_v61  ;;  %7601 = vmatmul.msk.f32.gmra.mxu3 %vm186_vm1, %v11667_v27  ;;  %v2947_v27 = vadd.f32 %v11599_v37, %v10531_v57  ;;  %v16865_v57 = vmax.f32 %v10484_v47, %v10487_v5  ;;  %v3830_v49 = vadd.f32 %v12457_v0, %v3412_v32  ;;  %v16869_v0 = vld [vmem:[#allocation184_spill] sm:$0xff]  ;;  %v16880_v32 = vld [vmem:[#allocation205_spill] sm:$0xff] }
 0x69f   :  { %v3952_v19 = vpop.f32.mrf.mxu2  ;;  %v3411_v22 = vadd.f32 %v11616_v1, %v2947_v27  ;;  %v4643_v1 = vld [vmem:[%s15985_s3 + $0x188] sm:$0xff] }
 0x6a0   :  { %v4256_v8 = vadd.f32 %v3952_v19, %v3826_v20  ;;  %v4113_v30 = vpop.f32.mrf.mxu3  ;;  %v12529_v23 = vpop.f32.mrf.mxu0  ;;  %4826 = vmatpush.msra.mxu1 %v4643_v1  ;;  %v16868_v19 = vld [vmem:[#allocation77_spill] sm:$0xff] }
 0x6a1   :  { %v4257_v58 = vadd.f32 %v4113_v30, %v3827_v46  ;;  %v3686_v15 = vpop.f32.mrf.mxu1  ;;  %v16867_v46 = vld [vmem:[#allocation76_spill] sm:$0xff]  ;;  %v2953_v43 = vadd.f32 %v11641_v24, %v16868_v19 }
 0x6a2   :  { %v3829_v53 = vadd.f32 %v3686_v15, %v3411_v22  ;;  %v2792_v56 = vadd.f32 %v11555_v63, %v16867_v46  ;;  %v16870_v30 = vld [vmem:[#allocation200_spill] sm:$0xff]  ;;  %v16871_v63 = vld [vmem:[#allocation185_spill] sm:$0xff] }
 0x6a3   :  { %v4399_v18 = vmax.f32 %v4256_v8, %v4257_v58  ;;  %7459 = vmatmul.msk.f32.gmra.mxu0 %vm186_vm1, %v12544_v62  ;;  %v3415_v58 = vadd.f32 %v16871_v63, %v2953_v43  ;;  %v16872_v24 = vld [vmem:[#allocation72_spill] sm:$0xff]  ;;  %v16873_v15 = vld [vmem:[#allocation73_spill] sm:$0xff] }
 0x6a4   :  { %7504 = vmatmul.msk.f32.gmra.mxu1 %vm186_vm1, %v12438_v16  ;;  %7553 = vmatmul.msk.f32.gmra.mxu2 %vm186_vm1, %v11688_v12  ;;  %v4642_v16 = vld [vmem:[%s15985_s3 + $0x180] sm:$0xff]  ;;  %v3414_v8 = vadd.f32 %v16869_v0, %v2792_v56  ;;  %v16874_v41 = vmax.f32 %v16872_v24, %v16873_v15  ;;  %v4641_v0 = vld [vmem:[%s15985_s3 + $0x178] sm:$0xff] }
 0x6a5   :  { %v12557_v37 = vmax.f32 %v16865_v57, %v4399_v18  ;;  %7602 = vmatmul.msk.f32.gmra.mxu3 %vm186_vm1, %v11688_v12  ;;  %4761 = vmatpush.msrb.mxu0 %v4642_v16  ;;  %v16875_v16 = vld [vmem:[#allocation2_spill] sm:$0xff] }
 0x6a6   :  { %v3832_v59 = vadd.f32 %v12483_v36, %v3414_v8  ;;  %v16876_v36 = vld [vmem:[#allocation180_spill] sm:$0xff]  ;;  %v16885_v8 = vld [vmem:[#allocation83_spill] sm:$0xff]  ;;  %4827 = vmatpush.msra.mxu1 %v4641_v0 }
 0x6a7   :  { %v3955_v45 = vpop.f32.mrf.mxu2  ;;  %v2795_v1 = vadd.f32 %v16876_v36, %v16875_v16 }
 0x6a8   :  { %v4258_v28 = vadd.f32 %v3955_v45, %v3828_v13  ;;  %v4116_v40 = vpop.f32.mrf.mxu3  ;;  %v12568_v47 = vpop.f32.mrf.mxu0 }
 0x6a9   :  { %v4259_v5 = vadd.f32 %v4116_v40, %v3829_v53  ;;  %v3689_v12 = vpop.f32.mrf.mxu1  ;;  %v16878_v40 = vld [vmem:[#allocation187_spill] sm:$0xff] }
 0x6aa   :  { %v3831_v61 = vadd.f32 %v3689_v12, %v3413_v6  ;;  %v16881_v6 = vld [vmem:[#allocation189_spill] sm:$0xff] }
 0x6ab   :  { %v4400_v29 = vmax.f32 %v4258_v28, %v4259_v5  ;;  %7460 = vmatmul.msk.f32.gmra.mxu0 %vm186_vm1, %v12577_v39  ;;  %v16877_v28 = vld [vmem:[#allocation81_spill] sm:$0xff] }
 0x6ac   :  { %7505 = vmatmul.msk.f32.gmra.mxu1 %vm186_vm1, %v12464_v3  ;;  %7554 = vmatmul.msk.f32.gmra.mxu2 %vm186_vm1, %v11709_v10  ;;  %v2956_v5 = vadd.f32 %v16878_v40, %v16877_v28 }
 0x6ad   :  { %v12590_v7 = vmax.f32 %v16866_v25, %v4400_v29  ;;  %7603 = vmatmul.msk.f32.gmra.mxu3 %vm186_vm1, %v11709_v10  ;;  %v12604_v10 = vld [vmem:[%s15984_s0 + $0x100] sm:$0xff]  ;;  %v3416_v29 = vadd.f32 %v16879_v33, %v2795_v1 }
 0x6ae   :  { %v3417_v25 = vadd.f32 %v16881_v6, %v2956_v5  ;;  %v16895_v33 = vld [vmem:[#allocation86_spill] sm:$0xff]  ;;  %v16897_v6 = vld [vmem:[#allocation21_spill] sm:$0xff] }
 0x6af   :  { %v3958_v51 = vpop.f32.mrf.mxu2 }
 0x6b0   :  { %v4260_v42 = vadd.f32 %v3958_v51, %v3830_v49  ;;  %v4119_v54 = vpop.f32.mrf.mxu3  ;;  %v12595_v3 = vpop.f32.mrf.mxu0  ;;  %v16882_v49 = vld [vmem:[#allocation74_spill] sm:$0xff] }
 0x6b1   :  { %v4261_v34 = vadd.f32 %v4119_v54, %v3831_v61  ;;  %v3692_v20 = vpop.f32.mrf.mxu1  ;;  %v16883_v61 = vld [vmem:[#allocation75_spill] sm:$0xff]  ;;  %v3834_v54 = vadd.f32 %v12503_v4, %v3416_v29  ;;  %v16887_v4 = vld [vmem:[#allocation84_spill] sm:$0xff]  ;;  %v16896_v29 = vld [vmem:[#allocation182_spill] sm:$0xff] }
 0x6b2   :  { %v3833_v27 = vadd.f32 %v3692_v20, %v3415_v58  ;;  %v16884_v51 = vmax.f32 %v16882_v49, %v16883_v61  ;;  %v16888_v58 = vld [vmem:[#allocation191_spill] sm:$0xff] }
 0x6b3   :  { %v4401_v17 = vmax.f32 %v4260_v42, %v4261_v34  ;;  %7461 = vmatmul.msk.f32.gmra.mxu0 %vm186_vm1, %v12604_v10  ;;  %v2959_v24 = vadd.f32 %v16888_v58, %v16887_v4 }
 0x6b4   :  { %7506 = vmatmul.msk.f32.gmra.mxu1 %vm186_vm1, %v12492_v14  ;;  %7555 = vmatmul.msk.f32.gmra.mxu2 %vm186_vm1, %v16870_v30  ;;  %v4608_v14 = vld [vmem:[%s15985_s3 + $0x70] sm:$0xff] }
 0x6b5   :  { %v12617_v26 = vmax.f32 %v16874_v41, %v4401_v17  ;;  %7604 = vmatmul.msk.f32.gmra.mxu3 %vm186_vm1, %v16870_v30  ;;  %4892 = vmatpush.msra.mxu2 %v4608_v14  ;;  %v4640_v17 = vld [vmem:[%s15985_s3 + $0x170] sm:$0xff]  ;;  %v16886_v30 = vld [vmem:[#allocation181_spill] sm:$0xff] }
 0x6b6   :  { %v2798_v63 = vadd.f32 %v16886_v30, %v16885_v8  ;;  %4762 = vmatpush.msrb.mxu0 %v4640_v17  ;;  %v12670_v41 = vld [vmem:[%s15984_s0 + $0x110] sm:$0xff]  ;;  %v16891_v14 = vld [vmem:[#allocation193_spill] sm:$0xff] }
 0x6b7   :  { %v3961_v18 = vpop.f32.mrf.mxu2  ;;  %v3419_v50 = vadd.f32 %v16891_v14, %v2959_v24 }
 0x6b8   :  { %v4262_v22 = vadd.f32 %v3961_v18, %v3832_v59  ;;  %v4122_v57 = vpop.f32.mrf.mxu3  ;;  %v12628_v13 = vpop.f32.mrf.mxu0  ;;  %v16889_v59 = vld [vmem:[#allocation192_spill] sm:$0xff]  ;;  %v16890_v18 = vld [vmem:[#allocation210_spill] sm:$0xff] }
 0x6b9   :  { %v4263_v53 = vadd.f32 %v4122_v57, %v3833_v27  ;;  %v3695_v45 = vpop.f32.mrf.mxu1  ;;  %v3418_v27 = vadd.f32 %v16889_v59, %v2798_v63  ;;  %v16893_v57 = vld [vmem:[#allocation79_spill] sm:$0xff] }
 0x6ba   :  { %v3835_v34 = vadd.f32 %v3695_v45, %v3417_v25  ;;  %v16898_v25 = vld [vmem:[#allocation195_spill] sm:$0xff] }
 0x6bb   :  { %v4402_v12 = vmax.f32 %v4262_v22, %v4263_v53  ;;  %7462 = vmatmul.msk.f32.gmra.mxu0 %vm186_vm1, %v12637_v2  ;;  %v16892_v22 = vld [vmem:[#allocation78_spill] sm:$0xff]  ;;  %v3836_v16 = vadd.f32 %v12529_v23, %v3418_v27  ;;  %v2962_v49 = vadd.f32 %v16898_v25, %v16897_v6  ;;  %v16899_v23 = vld [vmem:[#allocation196_spill] sm:$0xff]  ;;  %v4607_v59 = vld [vmem:[%s15985_s3 + $0x68] sm:$0xff] }
 0x6bc   :  { %7507 = vmatmul.msk.f32.gmra.mxu1 %vm186_vm1, %v12512_v11  ;;  %7556 = vmatmul.msk.f32.gmra.mxu2 %vm186_vm1, %v16880_v32  ;;  %v16894_v53 = vmax.f32 %v16892_v22, %v16893_v57  ;;  %v16905_v27 = vld [vmem:[#allocation24_spill] sm:$0xff] }
 0x6bd   :  { %v12650_v42 = vmax.f32 %v16884_v51, %v4402_v12  ;;  %7605 = vmatmul.msk.f32.gmra.mxu3 %vm186_vm1, %v16880_v32  ;;  %v2801_v32 = vadd.f32 %v16896_v29, %v16895_v33  ;;  %v12697_v51 = vld [vmem:[%s15984_s0 + $0x118] sm:$0xff] }
 0x6be   :  { %4958 = vmatpush.msra.mxu3 %v4607_v59  ;;  %v16920_v59 = vld [vmem:[#allocation5_spill] sm:$0xff] }
 0x6bf   :  { %v3964_v20 = vpop.f32.mrf.mxu2 }
 0x6c0   :  { %v4264_v46 = vadd.f32 %v3964_v20, %v3834_v54  ;;  %v4125_v56 = vpop.f32.mrf.mxu3  ;;  %v12655_v11 = vpop.f32.mrf.mxu0  ;;  %v3420_v54 = vadd.f32 %v16899_v23, %v2801_v32  ;;  %v16901_v20 = vld [vmem:[#allocation197_spill] sm:$0xff] }
 0x6c1   :  { %v4265_v19 = vadd.f32 %v4125_v56, %v3835_v34  ;;  %v3698_v43 = vpop.f32.mrf.mxu1  ;;  %v16900_v34 = vld [vmem:[#allocation215_spill] sm:$0xff]  ;;  %v16902_v56 = vld [vmem:[#allocation82_spill] sm:$0xff] }
 0x6c2   :  { %v3837_v36 = vadd.f32 %v3698_v43, %v3419_v50  ;;  %v3838_v0 = vadd.f32 %v12568_v47, %v3420_v54  ;;  %v16907_v47 = vld [vmem:[#allocation87_spill] sm:$0xff] }
 0x6c3   :  { %v4403_v15 = vmax.f32 %v4264_v46, %v4265_v19  ;;  %7463 = vmatmul.msk.f32.gmra.mxu0 %vm186_vm1, %v12670_v41  ;;  %v3421_v46 = vadd.f32 %v16901_v20, %v2962_v49  ;;  %v16903_v19 = vld [vmem:[#allocation3_spill] sm:$0xff] }
 0x6c4   :  { %7508 = vmatmul.msk.f32.gmra.mxu1 %vm186_vm1, %v12544_v62  ;;  %7557 = vmatmul.msk.f32.gmra.mxu2 %vm186_vm1, %v16890_v18  ;;  %v16904_v43 = vmax.f32 %v16902_v56, %v16903_v19  ;;  %v16908_v50 = vld [vmem:[#allocation199_spill] sm:$0xff]  ;;  %v16915_v56 = vld [vmem:[#allocation186_spill] sm:$0xff] }
 0x6c5   :  { %v12683_v45 = vmax.f32 %v16894_v53, %v4403_v15  ;;  %7606 = vmatmul.msk.f32.gmra.mxu3 %vm186_vm1, %v16890_v18  ;;  %v4606_v15 = vld [vmem:[%s15985_s3 + $0x60] sm:$0xff]  ;;  %v16906_v18 = vld [vmem:[#allocation183_spill] sm:$0xff]  ;;  %v2965_v22 = vadd.f32 %v16908_v50, %v16907_v47 }
 0x6c6   :  { %v2804_v14 = vadd.f32 %v16906_v18, %v16905_v27  ;;  %4893 = vmatpush.msra.mxu2 %v4606_v15  ;;  %v12730_v53 = vld [vmem:[%s15984_s0 + $0x120] sm:$0xff]  ;;  %v4639_v20 = vld [vmem:[%s15985_s3 + $0x168] sm:$0xff] }
 0x6c7   :  { %v3967_v1 = vpop.f32.mrf.mxu2  ;;  %4828 = vmatpush.msra.mxu1 %v4639_v20  ;;  %v16921_v27 = vld [vmem:[#allocation6_spill] sm:$0xff]  ;;  %v16930_v20 = vld [vmem:[#allocation8_spill] sm:$0xff] }
 0x6c8   :  { %v4266_v28 = vadd.f32 %v3967_v1, %v3836_v16  ;;  %v4128_v40 = vpop.f32.mrf.mxu3  ;;  %v12688_v62 = vpop.f32.mrf.mxu0  ;;  %v16909_v16 = vld [vmem:[#allocation201_spill] sm:$0xff]  ;;  %v7902_v1 = vld [vmem:[%s15984_s0 + $0x2c0] sm:$0xff]  ;;  %v16922_v18 = vmax.f32 %v16920_v59, %v16921_v27 }
 0x6c9   :  { %v4267_v5 = vadd.f32 %v4128_v40, %v3837_v36  ;;  %v3701_v12 = vpop.f32.mrf.mxu1  ;;  %v3422_v36 = vadd.f32 %v16909_v16, %v2804_v14  ;;  %v16933_v59 = vld [vmem:[#allocation194_spill] sm:$0xff] }
 0x6ca   :  { %v3839_v8 = vadd.f32 %v3701_v12, %v3421_v46  ;;  %v16912_v12 = vld [vmem:[#allocation85_spill] sm:$0xff]  ;;  %v16914_v46 = vld [vmem:[#allocation88_spill] sm:$0xff] }
 0x6cb   :  { %v4404_v61 = vmax.f32 %v4266_v28, %v4267_v5  ;;  %7464 = vmatmul.msk.f32.gmra.mxu0 %vm186_vm1, %v12697_v51  ;;  %v16910_v28 = vld [vmem:[#allocation202_spill] sm:$0xff]  ;;  %v16911_v5 = vld [vmem:[#allocation4_spill] sm:$0xff]  ;;  %v3840_v32 = vadd.f32 %v12595_v3, %v3422_v36  ;;  %v2807_v19 = vadd.f32 %v16915_v56, %v16914_v46  ;;  %v16916_v3 = vld [vmem:[#allocation89_spill] sm:$0xff] }
 0x6cc   :  { %7509 = vmatmul.msk.f32.gmra.mxu1 %vm186_vm1, %v12577_v39  ;;  %7558 = vmatmul.msk.f32.gmra.mxu2 %vm186_vm1, %v16900_v34  ;;  %v3423_v40 = vadd.f32 %v16910_v28, %v2965_v22  ;;  %v16913_v33 = vmax.f32 %v16911_v5, %v16912_v12  ;;  %v16923_v28 = vld [vmem:[#allocation25_spill] sm:$0xff]  ;;  %v16925_v12 = vld [vmem:[#allocation90_spill] sm:$0xff] }
 0x6cd   :  { %v12710_v17 = vmax.f32 %v16904_v43, %v4404_v61  ;;  %7607 = vmatmul.msk.f32.gmra.mxu3 %vm186_vm1, %v16900_v34  ;;  %v4638_v34 = vld [vmem:[%s15985_s3 + $0x160] sm:$0xff]  ;;  %v16917_v43 = vld [vmem:[#allocation204_spill] sm:$0xff] }
 0x6ce   :  { %4763 = vmatpush.msrb.mxu0 %v4638_v34  ;;  %v16929_v34 = vld [vmem:[#allocation7_spill] sm:$0xff] }
 0x6cf   :  { %v3970_v30 = vpop.f32.mrf.mxu2  ;;  %v16931_v46 = vmax.f32 %v16929_v34, %v16930_v20  ;;  %v4636_v34 = vld [vmem:[%s15985_s3 + $0x150] sm:$0xff]  ;;  %v4637_v20 = vld [vmem:[%s15985_s3 + $0x158] sm:$0xff] }
 0x6d0   :  { %v4268_v63 = vadd.f32 %v3970_v30, %v3838_v0  ;;  %v4131_v4 = vpop.f32.mrf.mxu3  ;;  %v12715_v39 = vpop.f32.mrf.mxu0  ;;  %v2968_v0 = vadd.f32 %v16917_v43, %v16916_v3  ;;  %v12764_v30 = vld [vmem:[%s15984_s0 + $0x128] sm:$0xff]  ;;  %4764 = vmatpush.msrb.mxu0 %v4636_v34  ;;  %4829 = vmatpush.msra.mxu1 %v4637_v20  ;;  %v16955_v20 = vld [vmem:[#allocation225_spill] sm:$0xff] }
 0x6d1   :  { %v4269_v58 = vadd.f32 %v4131_v4, %v3839_v8  ;;  %v3704_v24 = vpop.f32.mrf.mxu1  ;;  %v7912_v34 = vld [vmem:[%s15984_s0 + $0x2e8] sm:$0xff] }
 0x6d2   :  { %v3841_v6 = vadd.f32 %v3704_v24, %v3423_v40  ;;  %v16919_v24 = vld [vmem:[#allocation207_spill] sm:$0xff]  ;;  %v16924_v40 = vld [vmem:[#allocation190_spill] sm:$0xff] }
 0x6d3   :  { %v4405_v57 = vmax.f32 %v4268_v63, %v4269_v58  ;;  %7465 = vmatmul.msk.f32.gmra.mxu0 %vm186_vm1, %v12730_v53  ;;  %v16918_v63 = vld [vmem:[#allocation206_spill] sm:$0xff]  ;;  %v7904_v58 = vld [vmem:[%s15984_s0 + $0x2c8] sm:$0xff]  ;;  %v3425_v15 = vadd.f32 %v16919_v24, %v2968_v0  ;;  %v2810_v5 = vadd.f32 %v16924_v40, %v16923_v28  ;;  %v4605_v24 = vld [vmem:[%s15985_s3 + $0x58] sm:$0xff] }
 0x6d4   :  { %7510 = vmatmul.msk.f32.gmra.mxu1 %vm186_vm1, %v12604_v10  ;;  %7559 = vmatmul.msk.f32.gmra.mxu2 %vm186_vm1, %v7902_v1  ;;  %v3424_v4 = vadd.f32 %v16918_v63, %v2807_v19  ;;  %v16938_v40 = vld [vmem:[#allocation27_spill] sm:$0xff] }
 0x6d5   :  { %v12745_v29 = vmax.f32 %v16913_v33, %v4405_v57  ;;  %7608 = vmatmul.msk.f32.gmra.mxu3 %vm186_vm1, %v7902_v1  ;;  %v16926_v33 = vld [vmem:[#allocation209_spill] sm:$0xff] }
 0x6d6   :  { %v3842_v47 = vadd.f32 %v12628_v13, %v3424_v4  ;;  %v16927_v13 = vld [vmem:[#allocation211_spill] sm:$0xff]  ;;  %4959 = vmatpush.msra.mxu3 %v4605_v24  ;;  %v7910_v24 = vld [vmem:[%s15984_s0 + $0x2e0] sm:$0xff] }
 0x6d7   :  { %v3973_v25 = vpop.f32.mrf.mxu2 }
 0x6d8   :  { %v4270_v10 = vadd.f32 %v3973_v25, %v3840_v32  ;;  %v4134_v49 = vpop.f32.mrf.mxu3  ;;  %v12749_v61 = vpop.f32.mrf.mxu0  ;;  %v2971_v32 = vadd.f32 %v16926_v33, %v16925_v12  ;;  %v12792_v25 = vld [vmem:[%s15984_s0 + $0x130] sm:$0xff] }
 0x6d9   :  { %v4271_v23 = vadd.f32 %v4134_v49, %v3841_v6  ;;  %v3707_v54 = vpop.f32.mrf.mxu1  ;;  %v7906_v49 = vld [vmem:[%s15984_s0 + $0x2d0] sm:$0xff] }
 0x6da   :  { %v3843_v50 = vadd.f32 %v3707_v54, %v3425_v15  ;;  %v16932_v15 = vld [vmem:[#allocation28_spill] sm:$0xff] }
 0x6db   :  { %v4406_v8 = vmax.f32 %v4270_v10, %v4271_v23  ;;  %7466 = vmatmul.msk.f32.gmra.mxu0 %vm186_vm1, %v12764_v30  ;;  %v3426_v10 = vadd.f32 %v16927_v13, %v2810_v5  ;;  %v16928_v23 = vld [vmem:[#allocation212_spill] sm:$0xff]  ;;  %v2813_v27 = vadd.f32 %v16933_v59, %v16932_v15  ;;  %v16939_v5 = vld [vmem:[#allocation9_spill] sm:$0xff] }
 0x6dc   :  { %7511 = vmatmul.msk.f32.gmra.mxu1 %vm186_vm1, %v12637_v2  ;;  %7560 = vmatmul.msk.f32.gmra.mxu2 %vm186_vm1, %v7904_v58  ;;  %v3427_v54 = vadd.f32 %v16928_v23, %v2971_v32  ;;  %v16940_v12 = vmax.f32 %v16938_v40, %v16939_v5  ;;  %v16946_v15 = vld [vmem:[#allocation221_spill] sm:$0xff]  ;;  %v16950_v5 = vld [vmem:[#allocation32_spill] sm:$0xff] }
 0x6dd   :  { %v12779_v14 = vmax.f32 %v16922_v18, %v4406_v8  ;;  %7609 = vmatmul.msk.f32.gmra.mxu3 %vm186_vm1, %v7904_v58  ;;  %v3844_v19 = vadd.f32 %v12655_v11, %v3426_v10  ;;  %v4604_v58 = vld [vmem:[%s15985_s3 + $0x50] sm:$0xff]  ;;  %v16934_v11 = vld [vmem:[#allocation91_spill] sm:$0xff]  ;;  %v16935_v18 = vld [vmem:[#allocation214_spill] sm:$0xff] }
 0x6de   :  { %4894 = vmatpush.msra.mxu2 %v4604_v58 }
 0x6df   :  { %v3976_v22 = vpop.f32.mrf.mxu2 }
 0x6e0   :  { %v4272_v2 = vadd.f32 %v3976_v22, %v3842_v47  ;;  %v4137_v57 = vpop.f32.mrf.mxu3  ;;  %v12783_v16 = vpop.f32.mrf.mxu0  ;;  %v2974_v47 = vadd.f32 %v16935_v18, %v16934_v11  ;;  %v12826_v22 = vld [vmem:[%s15984_s0 + $0x138] sm:$0xff]  ;;  %v16948_v11 = vld [vmem:[#allocation11_spill] sm:$0xff] }
 0x6e1   :  { %v4273_v36 = vadd.f32 %v4137_v57, %v3843_v50  ;;  %v3710_v1 = vpop.f32.mrf.mxu1 }
 0x6e2   :  { %v3845_v3 = vadd.f32 %v3710_v1, %v3427_v54  ;;  %v16937_v1 = vld [vmem:[#allocation217_spill] sm:$0xff] }
 0x6e3   :  { %v4407_v6 = vmax.f32 %v4272_v2, %v4273_v36  ;;  %7467 = vmatmul.msk.f32.gmra.mxu0 %vm186_vm1, %v12792_v25  ;;  %v16936_v2 = vld [vmem:[#allocation216_spill] sm:$0xff]  ;;  %v7908_v36 = vld [vmem:[%s15984_s0 + $0x2d8] sm:$0xff]  ;;  %v3429_v28 = vadd.f32 %v16937_v1, %v2974_v47 }
 0x6e4   :  { %7512 = vmatmul.msk.f32.gmra.mxu1 %vm186_vm1, %v12670_v41  ;;  %7561 = vmatmul.msk.f32.gmra.mxu2 %vm186_vm1, %v7906_v49  ;;  %v3428_v57 = vadd.f32 %v16936_v2, %v2813_v27  ;;  %v16947_v27 = vld [vmem:[#allocation10_spill] sm:$0xff] }
 0x6e5   :  { %v12807_v56 = vmax.f32 %v16931_v46, %v4407_v6  ;;  %7610 = vmatmul.msk.f32.gmra.mxu3 %vm186_vm1, %v7906_v49  ;;  %v16941_v46 = vld [vmem:[#allocation30_spill] sm:$0xff]  ;;  %v16949_v18 = vmax.f32 %v16947_v27, %v16948_v11  ;;  %v4603_v11 = vld [vmem:[%s15985_s3 + $0x48] sm:$0xff] }
 0x6e6   :  { %v3846_v32 = vadd.f32 %v12688_v62, %v3428_v57  ;;  %v16943_v62 = vld [vmem:[#allocation92_spill] sm:$0xff]  ;;  %v4602_v27 = vld [vmem:[%s15985_s3 + $0x40] sm:$0xff]  ;;  %4960 = vmatpush.msra.mxu3 %v4603_v11  ;;  %v12956_v11 = vld [vmem:[%s15984_s0 + $0x158] sm:$0xff] }
 0x6e7   :  { %v3979_v43 = vpop.f32.mrf.mxu2  ;;  %4895 = vmatpush.msra.mxu2 %v4602_v27 }
 0x6e8   :  { %v4274_v41 = vadd.f32 %v3979_v43, %v3844_v19  ;;  %v4140_v0 = vpop.f32.mrf.mxu3  ;;  %v12811_v8 = vpop.f32.mrf.mxu0  ;;  %v16942_v19 = vld [vmem:[#allocation198_spill] sm:$0xff]  ;;  %v16944_v43 = vld [vmem:[#allocation219_spill] sm:$0xff] }
 0x6e9   :  { %v4275_v63 = vadd.f32 %v4140_v0, %v3845_v3  ;;  %v3713_v4 = vpop.f32.mrf.mxu1  ;;  %v2816_v3 = vadd.f32 %v16942_v19, %v16941_v46  ;;  %v16956_v19 = vld [vmem:[#allocation12_spill] sm:$0xff] }
 0x6ea   :  { %v3847_v6 = vadd.f32 %v3713_v4, %v3429_v28  ;;  %v16945_v4 = vld [vmem:[#allocation220_spill] sm:$0xff] }
 0x6eb   :  { %v4408_v50 = vmax.f32 %v4274_v41, %v4275_v63  ;;  %7468 = vmatmul.msk.f32.gmra.mxu0 %vm186_vm1, %v12826_v22  ;;  %v2977_v41 = vadd.f32 %v16944_v43, %v16943_v62  ;;  %v12860_v63 = vld [vmem:[%s15984_s0 + $0x140] sm:$0xff]  ;;  %v3430_v58 = vadd.f32 %v16945_v4, %v2816_v3  ;;  %v16957_v3 = vld [vmem:[#allocation13_spill] sm:$0xff] }
 0x6ec   :  { %7513 = vmatmul.msk.f32.gmra.mxu1 %vm186_vm1, %v12697_v51  ;;  %7562 = vmatmul.msk.f32.gmra.mxu2 %vm186_vm1, %v7908_v36  ;;  %v16958_v62 = vmax.f32 %v16956_v19, %v16957_v3 }
 0x6ed   :  { %v12841_v33 = vmax.f32 %v16940_v12, %v4408_v50  ;;  %7611 = vmatmul.msk.f32.gmra.mxu3 %vm186_vm1, %v7908_v36  ;;  %v3431_v59 = vadd.f32 %v16946_v15, %v2977_v41  ;;  %v3848_v50 = vadd.f32 %v12715_v39, %v3430_v58  ;;  %v16951_v12 = vld [vmem:[#allocation203_spill] sm:$0xff]  ;;  %v16954_v39 = vld [vmem:[#allocation224_spill] sm:$0xff] }
 0x6ef   :  { %v3982_v13 = vpop.f32.mrf.mxu2 }
 0x6f0   :  { %v4276_v51 = vadd.f32 %v3982_v13, %v3846_v32  ;;  %v4143_v10 = vpop.f32.mrf.mxu3  ;;  %v12845_v49 = vpop.f32.mrf.mxu0  ;;  %v2819_v32 = vadd.f32 %v16951_v12, %v16950_v5  ;;  %v16953_v13 = vld [vmem:[#allocation223_spill] sm:$0xff]  ;;  %v7914_v12 = vld [vmem:[%s15984_s0 + $0x2f0] sm:$0xff] }
 0x6f1   :  { %v4277_v23 = vadd.f32 %v4143_v10, %v3847_v6  ;;  %v3716_v54 = vpop.f32.mrf.mxu1  ;;  %v16952_v6 = vld [vmem:[#allocation93_spill] sm:$0xff] }
 0x6f2   :  { %v3849_v2 = vadd.f32 %v3716_v54, %v3431_v59  ;;  %v3432_v54 = vadd.f32 %v16954_v39, %v2819_v32  ;;  %v16964_v32 = vld [vmem:[#allocation229_spill] sm:$0xff] }
 0x6f3   :  { %v4409_v0 = vmax.f32 %v4276_v51, %v4277_v23  ;;  %7469 = vmatmul.msk.f32.gmra.mxu0 %vm186_vm1, %v12860_v63  ;;  %v2980_v51 = vadd.f32 %v16953_v13, %v16952_v6  ;;  %v12888_v23 = vld [vmem:[%s15984_s0 + $0x148] sm:$0xff]  ;;  %v16965_v13 = vld [vmem:[#allocation14_spill] sm:$0xff] }
 0x6f4   :  { %7514 = vmatmul.msk.f32.gmra.mxu1 %vm186_vm1, %v12730_v53  ;;  %7563 = vmatmul.msk.f32.gmra.mxu2 %vm186_vm1, %v7910_v24  ;;  %v3850_v41 = vadd.f32 %v12749_v61, %v3432_v54  ;;  %v16961_v61 = vld [vmem:[#allocation94_spill] sm:$0xff] }
 0x6f5   :  { %v12875_v47 = vmax.f32 %v16949_v18, %v4409_v0  ;;  %7612 = vmatmul.msk.f32.gmra.mxu3 %vm186_vm1, %v7910_v24  ;;  %v3433_v46 = vadd.f32 %v16955_v20, %v2980_v51  ;;  %v16959_v18 = vld [vmem:[#allocation35_spill] sm:$0xff] }
 0x6f6   :  { %v16966_v51 = vld [vmem:[#allocation15_spill] sm:$0xff] }
 0x6f7   :  { %v3985_v57 = vpop.f32.mrf.mxu2 }
 0x6f8   :  { %v4278_v53 = vadd.f32 %v3985_v57, %v3848_v50  ;;  %v4146_v36 = vpop.f32.mrf.mxu3  ;;  %v12879_v1 = vpop.f32.mrf.mxu0  ;;  %v16960_v50 = vld [vmem:[#allocation208_spill] sm:$0xff]  ;;  %v16962_v57 = vld [vmem:[#allocation227_spill] sm:$0xff] }
 0x6f9   :  { %v4279_v28 = vadd.f32 %v4146_v36, %v3849_v2  ;;  %v3719_v40 = vpop.f32.mrf.mxu1  ;;  %v2822_v2 = vadd.f32 %v16960_v50, %v16959_v18  ;;  %v16972_v18 = vld [vmem:[#allocation232_spill] sm:$0xff] }
 0x6fa   :  { %v3851_v0 = vadd.f32 %v3719_v40, %v3433_v46  ;;  %v16963_v40 = vld [vmem:[#allocation228_spill] sm:$0xff] }
 0x6fb   :  { %v4410_v10 = vmax.f32 %v4278_v53, %v4279_v28  ;;  %7470 = vmatmul.msk.f32.gmra.mxu0 %vm186_vm1, %v12888_v23  ;;  %v2983_v53 = vadd.f32 %v16962_v57, %v16961_v61  ;;  %v12922_v28 = vld [vmem:[%s15984_s0 + $0x150] sm:$0xff]  ;;  %v3434_v5 = vadd.f32 %v16963_v40, %v2822_v2  ;;  %v7916_v2 = vld [vmem:[%s15984_s0 + $0x2f8] sm:$0xff] }
 0x6fc   :  { %7515 = vmatmul.msk.f32.gmra.mxu1 %vm186_vm1, %v12764_v30  ;;  %7564 = vmatmul.msk.f32.gmra.mxu2 %vm186_vm1, %v7912_v34  ;;  %v16973_v61 = vld [vmem:[#allocation233_spill] sm:$0xff] }
 0x6fd   :  { %v12903_v43 = vmax.f32 %v16958_v62, %v4410_v10  ;;  %7613 = vmatmul.msk.f32.gmra.mxu3 %vm186_vm1, %v7912_v34  ;;  %v3435_v6 = vadd.f32 %v16964_v32, %v2983_v53  ;;  %v16967_v10 = vmax.f32 %v16965_v13, %v16966_v51  ;;  %v3852_v54 = vadd.f32 %v12783_v16, %v3434_v5  ;;  %v16970_v16 = vld [vmem:[#allocation95_spill] sm:$0xff]  ;;  %v16974_v53 = vld [vmem:[#allocation16_spill] sm:$0xff] }
 0x6ff   :  { %v3988_v4 = vpop.f32.mrf.mxu2 }
 0x700   :  { %v4280_v30 = vadd.f32 %v3988_v4, %v3850_v41  ;;  %v4149_v58 = vpop.f32.mrf.mxu3  ;;  %v12907_v24 = vpop.f32.mrf.mxu0  ;;  %v4634_v41 = vld [vmem:[%s15985_s3 + $0x140] sm:$0xff]  ;;  %v16968_v4 = vld [vmem:[#allocation37_spill] sm:$0xff] }
 0x701   :  { %v4281_v15 = vadd.f32 %v4149_v58, %v3851_v0  ;;  %v3722_v59 = vpop.f32.mrf.mxu1  ;;  %v4635_v0 = vld [vmem:[%s15985_s3 + $0x148] sm:$0xff]  ;;  %4765 = vmatpush.msrb.mxu0 %v4634_v41 }
 0x702   :  { %v3853_v34 = vadd.f32 %v3722_v59, %v3435_v6  ;;  %4830 = vmatpush.msra.mxu1 %v4635_v0 }
 0x703   :  { %v4411_v36 = vmax.f32 %v4280_v30, %v4281_v15  ;;  %7471 = vmatmul.msk.f32.gmra.mxu0 %vm186_vm1, %v12922_v28  ;;  %v16969_v30 = vld [vmem:[#allocation213_spill] sm:$0xff]  ;;  %v16971_v15 = vld [vmem:[#allocation231_spill] sm:$0xff] }
 0x704   :  { %7516 = vmatmul.msk.f32.gmra.mxu1 %vm186_vm1, %v12792_v25  ;;  %7565 = vmatmul.msk.f32.gmra.mxu2 %vm186_vm1, %v7914_v12  ;;  %v2825_v58 = vadd.f32 %v16969_v30, %v16968_v4  ;;  %v2986_v59 = vadd.f32 %v16971_v15, %v16970_v16  ;;  %v12984_v4 = vld [vmem:[%s15984_s0 + $0x160] sm:$0xff] }
 0x705   :  { %v12937_v39 = vmax.f32 %v16967_v10, %v4411_v36  ;;  %7614 = vmatmul.msk.f32.gmra.mxu3 %vm186_vm1, %v7914_v12  ;;  %v16975_v36 = vld [vmem:[#allocation17_spill] sm:$0xff]  ;;  %v7918_v30 = vld [vmem:[%s15984_s0 + $0x300] sm:$0xff] }
 0x706   :  { %v3436_v50 = vadd.f32 %v16972_v18, %v2825_v58  ;;  %v3437_v57 = vadd.f32 %v16973_v61, %v2986_v59  ;;  %v16976_v40 = vmax.f32 %v16974_v53, %v16975_v36  ;;  %v16982_v58 = vld [vmem:[#allocation237_spill] sm:$0xff]  ;;  %v16983_v15 = vld [vmem:[#allocation18_spill] sm:$0xff]  ;;  %v16984_v59 = vld [vmem:[#allocation19_spill] sm:$0xff] }
 0x707   :  { %v3991_v20 = vpop.f32.mrf.mxu2 }
 0x708   :  { %v4282_v25 = vadd.f32 %v3991_v20, %v3852_v54  ;;  %v4152_v46 = vpop.f32.mrf.mxu3  ;;  %v12941_v19 = vpop.f32.mrf.mxu0  ;;  %v3854_v12 = vadd.f32 %v12811_v8, %v3436_v50  ;;  %v16978_v20 = vld [vmem:[#allocation218_spill] sm:$0xff]  ;;  %v16981_v8 = vld [vmem:[#allocation236_spill] sm:$0xff] }
 0x709   :  { %v4283_v3 = vadd.f32 %v4152_v46, %v3853_v34  ;;  %v3725_v62 = vpop.f32.mrf.mxu1  ;;  %v16977_v34 = vld [vmem:[#allocation39_spill] sm:$0xff]  ;;  %v16979_v46 = vld [vmem:[#allocation96_spill] sm:$0xff] }
 0x70a   :  { %v3855_v32 = vadd.f32 %v3725_v62, %v3437_v57 }
 0x70b   :  { %v4412_v27 = vmax.f32 %v4282_v25, %v4283_v3  ;;  %7472 = vmatmul.msk.f32.gmra.mxu0 %vm186_vm1, %v12956_v11  ;;  %v2828_v25 = vadd.f32 %v16978_v20, %v16977_v34  ;;  %v16980_v3 = vld [vmem:[#allocation235_spill] sm:$0xff] }
 0x70c   :  { %7517 = vmatmul.msk.f32.gmra.mxu1 %vm186_vm1, %v12826_v22  ;;  %7566 = vmatmul.msk.f32.gmra.mxu2 %vm186_vm1, %v7916_v2  ;;  %v2989_v41 = vadd.f32 %v16980_v3, %v16979_v46  ;;  %v13018_v20 = vld [vmem:[%s15984_s0 + $0x168] sm:$0xff] }
 0x70d   :  { %v12971_v5 = vmax.f32 %v16976_v40, %v4412_v27  ;;  %7615 = vmatmul.msk.f32.gmra.mxu3 %vm186_vm1, %v7916_v2  ;;  %v3438_v62 = vadd.f32 %v16981_v8, %v2828_v25  ;;  %v16985_v27 = vmax.f32 %v16983_v15, %v16984_v59  ;;  %v16990_v25 = vld [vmem:[#allocation240_spill] sm:$0xff]  ;;  %v7920_v3 = vld [vmem:[%s15984_s0 + $0x308] sm:$0xff] }
 0x70e   :  { %v3439_v16 = vadd.f32 %v16982_v58, %v2989_v41  ;;  %v16991_v41 = vld [vmem:[#allocation241_spill] sm:$0xff]  ;;  %v16992_v8 = vld [vmem:[#allocation20_spill] sm:$0xff] }
 0x70f   :  { %v3994_v6 = vpop.f32.mrf.mxu2  ;;  %v3856_v50 = vadd.f32 %v12845_v49, %v3438_v62  ;;  %v16988_v49 = vld [vmem:[#allocation97_spill] sm:$0xff]  ;;  %v16993_v62 = vld [vmem:[#allocation22_spill] sm:$0xff] }
 0x710   :  { %v4284_v22 = vadd.f32 %v3994_v6, %v3854_v12  ;;  %v4155_v13 = vpop.f32.mrf.mxu3  ;;  %v12975_v51 = vpop.f32.mrf.mxu0  ;;  %v4600_v12 = vld [vmem:[%s15985_s3 + $0x30] sm:$0xff]  ;;  %v16986_v6 = vld [vmem:[#allocation43_spill] sm:$0xff] }
 0x711   :  { %v4285_v10 = vadd.f32 %v4155_v13, %v3855_v32  ;;  %v3728_v54 = vpop.f32.mrf.mxu1  ;;  %v4601_v32 = vld [vmem:[%s15985_s3 + $0x38] sm:$0xff]  ;;  %4896 = vmatpush.msra.mxu2 %v4600_v12  ;;  %v16996_v12 = vld [vmem:[#allocation226_spill] sm:$0xff] }
 0x712   :  { %v3857_v2 = vadd.f32 %v3728_v54, %v3439_v16  ;;  %4961 = vmatpush.msra.mxu3 %v4601_v32 }
 0x713   :  { %v4413_v0 = vmax.f32 %v4284_v22, %v4285_v10  ;;  %7473 = vmatmul.msk.f32.gmra.mxu0 %vm186_vm1, %v12984_v4  ;;  %v16987_v22 = vld [vmem:[#allocation222_spill] sm:$0xff]  ;;  %v16989_v10 = vld [vmem:[#allocation239_spill] sm:$0xff] }
 0x714   :  { %7518 = vmatmul.msk.f32.gmra.mxu1 %vm186_vm1, %v12860_v63  ;;  %7567 = vmatmul.msk.f32.gmra.mxu2 %vm186_vm1, %v7918_v30  ;;  %v2831_v13 = vadd.f32 %v16987_v22, %v16986_v6  ;;  %v2992_v54 = vadd.f32 %v16989_v10, %v16988_v49  ;;  %v16999_v49 = vld [vmem:[#allocation244_spill] sm:$0xff] }
 0x715   :  { %v12999_v18 = vmax.f32 %v16985_v27, %v4413_v0  ;;  %7616 = vmatmul.msk.f32.gmra.mxu3 %vm186_vm1, %v7918_v30  ;;  %v16994_v30 = vmax.f32 %v16992_v8, %v16993_v62 }
 0x716   :  { %v3440_v46 = vadd.f32 %v16990_v25, %v2831_v13  ;;  %v3441_v0 = vadd.f32 %v16991_v41, %v2992_v54  ;;  %v13052_v13 = vld [vmem:[%s15984_s0 + $0x170] sm:$0xff] }
 0x717   :  { %v3997_v61 = vpop.f32.mrf.mxu2  ;;  %v7922_v54 = vld [vmem:[%s15984_s0 + $0x310] sm:$0xff] }
 0x718   :  { %v4286_v63 = vadd.f32 %v3997_v61, %v3856_v50  ;;  %v4158_v57 = vpop.f32.mrf.mxu3  ;;  %v13003_v53 = vpop.f32.mrf.mxu0  ;;  %v3858_v16 = vadd.f32 %v12879_v1, %v3440_v46  ;;  %v16997_v1 = vld [vmem:[#allocation98_spill] sm:$0xff]  ;;  %v17001_v46 = vld [vmem:[#allocation23_spill] sm:$0xff] }
 0x719   :  { %v4287_v36 = vadd.f32 %v4158_v57, %v3857_v2  ;;  %v3731_v40 = vpop.f32.mrf.mxu1  ;;  %v4633_v57 = vld [vmem:[%s15985_s3 + $0x138] sm:$0xff] }
 0x71a   :  { %v3859_v15 = vadd.f32 %v3731_v40, %v3441_v0  ;;  %4831 = vmatpush.msra.mxu1 %v4633_v57  ;;  %v16998_v40 = vld [vmem:[#allocation243_spill] sm:$0xff] }
 0x71b   :  { %v4414_v34 = vmax.f32 %v4286_v63, %v4287_v36  ;;  %7474 = vmatmul.msk.f32.gmra.mxu0 %vm186_vm1, %v13018_v20  ;;  %v4632_v63 = vld [vmem:[%s15985_s3 + $0x130] sm:$0xff]  ;;  %v16995_v36 = vld [vmem:[#allocation47_spill] sm:$0xff]  ;;  %v2995_v6 = vadd.f32 %v16998_v40, %v16997_v1  ;;  %v13080_v1 = vld [vmem:[%s15984_s0 + $0x178] sm:$0xff] }
 0x71c   :  { %7519 = vmatmul.msk.f32.gmra.mxu1 %vm186_vm1, %v12888_v23  ;;  %7568 = vmatmul.msk.f32.gmra.mxu2 %vm186_vm1, %v7920_v3  ;;  %v2834_v32 = vadd.f32 %v16996_v12, %v16995_v36  ;;  %v17006_v57 = vld [vmem:[#allocation99_spill] sm:$0xff]  ;;  %v7924_v40 = vld [vmem:[%s15984_s0 + $0x318] sm:$0xff] }
 0x71d   :  { %v13033_v58 = vmax.f32 %v16994_v30, %v4414_v34  ;;  %7617 = vmatmul.msk.f32.gmra.mxu3 %vm186_vm1, %v7920_v3  ;;  %4766 = vmatpush.msrb.mxu0 %v4632_v63  ;;  %v17000_v34 = vld [vmem:[#allocation245_spill] sm:$0xff]  ;;  %v17002_v3 = vld [vmem:[#allocation42_spill] sm:$0xff]  ;;  %v17007_v36 = vld [vmem:[#allocation247_spill] sm:$0xff] }
 0x71e   :  { %v3442_v10 = vadd.f32 %v16999_v49, %v2834_v32  ;;  %v3443_v25 = vadd.f32 %v17000_v34, %v2995_v6  ;;  %v17003_v41 = vmax.f32 %v17001_v46, %v17002_v3  ;;  %v2998_v12 = vadd.f32 %v17007_v36, %v17006_v57  ;;  %v17009_v6 = vld [vmem:[#allocation249_spill] sm:$0xff]  ;;  %v17010_v49 = vld [vmem:[#allocation26_spill] sm:$0xff] }
 0x71f   :  { %v4000_v59 = vpop.f32.mrf.mxu2  ;;  %v13114_v36 = vld [vmem:[%s15984_s0 + $0x180] sm:$0xff] }
 0x720   :  { %v4288_v23 = vadd.f32 %v4000_v59, %v3858_v16  ;;  %v4161_v27 = vpop.f32.mrf.mxu3  ;;  %v13037_v50 = vpop.f32.mrf.mxu0  ;;  %v3860_v8 = vadd.f32 %v12907_v24, %v3442_v10  ;;  %v17008_v24 = vld [vmem:[#allocation248_spill] sm:$0xff]  ;;  %v17011_v10 = vld [vmem:[#allocation45_spill] sm:$0xff] }
 0x721   :  { %v4289_v2 = vadd.f32 %v4161_v27, %v3859_v15  ;;  %v3734_v61 = vpop.f32.mrf.mxu1  ;;  %v17004_v27 = vld [vmem:[#allocation52_spill] sm:$0xff] }
 0x722   :  { %v3861_v62 = vadd.f32 %v3734_v61, %v3443_v25 }
 0x723   :  { %v4415_v22 = vmax.f32 %v4288_v23, %v4289_v2  ;;  %7475 = vmatmul.msk.f32.gmra.mxu0 %vm186_vm1, %v13052_v13  ;;  %v17005_v2 = vld [vmem:[#allocation230_spill] sm:$0xff] }
 0x724   :  { %7520 = vmatmul.msk.f32.gmra.mxu1 %vm186_vm1, %v12922_v28  ;;  %7569 = vmatmul.msk.f32.gmra.mxu2 %vm186_vm1, %v7922_v54  ;;  %v2837_v63 = vadd.f32 %v17005_v2, %v17004_v27  ;;  %v17014_v27 = vld [vmem:[#allocation234_spill] sm:$0xff] }
 0x725   :  { %v13067_v0 = vmax.f32 %v17003_v41, %v4415_v22  ;;  %7618 = vmatmul.msk.f32.gmra.mxu3 %vm186_vm1, %v7922_v54  ;;  %v3445_v22 = vadd.f32 %v17009_v6, %v2998_v12  ;;  %v17012_v54 = vmax.f32 %v17010_v49, %v17011_v10  ;;  %v17017_v12 = vld [vmem:[#allocation252_spill] sm:$0xff]  ;;  %v17019_v6 = vld [vmem:[#allocation29_spill] sm:$0xff] }
 0x726   :  { %v3444_v61 = vadd.f32 %v17008_v24, %v2837_v63  ;;  %v7926_v24 = vld [vmem:[%s15984_s0 + $0x320] sm:$0xff] }
 0x727   :  { %v4003_v30 = vpop.f32.mrf.mxu2 }
 0x728   :  { %v4290_v28 = vadd.f32 %v4003_v30, %v3860_v8  ;;  %v4164_v16 = vpop.f32.mrf.mxu3  ;;  %v13071_v15 = vpop.f32.mrf.mxu0  ;;  %v3862_v25 = vadd.f32 %v12941_v19, %v3444_v61  ;;  %v17015_v19 = vld [vmem:[#allocation101_spill] sm:$0xff] }
 0x729   :  { %v4291_v59 = vadd.f32 %v4164_v16, %v3861_v62  ;;  %v3737_v23 = vpop.f32.mrf.mxu1  ;;  %v4599_v16 = vld [vmem:[%s15985_s3 + $0x28] sm:$0xff]  ;;  %v17018_v61 = vld [vmem:[#allocation253_spill] sm:$0xff] }
 0x72a   :  { %v3863_v46 = vadd.f32 %v3737_v23, %v3445_v22  ;;  %4962 = vmatpush.msra.mxu3 %v4599_v16  ;;  %v17016_v23 = vld [vmem:[#allocation251_spill] sm:$0xff]  ;;  %v17020_v22 = vld [vmem:[#allocation48_spill] sm:$0xff] }
 0x72b   :  { %v4416_v32 = vmax.f32 %v4290_v28, %v4291_v59  ;;  %7476 = vmatmul.msk.f32.gmra.mxu0 %vm186_vm1, %v13080_v1  ;;  %v4598_v28 = vld [vmem:[%s15985_s3 + $0x20] sm:$0xff]  ;;  %v17013_v59 = vld [vmem:[#allocation100_spill] sm:$0xff]  ;;  %v3001_v63 = vadd.f32 %v17016_v23, %v17015_v19  ;;  %v17021_v49 = vmax.f32 %v17019_v6, %v17020_v22  ;;  %v4631_v16 = vld [vmem:[%s15985_s3 + $0x128] sm:$0xff] }
 0x72c   :  { %7521 = vmatmul.msk.f32.gmra.mxu1 %vm186_vm1, %v12956_v11  ;;  %7570 = vmatmul.msk.f32.gmra.mxu2 %vm186_vm1, %v7924_v40  ;;  %v2840_v2 = vadd.f32 %v17014_v27, %v17013_v59  ;;  %v17022_v59 = vld [vmem:[#allocation102_spill] sm:$0xff]  ;;  %v17029_v6 = vld [vmem:[#allocation51_spill] sm:$0xff] }
 0x72d   :  { %v13095_v34 = vmax.f32 %v17012_v54, %v4416_v32  ;;  %7619 = vmatmul.msk.f32.gmra.mxu3 %vm186_vm1, %v7924_v40  ;;  %4897 = vmatpush.msra.mxu2 %v4598_v28  ;;  %v3447_v40 = vadd.f32 %v17018_v61, %v3001_v63  ;;  %v4630_v28 = vld [vmem:[%s15985_s3 + $0x120] sm:$0xff]  ;;  %v13148_v63 = vld [vmem:[%s15984_s0 + $0x188] sm:$0xff] }
 0x72e   :  { %v3446_v32 = vadd.f32 %v17017_v12, %v2840_v2  ;;  %v17023_v27 = vld [vmem:[#allocation238_spill] sm:$0xff]  ;;  %4767 = vmatpush.msrb.mxu0 %v4630_v28  ;;  %4832 = vmatpush.msra.mxu1 %v4631_v16  ;;  %v17031_v16 = vld [vmem:[#allocation104_spill] sm:$0xff] }
 0x72f   :  { %v4006_v3 = vpop.f32.mrf.mxu2  ;;  %v2843_v2 = vadd.f32 %v17023_v27, %v17022_v59  ;;  %v17032_v59 = vld [vmem:[#allocation242_spill] sm:$0xff] }
 0x730   :  { %v4292_v11 = vadd.f32 %v4006_v3, %v3862_v25  ;;  %v4167_v41 = vpop.f32.mrf.mxu3  ;;  %v13099_v8 = vpop.f32.mrf.mxu0  ;;  %v3864_v54 = vadd.f32 %v12975_v51, %v3446_v32  ;;  %v17024_v51 = vld [vmem:[#allocation103_spill] sm:$0xff]  ;;  %v2846_v27 = vadd.f32 %v17032_v59, %v17031_v16  ;;  %v4596_v16 = vld [vmem:[%s15985_s3 + $0x10] sm:$0xff]  ;;  %v4597_v59 = vld [vmem:[%s15985_s3 + $0x18] sm:$0xff] }
 0x731   :  { %v4293_v62 = vadd.f32 %v4167_v41, %v3863_v46  ;;  %v3740_v30 = vpop.f32.mrf.mxu1  ;;  %v7928_v32 = vld [vmem:[%s15984_s0 + $0x328] sm:$0xff]  ;;  %4898 = vmatpush.msra.mxu2 %v4596_v16  ;;  %4963 = vmatpush.msra.mxu3 %v4597_v59 }
 0x732   :  { %v3865_v25 = vadd.f32 %v3740_v30, %v3447_v40  ;;  %v17025_v30 = vld [vmem:[#allocation255_spill] sm:$0xff] }
 0x733   :  { %v4417_v57 = vmax.f32 %v4292_v11, %v4293_v62  ;;  %7477 = vmatmul.msk.f32.gmra.mxu0 %vm186_vm1, %v13114_v36  ;;  %v3004_v19 = vadd.f32 %v17025_v30, %v17024_v51  ;;  %v17028_v40 = vld [vmem:[#allocation31_spill] sm:$0xff] }
 0x734   :  { %7522 = vmatmul.msk.f32.gmra.mxu1 %vm186_vm1, %v12984_v4  ;;  %7571 = vmatmul.msk.f32.gmra.mxu2 %vm186_vm1, %v7926_v24  ;;  %v17030_v22 = vmax.f32 %v17028_v40, %v17029_v6  ;;  %v17034_v51 = vld [vmem:[#allocation259_spill] sm:$0xff] }
 0x735   :  { %v13129_v10 = vmax.f32 %v17021_v49, %v4417_v57  ;;  %7620 = vmatmul.msk.f32.gmra.mxu3 %vm186_vm1, %v7926_v24  ;;  %v17026_v57 = vld [vmem:[#allocation256_spill] sm:$0xff]  ;;  %v17027_v24 = vld [vmem:[#allocation257_spill] sm:$0xff] }
 0x736   :  { %v3448_v12 = vadd.f32 %v17026_v57, %v2843_v2  ;;  %v3449_v61 = vadd.f32 %v17027_v24, %v3004_v19  ;;  %v17033_v2 = vld [vmem:[#allocation105_spill] sm:$0xff]  ;;  %v7930_v57 = vld [vmem:[%s15984_s0 + $0x330] sm:$0xff] }
 0x737   :  { %v4009_v46 = vpop.f32.mrf.mxu2  ;;  %v3007_v30 = vadd.f32 %v17034_v51, %v17033_v2  ;;  %v17037_v24 = vld [vmem:[#allocation33_spill] sm:$0xff]  ;;  %v17041_v2 = vld [vmem:[#allocation246_spill] sm:$0xff] }
 0x738   :  { %v4294_v4 = vadd.f32 %v4009_v46, %v3864_v54  ;;  %v4170_v3 = vpop.f32.mrf.mxu3  ;;  %v13133_v11 = vpop.f32.mrf.mxu0  ;;  %v3866_v54 = vadd.f32 %v13003_v53, %v3448_v12  ;;  %v17035_v53 = vld [vmem:[#allocation260_spill] sm:$0xff]  ;;  %v17036_v12 = vld [vmem:[#allocation261_spill] sm:$0xff] }
 0x739   :  { %v4295_v41 = vadd.f32 %v4170_v3, %v3865_v25  ;;  %v3743_v62 = vpop.f32.mrf.mxu1 }
 0x73a   :  { %v3867_v25 = vadd.f32 %v3743_v62, %v3449_v61  ;;  %v3450_v62 = vadd.f32 %v17035_v53, %v2846_v27  ;;  %v17038_v61 = vld [vmem:[#allocation34_spill] sm:$0xff]  ;;  %v13210_v53 = vld [vmem:[%s15984_s0 + $0x198] sm:$0xff] }
 0x73b   :  { %v4418_v23 = vmax.f32 %v4294_v4, %v4295_v41  ;;  %7478 = vmatmul.msk.f32.gmra.mxu0 %vm186_vm1, %v13148_v63  ;;  %v17039_v40 = vmax.f32 %v17037_v24, %v17038_v61  ;;  %v17040_v27 = vld [vmem:[#allocation106_spill] sm:$0xff]  ;;  %v17046_v61 = vld [vmem:[#allocation56_spill] sm:$0xff] }
 0x73c   :  { %7523 = vmatmul.msk.f32.gmra.mxu1 %vm186_vm1, %v13018_v20  ;;  %7572 = vmatmul.msk.f32.gmra.mxu2 %vm186_vm1, %v7928_v32  ;;  %v2849_v51 = vadd.f32 %v17041_v2, %v17040_v27  ;;  %v4628_v2 = vld [vmem:[%s15985_s3 + $0x110] sm:$0xff] }
 0x73d   :  { %v13163_v49 = vmax.f32 %v17030_v22, %v4418_v23  ;;  %7621 = vmatmul.msk.f32.gmra.mxu3 %vm186_vm1, %v7928_v32  ;;  %v13176_v23 = vld [vmem:[%s15984_s0 + $0x190] sm:$0xff]  ;;  %v3451_v32 = vadd.f32 %v17036_v12, %v3007_v30  ;;  %v3868_v22 = vadd.f32 %v13037_v50, %v3450_v62  ;;  %v17042_v50 = vld [vmem:[#allocation107_spill] sm:$0xff]  ;;  %v7932_v12 = vld [vmem:[%s15984_s0 + $0x338] sm:$0xff]  ;;  %4768 = vmatpush.msrb.mxu0 %v4628_v2 }
 0x73e   :  { %v17044_v62 = vld [vmem:[#allocation264_spill] sm:$0xff] }
 0x73f   :  { %v4012_v46 = vpop.f32.mrf.mxu2 }
 0x740   :  { %v4296_v20 = vadd.f32 %v4012_v46, %v3866_v54  ;;  %v4173_v4 = vpop.f32.mrf.mxu3  ;;  %v13167_v3 = vpop.f32.mrf.mxu0 }
 0x741   :  { %v4297_v41 = vadd.f32 %v4173_v4, %v3867_v25  ;;  %v3746_v28 = vpop.f32.mrf.mxu1 }
 0x742   :  { %v3869_v54 = vadd.f32 %v3746_v28, %v3451_v32  ;;  %v17043_v28 = vld [vmem:[#allocation263_spill] sm:$0xff]  ;;  %v17045_v32 = vld [vmem:[#allocation265_spill] sm:$0xff] }
 0x743   :  { %v4419_v19 = vmax.f32 %v4296_v20, %v4297_v41  ;;  %7479 = vmatmul.msk.f32.gmra.mxu0 %vm186_vm1, %v13176_v23  ;;  %v3010_v30 = vadd.f32 %v17043_v28, %v17042_v50  ;;  %v17049_v50 = vld [vmem:[#allocation108_spill] sm:$0xff]  ;;  %v17050_v28 = vld [vmem:[#allocation250_spill] sm:$0xff] }
 0x744   :  { %7524 = vmatmul.msk.f32.gmra.mxu1 %vm186_vm1, %v13052_v13  ;;  %7573 = vmatmul.msk.f32.gmra.mxu2 %vm186_vm1, %v7930_v57 }
 0x745   :  { %v13191_v6 = vmax.f32 %v17039_v40, %v4419_v19  ;;  %7622 = vmatmul.msk.f32.gmra.mxu3 %vm186_vm1, %v7930_v57  ;;  %v3452_v57 = vadd.f32 %v17044_v62, %v2849_v51  ;;  %v3453_v24 = vadd.f32 %v17045_v32, %v3010_v30  ;;  %v17047_v40 = vld [vmem:[#allocation36_spill] sm:$0xff]  ;;  %v4629_v51 = vld [vmem:[%s15985_s3 + $0x118] sm:$0xff]  ;;  %v2852_v30 = vadd.f32 %v17050_v28, %v17049_v50 }
 0x746   :  { %4833 = vmatpush.msra.mxu1 %v4629_v51  ;;  %v17053_v32 = vld [vmem:[#allocation268_spill] sm:$0xff] }
 0x747   :  { %v4015_v25 = vpop.f32.mrf.mxu2 }
 0x748   :  { %v4298_v13 = vadd.f32 %v4015_v25, %v3868_v22  ;;  %v4176_v46 = vpop.f32.mrf.mxu3  ;;  %v13195_v20 = vpop.f32.mrf.mxu0  ;;  %v17048_v22 = vmax.f32 %v17046_v61, %v17047_v40  ;;  %v3870_v25 = vadd.f32 %v13071_v15, %v3452_v57  ;;  %v17051_v15 = vld [vmem:[#allocation109_spill] sm:$0xff]  ;;  %v13244_v57 = vld [vmem:[%s15984_s0 + $0x1a0] sm:$0xff] }
 0x749   :  { %v4299_v4 = vadd.f32 %v4176_v46, %v3869_v54  ;;  %v3749_v41 = vpop.f32.mrf.mxu1  ;;  %v7934_v61 = vld [vmem:[%s15984_s0 + $0x340] sm:$0xff]  ;;  %v17054_v40 = vld [vmem:[#allocation269_spill] sm:$0xff] }
 0x74b   :  { %v4420_v19 = vmax.f32 %v4298_v13, %v4299_v4  ;;  %7480 = vmatmul.msk.f32.gmra.mxu0 %vm186_vm1, %v13210_v53  ;;  %v3871_v13 = vadd.f32 %v3749_v41, %v3453_v24  ;;  %v17052_v41 = vld [vmem:[#allocation267_spill] sm:$0xff]  ;;  %v3454_v24 = vadd.f32 %v17053_v32, %v2852_v30 }
 0x74c   :  { %7525 = vmatmul.msk.f32.gmra.mxu1 %vm186_vm1, %v13080_v1  ;;  %7574 = vmatmul.msk.f32.gmra.mxu2 %vm186_vm1, %v7932_v12  ;;  %v17060_v32 = vld [vmem:[#allocation111_spill] sm:$0xff] }
 0x74d   :  { %v13225_v54 = vmax.f32 %v17048_v22, %v4420_v19  ;;  %7623 = vmatmul.msk.f32.gmra.mxu3 %vm186_vm1, %v7932_v12  ;;  %v3013_v19 = vadd.f32 %v17052_v41, %v17051_v15  ;;  %v4626_v12 = vld [vmem:[%s15985_s3 + $0x100] sm:$0xff] }
 0x74e   :  { %4769 = vmatpush.msrb.mxu0 %v4626_v12  ;;  %v17058_v15 = vld [vmem:[#allocation110_spill] sm:$0xff]  ;;  %v13275_v12 = vld [vmem:[%s15984_s0 + $0x1a8] sm:$0xff] }
 0x74f   :  { %v4018_v46 = vpop.f32.mrf.mxu2  ;;  %v3455_v22 = vadd.f32 %v17054_v40, %v3013_v19  ;;  %v17059_v41 = vld [vmem:[#allocation254_spill] sm:$0xff]  ;;  %v17061_v40 = vld [vmem:[#allocation271_spill] sm:$0xff] }
 0x750   :  { %v4300_v1 = vadd.f32 %v4018_v46, %v3870_v25  ;;  %v4179_v4 = vpop.f32.mrf.mxu3  ;;  %v13229_v16 = vpop.f32.mrf.mxu0  ;;  %v17055_v25 = vld [vmem:[#allocation59_spill] sm:$0xff]  ;;  %v2855_v19 = vadd.f32 %v17059_v41, %v17058_v15 }
 0x751   :  { %v4301_v59 = vadd.f32 %v4179_v4, %v3871_v13  ;;  %v3752_v27 = vpop.f32.mrf.mxu1  ;;  %v17056_v13 = vld [vmem:[#allocation38_spill] sm:$0xff]  ;;  %v3872_v4 = vadd.f32 %v13099_v8, %v3454_v24  ;;  %v17062_v8 = vld [vmem:[#allocation272_spill] sm:$0xff]  ;;  %v7936_v24 = vld [vmem:[%s15984_s0 + $0x348] sm:$0xff] }
 0x752   :  { %v17057_v46 = vmax.f32 %v17055_v25, %v17056_v13  ;;  %v17064_v13 = vld [vmem:[#allocation40_spill] sm:$0xff] }
 0x753   :  { %v4421_v62 = vmax.f32 %v4300_v1, %v4301_v59  ;;  %7481 = vmatmul.msk.f32.gmra.mxu0 %vm186_vm1, %v13244_v57  ;;  %v3873_v59 = vadd.f32 %v3752_v27, %v3455_v22  ;;  %v3456_v27 = vadd.f32 %v17062_v8, %v2855_v19 }
 0x754   :  { %7526 = vmatmul.msk.f32.gmra.mxu1 %vm186_vm1, %v13114_v36  ;;  %7575 = vmatmul.msk.f32.gmra.mxu2 %vm186_vm1, %v7934_v61 }
 0x755   :  { %v13262_v1 = vmax.f32 %v17057_v46, %v4421_v62  ;;  %7624 = vmatmul.msk.f32.gmra.mxu3 %vm186_vm1, %v7934_v61  ;;  %v3016_v62 = vadd.f32 %v17061_v40, %v17060_v32  ;;  %v17063_v61 = vld [vmem:[#allocation273_spill] sm:$0xff]  ;;  %v4594_v32 = vld [vmem:[%s15985_s3] sm:$0xff]  ;;  %v4595_v40 = vld [vmem:[%s15985_s3 + $0x8] sm:$0xff] }
 0x756   :  { %v17065_v46 = vld [vmem:[#allocation41_spill] sm:$0xff]  ;;  %4899 = vmatpush.msra.mxu2 %v4594_v32  ;;  %4964 = vmatpush.msra.mxu3 %v4595_v40 }
 0x757   :  { %v4021_v36 = vpop.f32.mrf.mxu2  ;;  %v3457_v22 = vadd.f32 %v17063_v61, %v3016_v62  ;;  %v17067_v62 = vld [vmem:[#allocation112_spill] sm:$0xff] }
 0x758   :  { %v4302_v2 = vadd.f32 %v4021_v36, %v3872_v4  ;;  %v4182_v51 = vpop.f32.mrf.mxu3  ;;  %v13266_v50 = vpop.f32.mrf.mxu0  ;;  %v17066_v4 = vmax.f32 %v17064_v13, %v17065_v46  ;;  %v3874_v36 = vadd.f32 %v13133_v11, %v3456_v27  ;;  %v17069_v11 = vld [vmem:[#allocation113_spill] sm:$0xff]  ;;  %v13309_v61 = vld [vmem:[%s15984_s0 + $0x1b0] sm:$0xff] }
 0x759   :  { %v4303_v28 = vadd.f32 %v4182_v51, %v3873_v59  ;;  %v3755_v30 = vpop.f32.mrf.mxu1  ;;  %v7938_v46 = vld [vmem:[%s15984_s0 + $0x350] sm:$0xff] }
 0x75b   :  { %v4422_v25 = vmax.f32 %v4302_v2, %v4303_v28  ;;  %7482 = vmatmul.msk.f32.gmra.mxu0 %vm186_vm1, %v13275_v12  ;;  %v3875_v2 = vadd.f32 %v3755_v30, %v3457_v22  ;;  %v17070_v30 = vld [vmem:[#allocation275_spill] sm:$0xff]  ;;  %v17071_v22 = vld [vmem:[#allocation276_spill] sm:$0xff] }
 0x75c   :  { %7527 = vmatmul.msk.f32.gmra.mxu1 %vm186_vm1, %v13148_v63  ;;  %7576 = vmatmul.msk.f32.gmra.mxu2 %vm186_vm1, %v7936_v24  ;;  %v3019_v27 = vadd.f32 %v17070_v30, %v17069_v11  ;;  %v4627_v30 = vld [vmem:[%s15985_s3 + $0x108] sm:$0xff] }
 0x75d   :  { %v13290_v59 = vmax.f32 %v17066_v4, %v4422_v25  ;;  %7625 = vmatmul.msk.f32.gmra.mxu3 %vm186_vm1, %v7936_v24  ;;  %v17068_v25 = vld [vmem:[#allocation258_spill] sm:$0xff]  ;;  %v17072_v4 = vld [vmem:[#allocation277_spill] sm:$0xff]  ;;  %4834 = vmatpush.msra.mxu1 %v4627_v30 }
 0x75e   :  { %v2858_v8 = vadd.f32 %v17068_v25, %v17067_v62 }
 0x75f   :  { %v4024_v51 = vpop.f32.mrf.mxu2 }
 0x760   :  { %v4304_v63 = vadd.f32 %v4024_v51, %v3874_v36  ;;  %v4185_v28 = vpop.f32.mrf.mxu3  ;;  %v13294_v15 = vpop.f32.mrf.mxu0  ;;  %v3458_v13 = vadd.f32 %v17071_v22, %v2858_v8  ;;  %v3459_v36 = vadd.f32 %v17072_v4, %v3019_v27  ;;  %v17074_v51 = vld [vmem:[#allocation46_spill] sm:$0xff]  ;;  %v17076_v27 = vld [vmem:[#allocation116_spill] sm:$0xff]  ;;  %v17078_v4 = vld [vmem:[#allocation117_spill] sm:$0xff] }
 0x761   :  { %v4305_v41 = vadd.f32 %v4185_v28, %v3875_v2  ;;  %v3758_v19 = vpop.f32.mrf.mxu1  ;;  %v17073_v2 = vld [vmem:[#allocation44_spill] sm:$0xff]  ;;  %v17077_v22 = vld [vmem:[#allocation262_spill] sm:$0xff] }
 0x762   :  { %v3877_v32 = vadd.f32 %v3758_v19, %v3459_v36  ;;  %v17080_v36 = vld [vmem:[#allocation280_spill] sm:$0xff] }
 0x763   :  { %v4423_v24 = vmax.f32 %v4304_v63, %v4305_v41  ;;  %7483 = vmatmul.msk.f32.gmra.mxu0 %vm186_vm1, %v13309_v61  ;;  %v17075_v63 = vmax.f32 %v17073_v2, %v17074_v51  ;;  %v3876_v41 = vadd.f32 %v13167_v3, %v3458_v13  ;;  %v13340_v3 = vld [vmem:[%s15986_s2] ss:$0 sm:$0xff]  ;;  %v13345_v13 = vld [vmem:[%s15984_s0 + $0x1b8] sm:$0xff] }
 0x764   :  { %7528 = vmatmul.msk.f32.gmra.mxu1 %vm186_vm1, %v13176_v23  ;;  %7577 = vmatmul.msk.f32.gmra.mxu2 %vm186_vm1, %v7938_v46 }
 0x765   :  { %v13324_v28 = vmax.f32 %v17075_v63, %v4423_v24  ;;  %7626 = vmatmul.msk.f32.gmra.mxu3 %vm186_vm1, %v7938_v46  ;;  %v2861_v24 = vadd.f32 %v17077_v22, %v17076_v27  ;;  %v17079_v46 = vld [vmem:[#allocation279_spill] sm:$0xff]  ;;  %v7940_v63 = vld [vmem:[%s15984_s0 + $0x358] sm:$0xff] }
 0x766   :  { %v3022_v2 = vadd.f32 %v17079_v46, %v17078_v4 }
 0x767   :  { %v4027_v40 = vpop.f32.mrf.mxu2  ;;  %v3460_v51 = vadd.f32 %v17080_v36, %v2861_v24 }
 0x768   :  { %v4306_v23 = vadd.f32 %v4027_v40, %v3876_v41  ;;  %v4188_v62 = vpop.f32.mrf.mxu3  ;;  %v13328_v25 = vpop.f32.mrf.mxu0  ;;  %v17081_v41 = vld [vmem:[#allocation281_spill] sm:$0xff]  ;;  %v4502_v40 = vadd.f32 %v13340_v3, %v12650_v42  ;;  %v142_v42 = vld [vmem:[%s15984_s0 + $0x360] sm:$0xff] }
 0x769   :  { %v4307_v8 = vadd.f32 %v4188_v62, %v3877_v32  ;;  %v3761_v11 = vpop.f32.mrf.mxu1  ;;  %v3461_v32 = vadd.f32 %v17081_v41, %v3022_v2  ;;  %v17083_v62 = vld [vmem:[#allocation50_spill] sm:$0xff] }
 0x76a   :  { %v13368_v36 = vmax.f32 %v4502_v40, 0.0  ;;  %v17091_v40 = vld [vmem:[#allocation285_spill] sm:$0xff] }
 0x76b   :  { %v4424_v19 = vmax.f32 %v4306_v23, %v4307_v8  ;;  %7484 = vmatmul.msk.f32.gmra.mxu0 %vm186_vm1, %v13345_v13  ;;  %v17082_v23 = vld [vmem:[#allocation49_spill] sm:$0xff]  ;;  %v3879_v27 = vadd.f32 %v3761_v11, %v3461_v32 }
 0x76c   :  { %7529 = vmatmul.msk.f32.gmra.mxu1 %vm186_vm1, %v13210_v53  ;;  %7578 = vmatmul.msk.f32.gmra.mxu2 %vm186_vm1, %v7940_v63  ;;  %v17084_v8 = vmax.f32 %v17082_v23, %v17083_v62  ;;  %v3878_v53 = vadd.f32 %v13195_v20, %v3460_v51  ;;  %17085 = vst [vmem:[#allocation76_spill] sm:$0xff] %v13368_v36  ;;  %v17087_v23 = vld [vmem:[#allocation266_spill] sm:$0xff]  ;;  %v17090_v51 = vld [vmem:[#allocation284_spill] sm:$0xff] }
 0x76d   :  { %7627 = vmatmul.msk.f32.gmra.mxu3 %vm186_vm1, %v7940_v63  ;;  %v17088_v63 = vld [vmem:[#allocation121_spill] sm:$0xff] }
 0x76e   :  { %v13362_v30 = vmax.f32 %v17084_v8, %v4424_v19  ;;  %v17086_v19 = vld [vmem:[#allocation120_spill] sm:$0xff]  ;;  %v17089_v8 = vld [vmem:[#allocation283_spill] sm:$0xff] }
 0x76f   :  { %v4030_v22 = vpop.f32.mrf.mxu2  ;;  %v2864_v62 = vadd.f32 %v17087_v23, %v17086_v19  ;;  %v3025_v20 = vadd.f32 %v17089_v8, %v17088_v63 }
 0x770   :  { %v4308_v24 = vadd.f32 %v4030_v22, %v3878_v53  ;;  %v4191_v4 = vpop.f32.mrf.mxu3  ;;  %v13366_v46 = vpop.f32.mrf.mxu0  ;;  %v17092_v22 = vld [vmem:[#allocation114_spill] sm:$0xff] }
 0x771   :  { %v4309_v2 = vadd.f32 %v4191_v4, %v3879_v27  ;;  %v3764_v41 = vpop.f32.mrf.mxu1  ;;  %v3462_v32 = vadd.f32 %v17090_v51, %v2864_v62  ;;  %v3463_v53 = vadd.f32 %v17091_v40, %v3025_v20  ;;  %v4503_v27 = vadd.f32 %v13340_v3, %v12683_v45  ;;  %v17093_v4 = vld [vmem:[#allocation115_spill] sm:$0xff] }
 0x772   :  { %v17094_v19 = vmax.f32 %v17092_v22, %v17093_v4  ;;  %v143_v45 = vld [vmem:[%s15984_s0 + $0x368] sm:$0xff] }
 0x773   :  { %v4425_v11 = vmax.f32 %v4308_v24, %v4309_v2  ;;  %4770 = vmatmul.f32.vlgmr.msrb.gmra.mxu0 %v13368_v36  ;;  %v3880_v24 = vadd.f32 %v13229_v16, %v3462_v32  ;;  %v3881_v2 = vadd.f32 %v3764_v41, %v3463_v53  ;;  %v13397_v40 = vmax.f32 %v4503_v27, 0.0  ;;  %v4721_v16 = vld [vmem:[%s15985_s3 + $0x3f8] sm:$0xff]  ;;  %v17096_v41 = vld [vmem:[#allocation124_spill] sm:$0xff]  ;;  %v17099_v22 = vld [vmem:[#allocation287_spill] sm:$0xff] }
 0x774   :  { %7530 = vmatmul.msk.f32.gmra.mxu1 %vm186_vm1, %v13244_v57  ;;  %7579 = vmatmul.msk.f32.gmra.mxu2 %vm186_vm1, %v142_v42  ;;  %v17098_v53 = vld [vmem:[#allocation125_spill] sm:$0xff]  ;;  %v17100_v27 = vld [vmem:[#allocation288_spill] sm:$0xff] }
 0x775   :  { %v13388_v23 = vmax.f32 %v17094_v19, %v4425_v11  ;;  %7628 = vmatmul.msk.f32.gmra.mxu3 %vm186_vm1, %v142_v42  ;;  %17095 = vst [vmem:[#allocation77_spill] sm:$0xff] %v13397_v40  ;;  %v4720_v42 = vld [vmem:[%s15985_s3 + $0x3f0] sm:$0xff]  ;;  %v17097_v11 = vld [vmem:[#allocation270_spill] sm:$0xff]  ;;  %v3028_v4 = vadd.f32 %v17099_v22, %v17098_v53 }
 0x776   :  { %v2867_v32 = vadd.f32 %v17097_v11, %v17096_v41  ;;  %5176 = vmatpush.msrb.mxu2 %v4720_v42  ;;  %5241 = vmatpush.msrb.mxu3 %v4721_v16  ;;  %v17102_v42 = vld [vmem:[#allocation118_spill] sm:$0xff]  ;;  %v17103_v16 = vld [vmem:[#allocation119_spill] sm:$0xff] }
 0x777   :  { %v4033_v62 = vpop.f32.mrf.mxu2  ;;  %v17104_v41 = vmax.f32 %v17102_v42, %v17103_v16  ;;  %v17108_v42 = vld [vmem:[#allocation129_spill] sm:$0xff] }
 0x778   :  { %v4310_v63 = vadd.f32 %v4033_v62, %v3880_v24  ;;  %v4194_v57 = vpop.f32.mrf.mxu3  ;;  %v13392_v8 = vpop.f32.mrf.mxu0  ;;  %v3464_v24 = vadd.f32 %v17100_v27, %v2867_v32 }
 0x779   :  { %v4311_v51 = vadd.f32 %v4194_v57, %v3881_v2  ;;  %v3767_v20 = vpop.f32.mrf.mxu1  ;;  %v17101_v2 = vld [vmem:[#allocation289_spill] sm:$0xff]  ;;  %v4504_v57 = vadd.f32 %v13340_v3, %v12710_v17 }
 0x77a   :  { %v3465_v62 = vadd.f32 %v17101_v2, %v3028_v4  ;;  %v144_v4 = vld [vmem:[%s15984_s0 + $0x370] sm:$0xff] }
 0x77b   :  { %v4426_v19 = vmax.f32 %v4310_v63, %v4311_v51  ;;  %4773 = vmatmul.f32.gmra.mxu0 %v13397_v40  ;;  %v3882_v63 = vadd.f32 %v13266_v50, %v3464_v24  ;;  %v13429_v2 = vmax.f32 %v4504_v57, 0.0  ;;  %v4689_v50 = vld [vmem:[%s15985_s3 + $0x2f8] sm:$0xff]  ;;  %v17107_v24 = vld [vmem:[#allocation274_spill] sm:$0xff]  ;;  %v17109_v57 = vld [vmem:[#allocation291_spill] sm:$0xff] }
 0x77c   :  { %7531 = vmatmul.msk.f32.gmra.mxu1 %vm186_vm1, %v13275_v12  ;;  %7580 = vmatmul.msk.f32.gmra.mxu2 %vm186_vm1, %v143_v45  ;;  %v3883_v51 = vadd.f32 %v3767_v20, %v3465_v62  ;;  %v4718_v20 = vld [vmem:[%s15985_s3 + $0x3e0] sm:$0xff]  ;;  %v3031_v16 = vadd.f32 %v17109_v57, %v17108_v42 }
 0x77d   :  { %v13420_v11 = vmax.f32 %v17104_v41, %v4426_v19  ;;  %7629 = vmatmul.msk.f32.gmra.mxu3 %vm186_vm1, %v143_v45  ;;  %17105 = vst [vmem:[#allocation184_spill] sm:$0xff] %v13429_v2  ;;  %v4688_v45 = vld [vmem:[%s15985_s3 + $0x2f0] sm:$0xff]  ;;  %5079 = vmatpush.msrb.mxu1 %v4689_v50  ;;  %v4505_v50 = vadd.f32 %v13340_v3, %v12745_v29  ;;  %v145_v29 = vld [vmem:[%s15984_s0 + $0x378] sm:$0xff] }
 0x77e   :  { %v17106_v19 = vld [vmem:[#allocation128_spill] sm:$0xff]  ;;  %5014 = vmatpush.msra.mxu0 %v4688_v45  ;;  %5177 = vmatpush.msrb.mxu2 %v4718_v20 }
 0x77f   :  { %v4036_v32 = vpop.f32.mrf.mxu2  ;;  %v2870_v62 = vadd.f32 %v17107_v24, %v17106_v19 }
 0x780   :  { %v4312_v53 = vadd.f32 %v4036_v32, %v3882_v63  ;;  %v4197_v12 = vpop.f32.mrf.mxu3  ;;  %v13424_v22 = vpop.f32.mrf.mxu0  ;;  %v4719_v63 = vld [vmem:[%s15985_s3 + $0x3e8] sm:$0xff] }
 0x781   :  { %v4313_v17 = vadd.f32 %v4197_v12, %v3883_v51  ;;  %v3770_v27 = vpop.f32.mrf.mxu1  ;;  %v17110_v51 = vld [vmem:[#allocation292_spill] sm:$0xff]  ;;  %v17111_v12 = vld [vmem:[#allocation293_spill] sm:$0xff]  ;;  %5242 = vmatpush.msrb.mxu3 %v4719_v63  ;;  %v17117_v63 = vld [vmem:[#allocation278_spill] sm:$0xff] }
 0x782   :  { %v3466_v32 = vadd.f32 %v17110_v51, %v2870_v62  ;;  %v3467_v45 = vadd.f32 %v17111_v12, %v3031_v16 }
 0x783   :  { %v4427_v41 = vmax.f32 %v4312_v53, %v4313_v17  ;;  %4776 = vmatmul.f32.gmra.mxu0 %v13429_v2  ;;  %v17112_v53 = vld [vmem:[#allocation122_spill] sm:$0xff]  ;;  %v17113_v17 = vld [vmem:[#allocation123_spill] sm:$0xff] }
 0x784   :  { %7532 = vmatmul.msk.f32.gmra.mxu1 %vm186_vm1, %v13309_v61  ;;  %7581 = vmatmul.msk.f32.gmra.mxu2 %vm186_vm1, %v144_v4  ;;  %v17114_v19 = vmax.f32 %v17112_v53, %v17113_v17  ;;  %v3884_v24 = vadd.f32 %v13294_v15, %v3466_v32  ;;  %v3885_v62 = vadd.f32 %v3770_v27, %v3467_v45  ;;  %v13467_v53 = vmax.f32 %v4505_v50, 0.0  ;;  %v4687_v15 = vld [vmem:[%s15985_s3 + $0x2e8] sm:$0xff]  ;;  %v4716_v27 = vld [vmem:[%s15985_s3 + $0x3d0] sm:$0xff]  ;;  %v17118_v45 = vld [vmem:[#allocation133_spill] sm:$0xff] }
 0x785   :  { %7630 = vmatmul.msk.f32.gmra.mxu3 %vm186_vm1, %v144_v4  ;;  %v4686_v4 = vld [vmem:[%s15985_s3 + $0x2e0] sm:$0xff]  ;;  %5080 = vmatpush.msrb.mxu1 %v4687_v15  ;;  %v17119_v50 = vld [vmem:[#allocation295_spill] sm:$0xff] }
 0x786   :  { %v13458_v20 = vmax.f32 %v17114_v19, %v4427_v41  ;;  %17115 = vst [vmem:[#allocation200_spill] sm:$0xff] %v13467_v53  ;;  %v17116_v41 = vld [vmem:[#allocation132_spill] sm:$0xff]  ;;  %5015 = vmatpush.msra.mxu0 %v4686_v4  ;;  %v3034_v17 = vadd.f32 %v17119_v50, %v17118_v45  ;;  %5178 = vmatpush.msrb.mxu2 %v4716_v27 }
 0x787   :  { %v4039_v42 = vpop.f32.mrf.mxu2  ;;  %v2873_v32 = vadd.f32 %v17117_v63, %v17116_v41 }
 0x788   :  { %v4314_v61 = vadd.f32 %v4039_v42, %v3884_v24  ;;  %v4200_v57 = vpop.f32.mrf.mxu3  ;;  %v13462_v51 = vpop.f32.mrf.mxu0  ;;  %v4717_v24 = vld [vmem:[%s15985_s3 + $0x3d8] sm:$0xff]  ;;  %v3469_v42 = vadd.f32 %v12139_v48, %v3034_v17  ;;  %v17125_v17 = vld [vmem:[#allocation282_spill] sm:$0xff] }
 0x789   :  { %v4315_v16 = vadd.f32 %v4200_v57, %v3885_v62  ;;  %v3773_v12 = vpop.f32.mrf.mxu1  ;;  %v3468_v62 = vadd.f32 %v12137_v38, %v2873_v32  ;;  %v4510_v57 = vadd.f32 %v13340_v3, %v12903_v43  ;;  %v4498_v38 = vadd.f32 %v13340_v3, %v12524_v55  ;;  %5243 = vmatpush.msrb.mxu3 %v4717_v24  ;;  %v4685_v55 = vld [vmem:[%s15985_s3 + $0x2d8] sm:$0xff] }
 0x78a   :  { %5081 = vmatpush.msrb.mxu1 %v4685_v55  ;;  %v4499_v55 = vadd.f32 %v13340_v3, %v12557_v37  ;;  %v13548_v37 = vld [vmem:[%s15985_s3 + $0x2c8] sm:$0xff] }
 0x78b   :  { %v4428_v19 = vmax.f32 %v4314_v61, %v4315_v16  ;;  %4779 = vmatmul.f32.gmra.mxu0 %v13467_v53  ;;  %v17120_v61 = vld [vmem:[#allocation126_spill] sm:$0xff]  ;;  %v17121_v16 = vld [vmem:[#allocation127_spill] sm:$0xff]  ;;  %v3886_v27 = vadd.f32 %v13328_v25, %v3468_v62  ;;  %v13504_v43 = vmax.f32 %v4510_v57, 0.0  ;;  %v4546_v24 = vmax.f32 %v4498_v38, 0.0  ;;  %v17126_v62 = vld [vmem:[#allocation137_spill] sm:$0xff] }
 0x78c   :  { %7533 = vmatmul.msk.f32.gmra.mxu1 %vm186_vm1, %v13345_v13  ;;  %7582 = vmatmul.msk.f32.gmra.mxu2 %vm186_vm1, %v145_v29  ;;  %v17122_v4 = vmax.f32 %v17120_v61, %v17121_v16  ;;  %v3887_v13 = vadd.f32 %v3773_v12, %v3469_v42  ;;  %v4714_v25 = vld [vmem:[%s15985_s3 + $0x3c0] sm:$0xff]  ;;  %v17124_v12 = vld [vmem:[#allocation136_spill] sm:$0xff]  ;;  %v17127_v42 = vld [vmem:[#allocation297_spill] sm:$0xff] }
 0x78d   :  { %7631 = vmatmul.msk.f32.gmra.mxu3 %vm186_vm1, %v145_v29  ;;  %17123 = vst [vmem:[#allocation185_spill] sm:$0xff] %v13504_v43  ;;  %v4684_v29 = vld [vmem:[%s15985_s3 + $0x2d0] sm:$0xff]  ;;  %v3037_v57 = vadd.f32 %v17127_v42, %v17126_v62  ;;  %5179 = vmatpush.msrb.mxu2 %v4714_v25  ;;  %v4715_v16 = vld [vmem:[%s15985_s3 + $0x3c8] sm:$0xff] }
 0x78e   :  { %v13496_v15 = vmax.f32 %v17122_v4, %v4428_v19  ;;  %v2876_v19 = vadd.f32 %v17125_v17, %v17124_v12  ;;  %5016 = vmatpush.msra.mxu0 %v4684_v29  ;;  %5244 = vmatpush.msrb.mxu3 %v4715_v16  ;;  %v4547_v16 = vmax.f32 %v4499_v55, 0.0 }
 0x78f   :  { %v4042_v41 = vpop.f32.mrf.mxu2  ;;  %5082 = vmatpush.msrb.mxu1 %v13548_v37 }
 0x790   :  { %v4316_v63 = vadd.f32 %v4042_v41, %v3886_v27  ;;  %v4203_v48 = vpop.f32.mrf.mxu3  ;;  %v13502_v32 = vpop.f32.mrf.mxu0  ;;  %v3470_v4 = vadd.f32 %v12160_v44, %v2876_v19  ;;  %v17128_v27 = vld [vmem:[#allocation298_spill] sm:$0xff] }
 0x791   :  { %v4317_v45 = vadd.f32 %v4203_v48, %v3887_v13  ;;  %v3776_v50 = vpop.f32.mrf.mxu1  ;;  %v3471_v38 = vadd.f32 %v17128_v27, %v3037_v57  ;;  %v4511_v13 = vadd.f32 %v13340_v3, %v12937_v39  ;;  %v17129_v41 = vld [vmem:[#allocation130_spill] sm:$0xff]  ;;  %v17130_v48 = vld [vmem:[#allocation131_spill] sm:$0xff]  ;;  %v17136_v27 = vld [vmem:[#allocation300_spill] sm:$0xff] }
 0x792   :  { %v3888_v29 = vadd.f32 %v13366_v46, %v3470_v4  ;;  %v4712_v46 = vld [vmem:[%s15985_s3 + $0x3b0] sm:$0xff]  ;;  %v17134_v57 = vld [vmem:[#allocation286_spill] sm:$0xff]  ;;  %v17135_v4 = vld [vmem:[#allocation141_spill] sm:$0xff] }
 0x793   :  { %v4429_v61 = vmax.f32 %v4316_v63, %v4317_v45  ;;  %4782 = vmatmul.f32.gmra.mxu0 %v13504_v43  ;;  %v17131_v63 = vmax.f32 %v17129_v41, %v17130_v48  ;;  %v3889_v44 = vadd.f32 %v3776_v50, %v3471_v38  ;;  %v13538_v62 = vmax.f32 %v4511_v13, 0.0  ;;  %v17133_v50 = vld [vmem:[#allocation140_spill] sm:$0xff]  ;;  %5180 = vmatpush.msrb.mxu2 %v4712_v46  ;;  %v4713_v41 = vld [vmem:[%s15985_s3 + $0x3b8] sm:$0xff] }
 0x794   :  { %4835 = vmatmul.f32.vlgmr.msra.gmra.mxu1 %v13368_v36  ;;  %4900 = vmatmul.f32.vlgmr.msra.gmra.mxu2 %v4546_v24  ;;  %v3040_v38 = vadd.f32 %v17136_v27, %v17135_v4  ;;  %v17137_v48 = vld [vmem:[#allocation301_spill] sm:$0xff] }
 0x795   :  { %v13531_v45 = vmax.f32 %v17131_v63, %v4429_v61  ;;  %4965 = vmatmul.f32.vlgmr.msra.gmra.mxu3 %v4546_v24  ;;  %17132 = vst [vmem:[#allocation72_spill] sm:$0xff] %v13538_v62  ;;  %v13543_v24 = vld [vmem:[%s15985_s3 + $0x2c0] sm:$0xff]  ;;  %v2879_v61 = vadd.f32 %v17134_v57, %v17133_v50  ;;  %v4500_v50 = vadd.f32 %v13340_v3, %v12590_v7  ;;  %v13588_v7 = vld [vmem:[%s15985_s3 + $0x2b8] sm:$0xff] }
 0x796   :  { %5017 = vmatpush.msra.mxu0 %v13543_v24  ;;  %5245 = vmatpush.msrb.mxu3 %v4713_v41 }
 0x797   :  { %v4045_v25 = vpop.f32.mrf.mxu2  ;;  %v3472_v63 = vadd.f32 %v17137_v48, %v2879_v61  ;;  %5083 = vmatpush.msrb.mxu1 %v13588_v7 }
 0x798   :  { %v4318_v12 = vadd.f32 %v4045_v25, %v3888_v29  ;;  %v4206_v17 = vpop.f32.mrf.mxu3  ;;  %v13536_v19 = vpop.f32.mrf.mxu0  ;;  %v17138_v29 = vld [vmem:[#allocation302_spill] sm:$0xff] }
 0x799   :  { %v4319_v39 = vadd.f32 %v4206_v17, %v3889_v44  ;;  %v3779_v42 = vpop.f32.mrf.mxu1  ;;  %v3473_v55 = vadd.f32 %v17138_v29, %v3040_v38  ;;  %v4512_v44 = vadd.f32 %v13340_v3, %v12971_v5  ;;  %v17139_v25 = vld [vmem:[#allocation134_spill] sm:$0xff]  ;;  %v17140_v17 = vld [vmem:[#allocation135_spill] sm:$0xff]  ;;  %v3890_v46 = vadd.f32 %v13392_v8, %v3472_v63 }
 0x79a   :  { %v4710_v8 = vld [vmem:[%s15985_s3 + $0x3a0] sm:$0xff]  ;;  %v4548_v63 = vmax.f32 %v4500_v50, 0.0 }
 0x79b   :  { %v4430_v13 = vmax.f32 %v4318_v12, %v4319_v39  ;;  %4785 = vmatmul.f32.gmra.mxu0 %v13538_v62  ;;  %v17141_v12 = vmax.f32 %v17139_v25, %v17140_v17  ;;  %v3891_v57 = vadd.f32 %v3779_v42, %v3473_v55  ;;  %v13578_v48 = vmax.f32 %v4512_v44, 0.0  ;;  %v17144_v42 = vld [vmem:[#allocation144_spill] sm:$0xff]  ;;  %v17146_v55 = vld [vmem:[#allocation145_spill] sm:$0xff]  ;;  %5181 = vmatpush.msrb.mxu2 %v4710_v8 }
 0x79c   :  { %4838 = vmatmul.f32.gmra.mxu1 %v13397_v40  ;;  %4903 = vmatmul.f32.gmra.mxu2 %v4547_v16  ;;  %v17147_v44 = vld [vmem:[#allocation304_spill] sm:$0xff] }
 0x79d   :  { %v13571_v39 = vmax.f32 %v17141_v12, %v4430_v13  ;;  %4968 = vmatmul.f32.gmra.mxu3 %v4547_v16  ;;  %17143 = vst [vmem:[#allocation2_spill] sm:$0xff] %v13578_v48  ;;  %v13583_v16 = vld [vmem:[%s15985_s3 + $0x2b0] sm:$0xff]  ;;  %v17145_v13 = vld [vmem:[#allocation290_spill] sm:$0xff]  ;;  %v3043_v25 = vadd.f32 %v17147_v44, %v17146_v55  ;;  %v4711_v12 = vld [vmem:[%s15985_s3 + $0x3a8] sm:$0xff] }
 0x79e   :  { %v2882_v41 = vadd.f32 %v17145_v13, %v17144_v42  ;;  %5018 = vmatpush.msra.mxu0 %v13583_v16  ;;  %v4501_v42 = vadd.f32 %v13340_v3, %v12617_v26  ;;  %5246 = vmatpush.msrb.mxu3 %v4711_v12  ;;  %v13628_v26 = vld [vmem:[%s15985_s3 + $0x2a8] sm:$0xff] }
 0x79f   :  { %17142 = vst [vmem:[#allocation73_spill] sm:$0xff] %v13571_v39  ;;  %v4048_v61 = vpop.f32.mrf.mxu2  ;;  %v3475_v50 = vadd.f32 %v12202_v60, %v3043_v25  ;;  %5084 = vmatpush.msrb.mxu1 %v13628_v26 }
 0x7a0   :  { %v4320_v4 = vadd.f32 %v4048_v61, %v3890_v46  ;;  %v4209_v27 = vpop.f32.mrf.mxu3  ;;  %v13576_v38 = vpop.f32.mrf.mxu0  ;;  %v3474_v46 = vadd.f32 %v12200_v9, %v2882_v41  ;;  %v17148_v61 = vld [vmem:[#allocation138_spill] sm:$0xff] }
 0x7a1   :  { %v4321_v5 = vadd.f32 %v4209_v27, %v3891_v57  ;;  %v3782_v29 = vpop.f32.mrf.mxu1  ;;  %v4513_v57 = vadd.f32 %v13340_v3, %v12999_v18  ;;  %v17149_v27 = vld [vmem:[#allocation139_spill] sm:$0xff] }
 0x7a2   :  { %v3892_v8 = vadd.f32 %v13424_v22, %v3474_v46  ;;  %v3893_v9 = vadd.f32 %v3782_v29, %v3475_v50  ;;  %v4708_v22 = vld [vmem:[%s15985_s3 + $0x390] sm:$0xff]  ;;  %v4549_v46 = vmax.f32 %v4501_v42, 0.0  ;;  %v17155_v50 = vld [vmem:[#allocation149_spill] sm:$0xff]  ;;  %v17157_v42 = vld [vmem:[#allocation307_spill] sm:$0xff] }
 0x7a3   :  { %v4431_v17 = vmax.f32 %v4320_v4, %v4321_v5  ;;  %4788 = vmatmul.f32.gmra.mxu0 %v13578_v48  ;;  %v17150_v4 = vmax.f32 %v17148_v61, %v17149_v27  ;;  %v13618_v44 = vmax.f32 %v4513_v57, 0.0  ;;  %v17153_v29 = vld [vmem:[#allocation148_spill] sm:$0xff]  ;;  %v17156_v57 = vld [vmem:[#allocation306_spill] sm:$0xff]  ;;  %5182 = vmatpush.msrb.mxu2 %v4708_v22  ;;  %v4506_v22 = vadd.f32 %v13340_v3, %v12779_v14  ;;  %v13668_v14 = vld [vmem:[%s15985_s3 + $0x298] sm:$0xff] }
 0x7a4   :  { %4841 = vmatmul.f32.gmra.mxu1 %v13429_v2  ;;  %4906 = vmatmul.f32.gmra.mxu2 %v4548_v63  ;;  %v3046_v61 = vadd.f32 %v17156_v57, %v17155_v50 }
 0x7a5   :  { %v13611_v5 = vmax.f32 %v17150_v4, %v4431_v17  ;;  %4971 = vmatmul.f32.gmra.mxu3 %v4548_v63  ;;  %17152 = vst [vmem:[#allocation81_spill] sm:$0xff] %v13618_v44  ;;  %v13623_v63 = vld [vmem:[%s15985_s3 + $0x2a0] sm:$0xff]  ;;  %v4709_v4 = vld [vmem:[%s15985_s3 + $0x398] sm:$0xff]  ;;  %5085 = vmatpush.msrb.mxu1 %v13668_v14 }
 0x7a6   :  { %v17154_v17 = vld [vmem:[#allocation294_spill] sm:$0xff]  ;;  %5019 = vmatpush.msra.mxu0 %v13623_v63  ;;  %5247 = vmatpush.msrb.mxu3 %v4709_v4 }
 0x7a7   :  { %17151 = vst [vmem:[#allocation180_spill] sm:$0xff] %v13611_v5  ;;  %v4051_v13 = vpop.f32.mrf.mxu2  ;;  %v2885_v12 = vadd.f32 %v17154_v17, %v17153_v29  ;;  %v17159_v29 = vld [vmem:[#allocation143_spill] sm:$0xff]  ;;  %v17212_v5 = vld [vmem:[#allocation322_spill] sm:$0xff] }
 0x7a8   :  { %v4322_v41 = vadd.f32 %v4051_v13, %v3892_v8  ;;  %v4212_v55 = vpop.f32.mrf.mxu3  ;;  %v13616_v60 = vpop.f32.mrf.mxu0  ;;  %v4518_v13 = vadd.f32 %v13340_v3, %v13163_v49 }
 0x7a9   :  { %v4323_v18 = vadd.f32 %v4212_v55, %v3893_v9  ;;  %v3785_v25 = vpop.f32.mrf.mxu1  ;;  %v3476_v8 = vadd.f32 %v12223_v31, %v2885_v12  ;;  %v3477_v9 = vadd.f32 %v17157_v42, %v3046_v61  ;;  %v17158_v55 = vld [vmem:[#allocation142_spill] sm:$0xff] }
 0x7aa   :  { %v13658_v42 = vmax.f32 %v4518_v13, 0.0  ;;  %v17166_v13 = vld [vmem:[#allocation309_spill] sm:$0xff] }
 0x7ab   :  { %v4432_v27 = vmax.f32 %v4322_v41, %v4323_v18  ;;  %4791 = vmatmul.f32.gmra.mxu0 %v13618_v44  ;;  %v17160_v41 = vmax.f32 %v17158_v55, %v17159_v29  ;;  %v3894_v17 = vadd.f32 %v13462_v51, %v3476_v8  ;;  %v3895_v31 = vadd.f32 %v3785_v25, %v3477_v9  ;;  %v4706_v51 = vld [vmem:[%s15985_s3 + $0x380] sm:$0xff]  ;;  %v17163_v25 = vld [vmem:[#allocation152_spill] sm:$0xff]  ;;  %v17165_v9 = vld [vmem:[#allocation153_spill] sm:$0xff] }
 0x7ac   :  { %4844 = vmatmul.f32.gmra.mxu1 %v13467_v53  ;;  %4909 = vmatmul.f32.gmra.mxu2 %v4549_v46  ;;  %17162 = vst [vmem:[#allocation188_spill] sm:$0xff] %v13658_v42  ;;  %v13675_v8 = vmax.f32 %v4506_v22, 0.0  ;;  %v3049_v55 = vadd.f32 %v17166_v13, %v17165_v9  ;;  %v17168_v22 = vld [vmem:[#allocation311_spill] sm:$0xff] }
 0x7ad   :  { %v13651_v18 = vmax.f32 %v17160_v41, %v4432_v27  ;;  %4974 = vmatmul.f32.gmra.mxu3 %v4549_v46  ;;  %v13663_v46 = vld [vmem:[%s15985_s3 + $0x290] sm:$0xff]  ;;  %5183 = vmatpush.msrb.mxu2 %v4706_v51  ;;  %v4707_v41 = vld [vmem:[%s15985_s3 + $0x388] sm:$0xff]  ;;  %v4507_v51 = vadd.f32 %v13340_v3, %v12807_v56 }
 0x7ae   :  { %v17164_v27 = vld [vmem:[#allocation296_spill] sm:$0xff]  ;;  %5020 = vmatpush.msra.mxu0 %v13663_v46  ;;  %5248 = vmatpush.msrb.mxu3 %v4707_v41  ;;  %v13712_v56 = vld [vmem:[%s15985_s3 + $0x288] sm:$0xff] }
 0x7af   :  { %17161 = vst [vmem:[#allocation187_spill] sm:$0xff] %v13651_v18  ;;  %v4054_v12 = vpop.f32.mrf.mxu2  ;;  %v2888_v4 = vadd.f32 %v17164_v27, %v17163_v25  ;;  %v17169_v25 = vld [vmem:[#allocation146_spill] sm:$0xff]  ;;  %v17175_v41 = vld [vmem:[#allocation299_spill] sm:$0xff]  ;;  %5086 = vmatpush.msrb.mxu1 %v13712_v56 }
 0x7b0   :  { %v4324_v50 = vadd.f32 %v4054_v12, %v3894_v17  ;;  %v4215_v57 = vpop.f32.mrf.mxu3  ;;  %v13656_v61 = vpop.f32.mrf.mxu0  ;;  %v17167_v17 = vld [vmem:[#allocation310_spill] sm:$0xff]  ;;  %v3479_v12 = vadd.f32 %v17168_v22, %v3049_v55  ;;  %v17211_v18 = vld [vmem:[#allocation163_spill] sm:$0xff] }
 0x7b1   :  { %v4325_v49 = vadd.f32 %v4215_v57, %v3895_v31  ;;  %v3788_v53 = vpop.f32.mrf.mxu1  ;;  %v3478_v31 = vadd.f32 %v17167_v17, %v2888_v4  ;;  %v4519_v57 = vadd.f32 %v13340_v3, %v13191_v6  ;;  %v3061_v39 = vadd.f32 %v17212_v5, %v17211_v18  ;;  %v17216_v5 = vld [vmem:[#allocation55_spill] sm:$0xff]  ;;  %v17217_v18 = vld [vmem:[#allocation57_spill] sm:$0xff] }
 0x7b2   :  { %v3897_v9 = vadd.f32 %v3788_v53, %v3479_v12  ;;  %v4704_v53 = vld [vmem:[%s15985_s3 + $0x370] sm:$0xff]  ;;  %v13719_v12 = vmax.f32 %v4507_v51, 0.0 }
 0x7b3   :  { %v4433_v29 = vmax.f32 %v4324_v50, %v4325_v49  ;;  %4794 = vmatmul.f32.gmra.mxu0 %v13658_v42  ;;  %v17170_v50 = vld [vmem:[#allocation147_spill] sm:$0xff]  ;;  %v3896_v4 = vadd.f32 %v13502_v32, %v3478_v31  ;;  %v13702_v6 = vmax.f32 %v4519_v57, 0.0  ;;  %v17174_v32 = vld [vmem:[#allocation156_spill] sm:$0xff]  ;;  %v17176_v57 = vld [vmem:[#allocation157_spill] sm:$0xff]  ;;  %5184 = vmatpush.msrb.mxu2 %v4704_v53  ;;  %v4508_v53 = vadd.f32 %v13340_v3, %v12841_v33 }
 0x7b4   :  { %4847 = vmatmul.f32.gmra.mxu1 %v13504_v43  ;;  %4912 = vmatmul.f32.gmra.mxu2 %v13675_v8  ;;  %v17171_v49 = vmax.f32 %v17169_v25, %v17170_v50  ;;  %v2891_v31 = vadd.f32 %v17175_v41, %v17174_v32  ;;  %v17177_v50 = vld [vmem:[#allocation313_spill] sm:$0xff]  ;;  %v17178_v32 = vld [vmem:[#allocation150_spill] sm:$0xff] }
 0x7b5   :  { %4977 = vmatmul.f32.gmra.mxu3 %v13675_v8  ;;  %17173 = vst [vmem:[#allocation189_spill] sm:$0xff] %v13702_v6 }
 0x7b6   :  { %v13694_v27 = vmax.f32 %v17171_v49, %v4433_v29  ;;  %v13707_v29 = vld [vmem:[%s15985_s3 + $0x280] sm:$0xff]  ;;  %v3052_v49 = vadd.f32 %v17177_v50, %v17176_v57 }
 0x7b7   :  { %v4057_v13 = vpop.f32.mrf.mxu2  ;;  %5021 = vmatpush.msra.mxu0 %v13707_v29  ;;  %v4702_v50 = vld [vmem:[%s15985_s3 + $0x360] sm:$0xff] }
 0x7b8   :  { %17172 = vst [vmem:[#allocation205_spill] sm:$0xff] %v13694_v27  ;;  %v4326_v17 = vadd.f32 %v4057_v13, %v3896_v4  ;;  %v4218_v55 = vpop.f32.mrf.mxu3  ;;  %v13700_v22 = vpop.f32.mrf.mxu0  ;;  %v3480_v13 = vadd.f32 %v12263_v52, %v2891_v31  ;;  %v3481_v51 = vadd.f32 %v12265_v21, %v3052_v49  ;;  %v13747_v21 = vld [vmem:[%s15985_s3 + $0x270] sm:$0xff]  ;;  %5185 = vmatpush.msrb.mxu2 %v4702_v50 }
 0x7b9   :  { %v4327_v2 = vadd.f32 %v4218_v55, %v3897_v9  ;;  %v3791_v25 = vpop.f32.mrf.mxu1  ;;  %v4705_v9 = vld [vmem:[%s15985_s3 + $0x378] sm:$0xff]  ;;  %v4520_v55 = vadd.f32 %v13340_v3, %v13225_v54  ;;  %5022 = vmatpush.msra.mxu0 %v13747_v21  ;;  %v4521_v50 = vadd.f32 %v13340_v3, %v13262_v1  ;;  %v13796_v1 = vld [vmem:[%s15985_s3 + $0x268] sm:$0xff] }
 0x7ba   :  { %v3898_v52 = vadd.f32 %v13536_v19, %v3480_v13  ;;  %5249 = vmatpush.msrb.mxu3 %v4705_v9  ;;  %v3899_v31 = vadd.f32 %v3791_v25, %v3481_v51  ;;  %v13752_v54 = vld [vmem:[%s15985_s3 + $0x278] sm:$0xff]  ;;  %v4703_v25 = vld [vmem:[%s15985_s3 + $0x368] sm:$0xff]  ;;  %v17183_v51 = vld [vmem:[#allocation158_spill] sm:$0xff] }
 0x7bb   :  { %v4434_v4 = vmax.f32 %v4326_v17, %v4327_v2  ;;  %4797 = vmatmul.f32.gmra.mxu0 %v13702_v6  ;;  %v17179_v2 = vld [vmem:[#allocation151_spill] sm:$0xff]  ;;  %5087 = vmatpush.msrb.mxu1 %v13752_v54 }
 0x7bc   :  { %4850 = vmatmul.f32.gmra.mxu1 %v13538_v62  ;;  %4915 = vmatmul.f32.gmra.mxu2 %v13719_v12  ;;  %v17180_v17 = vmax.f32 %v17178_v32, %v17179_v2  ;;  %v17184_v32 = vld [vmem:[#allocation303_spill] sm:$0xff] }
 0x7bd   :  { %4980 = vmatmul.f32.gmra.mxu3 %v13719_v12  ;;  %v2894_v2 = vadd.f32 %v17184_v32, %v17183_v51  ;;  %5088 = vmatpush.msrb.mxu1 %v13796_v1 }
 0x7be   :  { %v13738_v41 = vmax.f32 %v17180_v17, %v4434_v4  ;;  %v13764_v4 = vmax.f32 %v4520_v55, 0.0  ;;  %5250 = vmatpush.msrb.mxu3 %v4703_v25  ;;  %v13768_v17 = vmax.f32 %v4508_v53, 0.0  ;;  %v17187_v55 = vld [vmem:[#allocation316_spill] sm:$0xff]  ;;  %v17189_v53 = vld [vmem:[#allocation155_spill] sm:$0xff] }
 0x7bf   :  { %v4060_v57 = vpop.f32.mrf.mxu2 }
 0x7c0   :  { %17181 = vst [vmem:[#allocation74_spill] sm:$0xff] %v13738_v41  ;;  %v4328_v33 = vadd.f32 %v4060_v57, %v3898_v52  ;;  %v4221_v49 = vpop.f32.mrf.mxu3  ;;  %v13757_v19 = vpop.f32.mrf.mxu0  ;;  %v17185_v52 = vld [vmem:[#allocation159_spill] sm:$0xff]  ;;  %v3482_v41 = vadd.f32 %v12286_v35, %v2894_v2 }
 0x7c1   :  { %17182 = vst [vmem:[#allocation75_spill] sm:$0xff] %v13764_v4  ;;  %v4329_v9 = vadd.f32 %v4221_v49, %v3899_v31  ;;  %v3794_v13 = vpop.f32.mrf.mxu1  ;;  %v17186_v57 = vld [vmem:[#allocation315_spill] sm:$0xff]  ;;  %v17188_v49 = vld [vmem:[#allocation154_spill] sm:$0xff] }
 0x7c2   :  { %v3055_v40 = vadd.f32 %v17186_v57, %v17185_v52  ;;  %v17190_v25 = vmax.f32 %v17188_v49, %v17189_v53  ;;  %v3900_v35 = vadd.f32 %v13576_v38, %v3482_v41  ;;  %v4701_v38 = vld [vmem:[%s15985_s3 + $0x358] sm:$0xff]  ;;  %v13808_v41 = vmax.f32 %v4521_v50, 0.0 }
 0x7c3   :  { %v4435_v36 = vmax.f32 %v4328_v33, %v4329_v9  ;;  %4800 = vmatmul.f32.gmra.mxu0 %v13764_v4  ;;  %v4509_v33 = vadd.f32 %v13340_v3, %v12875_v47  ;;  %5251 = vmatpush.msrb.mxu3 %v4701_v38  ;;  %v17194_v49 = vld [vmem:[#allocation305_spill] sm:$0xff] }
 0x7c4   :  { %4853 = vmatmul.f32.gmra.mxu1 %v13578_v48  ;;  %4918 = vmatmul.f32.gmra.mxu2 %v13768_v17  ;;  %v3483_v31 = vadd.f32 %v17187_v55, %v3055_v40  ;;  %v13791_v40 = vld [vmem:[%s15985_s3 + $0x260] sm:$0xff]  ;;  %17192 = vst [vmem:[#allocation181_spill] sm:$0xff] %v13808_v41  ;;  %v13813_v55 = vld [vmem:[%s15985_s3 + $0x250] sm:$0xff] }
 0x7c5   :  { %v13782_v51 = vmax.f32 %v17190_v25, %v4435_v36  ;;  %4983 = vmatmul.f32.gmra.mxu3 %v13768_v17  ;;  %v4700_v36 = vld [vmem:[%s15985_s3 + $0x350] sm:$0xff]  ;;  %5023 = vmatpush.msra.mxu0 %v13791_v40  ;;  %v13817_v25 = vmax.f32 %v4509_v33, 0.0 }
 0x7c6   :  { %v3901_v9 = vadd.f32 %v3794_v13, %v3483_v31  ;;  %5186 = vmatpush.msrb.mxu2 %v4700_v36  ;;  %v17193_v31 = vld [vmem:[#allocation160_spill] sm:$0xff]  ;;  %v17198_v36 = vld [vmem:[#allocation319_spill] sm:$0xff] }
 0x7c7   :  { %17191 = vst [vmem:[#allocation83_spill] sm:$0xff] %v13782_v51  ;;  %v4063_v32 = vpop.f32.mrf.mxu2  ;;  %v2897_v53 = vadd.f32 %v17194_v49, %v17193_v31  ;;  %5024 = vmatpush.msra.mxu0 %v13813_v55  ;;  %v17199_v33 = vld [vmem:[#allocation320_spill] sm:$0xff]  ;;  %v4526_v31 = vadd.f32 %v13340_v3, %v13420_v11  ;;  %v17200_v49 = vld [vmem:[#allocation53_spill] sm:$0xff] }
 0x7c8   :  { %v4330_v2 = vadd.f32 %v4063_v32, %v3900_v35  ;;  %v4224_v47 = vpop.f32.mrf.mxu3  ;;  %v13801_v52 = vpop.f32.mrf.mxu0  ;;  %v17195_v35 = vld [vmem:[#allocation161_spill] sm:$0xff]  ;;  %v17196_v32 = vld [vmem:[#allocation318_spill] sm:$0xff] }
 0x7c9   :  { %v4331_v13 = vadd.f32 %v4224_v47, %v3901_v9  ;;  %v3797_v57 = vpop.f32.mrf.mxu1  ;;  %v3058_v50 = vadd.f32 %v17196_v32, %v17195_v35  ;;  %v13826_v9 = vld [vmem:[%s15985_s3 + $0x240] sm:$0xff]  ;;  %v3484_v47 = vadd.f32 %v17198_v36, %v2897_v53  ;;  %v13844_v53 = vld [vmem:[%s15985_s3 + $0x230] sm:$0xff]  ;;  %v4514_v32 = vadd.f32 %v13340_v3, %v13033_v58 }
 0x7ca   :  { %17197 = vst [vmem:[#allocation84_spill] sm:$0xff] %v13826_v9  ;;  %5025 = vmatpush.msra.mxu0 %v13826_v9 }
 0x7cb   :  { %v4436_v51 = vmax.f32 %v4330_v2, %v4331_v13  ;;  %4803 = vmatmul.f32.gmra.mxu0 %v13808_v41  ;;  %v3485_v38 = vadd.f32 %v17199_v33, %v3058_v50  ;;  %v17201_v2 = vld [vmem:[#allocation54_spill] sm:$0xff]  ;;  %17204 = vst [vmem:[#allocation192_spill] sm:$0xff] %v13844_v53  ;;  %v3902_v50 = vadd.f32 %v13616_v60, %v3484_v47  ;;  %v13869_v47 = vmax.f32 %v4526_v31, 0.0 }
 0x7cc   :  { %4856 = vmatmul.f32.gmra.mxu1 %v13618_v44  ;;  %4921 = vmatmul.f32.gmra.mxu2 %v13817_v25  ;;  %v17202_v13 = vmax.f32 %v17200_v49, %v17201_v2  ;;  %v4698_v33 = vld [vmem:[%s15985_s3 + $0x340] sm:$0xff]  ;;  %v4699_v49 = vld [vmem:[%s15985_s3 + $0x348] sm:$0xff]  ;;  %v13874_v27 = vmax.f32 %v4514_v32, 0.0  ;;  %v17215_v32 = vld [vmem:[#allocation324_spill] sm:$0xff] }
 0x7cd   :  { %4986 = vmatmul.f32.gmra.mxu3 %v13817_v25  ;;  %v3903_v11 = vadd.f32 %v3797_v57, %v3485_v38  ;;  %5026 = vmatpush.msra.mxu0 %v13844_v53  ;;  %v13867_v57 = vld [vmem:[%s15985_s3 + $0x220] sm:$0xff]  ;;  %17207 = vst [vmem:[#allocation78_spill] sm:$0xff] %v13869_v47 }
 0x7ce   :  { %v13837_v35 = vmax.f32 %v17202_v13, %v4436_v51  ;;  %v13852_v51 = vld [vmem:[%s15985_s3 + $0x258] sm:$0xff]  ;;  %5187 = vmatpush.msrb.mxu2 %v4698_v33  ;;  %17206 = vst [vmem:[#allocation193_spill] sm:$0xff] %v13867_v57  ;;  %5252 = vmatpush.msrb.mxu3 %v4699_v49  ;;  %v13879_v33 = vld [vmem:[%s15985_s3 + $0x210] sm:$0xff] }
 0x7cf   :  { %v4066_v36 = vpop.f32.mrf.mxu2  ;;  %17205 = vst [vmem:[#allocation210_spill] sm:$0xff] %v13852_v51  ;;  %5089 = vmatpush.msrb.mxu1 %v13852_v51  ;;  %5027 = vmatpush.msra.mxu0 %v13867_v57 }
 0x7d0   :  { %17203 = vst [vmem:[#allocation191_spill] sm:$0xff] %v13837_v35  ;;  %v4332_v58 = vadd.f32 %v4066_v36, %v3902_v50  ;;  %v4227_v2 = vpop.f32.mrf.mxu3  ;;  %v13861_v60 = vpop.f32.mrf.mxu0  ;;  %v17208_v35 = vld [vmem:[#allocation162_spill] sm:$0xff]  ;;  %v17209_v50 = vld [vmem:[#allocation308_spill] sm:$0xff] }
 0x7d1   :  { %v4333_v38 = vadd.f32 %v4227_v2, %v3903_v11  ;;  %v3800_v13 = vpop.f32.mrf.mxu1  ;;  %v2900_v36 = vadd.f32 %v17209_v50, %v17208_v35  ;;  %17210 = vst [vmem:[#allocation79_spill] sm:$0xff] %v13879_v33  ;;  %v17213_v11 = vld [vmem:[#allocation323_spill] sm:$0xff]  ;;  %v13890_v35 = vld [vmem:[%s15985_s3 + $0x200] sm:$0xff]  ;;  %v3487_v2 = vadd.f32 %v17215_v32, %v3061_v39  ;;  %v4527_v50 = vadd.f32 %v13340_v3, %v13458_v20  ;;  %v4696_v39 = vld [vmem:[%s15985_s3 + $0x330] sm:$0xff] }
 0x7d2   :  { %17214 = vst [vmem:[#allocation86_spill] sm:$0xff] %v13890_v35  ;;  %5028 = vmatpush.msra.mxu0 %v13879_v33  ;;  %v13908_v20 = vld [vmem:[%s15985_s3 + $0x248] sm:$0xff]  ;;  %5188 = vmatpush.msrb.mxu2 %v4696_v39  ;;  %v17224_v33 = vld [vmem:[#allocation326_spill] sm:$0xff]  ;;  %v4528_v39 = vadd.f32 %v13340_v3, %v13496_v15 }
 0x7d3   :  { %v4437_v31 = vmax.f32 %v4332_v58, %v4333_v38  ;;  %4806 = vmatmul.f32.gmra.mxu0 %v13869_v47  ;;  %v3486_v49 = vadd.f32 %v17213_v11, %v2900_v36  ;;  %v17218_v58 = vmax.f32 %v17216_v5, %v17217_v18  ;;  %v4515_v36 = vadd.f32 %v13340_v3, %v13067_v0  ;;  %v17221_v5 = vld [vmem:[#allocation164_spill] sm:$0xff]  ;;  %v4695_v15 = vld [vmem:[%s15985_s3 + $0x328] sm:$0xff] }
 0x7d4   :  { %4859 = vmatmul.f32.gmra.mxu1 %v13658_v42  ;;  %4924 = vmatmul.f32.gmra.mxu2 %v13874_v27  ;;  %v3905_v57 = vadd.f32 %v3800_v13, %v3487_v2  ;;  %v13920_v13 = vmax.f32 %v4527_v50, 0.0  ;;  %v17222_v18 = vld [vmem:[#allocation312_spill] sm:$0xff] }
 0x7d5   :  { %v13898_v38 = vmax.f32 %v17218_v58, %v4437_v31  ;;  %4989 = vmatmul.f32.gmra.mxu3 %v13874_v27  ;;  %v3904_v11 = vadd.f32 %v13656_v61, %v3486_v49  ;;  %5029 = vmatpush.msra.mxu0 %v13890_v35  ;;  %v4697_v31 = vld [vmem:[%s15985_s3 + $0x338] sm:$0xff]  ;;  %v2903_v58 = vadd.f32 %v17222_v18, %v17221_v5 }
 0x7d6   :  { %5090 = vmatpush.msrb.mxu1 %v13908_v20  ;;  %17220 = vst [vmem:[#allocation21_spill] sm:$0xff] %v13920_v13  ;;  %5253 = vmatpush.msrb.mxu3 %v4697_v31  ;;  %v17223_v35 = vld [vmem:[#allocation165_spill] sm:$0xff]  ;;  %v17227_v31 = vld [vmem:[#allocation58_spill] sm:$0xff] }
 0x7d7   :  { %17219 = vst [vmem:[#allocation182_spill] sm:$0xff] %v13898_v38  ;;  %v4069_v53 = vpop.f32.mrf.mxu2  ;;  %v13924_v38 = vmax.f32 %v4515_v36, 0.0  ;;  %v3064_v51 = vadd.f32 %v17224_v33, %v17223_v35  ;;  %v17228_v36 = vld [vmem:[#allocation60_spill] sm:$0xff]  ;;  %v13944_v33 = vld [vmem:[%s15985_s3 + $0x238] sm:$0xff]  ;;  %v4694_v35 = vld [vmem:[%s15985_s3 + $0x320] sm:$0xff] }
 0x7d8   :  { %v4334_v0 = vadd.f32 %v4069_v53, %v3904_v11  ;;  %v4230_v32 = vpop.f32.mrf.mxu3  ;;  %v13917_v61 = vpop.f32.mrf.mxu0  ;;  %v17225_v11 = vld [vmem:[#allocation327_spill] sm:$0xff]  ;;  %17231 = vst [vmem:[#allocation196_spill] sm:$0xff] %v13944_v33  ;;  %5091 = vmatpush.msrb.mxu1 %v13944_v33  ;;  %5189 = vmatpush.msrb.mxu2 %v4694_v35 }
 0x7d9   :  { %v4335_v49 = vadd.f32 %v4230_v32, %v3905_v57  ;;  %v3803_v2 = vpop.f32.mrf.mxu1  ;;  %v3488_v9 = vadd.f32 %v17225_v11, %v2903_v58  ;;  %v17226_v57 = vld [vmem:[#allocation328_spill] sm:$0xff]  ;;  %v17229_v32 = vmax.f32 %v17227_v31, %v17228_v36  ;;  %5254 = vmatpush.msrb.mxu3 %v4695_v15 }
 0x7da   :  { %v3489_v50 = vadd.f32 %v17226_v57, %v3064_v51  ;;  %v4516_v51 = vadd.f32 %v13340_v3, %v13095_v34  ;;  %v13958_v57 = vmax.f32 %v4528_v39, 0.0  ;;  %v17238_v39 = vld [vmem:[#allocation332_spill] sm:$0xff] }
 0x7db   :  { %v4438_v53 = vmax.f32 %v4334_v0, %v4335_v49  ;;  %4809 = vmatmul.f32.gmra.mxu0 %v13920_v13  ;;  %v3906_v0 = vadd.f32 %v13700_v22, %v3488_v9  ;;  %v17235_v22 = vld [vmem:[#allocation167_spill] sm:$0xff]  ;;  %v17236_v9 = vld [vmem:[#allocation330_spill] sm:$0xff] }
 0x7dc   :  { %4862 = vmatmul.f32.gmra.mxu1 %v13702_v6  ;;  %4927 = vmatmul.f32.gmra.mxu2 %v13924_v38  ;;  %v3907_v49 = vadd.f32 %v3803_v2, %v3489_v50  ;;  %17232 = vst [vmem:[#allocation215_spill] sm:$0xff] %v13958_v57  ;;  %v13962_v34 = vmax.f32 %v4516_v51, 0.0  ;;  %v3067_v33 = vadd.f32 %v17236_v9, %v17235_v22  ;;  %v17237_v2 = vld [vmem:[#allocation331_spill] sm:$0xff]  ;;  %v17240_v51 = vld [vmem:[#allocation62_spill] sm:$0xff] }
 0x7dd   :  { %v13938_v5 = vmax.f32 %v17229_v32, %v4438_v53  ;;  %4992 = vmatmul.f32.gmra.mxu3 %v13924_v38  ;;  %v17233_v32 = vld [vmem:[#allocation166_spill] sm:$0xff] }
 0x7de   :  { %v3491_v15 = vadd.f32 %v17238_v39, %v3067_v33  ;;  %v4517_v33 = vadd.f32 %v13340_v3, %v13129_v10 }
 0x7df   :  { %17230 = vst [vmem:[#allocation195_spill] sm:$0xff] %v13938_v5  ;;  %v4072_v18 = vpop.f32.mrf.mxu2  ;;  %v17234_v5 = vld [vmem:[#allocation314_spill] sm:$0xff] }
 0x7e0   :  { %v4336_v58 = vadd.f32 %v4072_v18, %v3906_v0  ;;  %v4233_v53 = vpop.f32.mrf.mxu3  ;;  %v13956_v11 = vpop.f32.mrf.mxu0  ;;  %v2906_v6 = vadd.f32 %v17234_v5, %v17233_v32  ;;  %v4529_v0 = vadd.f32 %v13340_v3, %v13531_v45  ;;  %v17239_v5 = vld [vmem:[#allocation61_spill] sm:$0xff]  ;;  %v14000_v10 = vmax.f32 %v4517_v33, 0.0 }
 0x7e1   :  { %v4337_v31 = vadd.f32 %v4233_v53, %v3907_v49  ;;  %v3806_v36 = vpop.f32.mrf.mxu1  ;;  %v17241_v49 = vmax.f32 %v17239_v5, %v17240_v51  ;;  %v4693_v45 = vld [vmem:[%s15985_s3 + $0x318] sm:$0xff]  ;;  %v17244_v51 = vld [vmem:[#allocation168_spill] sm:$0xff] }
 0x7e2   :  { %v3490_v50 = vadd.f32 %v17237_v2, %v2906_v6  ;;  %v13982_v6 = vld [vmem:[%s15985_s3 + $0x228] sm:$0xff]  ;;  %5255 = vmatpush.msrb.mxu3 %v4693_v45  ;;  %v13996_v2 = vmax.f32 %v4529_v0, 0.0  ;;  %v17249_v0 = vld [vmem:[#allocation336_spill] sm:$0xff]  ;;  %v14018_v33 = vld [vmem:[%s15985_s3 + $0x218] sm:$0xff] }
 0x7e3   :  { %v4439_v35 = vmax.f32 %v4336_v58, %v4337_v31  ;;  %4812 = vmatmul.f32.gmra.mxu0 %v13958_v57  ;;  %v4692_v58 = vld [vmem:[%s15985_s3 + $0x310] sm:$0xff]  ;;  %5092 = vmatpush.msrb.mxu1 %v13982_v6  ;;  %v3909_v31 = vadd.f32 %v3806_v36, %v3491_v15  ;;  %v17248_v36 = vld [vmem:[#allocation335_spill] sm:$0xff] }
 0x7e4   :  { %4865 = vmatmul.f32.gmra.mxu1 %v13764_v4  ;;  %4930 = vmatmul.f32.gmra.mxu2 %v13962_v34  ;;  %v3908_v53 = vadd.f32 %v13757_v19, %v3490_v50  ;;  %17243 = vst [vmem:[#allocation82_spill] sm:$0xff] %v13996_v2  ;;  %v17246_v19 = vld [vmem:[#allocation169_spill] sm:$0xff]  ;;  %v17247_v50 = vld [vmem:[#allocation334_spill] sm:$0xff] }
 0x7e5   :  { %v13976_v18 = vmax.f32 %v17241_v49, %v4439_v35  ;;  %4995 = vmatmul.f32.gmra.mxu3 %v13962_v34  ;;  %5190 = vmatpush.msrb.mxu2 %v4692_v58  ;;  %v17245_v49 = vld [vmem:[#allocation317_spill] sm:$0xff]  ;;  %v3070_v4 = vadd.f32 %v17247_v50, %v17246_v19  ;;  %v7941_v19 = vld [vmem:[%s15985_s3 + $0x1f0] sm:$0xff] }
 0x7e6   :  { %5093 = vmatpush.msrb.mxu1 %v14018_v33 }
 0x7e7   :  { %17242 = vst [vmem:[#allocation197_spill] sm:$0xff] %v13976_v18  ;;  %v4075_v32 = vpop.f32.mrf.mxu2  ;;  %v2909_v18 = vadd.f32 %v17245_v49, %v17244_v51  ;;  %v3493_v45 = vadd.f32 %v17249_v0, %v3070_v4  ;;  %v4691_v4 = vld [vmem:[%s15985_s3 + $0x308] sm:$0xff]  ;;  %v17254_v0 = vld [vmem:[#allocation170_spill] sm:$0xff] }
 0x7e8   :  { %v4338_v22 = vadd.f32 %v4075_v32, %v3908_v53  ;;  %v4236_v9 = vpop.f32.mrf.mxu3  ;;  %v13994_v35 = vpop.f32.mrf.mxu0  ;;  %v17250_v53 = vld [vmem:[#allocation63_spill] sm:$0xff]  ;;  %5256 = vmatpush.msrb.mxu3 %v4691_v4  ;;  %v17257_v4 = vld [vmem:[#allocation337_spill] sm:$0xff] }
 0x7e9   :  { %v4339_v39 = vadd.f32 %v4236_v9, %v3909_v31  ;;  %v3809_v5 = vpop.f32.mrf.mxu1  ;;  %v3492_v15 = vadd.f32 %v17248_v36, %v2909_v18  ;;  %v17251_v31 = vld [vmem:[#allocation80_spill] sm:$0xff]  ;;  %v4690_v18 = vld [vmem:[%s15985_s3 + $0x300] sm:$0xff] }
 0x7ea   :  { %v17252_v32 = vmax.f32 %v17250_v53, %v17251_v31  ;;  %5191 = vmatpush.msrb.mxu2 %v4690_v18  ;;  %v3911_v51 = vadd.f32 %v3809_v5, %v3493_v45  ;;  %v7943_v5 = vld [vmem:[%s15985_s3 + $0x1e0] sm:$0xff]  ;;  %v17255_v45 = vld [vmem:[#allocation321_spill] sm:$0xff]  ;;  %v17256_v18 = vld [vmem:[#allocation171_spill] sm:$0xff] }
 0x7eb   :  { %v4440_v58 = vmax.f32 %v4338_v22, %v4339_v39  ;;  %4815 = vmatmul.f32.gmra.mxu0 %v13996_v2  ;;  %v4522_v22 = vadd.f32 %v13340_v3, %v13290_v59  ;;  %v3910_v39 = vadd.f32 %v13801_v52, %v3492_v15  ;;  %v7942_v59 = vld [vmem:[%s15985_s3 + $0x1f8] sm:$0xff]  ;;  %v2912_v53 = vadd.f32 %v17255_v45, %v17254_v0 }
 0x7ec   :  { %4868 = vmatmul.f32.gmra.mxu1 %v13808_v41  ;;  %4933 = vmatmul.f32.gmra.mxu2 %v14000_v10 }
 0x7ed   :  { %v14012_v9 = vmax.f32 %v17252_v32, %v4440_v58  ;;  %4998 = vmatmul.f32.gmra.mxu3 %v14000_v10  ;;  %5500 = vmatpush.msra.mxu2 %v7941_v19  ;;  %v14043_v31 = vmax.f32 %v4522_v22, 0.0  ;;  %v7944_v32 = vld [vmem:[%s15985_s3 + $0x1e8] sm:$0xff]  ;;  %v7945_v22 = vld [vmem:[%s15985_s3 + $0x1d0] sm:$0xff]  ;;  %v17258_v19 = vld [vmem:[#allocation338_spill] sm:$0xff] }
 0x7ee   :  { %5565 = vmatpush.msra.mxu3 %v7942_v59  ;;  %v17259_v59 = vld [vmem:[#allocation339_spill] sm:$0xff] }
 0x7ef   :  { %17253 = vst [vmem:[#allocation3_spill] sm:$0xff] %v14012_v9  ;;  %v4078_v49 = vpop.f32.mrf.mxu2  ;;  %5501 = vmatpush.msra.mxu2 %v7943_v5  ;;  %v17261_v5 = vld [vmem:[#allocation65_spill] sm:$0xff] }
 0x7f0   :  { %v4340_v50 = vadd.f32 %v4078_v49, %v3910_v39  ;;  %v4239_v58 = vpop.f32.mrf.mxu3  ;;  %v14033_v36 = vpop.f32.mrf.mxu0  ;;  %5566 = vmatpush.msra.mxu3 %v7944_v32  ;;  %v3073_v39 = vadd.f32 %v17257_v4, %v17256_v18  ;;  %v14054_v49 = vld [vmem:[%s15985_s3 + $0x208] sm:$0xff]  ;;  %v4523_v32 = vadd.f32 %v13340_v3, %v13324_v28  ;;  %v7946_v18 = vld [vmem:[%s15985_s3 + $0x1d8] sm:$0xff]  ;;  %v7947_v4 = vld [vmem:[%s15985_s3 + $0x1c0] sm:$0xff] }
 0x7f1   :  { %v4341_v52 = vadd.f32 %v4239_v58, %v3911_v51  ;;  %v3812_v15 = vpop.f32.mrf.mxu1  ;;  %5502 = vmatpush.msra.mxu2 %v7945_v22  ;;  %v3494_v58 = vadd.f32 %v17258_v19, %v2912_v53  ;;  %5094 = vmatpush.msrb.mxu1 %v14054_v49  ;;  %v7948_v28 = vld [vmem:[%s15985_s3 + $0x1c8] sm:$0xff]  ;;  %v7949_v3 = vld [vmem:[%s15985_s3 + $0x1b0] sm:$0xff] }
 0x7f2   :  { %5567 = vmatpush.msra.mxu3 %v7946_v18  ;;  %v17267_v18 = vld [vmem:[#allocation173_spill] sm:$0xff] }
 0x7f3   :  { %v4441_v51 = vmax.f32 %v4340_v50, %v4341_v52  ;;  %5030 = vmatmul.f32.vlgmr.msra.gmra.mxu0 %v13675_v8  ;;  %v3495_v50 = vadd.f32 %v17259_v59, %v3073_v39  ;;  %v17260_v52 = vld [vmem:[#allocation64_spill] sm:$0xff]  ;;  %v3912_v53 = vadd.f32 %v13861_v60, %v3494_v58  ;;  %5503 = vmatpush.msra.mxu2 %v7947_v4 }
 0x7f4   :  { %4871 = vmatmul.f32.gmra.mxu1 %v13869_v47  ;;  %4936 = vmatmul.f32.gmra.mxu2 %v14043_v31  ;;  %v17262_v0 = vmax.f32 %v17260_v52, %v17261_v5  ;;  %v17265_v52 = vld [vmem:[#allocation172_spill] sm:$0xff]  ;;  %v17266_v5 = vld [vmem:[#allocation325_spill] sm:$0xff] }
 0x7f5   :  { %5001 = vmatmul.f32.gmra.mxu3 %v14043_v31  ;;  %v3913_v39 = vadd.f32 %v3812_v15, %v3495_v50  ;;  %5504 = vmatpush.msra.mxu2 %v7949_v3  ;;  %v14090_v15 = vld [vmem:[%s15985_s3 + $0x4f0] sm:$0xff]  ;;  %v14095_v50 = vld [vmem:[%s15985_s3 + $0x4f8] sm:$0xff] }
 0x7f6   :  { %v14066_v45 = vmax.f32 %v17262_v0, %v4441_v51  ;;  %5568 = vmatpush.msra.mxu3 %v7948_v28  ;;  %17264 = vst [vmem:[#allocation183_spill] sm:$0xff] %v14095_v50  ;;  %v2915_v0 = vadd.f32 %v17266_v5, %v17265_v52  ;;  %5338 = vmatpush.msrb.mxu0 %v14090_v15  ;;  %v17268_v4 = vld [vmem:[#allocation340_spill] sm:$0xff]  ;;  %v17269_v28 = vld [vmem:[#allocation341_spill] sm:$0xff]  ;;  %v17271_v5 = vld [vmem:[#allocation66_spill] sm:$0xff] }
 0x7f7   :  { %v4081_v51 = vpop.f32.mrf.mxu2  ;;  %5403 = vmatpush.msra.mxu1 %v14095_v50 }
 0x7f8   :  { %17263 = vst [vmem:[#allocation24_spill] sm:$0xff] %v14066_v45  ;;  %v4342_v22 = vadd.f32 %v4081_v51, %v3912_v53  ;;  %v4242_v19 = vpop.f32.mrf.mxu3  ;;  %v14079_v59 = vpop.f32.mrf.mxu0  ;;  %v14099_v53 = vmax.f32 %v4523_v32, 0.0  ;;  %v3496_v3 = vadd.f32 %v17269_v28, %v2915_v0  ;;  %v17270_v32 = vld [vmem:[#allocation342_spill] sm:$0xff]  ;;  %v17272_v45 = vld [vmem:[#allocation67_spill] sm:$0xff] }
 0x7f9   :  { %v4343_v60 = vadd.f32 %v4242_v19, %v3913_v39  ;;  %v3815_v58 = vpop.f32.mrf.mxu1  ;;  %v3076_v39 = vadd.f32 %v17268_v4, %v17267_v18  ;;  %v7950_v19 = vld [vmem:[%s15985_s3 + $0x1b8] sm:$0xff]  ;;  %v17273_v9 = vmax.f32 %v17271_v5, %v17272_v45  ;;  %v7956_v5 = vld [vmem:[%s15985_s3 + $0x180] sm:$0xff] }
 0x7fa   :  { %5569 = vmatpush.msra.mxu3 %v7950_v19  ;;  %v3914_v4 = vadd.f32 %v13917_v61, %v3496_v3 }
 0x7fb   :  { %v4442_v51 = vmax.f32 %v4342_v22, %v4343_v60  ;;  %5033 = vmatmul.f32.gmra.mxu0 %v13719_v12  ;;  %v3497_v52 = vadd.f32 %v17270_v32, %v3076_v39  ;;  %v7951_v22 = vld [vmem:[%s15985_s3 + $0x1a0] sm:$0xff] }
 0x7fc   :  { %4874 = vmatmul.f32.gmra.mxu1 %v13920_v13  ;;  %4939 = vmatmul.f32.gmra.mxu2 %v14099_v53  ;;  %v14125_v60 = vld [vmem:[%s15986_s2] ss:$0 sm:$0xff] }
 0x7fd   :  { %v14116_v18 = vmax.f32 %v17273_v9, %v4442_v51  ;;  %5004 = vmatmul.f32.gmra.mxu3 %v14099_v53  ;;  %5505 = vmatpush.msra.mxu2 %v7951_v22  ;;  %v4524_v0 = vadd.f32 %v14125_v60, %v13362_v30  ;;  %v7953_v9 = vld [vmem:[%s15985_s3 + $0x1a8] sm:$0xff]  ;;  %v3915_v45 = vadd.f32 %v3815_v58, %v3497_v52  ;;  %v7954_v51 = vld [vmem:[%s15985_s3 + $0x190] sm:$0xff]  ;;  %v7955_v30 = vld [vmem:[%s15985_s3 + $0x198] sm:$0xff] }
 0x7fe   :  { %5570 = vmatpush.msra.mxu3 %v7953_v9  ;;  %v14144_v58 = vld [vmem:[%s15985_s3 + $0x4e0] sm:$0xff]  ;;  %v14149_v52 = vld [vmem:[%s15985_s3 + $0x4e8] sm:$0xff] }
 0x7ff   :  { %17274 = vst [vmem:[#allocation87_spill] sm:$0xff] %v14116_v18  ;;  %v4084_v39 = vpop.f32.mrf.mxu2  ;;  %5506 = vmatpush.msra.mxu2 %v7954_v51  ;;  %v17277_v22 = vld [vmem:[#allocation174_spill] sm:$0xff]  ;;  %5339 = vmatpush.msrb.mxu0 %v14144_v58  ;;  %v17280_v51 = vld [vmem:[#allocation343_spill] sm:$0xff] }
 0x800   :  { %v4344_v19 = vadd.f32 %v4084_v39, %v3914_v4  ;;  %v4245_v28 = vpop.f32.mrf.mxu3  ;;  %v14136_v32 = vpop.f32.mrf.mxu0  ;;  %5571 = vmatpush.msra.mxu3 %v7955_v30  ;;  %17275 = vst [vmem:[#allocation199_spill] sm:$0xff] %v14144_v58  ;;  %v17278_v4 = vld [vmem:[#allocation329_spill] sm:$0xff]  ;;  %5404 = vmatpush.msra.mxu1 %v14149_v52  ;;  %v17279_v39 = vld [vmem:[#allocation175_spill] sm:$0xff] }
 0x801   :  { %v4345_v61 = vadd.f32 %v4245_v28, %v3915_v45  ;;  %v3818_v3 = vpop.f32.mrf.mxu1  ;;  %17276 = vst [vmem:[#allocation201_spill] sm:$0xff] %v14149_v52  ;;  %5507 = vmatpush.msra.mxu2 %v7956_v5  ;;  %v2918_v9 = vadd.f32 %v17278_v4, %v17277_v22  ;;  %v14156_v45 = vmax.f32 %v4524_v0, 0.0  ;;  %v3079_v28 = vadd.f32 %v17280_v51, %v17279_v39  ;;  %v7957_v18 = vld [vmem:[%s15985_s3 + $0x188] sm:$0xff]  ;;  %v17281_v5 = vld [vmem:[#allocation344_spill] sm:$0xff]  ;;  %v17282_v0 = vld [vmem:[#allocation345_spill] sm:$0xff] }
 0x802   :  { %5572 = vmatpush.msra.mxu3 %v7957_v18  ;;  %v17283_v4 = vld [vmem:[#allocation68_spill] sm:$0xff]  ;;  %v17284_v52 = vld [vmem:[#allocation69_spill] sm:$0xff]  ;;  %v4525_v18 = vadd.f32 %v14125_v60, %v13388_v23  ;;  %v7960_v51 = vld [vmem:[%s15985_s3 + $0x160] sm:$0xff] }
 0x803   :  { %v4443_v30 = vmax.f32 %v4344_v19, %v4345_v61  ;;  %5036 = vmatmul.f32.gmra.mxu0 %v13768_v17  ;;  %v3498_v50 = vadd.f32 %v17281_v5, %v2918_v9  ;;  %v3499_v22 = vadd.f32 %v17282_v0, %v3079_v28  ;;  %v17285_v58 = vmax.f32 %v17283_v4, %v17284_v52  ;;  %v7958_v19 = vld [vmem:[%s15985_s3 + $0x170] sm:$0xff]  ;;  %v7959_v9 = vld [vmem:[%s15985_s3 + $0x178] sm:$0xff]  ;;  %v7961_v23 = vld [vmem:[%s15985_s3 + $0x168] sm:$0xff] }
 0x804   :  { %4877 = vmatmul.f32.gmra.mxu1 %v13958_v57  ;;  %4942 = vmatmul.f32.gmra.mxu2 %v14156_v45  ;;  %v14201_v0 = vld [vmem:[%s15985_s3 + $0x4d8] sm:$0xff]  ;;  %v17289_v4 = vld [vmem:[#allocation178_spill] sm:$0xff] }
 0x805   :  { %v14173_v39 = vmax.f32 %v17285_v58, %v4443_v30  ;;  %5007 = vmatmul.f32.gmra.mxu3 %v14156_v45  ;;  %5508 = vmatpush.msra.mxu2 %v7958_v19  ;;  %v3916_v61 = vadd.f32 %v13956_v11, %v3498_v50  ;;  %v3917_v52 = vadd.f32 %v3818_v3, %v3499_v22  ;;  %v14196_v3 = vld [vmem:[%s15985_s3 + $0x4d0] sm:$0xff]  ;;  %v17290_v19 = vld [vmem:[#allocation333_spill] sm:$0xff] }
 0x806   :  { %5573 = vmatpush.msra.mxu3 %v7959_v9  ;;  %17287 = vst [vmem:[#allocation4_spill] sm:$0xff] %v14196_v3  ;;  %v7962_v22 = vld [vmem:[%s15985_s3 + $0x150] sm:$0xff]  ;;  %v14208_v9 = vmax.f32 %v4525_v18, 0.0  ;;  %5340 = vmatpush.msrb.mxu0 %v14196_v3 }
 0x807   :  { %17286 = vst [vmem:[#allocation202_spill] sm:$0xff] %v14173_v39  ;;  %v4087_v58 = vpop.f32.mrf.mxu2  ;;  %5509 = vmatpush.msra.mxu2 %v7960_v51  ;;  %5405 = vmatpush.msra.mxu1 %v14201_v0  ;;  %v17294_v18 = vld [vmem:[#allocation348_spill] sm:$0xff] }
 0x808   :  { %v4346_v28 = vadd.f32 %v4087_v58, %v3916_v61  ;;  %v4248_v30 = vpop.f32.mrf.mxu3  ;;  %v14188_v5 = vpop.f32.mrf.mxu0  ;;  %5574 = vmatpush.msra.mxu3 %v7961_v23  ;;  %17288 = vst [vmem:[#allocation85_spill] sm:$0xff] %v14201_v0  ;;  %v2921_v61 = vadd.f32 %v17290_v19, %v17289_v4  ;;  %v17292_v58 = vld [vmem:[#allocation346_spill] sm:$0xff]  ;;  %v7963_v23 = vld [vmem:[%s15985_s3 + $0x158] sm:$0xff]  ;;  %v17296_v0 = vld [vmem:[#allocation71_spill] sm:$0xff] }
 0x809   :  { %v4347_v11 = vadd.f32 %v4248_v30, %v3917_v52  ;;  %v3821_v50 = vpop.f32.mrf.mxu1  ;;  %5510 = vmatpush.msra.mxu2 %v7962_v22  ;;  %v17291_v52 = vld [vmem:[#allocation179_spill] sm:$0xff]  ;;  %v17295_v19 = vld [vmem:[#allocation70_spill] sm:$0xff] }
 0x80a   :  { %v3082_v51 = vadd.f32 %v17292_v58, %v17291_v52  ;;  %5575 = vmatpush.msra.mxu3 %v7963_v23  ;;  %v17293_v22 = vld [vmem:[#allocation347_spill] sm:$0xff]  ;;  %v17297_v3 = vmax.f32 %v17295_v19, %v17296_v0 }
 0x80b   :  { %v4444_v30 = vmax.f32 %v4346_v28, %v4347_v11  ;;  %5039 = vmatmul.f32.gmra.mxu0 %v13817_v25  ;;  %v3500_v39 = vadd.f32 %v17293_v22, %v2921_v61  ;;  %v7964_v28 = vld [vmem:[%s15985_s3 + $0x140] sm:$0xff]  ;;  %v7965_v61 = vld [vmem:[%s15985_s3 + $0x148] sm:$0xff] }
 0x80c   :  { %4880 = vmatmul.f32.gmra.mxu1 %v13996_v2  ;;  %4945 = vmatmul.f32.gmra.mxu2 %v14208_v9  ;;  %v3501_v4 = vadd.f32 %v17294_v18, %v3082_v51  ;;  %v14251_v18 = vld [vmem:[%s15985_s3 + $0x4c8] sm:$0xff] }
 0x80d   :  { %v14225_v52 = vmax.f32 %v17297_v3, %v4444_v30  ;;  %5010 = vmatmul.f32.gmra.mxu3 %v14208_v9  ;;  %5511 = vmatpush.msra.mxu2 %v7964_v28  ;;  %v3918_v11 = vadd.f32 %v13994_v35, %v3500_v39  ;;  %v7966_v3 = vld [vmem:[%s15985_s3 + $0x130] sm:$0xff]  ;;  %v7967_v35 = vld [vmem:[%s15985_s3 + $0x138] sm:$0xff]  ;;  %v7969_v28 = vld [vmem:[%s15985_s3 + $0x128] sm:$0xff] }
 0x80e   :  { %5576 = vmatpush.msra.mxu3 %v7965_v61  ;;  %v3919_v58 = vadd.f32 %v3821_v50, %v3501_v4  ;;  %v14246_v50 = vld [vmem:[%s15985_s3 + $0x4c0] sm:$0xff]  ;;  %5406 = vmatpush.msra.mxu1 %v14251_v18  ;;  %v17300_v61 = vld [vmem:[#allocation177_spill] sm:$0xff] }
 0x80f   :  { %17298 = vst [vmem:[#allocation88_spill] sm:$0xff] %v14225_v52  ;;  %v4090_v51 = vpop.f32.mrf.mxu2  ;;  %5512 = vmatpush.msra.mxu2 %v7966_v3  ;;  %v7968_v4 = vld [vmem:[%s15985_s3 + $0x120] sm:$0xff]  ;;  %5341 = vmatpush.msrb.mxu0 %v14246_v50  ;;  %v7970_v3 = vld [vmem:[%s15985_s3 + $0x110] sm:$0xff] }
 0x810   :  { %v4348_v0 = vadd.f32 %v4090_v51, %v3918_v11  ;;  %v4251_v30 = vpop.f32.mrf.mxu3  ;;  %v14238_v23 = vpop.f32.mrf.mxu0  ;;  %5577 = vmatpush.msra.mxu3 %v7967_v35  ;;  %v17299_v11 = vld [vmem:[#allocation176_spill] sm:$0xff]  ;;  %v7972_v35 = vld [vmem:[%s15985_s3 + $0x100] sm:$0xff] }
 0x811   :  { %v4349_v39 = vadd.f32 %v4251_v30, %v3919_v58  ;;  %v4836_v22 = vpop.f32.mrf.mxu1  ;;  %5513 = vmatpush.msra.mxu2 %v7968_v4  ;;  %v17301_v58 = vmax.f32 %v17299_v11, %v17300_v61  ;;  %v7974_v11 = vld [vmem:[%s15985_s3 + $0x2f0] sm:$0xff] }
 0x812   :  { %5578 = vmatpush.msra.mxu3 %v7969_v28  ;;  %v7973_v28 = vld [vmem:[%s15985_s3 + $0x108] sm:$0xff] }
 0x813   :  { %v4445_v19 = vmax.f32 %v4348_v0, %v4349_v39  ;;  %5042 = vmatmul.f32.gmra.mxu0 %v13874_v27  ;;  %5514 = vmatpush.msra.mxu2 %v7970_v3  ;;  %v7971_v0 = vld [vmem:[%s15985_s3 + $0x118] sm:$0xff] }
 0x814   :  { %5095 = vmatmul.f32.vlgmr.msrb.gmra.mxu1 %v13675_v8  ;;  %5192 = vmatmul.f32.vlgmr.msrb.gmra.mxu2 %v13504_v43  ;;  %v14300_v3 = vld [vmem:[%s15985_s3 + $0x4b8] sm:$0xff] }
 0x815   :  { %v14267_v51 = vmax.f32 %v17301_v58, %v4445_v19  ;;  %5257 = vmatmul.f32.vlgmr.msrb.gmra.mxu3 %v13504_v43  ;;  %5515 = vmatpush.msra.mxu2 %v7972_v35  ;;  %v7978_v35 = vld [vmem:[%s15985_s3 + $0x2e8] sm:$0xff] }
 0x816   :  { %5579 = vmatpush.msra.mxu3 %v7971_v0  ;;  %v7975_v0 = vld [vmem:[%s15985_s3 + $0x2f8] sm:$0xff]  ;;  %5407 = vmatpush.msra.mxu1 %v14300_v3 }
 0x817   :  { %17302 = vst [vmem:[#allocation186_spill] sm:$0xff] %v14267_v51  ;;  %v4901_v30 = vpop.f32.mrf.mxu2  ;;  %5760 = vmatpush.msrb.mxu2 %v7974_v11 }
 0x818   :  { %v14280_v39 = vadd.f32 %v4901_v30, %v14033_v36  ;;  %v4966_v4 = vpop.f32.mrf.mxu3  ;;  %v14282_v19 = vpop.f32.mrf.mxu0  ;;  %5580 = vmatpush.msra.mxu3 %v7973_v28  ;;  %v14295_v36 = vld [vmem:[%s15985_s3 + $0x4b0] sm:$0xff] }
 0x819   :  { %v14290_v61 = vadd.f32 %v4966_v4, %v4836_v22  ;;  %v4839_v58 = vpop.f32.mrf.mxu1  ;;  %5342 = vmatpush.msrb.mxu0 %v14295_v36  ;;  %v7976_v22 = vld [vmem:[%s15985_s3 + $0x2e0] sm:$0xff]  ;;  %v7977_v30 = vld [vmem:[%s15985_s3 + $0x2d0] sm:$0xff] }
 0x81a   :  { %5825 = vmatpush.msrb.mxu3 %v7975_v0  ;;  %5761 = vmatpush.msrb.mxu2 %v7976_v22  ;;  %v7979_v22 = vld [vmem:[%s15985_s3 + $0x2d8] sm:$0xff] }
 0x81b   :  { %5045 = vmatmul.f32.gmra.mxu0 %v13924_v38 }
 0x81c   :  { %5098 = vmatmul.f32.gmra.mxu1 %v13719_v12  ;;  %5195 = vmatmul.f32.gmra.mxu2 %v13538_v62 }
 0x81d   :  { %5260 = vmatmul.f32.gmra.mxu3 %v13538_v62  ;;  %5762 = vmatpush.msrb.mxu2 %v7977_v30 }
 0x81e   :  { %5826 = vmatpush.msrb.mxu3 %v7978_v35  ;;  %v14334_v35 = vld [vmem:[%s15985_s3 + $0x4a0] sm:$0xff] }
 0x81f   :  { %v4904_v4 = vpop.f32.mrf.mxu2  ;;  %5763 = vmatpush.msrb.mxu2 %v13543_v24  ;;  %v14339_v24 = vld [vmem:[%s15985_s3 + $0x4a8] sm:$0xff]  ;;  %5343 = vmatpush.msrb.mxu0 %v14334_v35 }
 0x820   :  { %v14322_v28 = vadd.f32 %v4904_v4, %v14079_v59  ;;  %v4969_v11 = vpop.f32.mrf.mxu3  ;;  %v14324_v0 = vpop.f32.mrf.mxu0  ;;  %5827 = vmatpush.msrb.mxu3 %v7979_v22  ;;  %5408 = vmatpush.msra.mxu1 %v14339_v24 }
 0x821   :  { %v14329_v30 = vadd.f32 %v4969_v11, %v4839_v58  ;;  %v4842_v51 = vpop.f32.mrf.mxu1  ;;  %5764 = vmatpush.msrb.mxu2 %v13583_v16 }
 0x822   :  { %5828 = vmatpush.msrb.mxu3 %v13548_v37 }
 0x823   :  { %5048 = vmatmul.f32.gmra.mxu0 %v13962_v34  ;;  %5765 = vmatpush.msrb.mxu2 %v13623_v63  ;;  %v14363_v63 = vld [vmem:[%s15985_s3 + $0x490] sm:$0xff] }
 0x824   :  { %5101 = vmatmul.f32.gmra.mxu1 %v13768_v17  ;;  %5198 = vmatmul.f32.gmra.mxu2 %v13578_v48 }
 0x825   :  { %5263 = vmatmul.f32.gmra.mxu3 %v13578_v48  ;;  %5766 = vmatpush.msrb.mxu2 %v13663_v46 }
 0x826   :  { %5829 = vmatpush.msrb.mxu3 %v13588_v7  ;;  %v14368_v7 = vld [vmem:[%s15985_s3 + $0x498] sm:$0xff]  ;;  %5344 = vmatpush.msrb.mxu0 %v14363_v63 }
 0x827   :  { %v4907_v59 = vpop.f32.mrf.mxu2  ;;  %5767 = vmatpush.msrb.mxu2 %v13707_v29  ;;  %5409 = vmatpush.msra.mxu1 %v14368_v7 }
 0x828   :  { %v14353_v16 = vadd.f32 %v4907_v59, %v14136_v32  ;;  %v4972_v58 = vpop.f32.mrf.mxu3  ;;  %v14355_v4 = vpop.f32.mrf.mxu0  ;;  %5830 = vmatpush.msrb.mxu3 %v13628_v26 }
 0x829   :  { %v14358_v37 = vadd.f32 %v4972_v58, %v4842_v51  ;;  %v4845_v11 = vpop.f32.mrf.mxu1  ;;  %5768 = vmatpush.msrb.mxu2 %v13747_v21  ;;  %v14392_v21 = vld [vmem:[%s15985_s3 + $0x480] sm:$0xff] }
 0x82a   :  { %5831 = vmatpush.msrb.mxu3 %v13668_v14  ;;  %5345 = vmatpush.msrb.mxu0 %v14392_v21 }
 0x82b   :  { %5051 = vmatmul.f32.gmra.mxu0 %v14000_v10  ;;  %5769 = vmatpush.msrb.mxu2 %v13791_v40  ;;  %v17304_v40 = vld [vmem:[#allocation210_spill] sm:$0xff] }
 0x82c   :  { %5104 = vmatmul.f32.gmra.mxu1 %v13817_v25  ;;  %5201 = vmatmul.f32.gmra.mxu2 %v13618_v44 }
 0x82d   :  { %5266 = vmatmul.f32.gmra.mxu3 %v13618_v44  ;;  %5770 = vmatpush.msrb.mxu2 %v13813_v55  ;;  %v17305_v55 = vld [vmem:[#allocation192_spill] sm:$0xff]  ;;  %v14504_v44 = vld [vmem:[%s15985_s3 + $0x420] sm:$0xff] }
 0x82e   :  { %5832 = vmatpush.msrb.mxu3 %v13712_v56  ;;  %v14397_v56 = vld [vmem:[%s15985_s3 + $0x488] sm:$0xff] }
 0x82f   :  { %v4910_v26 = vpop.f32.mrf.mxu2  ;;  %5410 = vmatpush.msra.mxu1 %v14397_v56 }
 0x830   :  { %v14382_v46 = vadd.f32 %v4910_v26, %v14188_v5  ;;  %v4975_v29 = vpop.f32.mrf.mxu3  ;;  %v14384_v32 = vpop.f32.mrf.mxu0  ;;  %5833 = vmatpush.msrb.mxu3 %v13752_v54  ;;  %v17303_v54 = vld [vmem:[#allocation84_spill] sm:$0xff] }
 0x831   :  { %v14387_v14 = vadd.f32 %v4975_v29, %v4845_v11  ;;  %v4848_v51 = vpop.f32.mrf.mxu1  ;;  %5771 = vmatpush.msrb.mxu2 %v17303_v54  ;;  %v14421_v26 = vld [vmem:[%s15985_s3 + $0x470] sm:$0xff]  ;;  %v14426_v29 = vld [vmem:[%s15985_s3 + $0x478] sm:$0xff]  ;;  %v17310_v54 = vld [vmem:[#allocation79_spill] sm:$0xff] }
 0x832   :  { %5834 = vmatpush.msrb.mxu3 %v13796_v1  ;;  %5346 = vmatpush.msrb.mxu0 %v14421_v26 }
 0x833   :  { %5054 = vmatmul.f32.gmra.mxu0 %v14043_v31  ;;  %5772 = vmatpush.msrb.mxu2 %v17305_v55 }
 0x834   :  { %5107 = vmatmul.f32.gmra.mxu1 %v13874_v27  ;;  %5204 = vmatmul.f32.gmra.mxu2 %v13658_v42 }
 0x835   :  { %5269 = vmatmul.f32.gmra.mxu3 %v13658_v42  ;;  %5411 = vmatpush.msra.mxu1 %v14426_v29  ;;  %v14479_v42 = vld [vmem:[%s15985_s3 + $0x458] sm:$0xff] }
 0x836   :  { %5835 = vmatpush.msrb.mxu3 %v17304_v40 }
 0x837   :  { %v4913_v5 = vpop.f32.mrf.mxu2 }
 0x838   :  { %v14411_v22 = vadd.f32 %v4913_v5, %v14238_v23  ;;  %v4978_v59 = vpop.f32.mrf.mxu3  ;;  %v14413_v58 = vpop.f32.mrf.mxu0  ;;  %5836 = vmatpush.msrb.mxu3 %v13908_v20  ;;  %v17307_v23 = vld [vmem:[#allocation193_spill] sm:$0xff]  ;;  %v17308_v20 = vld [vmem:[#allocation196_spill] sm:$0xff]  ;;  %v17311_v5 = vld [vmem:[#allocation86_spill] sm:$0xff] }
 0x839   :  { %v14416_v1 = vadd.f32 %v4978_v59, %v4848_v51  ;;  %v4851_v11 = vpop.f32.mrf.mxu1  ;;  %5773 = vmatpush.msrb.mxu2 %v17307_v23  ;;  %v17309_v51 = vld [vmem:[#allocation189_spill] sm:$0xff] }
 0x83a   :  { %5837 = vmatpush.msrb.mxu3 %v17308_v20 }
 0x83b   :  { %17306 = vst [vmem:[#allocation89_spill] sm:$0xff] %v14416_v1  ;;  %5057 = vmatmul.f32.gmra.mxu0 %v14099_v53  ;;  %5774 = vmatpush.msrb.mxu2 %v17310_v54  ;;  %v14450_v54 = vld [vmem:[%s15985_s3 + $0x460] sm:$0xff] }
 0x83c   :  { %5110 = vmatmul.f32.gmra.mxu1 %v13924_v38  ;;  %5207 = vmatmul.f32.gmra.mxu2 %v17309_v51 }
 0x83d   :  { %5272 = vmatmul.f32.gmra.mxu3 %v17309_v51  ;;  %5775 = vmatpush.msrb.mxu2 %v17311_v5 }
 0x83e   :  { %5838 = vmatpush.msrb.mxu3 %v13982_v6  ;;  %v14455_v6 = vld [vmem:[%s15985_s3 + $0x468] sm:$0xff]  ;;  %5347 = vmatpush.msrb.mxu0 %v14450_v54 }
 0x83f   :  { %v4916_v40 = vpop.f32.mrf.mxu2  ;;  %5412 = vmatpush.msra.mxu1 %v14455_v6 }
 0x840   :  { %v14440_v55 = vadd.f32 %v4916_v40, %v14282_v19  ;;  %v4981_v59 = vpop.f32.mrf.mxu3  ;;  %v14442_v23 = vpop.f32.mrf.mxu0  ;;  %5839 = vmatpush.msrb.mxu3 %v14018_v33  ;;  %v17314_v33 = vld [vmem:[#allocation75_spill] sm:$0xff] }
 0x841   :  { %v14445_v20 = vadd.f32 %v4981_v59, %v4851_v11  ;;  %v4854_v52 = vpop.f32.mrf.mxu1  ;;  %5413 = vmatpush.msra.mxu1 %v14479_v42 }
 0x842   :  { %17312 = vst [vmem:[#allocation204_spill] sm:$0xff] %v14440_v55  ;;  %5840 = vmatpush.msrb.mxu3 %v14054_v49  ;;  %v14474_v49 = vld [vmem:[%s15985_s3 + $0x450] sm:$0xff] }
 0x843   :  { %17313 = vst [vmem:[#allocation206_spill] sm:$0xff] %v14445_v20  ;;  %5060 = vmatmul.f32.gmra.mxu0 %v14156_v45  ;;  %v7980_v55 = vld [vmem:[%s15985_s3 + $0xf0] sm:$0xff] }
 0x844   :  { %5113 = vmatmul.f32.gmra.mxu1 %v13962_v34  ;;  %5210 = vmatmul.f32.gmra.mxu2 %v17314_v33 }
 0x845   :  { %5275 = vmatmul.f32.gmra.mxu3 %v17314_v33  ;;  %5348 = vmatpush.msrb.mxu0 %v14474_v49 }
 0x847   :  { %v4919_v19 = vpop.f32.mrf.mxu2 }
 0x848   :  { %v14465_v11 = vadd.f32 %v4919_v19, %v14324_v0  ;;  %v4984_v40 = vpop.f32.mrf.mxu3  ;;  %v14467_v5 = vpop.f32.mrf.mxu0  ;;  %v17317_v0 = vld [vmem:[#allocation73_spill] sm:$0xff] }
 0x849   :  { %v14469_v59 = vadd.f32 %v4984_v40, %v4854_v52  ;;  %v4857_v51 = vpop.f32.mrf.mxu1  ;;  %v14486_v52 = vld [vmem:[%s15985_s3 + $0x440] sm:$0xff]  ;;  %v4530_v19 = vadd.f32 %v14125_v60, %v17317_v0  ;;  %v14498_v40 = vld [vmem:[%s15985_s3 + $0x430] sm:$0xff] }
 0x84a   :  { %17315 = vst [vmem:[#allocation207_spill] sm:$0xff] %v14465_v11  ;;  %5349 = vmatpush.msrb.mxu0 %v14486_v52  ;;  %v14519_v11 = vld [vmem:[%s15985_s3 + $0x448] sm:$0xff] }
 0x84b   :  { %17316 = vst [vmem:[#allocation5_spill] sm:$0xff] %v14469_v59  ;;  %5063 = vmatmul.f32.gmra.mxu0 %v14208_v9  ;;  %v14511_v62 = vmax.f32 %v4530_v19, 0.0  ;;  %5414 = vmatpush.msra.mxu1 %v14519_v11 }
 0x84c   :  { %5116 = vmatmul.f32.gmra.mxu1 %v14000_v10  ;;  %5213 = vmatmul.f32.gmra.mxu2 %v13808_v41 }
 0x84d   :  { %5278 = vmatmul.f32.gmra.mxu3 %v13808_v41  ;;  %5350 = vmatpush.msrb.mxu0 %v14498_v40 }
 0x84f   :  { %v4922_v33 = vpop.f32.mrf.mxu2  ;;  %5351 = vmatpush.msrb.mxu0 %v14504_v44 }
 0x850   :  { %v14507_v48 = vadd.f32 %v4922_v33, %v14355_v4  ;;  %v4987_v0 = vpop.f32.mrf.mxu3  ;;  %v14509_v41 = vpop.f32.mrf.mxu0  ;;  %v14525_v4 = vld [vmem:[%s15985_s3 + $0x410] sm:$0xff] }
 0x851   :  { %v14513_v43 = vadd.f32 %v4987_v0, %v4857_v51  ;;  %v4860_v59 = vpop.f32.mrf.mxu1  ;;  %17320 = vst [vmem:[#allocation190_spill] sm:$0xff] %v14525_v4  ;;  %v14533_v51 = vld [vmem:[%s15985_s3 + $0x400] sm:$0xff]  ;;  %v17322_v33 = vld [vmem:[#allocation180_spill] sm:$0xff]  ;;  %5352 = vmatpush.msrb.mxu0 %v14525_v4 }
 0x852   :  { %17318 = vst [vmem:[#allocation6_spill] sm:$0xff] %v14507_v48  ;;  %v4531_v19 = vadd.f32 %v14125_v60, %v17322_v33 }
 0x853   :  { %17319 = vst [vmem:[#allocation25_spill] sm:$0xff] %v14513_v43  ;;  %5066 = vmatmul.f32.gmra.mxu0 %v14511_v62 }
 0x854   :  { %5119 = vmatmul.f32.gmra.mxu1 %v14043_v31  ;;  %5216 = vmatmul.f32.gmra.mxu2 %v13869_v47  ;;  %17321 = vst [vmem:[#allocation90_spill] sm:$0xff] %v14533_v51  ;;  %v14548_v1 = vmax.f32 %v4531_v19, 0.0 }
 0x855   :  { %5281 = vmatmul.f32.gmra.mxu3 %v13869_v47  ;;  %5353 = vmatpush.msrb.mxu0 %v14533_v51  ;;  %v14555_v51 = vld [vmem:[%s15985_s3 + $0x438] sm:$0xff] }
 0x856   :  { %5415 = vmatpush.msra.mxu1 %v14555_v51 }
 0x857   :  { %v4925_v0 = vpop.f32.mrf.mxu2  ;;  %5630 = vmatpush.msra.mxu0 %v7980_v55 }
 0x858   :  { %v14541_v43 = vadd.f32 %v4925_v0, %v14384_v32  ;;  %v4990_v48 = vpop.f32.mrf.mxu3  ;;  %v14543_v20 = vpop.f32.mrf.mxu0  ;;  %v7981_v32 = vld [vmem:[%s15985_s3 + $0xe0] sm:$0xff] }
 0x859   :  { %v14550_v33 = vadd.f32 %v4990_v48, %v4860_v59  ;;  %v4863_v47 = vpop.f32.mrf.mxu1  ;;  %5631 = vmatpush.msra.mxu0 %v7981_v32  ;;  %v17325_v48 = vld [vmem:[#allocation187_spill] sm:$0xff]  ;;  %v7982_v59 = vld [vmem:[%s15985_s3 + $0xd0] sm:$0xff]  ;;  %v7983_v0 = vld [vmem:[%s15985_s3 + $0xc0] sm:$0xff] }
 0x85a   :  { %17323 = vst [vmem:[#allocation209_spill] sm:$0xff] %v14541_v43  ;;  %v4532_v55 = vadd.f32 %v14125_v60, %v17325_v48 }
 0x85b   :  { %17324 = vst [vmem:[#allocation211_spill] sm:$0xff] %v14550_v33  ;;  %5069 = vmatmul.f32.gmra.mxu0 %v14548_v1 }
 0x85c   :  { %5122 = vmatmul.f32.gmra.mxu1 %v14099_v53  ;;  %5219 = vmatmul.f32.gmra.mxu2 %v13920_v13  ;;  %v14578_v48 = vmax.f32 %v4532_v55, 0.0 }
 0x85d   :  { %5284 = vmatmul.f32.gmra.mxu3 %v13920_v13  ;;  %5632 = vmatpush.msra.mxu0 %v7982_v59  ;;  %v14585_v59 = vld [vmem:[%s15985_s3 + $0x428] sm:$0xff] }
 0x85e   :  { %17327 = vst [vmem:[#allocation7_spill] sm:$0xff] %v14578_v48  ;;  %5416 = vmatpush.msra.mxu1 %v14585_v59 }
 0x85f   :  { %v4928_v19 = vpop.f32.mrf.mxu2  ;;  %5633 = vmatpush.msra.mxu0 %v7983_v0  ;;  %17329 = vst [vmem:[#allocation28_spill] sm:$0xff] %v14585_v59  ;;  %v7984_v0 = vld [vmem:[%s15985_s3 + $0xb0] sm:$0xff] }
 0x860   :  { %v14574_v32 = vadd.f32 %v4928_v19, %v14413_v58  ;;  %v4993_v33 = vpop.f32.mrf.mxu3  ;;  %v14576_v43 = vpop.f32.mrf.mxu0  ;;  %v7986_v19 = vld [vmem:[%s15985_s3 + $0x90] sm:$0xff] }
 0x861   :  { %v14580_v13 = vadd.f32 %v4993_v33, %v4863_v47  ;;  %v4866_v4 = vpop.f32.mrf.mxu1  ;;  %5634 = vmatpush.msra.mxu0 %v7984_v0  ;;  %v17330_v47 = vld [vmem:[#allocation205_spill] sm:$0xff]  ;;  %v7985_v33 = vld [vmem:[%s15985_s3 + $0xa0] sm:$0xff] }
 0x862   :  { %17326 = vst [vmem:[#allocation212_spill] sm:$0xff] %v14574_v32  ;;  %v4533_v58 = vadd.f32 %v14125_v60, %v17330_v47 }
 0x863   :  { %17328 = vst [vmem:[#allocation8_spill] sm:$0xff] %v14580_v13  ;;  %5072 = vmatmul.f32.gmra.mxu0 %v14578_v48 }
 0x864   :  { %5125 = vmatmul.f32.gmra.mxu1 %v14156_v45  ;;  %5222 = vmatmul.f32.gmra.mxu2 %v13958_v57  ;;  %v14608_v47 = vmax.f32 %v4533_v58, 0.0 }
 0x865   :  { %5287 = vmatmul.f32.gmra.mxu3 %v13958_v57  ;;  %5635 = vmatpush.msra.mxu0 %v7985_v33  ;;  %v14615_v33 = vld [vmem:[%s15985_s3 + $0x418] sm:$0xff] }
 0x866   :  { %17333 = vst [vmem:[#allocation214_spill] sm:$0xff] %v14615_v33  ;;  %5417 = vmatpush.msra.mxu1 %v14615_v33 }
 0x867   :  { %v4931_v55 = vpop.f32.mrf.mxu2  ;;  %5636 = vmatpush.msra.mxu0 %v7986_v19  ;;  %v7987_v19 = vld [vmem:[%s15985_s3 + $0x80] sm:$0xff] }
 0x868   :  { %v14604_v0 = vadd.f32 %v4931_v55, %v14442_v23  ;;  %v4996_v13 = vpop.f32.mrf.mxu3  ;;  %v14606_v32 = vpop.f32.mrf.mxu0  ;;  %v17334_v23 = vld [vmem:[#allocation74_spill] sm:$0xff] }
 0x869   :  { %v14610_v57 = vadd.f32 %v4996_v13, %v4866_v4  ;;  %v4869_v59 = vpop.f32.mrf.mxu1  ;;  %5637 = vmatpush.msra.mxu0 %v7987_v19  ;;  %v7988_v13 = vld [vmem:[%s15985_s3 + $0x70] sm:$0xff]  ;;  %v4534_v4 = vadd.f32 %v14125_v60, %v17334_v23  ;;  %v7989_v55 = vld [vmem:[%s15985_s3 + $0x60] sm:$0xff] }
 0x86a   :  { %17331 = vst [vmem:[#allocation194_spill] sm:$0xff] %v14604_v0  ;;  %v7990_v23 = vld [vmem:[%s15985_s3 + $0x50] sm:$0xff] }
 0x86b   :  { %17332 = vst [vmem:[#allocation91_spill] sm:$0xff] %v14610_v57  ;;  %5075 = vmatmul.f32.gmra.mxu0 %v14608_v47 }
 0x86c   :  { %5128 = vmatmul.f32.gmra.mxu1 %v14208_v9  ;;  %5225 = vmatmul.f32.gmra.mxu2 %v13996_v2 }
 0x86d   :  { %5290 = vmatmul.f32.gmra.mxu3 %v13996_v2  ;;  %5638 = vmatpush.msra.mxu0 %v7988_v13  ;;  %v14643_v13 = vld [vmem:[%s15985_s3 + $0x408] sm:$0xff] }
 0x86e   :  { %17337 = vst [vmem:[#allocation27_spill] sm:$0xff] %v14643_v13  ;;  %5418 = vmatpush.msra.mxu1 %v14643_v13  ;;  %v7996_v13 = vld [vmem:[%s15985_s3 + $0xc8] sm:$0xff] }
 0x86f   :  { %v4934_v58 = vpop.f32.mrf.mxu2  ;;  %5639 = vmatpush.msra.mxu0 %v7989_v55  ;;  %v14648_v55 = vmax.f32 %v4534_v4, 0.0 }
 0x870   :  { %v14634_v19 = vadd.f32 %v4934_v58, %v14467_v5  ;;  %v4999_v57 = vpop.f32.mrf.mxu3  ;;  %v14636_v0 = vpop.f32.mrf.mxu0  ;;  %v7992_v5 = vld [vmem:[%s15985_s3 + $0xe8] sm:$0xff]  ;;  %v7993_v58 = vld [vmem:[%s15985_s3 + $0x40] sm:$0xff] }
 0x871   :  { %v14638_v2 = vadd.f32 %v4999_v57, %v4869_v59  ;;  %v4872_v33 = vpop.f32.mrf.mxu1  ;;  %5640 = vmatpush.msra.mxu0 %v7990_v23  ;;  %17338 = vst [vmem:[#allocation9_spill] sm:$0xff] %v14648_v55  ;;  %v7991_v57 = vld [vmem:[%s15985_s3 + $0xf8] sm:$0xff]  ;;  %v17339_v59 = vld [vmem:[#allocation83_spill] sm:$0xff] }
 0x872   :  { %17335 = vst [vmem:[#allocation216_spill] sm:$0xff] %v14634_v19  ;;  %5695 = vmatpush.msrb.mxu1 %v7991_v57  ;;  %v4535_v4 = vadd.f32 %v14125_v60, %v17339_v59  ;;  %v7994_v57 = vld [vmem:[%s15985_s3 + $0xd8] sm:$0xff] }
 0x873   :  { %17336 = vst [vmem:[#allocation217_spill] sm:$0xff] %v14638_v2  ;;  %5354 = vmatmul.f32.vlgmr.msrb.gmra.mxu0 %v13874_v27 }
 0x874   :  { %5131 = vmatmul.f32.gmra.mxu1 %v14511_v62  ;;  %5228 = vmatmul.f32.gmra.mxu2 %v14648_v55 }
 0x875   :  { %5293 = vmatmul.f32.gmra.mxu3 %v14648_v55  ;;  %5696 = vmatpush.msrb.mxu1 %v7992_v5  ;;  %v7995_v5 = vld [vmem:[%s15985_s3 + $0x30] sm:$0xff] }
 0x876   :  { %5641 = vmatpush.msra.mxu0 %v7993_v58 }
 0x877   :  { %v4937_v23 = vpop.f32.mrf.mxu2  ;;  %5697 = vmatpush.msrb.mxu1 %v7994_v57  ;;  %v14682_v57 = vmax.f32 %v4535_v4, 0.0 }
 0x878   :  { %v14670_v55 = vadd.f32 %v4937_v23, %v14509_v41  ;;  %v5002_v2 = vpop.f32.mrf.mxu3  ;;  %v14672_v19 = vpop.f32.mrf.mxu0  ;;  %5642 = vmatpush.msra.mxu0 %v7995_v5  ;;  %v7997_v41 = vld [vmem:[%s15985_s3 + $0x20] sm:$0xff]  ;;  %v8000_v23 = vld [vmem:[%s15985_s3 + $0x10] sm:$0xff] }
 0x879   :  { %v14677_v59 = vadd.f32 %v5002_v2, %v4872_v33  ;;  %v4875_v58 = vpop.f32.mrf.mxu1  ;;  %5698 = vmatpush.msrb.mxu1 %v7996_v13  ;;  %17342 = vst [vmem:[#allocation92_spill] sm:$0xff] %v14682_v57  ;;  %v7998_v2 = vld [vmem:[%s15985_s3 + $0xb8] sm:$0xff]  ;;  %v7999_v33 = vld [vmem:[%s15985_s3 + $0xa8] sm:$0xff] }
 0x87a   :  { %17340 = vst [vmem:[#allocation30_spill] sm:$0xff] %v14670_v55  ;;  %5643 = vmatpush.msra.mxu0 %v7997_v41  ;;  %v17343_v13 = vld [vmem:[#allocation191_spill] sm:$0xff]  ;;  %v8001_v41 = vld [vmem:[%s15985_s3 + $0x98] sm:$0xff] }
 0x87b   :  { %17341 = vst [vmem:[#allocation198_spill] sm:$0xff] %v14677_v59  ;;  %5357 = vmatmul.f32.gmra.mxu0 %v13924_v38  ;;  %5699 = vmatpush.msrb.mxu1 %v7998_v2  ;;  %v4536_v4 = vadd.f32 %v14125_v60, %v17343_v13  ;;  %v8003_v55 = vld [vmem:[%s15985_s3 + $0x88] sm:$0xff] }
 0x87c   :  { %5134 = vmatmul.f32.gmra.mxu1 %v14548_v1  ;;  %5231 = vmatmul.f32.gmra.mxu2 %v14682_v57 }
 0x87d   :  { %5296 = vmatmul.f32.gmra.mxu3 %v14682_v57  ;;  %5700 = vmatpush.msrb.mxu1 %v7999_v33  ;;  %v8002_v33 = vld [vmem:[%s15985_s3] sm:$0xff] }
 0x87e   :  { %5644 = vmatpush.msra.mxu0 %v8000_v23 }
 0x87f   :  { %v4940_v5 = vpop.f32.mrf.mxu2  ;;  %5701 = vmatpush.msrb.mxu1 %v8001_v41  ;;  %v8007_v41 = vld [vmem:[%s15985_s3 + $0x3e0] sm:$0xff] }
 0x880   :  { %v14706_v2 = vadd.f32 %v4940_v5, %v14543_v20  ;;  %v5005_v57 = vpop.f32.mrf.mxu3  ;;  %v14708_v59 = vpop.f32.mrf.mxu0  ;;  %5645 = vmatpush.msra.mxu0 %v8002_v33  ;;  %v8004_v20 = vld [vmem:[%s15985_s3 + $0x3f0] sm:$0xff]  ;;  %v14721_v5 = vmax.f32 %v4536_v4, 0.0 }
 0x881   :  { %v14713_v13 = vadd.f32 %v5005_v57, %v4875_v58  ;;  %v4878_v23 = vpop.f32.mrf.mxu1  ;;  %5702 = vmatpush.msrb.mxu1 %v8003_v55  ;;  %v8005_v58 = vld [vmem:[%s15985_s3 + $0x78] sm:$0xff]  ;;  %v8006_v55 = vld [vmem:[%s15985_s3 + $0x68] sm:$0xff]  ;;  %v17346_v57 = vld [vmem:[#allocation182_spill] sm:$0xff] }
 0x882   :  { %5922 = vmatpush.msrb.mxu0 %v8004_v20  ;;  %17345 = vst [vmem:[#allocation220_spill] sm:$0xff] %v14721_v5  ;;  %v4537_v4 = vadd.f32 %v14125_v60, %v17346_v57  ;;  %v8008_v20 = vld [vmem:[%s15985_s3 + $0x58] sm:$0xff]  ;;  %v8009_v60 = vld [vmem:[%s15985_s3 + $0x3d0] sm:$0xff] }
 0x883   :  { %17344 = vst [vmem:[#allocation219_spill] sm:$0xff] %v14713_v13  ;;  %5360 = vmatmul.f32.gmra.mxu0 %v13962_v34  ;;  %5703 = vmatpush.msrb.mxu1 %v8005_v58 }
 0x884   :  { %5137 = vmatmul.f32.gmra.mxu1 %v14578_v48  ;;  %5234 = vmatmul.f32.gmra.mxu2 %v14721_v5 }
 0x885   :  { %5299 = vmatmul.f32.gmra.mxu3 %v14721_v5  ;;  %5704 = vmatpush.msrb.mxu1 %v8006_v55 }
 0x886   :  { %5923 = vmatpush.msrb.mxu0 %v8007_v41  ;;  %v8010_v41 = vld [vmem:[%s15985_s3 + $0x48] sm:$0xff] }
 0x887   :  { %v4943_v33 = vpop.f32.mrf.mxu2  ;;  %5705 = vmatpush.msrb.mxu1 %v8008_v20  ;;  %v14754_v20 = vmax.f32 %v4537_v4, 0.0  ;;  %v8014_v4 = vld [vmem:[%s15985_s3 + $0x3b0] sm:$0xff] }
 0x888   :  { %v14742_v58 = vadd.f32 %v4943_v33, %v14576_v43  ;;  %v5008_v5 = vpop.f32.mrf.mxu3  ;;  %v14744_v13 = vpop.f32.mrf.mxu0  ;;  %5924 = vmatpush.msrb.mxu0 %v8009_v60  ;;  %v8011_v43 = vld [vmem:[%s15985_s3 + $0x3c0] sm:$0xff]  ;;  %v8015_v60 = vld [vmem:[%s15985_s3 + $0x18] sm:$0xff] }
 0x889   :  { %v14749_v55 = vadd.f32 %v5008_v5, %v4878_v23  ;;  %v4881_v57 = vpop.f32.mrf.mxu1  ;;  %5706 = vmatpush.msrb.mxu1 %v8010_v41  ;;  %17348 = vst [vmem:[#allocation10_spill] sm:$0xff] %v14754_v20  ;;  %v8012_v23 = vld [vmem:[%s15985_s3 + $0x38] sm:$0xff]  ;;  %v8013_v5 = vld [vmem:[%s15985_s3 + $0x28] sm:$0xff] }
 0x88a   :  { %5925 = vmatpush.msrb.mxu0 %v8011_v43 }
 0x88b   :  { %17347 = vst [vmem:[#allocation221_spill] sm:$0xff] %v14749_v55  ;;  %5363 = vmatmul.f32.gmra.mxu0 %v14000_v10  ;;  %5707 = vmatpush.msrb.mxu1 %v8012_v23  ;;  %v8017_v55 = vld [vmem:[%s15985_s3 + $0x8] sm:$0xff] }
 0x88c   :  { %5140 = vmatmul.f32.gmra.mxu1 %v14608_v47  ;;  %5237 = vmatmul.f32.gmra.mxu2 %v14754_v20 }
 0x88d   :  { %5302 = vmatmul.f32.gmra.mxu3 %v14754_v20  ;;  %5708 = vmatpush.msrb.mxu1 %v8013_v5  ;;  %v8016_v5 = vld [vmem:[%s15985_s3 + $0x3a0] sm:$0xff] }
 0x88e   :  { %5926 = vmatpush.msrb.mxu0 %v8014_v4 }
 0x88f   :  { %v4946_v33 = vpop.f32.mrf.mxu2  ;;  %5709 = vmatpush.msrb.mxu1 %v8015_v60 }
 0x890   :  { %v14776_v41 = vadd.f32 %v4946_v33, %v14606_v32  ;;  %v5011_v43 = vpop.f32.mrf.mxu3  ;;  %v14778_v23 = vpop.f32.mrf.mxu0  ;;  %5927 = vmatpush.msrb.mxu0 %v8016_v5  ;;  %v8018_v32 = vld [vmem:[%s15985_s3 + $0x390] sm:$0xff]  ;;  %v17349_v33 = vld [vmem:[#allocation183_spill] sm:$0xff] }
 0x891   :  { %v14783_v20 = vadd.f32 %v5011_v43, %v4881_v57  ;;  %v5096_v4 = vpop.f32.mrf.mxu1  ;;  %5710 = vmatpush.msrb.mxu1 %v8017_v55  ;;  %v5144_v57 = vadd.f32 %v14636_v0, %v14280_v39  ;;  %v8019_v55 = vld [vmem:[%s15985_s3 + $0x3f8] sm:$0xff]  ;;  %v17350_v5 = vld [vmem:[#allocation199_spill] sm:$0xff] }
 0x892   :  { %5928 = vmatpush.msrb.mxu0 %v8018_v32  ;;  %v5145_v60 = vadd.f32 %v5096_v4, %v14290_v61  ;;  %v17351_v32 = vld [vmem:[#allocation201_spill] sm:$0xff] }
 0x893   :  { %5366 = vmatmul.f32.gmra.mxu0 %v14043_v31 }
 0x894   :  { %5419 = vmatmul.f32.vlgmr.msra.gmra.mxu1 %v13874_v27  ;;  %5516 = vmatmul.f32.vlgmr.msra.gmra.mxu2 %v13675_v8 }
 0x895   :  { %5581 = vmatmul.f32.vlgmr.msra.gmra.mxu3 %v13675_v8  ;;  %6084 = vmatpush.msra.mxu2 %v14090_v15  ;;  %v8020_v8 = vld [vmem:[%s15985_s3 + $0x380] sm:$0xff] }
 0x896   :  { %6149 = vmatpush.msra.mxu3 %v17349_v33  ;;  %5987 = vmatpush.msra.mxu1 %v8019_v55  ;;  %v8021_v33 = vld [vmem:[%s15985_s3 + $0x3e8] sm:$0xff]  ;;  %v17352_v55 = vld [vmem:[#allocation4_spill] sm:$0xff] }
 0x897   :  { %v5193_v43 = vpop.f32.mrf.mxu2  ;;  %6085 = vmatpush.msra.mxu2 %v17350_v5  ;;  %5929 = vmatpush.msrb.mxu0 %v8020_v8  ;;  %v8023_v5 = vld [vmem:[%s15985_s3 + $0x3d8] sm:$0xff]  ;;  %v5146_v8 = vadd.f32 %v14672_v19, %v14322_v28 }
 0x898   :  { %v14807_v15 = vadd.f32 %v5193_v43, %v5144_v57  ;;  %v5258_v39 = vpop.f32.mrf.mxu3  ;;  %v14809_v0 = vpop.f32.mrf.mxu0  ;;  %6150 = vmatpush.msra.mxu3 %v17351_v32  ;;  %5988 = vmatpush.msra.mxu1 %v8021_v33  ;;  %v8022_v57 = vld [vmem:[%s15985_s3 + $0x370] sm:$0xff]  ;;  %v17353_v43 = vld [vmem:[#allocation85_spill] sm:$0xff] }
 0x899   :  { %v14815_v61 = vadd.f32 %v5258_v39, %v5145_v60  ;;  %v5099_v4 = vpop.f32.mrf.mxu1  ;;  %6086 = vmatpush.msra.mxu2 %v17352_v55  ;;  %5930 = vmatpush.msrb.mxu0 %v8022_v57  ;;  %v8024_v60 = vld [vmem:[%s15985_s3 + $0x3c8] sm:$0xff]  ;;  %v8025_v32 = vld [vmem:[%s15985_s3 + $0x3b8] sm:$0xff]  ;;  %v8033_v57 = vld [vmem:[%s15985_s3 + $0x330] sm:$0xff] }
 0x89a   :  { %6151 = vmatpush.msra.mxu3 %v17353_v43  ;;  %5989 = vmatpush.msra.mxu1 %v8023_v5  ;;  %v8036_v5 = vld [vmem:[%s15985_s3 + $0x320] sm:$0xff] }
 0x89b   :  { %5369 = vmatmul.f32.gmra.mxu0 %v14099_v53  ;;  %6087 = vmatpush.msra.mxu2 %v14246_v50  ;;  %v5147_v50 = vadd.f32 %v5099_v4, %v14329_v30  ;;  %v8027_v30 = vld [vmem:[%s15985_s3 + $0x3a8] sm:$0xff]  ;;  %v8028_v4 = vld [vmem:[%s15985_s3 + $0x350] sm:$0xff] }
 0x89c   :  { %5422 = vmatmul.f32.gmra.mxu1 %v13924_v38  ;;  %5519 = vmatmul.f32.gmra.mxu2 %v13719_v12 }
 0x89d   :  { %5584 = vmatmul.f32.gmra.mxu3 %v13719_v12  ;;  %5990 = vmatpush.msra.mxu1 %v8024_v60  ;;  %v8026_v12 = vld [vmem:[%s15985_s3 + $0x360] sm:$0xff] }
 0x89e   :  { %6152 = vmatpush.msra.mxu3 %v14251_v18  ;;  %6088 = vmatpush.msra.mxu2 %v14295_v36 }
 0x89f   :  { %v5196_v39 = vpop.f32.mrf.mxu2  ;;  %5991 = vmatpush.msra.mxu1 %v8025_v32  ;;  %5931 = vmatpush.msrb.mxu0 %v8026_v12  ;;  %v8042_v12 = vld [vmem:[%s15985_s3 + $0x318] sm:$0xff] }
 0x8a0   :  { %v14844_v33 = vadd.f32 %v5196_v39, %v5146_v8  ;;  %v5261_v28 = vpop.f32.mrf.mxu3  ;;  %v14846_v19 = vpop.f32.mrf.mxu0  ;;  %6153 = vmatpush.msra.mxu3 %v14300_v3  ;;  %6089 = vmatpush.msra.mxu2 %v14334_v35  ;;  %v8029_v3 = vld [vmem:[%s15985_s3 + $0x398] sm:$0xff]  ;;  %v5148_v35 = vadd.f32 %v14708_v59, %v14353_v16 }
 0x8a1   :  { %v14850_v18 = vadd.f32 %v5261_v28, %v5147_v50  ;;  %v5102_v36 = vpop.f32.mrf.mxu1  ;;  %5992 = vmatpush.msra.mxu1 %v8027_v30  ;;  %5932 = vmatpush.msrb.mxu0 %v8028_v4  ;;  %v8039_v8 = vld [vmem:[%s15985_s3 + $0x338] sm:$0xff]  ;;  %v17356_v4 = vld [vmem:[#allocation28_spill] sm:$0xff] }
 0x8a2   :  { %6154 = vmatpush.msra.mxu3 %v14339_v24  ;;  %6090 = vmatpush.msra.mxu2 %v14363_v63  ;;  %v8030_v24 = vld [vmem:[%s15985_s3 + $0x388] sm:$0xff]  ;;  %v5149_v63 = vadd.f32 %v5102_v36, %v14358_v37  ;;  %v17355_v50 = vld [vmem:[#allocation89_spill] sm:$0xff] }
 0x8a3   :  { %5372 = vmatmul.f32.gmra.mxu0 %v14156_v45  ;;  %5993 = vmatpush.msra.mxu1 %v8029_v3  ;;  %v8043_v3 = vld [vmem:[%s15985_s3 + $0x308] sm:$0xff] }
 0x8a4   :  { %5425 = vmatmul.f32.gmra.mxu1 %v13962_v34  ;;  %5522 = vmatmul.f32.gmra.mxu2 %v13768_v17 }
 0x8a5   :  { %5587 = vmatmul.f32.gmra.mxu3 %v13768_v17  ;;  %6091 = vmatpush.msra.mxu2 %v14392_v21  ;;  %v8031_v17 = vld [vmem:[%s15985_s3 + $0x340] sm:$0xff] }
 0x8a6   :  { %6155 = vmatpush.msra.mxu3 %v14368_v7  ;;  %5994 = vmatpush.msra.mxu1 %v8030_v24  ;;  %v8032_v7 = vld [vmem:[%s15985_s3 + $0x378] sm:$0xff]  ;;  %v17359_v24 = vld [vmem:[#allocation204_spill] sm:$0xff] }
 0x8a7   :  { %v5199_v55 = vpop.f32.mrf.mxu2  ;;  %6092 = vmatpush.msra.mxu2 %v14421_v26  ;;  %5933 = vmatpush.msrb.mxu0 %v8031_v17  ;;  %v17361_v17 = vld [vmem:[#allocation206_spill] sm:$0xff] }
 0x8a8   :  { %v14879_v21 = vadd.f32 %v5199_v55, %v5148_v35  ;;  %v5264_v16 = vpop.f32.mrf.mxu3  ;;  %v14881_v59 = vpop.f32.mrf.mxu0  ;;  %6156 = vmatpush.msra.mxu3 %v14397_v56  ;;  %5995 = vmatpush.msra.mxu1 %v8032_v7  ;;  %v8034_v56 = vld [vmem:[%s15985_s3 + $0x368] sm:$0xff]  ;;  %v17358_v35 = vld [vmem:[#allocation214_spill] sm:$0xff] }
 0x8a9   :  { %v14887_v37 = vadd.f32 %v5264_v16, %v5149_v63  ;;  %v5105_v26 = vpop.f32.mrf.mxu1  ;;  %6093 = vmatpush.msra.mxu2 %v14450_v54  ;;  %5934 = vmatpush.msrb.mxu0 %v8033_v57  ;;  %v8035_v54 = vld [vmem:[%s15985_s3 + $0x358] sm:$0xff]  ;;  %v5154_v63 = vadd.f32 %v14809_v0, %v17359_v24  ;;  %v17360_v55 = vld [vmem:[#allocation27_spill] sm:$0xff] }
 0x8aa   :  { %6157 = vmatpush.msra.mxu3 %v14426_v29  ;;  %5996 = vmatpush.msra.mxu1 %v8034_v56  ;;  %v5150_v29 = vadd.f32 %v14744_v13, %v14382_v46  ;;  %v17362_v0 = vld [vmem:[#allocation207_spill] sm:$0xff]  ;;  %v17369_v24 = vld [vmem:[#allocation197_spill] sm:$0xff] }
 0x8ab   :  { %5375 = vmatmul.f32.gmra.mxu0 %v14208_v9  ;;  %6094 = vmatpush.msra.mxu2 %v14474_v49  ;;  %v5151_v49 = vadd.f32 %v5105_v26, %v14387_v14 }
 0x8ac   :  { %5428 = vmatmul.f32.gmra.mxu1 %v14000_v10  ;;  %5525 = vmatmul.f32.gmra.mxu2 %v13817_v25 }
 0x8ad   :  { %5590 = vmatmul.f32.gmra.mxu3 %v13817_v25  ;;  %5997 = vmatpush.msra.mxu1 %v8035_v54  ;;  %v8037_v25 = vld [vmem:[%s15985_s3 + $0x348] sm:$0xff] }
 0x8ae   :  { %6158 = vmatpush.msra.mxu3 %v14455_v6  ;;  %6095 = vmatpush.msra.mxu2 %v14486_v52  ;;  %v8038_v52 = vld [vmem:[%s15985_s3 + $0x310] sm:$0xff] }
 0x8af   :  { %v5202_v43 = vpop.f32.mrf.mxu2  ;;  %5935 = vmatpush.msrb.mxu0 %v8036_v5  ;;  %5998 = vmatpush.msra.mxu1 %v8037_v25 }
 0x8b0   :  { %v14916_v60 = vadd.f32 %v5202_v43, %v5150_v29  ;;  %v5267_v46 = vpop.f32.mrf.mxu3  ;;  %v14918_v13 = vpop.f32.mrf.mxu0  ;;  %6159 = vmatpush.msra.mxu3 %v14479_v42  ;;  %6096 = vmatpush.msra.mxu2 %v14498_v40  ;;  %v8040_v42 = vld [vmem:[%s15985_s3 + $0x328] sm:$0xff]  ;;  %v8041_v40 = vld [vmem:[%s15985_s3 + $0x300] sm:$0xff]  ;;  %v17363_v43 = vld [vmem:[#allocation5_spill] sm:$0xff] }
 0x8b1   :  { %v14922_v14 = vadd.f32 %v5267_v46, %v5151_v49  ;;  %v5108_v6 = vpop.f32.mrf.mxu1  ;;  %5936 = vmatpush.msrb.mxu0 %v8038_v52  ;;  %5999 = vmatpush.msra.mxu1 %v8039_v8  ;;  %v5156_v49 = vadd.f32 %v14846_v19, %v17362_v0  ;;  %v14995_v19 = vld [vmem:[%s15986_s2] ss:$0 sm:$0xff] }
 0x8b2   :  { %6160 = vmatpush.msra.mxu3 %v14519_v11  ;;  %6097 = vmatpush.msra.mxu2 %v14504_v44  ;;  %v5152_v44 = vadd.f32 %v14778_v23, %v14411_v22  ;;  %v17354_v11 = vld [vmem:[#allocation190_spill] sm:$0xff]  ;;  %v5153_v39 = vadd.f32 %v5108_v6, %v17355_v50  ;;  %17364 = vst [vmem:[#allocation11_spill] sm:$0xff] %v14995_v19 }
 0x8b3   :  { %5378 = vmatmul.f32.gmra.mxu0 %v14511_v62  ;;  %6000 = vmatpush.msra.mxu1 %v8040_v42  ;;  %v17357_v22 = vld [vmem:[#allocation90_spill] sm:$0xff] }
 0x8b4   :  { %5431 = vmatmul.f32.gmra.mxu1 %v14043_v31  ;;  %5528 = vmatmul.f32.gmra.mxu2 %v13874_v27 }
 0x8b5   :  { %5593 = vmatmul.f32.gmra.mxu3 %v13874_v27  ;;  %5937 = vmatpush.msrb.mxu0 %v8041_v40  ;;  %v17365_v40 = vld [vmem:[#allocation195_spill] sm:$0xff] }
 0x8b6   :  { %6161 = vmatpush.msra.mxu3 %v14555_v51  ;;  %6098 = vmatpush.msra.mxu2 %v17354_v11  ;;  %v17366_v11 = vld [vmem:[#allocation6_spill] sm:$0xff] }
 0x8b7   :  { %v5205_v32 = vpop.f32.mrf.mxu2  ;;  %6001 = vmatpush.msra.mxu1 %v8042_v12  ;;  %v5158_v50 = vadd.f32 %v14881_v59, %v17366_v11  ;;  %v4539_v59 = vadd.f32 %v14995_v19, %v17369_v24  ;;  %v17377_v24 = vld [vmem:[#allocation24_spill] sm:$0xff] }
 0x8b8   :  { %v14950_v28 = vadd.f32 %v5205_v32, %v5152_v44  ;;  %v5270_v36 = vpop.f32.mrf.mxu3  ;;  %v14952_v30 = vpop.f32.mrf.mxu0  ;;  %6162 = vmatpush.msra.mxu3 %v17356_v4  ;;  %6099 = vmatpush.msra.mxu2 %v17357_v22  ;;  %v4538_v44 = vadd.f32 %v14995_v19, %v17365_v40  ;;  %v17375_v40 = vld [vmem:[#allocation8_spill] sm:$0xff] }
 0x8b9   :  { %v14956_v51 = vadd.f32 %v5270_v36, %v5153_v39  ;;  %v5111_v23 = vpop.f32.mrf.mxu1  ;;  %6002 = vmatpush.msra.mxu1 %v8043_v3  ;;  %v17367_v39 = vld [vmem:[#allocation25_spill] sm:$0xff] }
 0x8ba   :  { %6163 = vmatpush.msra.mxu3 %v17358_v35  ;;  %v5155_v16 = vadd.f32 %v5111_v23, %v17361_v17  ;;  %v15007_v35 = vmax.f32 %v4538_v44, 0.0  ;;  %v17371_v17 = vld [vmem:[#allocation211_spill] sm:$0xff] }
 0x8bb   :  { %5381 = vmatmul.f32.gmra.mxu0 %v14548_v1 }
 0x8bc   :  { %5434 = vmatmul.f32.gmra.mxu1 %v14099_v53  ;;  %5531 = vmatmul.f32.gmra.mxu2 %v13924_v38  ;;  %17368 = vst [vmem:[#allocation32_spill] sm:$0xff] %v15007_v35 }
 0x8bd   :  { %5596 = vmatmul.f32.gmra.mxu3 %v13924_v38 }
 0x8be   :  { %6164 = vmatpush.msra.mxu3 %v17360_v55 }
 0x8bf   :  { %v5208_v7 = vpop.f32.mrf.mxu2 }
 0x8c0   :  { %v14970_v26 = vadd.f32 %v5208_v7, %v5154_v63  ;;  %v5273_v57 = vpop.f32.mrf.mxu3  ;;  %v14972_v56 = vpop.f32.mrf.mxu0  ;;  %v17370_v63 = vld [vmem:[#allocation209_spill] sm:$0xff] }
 0x8c1   :  { %v14974_v54 = vadd.f32 %v5273_v57, %v5155_v16  ;;  %v5114_v29 = vpop.f32.mrf.mxu1  ;;  %v5160_v55 = vadd.f32 %v14918_v13, %v17370_v63 }
 0x8c2   :  { %v5157_v5 = vadd.f32 %v5114_v29, %v17363_v43 }
 0x8c3   :  { %5384 = vmatmul.f32.gmra.mxu0 %v14578_v48 }
 0x8c4   :  { %5437 = vmatmul.f32.gmra.mxu1 %v14156_v45  ;;  %5534 = vmatmul.f32.gmra.mxu2 %v13962_v34 }
 0x8c5   :  { %5599 = vmatmul.f32.gmra.mxu3 %v13962_v34 }
 0x8c7   :  { %v5211_v25 = vpop.f32.mrf.mxu2 }
 0x8c8   :  { %v14983_v46 = vadd.f32 %v5211_v25, %v5156_v49  ;;  %v5276_v6 = vpop.f32.mrf.mxu3  ;;  %v14985_v52 = vpop.f32.mrf.mxu0  ;;  %v17373_v25 = vld [vmem:[#allocation3_spill] sm:$0xff] }
 0x8c9   :  { %v14987_v8 = vadd.f32 %v5276_v6, %v5157_v5  ;;  %v5117_v42 = vpop.f32.mrf.mxu1  ;;  %v15022_v5 = vmax.f32 %v4539_v59, 0.0  ;;  %v4540_v13 = vadd.f32 %v14995_v19, %v17373_v25  ;;  %v17374_v6 = vld [vmem:[#allocation212_spill] sm:$0xff]  ;;  %v17378_v59 = vld [vmem:[#allocation194_spill] sm:$0xff] }
 0x8ca   :  { %v5159_v32 = vadd.f32 %v5117_v42, %v17367_v39  ;;  %v5162_v42 = vadd.f32 %v14952_v30, %v17374_v6  ;;  %v4541_v30 = vadd.f32 %v14995_v19, %v17377_v24  ;;  %v5164_v63 = vadd.f32 %v14972_v56, %v17378_v59  ;;  %v17381_v56 = vld [vmem:[#allocation216_spill] sm:$0xff] }
 0x8cb   :  { %5387 = vmatmul.f32.gmra.mxu0 %v14608_v47  ;;  %17372 = vst [vmem:[#allocation203_spill] sm:$0xff] %v15022_v5  ;;  %v17388_v19 = vld [vmem:[#allocation184_spill] sm:$0xff] }
 0x8cc   :  { %5440 = vmatmul.f32.gmra.mxu1 %v14208_v9  ;;  %5537 = vmatmul.f32.gmra.mxu2 %v14000_v10  ;;  %v15052_v6 = vmax.f32 %v4541_v30, 0.0 }
 0x8cd   :  { %5602 = vmatmul.f32.gmra.mxu3 %v14000_v10 }
 0x8ce   :  { %17380 = vst [vmem:[#allocation223_spill] sm:$0xff] %v15052_v6 }
 0x8cf   :  { %v5214_v12 = vpop.f32.mrf.mxu2 }
 0x8d0   :  { %v15003_v36 = vadd.f32 %v5214_v12, %v5158_v50  ;;  %v5279_v4 = vpop.f32.mrf.mxu3  ;;  %v5067_v22 = vpop.f32.mrf.mxu0 }
 0x8d1   :  { %v15005_v23 = vadd.f32 %v5279_v4, %v5159_v32  ;;  %v5120_v3 = vpop.f32.mrf.mxu1 }
 0x8d2   :  { %v5161_v16 = vadd.f32 %v5120_v3, %v17371_v17  ;;  %v15037_v3 = vmax.f32 %v4540_v13, 0.0 }
 0x8d3   :  { %5390 = vmatmul.f32.gmra.mxu0 %v15007_v35 }
 0x8d4   :  { %5443 = vmatmul.f32.gmra.mxu1 %v14511_v62  ;;  %5540 = vmatmul.f32.gmra.mxu2 %v14043_v31  ;;  %17376 = vst [vmem:[#allocation93_spill] sm:$0xff] %v15037_v3 }
 0x8d5   :  { %5605 = vmatmul.f32.gmra.mxu3 %v14043_v31 }
 0x8d7   :  { %v5217_v7 = vpop.f32.mrf.mxu2 }
 0x8d8   :  { %v15018_v57 = vadd.f32 %v5217_v7, %v5160_v55  ;;  %v5282_v29 = vpop.f32.mrf.mxu3  ;;  %v5070_v0 = vpop.f32.mrf.mxu0  ;;  %v17379_v55 = vld [vmem:[#allocation91_spill] sm:$0xff] }
 0x8d9   :  { %v15020_v49 = vadd.f32 %v5282_v29, %v5161_v16  ;;  %v5123_v43 = vpop.f32.mrf.mxu1 }
 0x8da   :  { %v5163_v44 = vadd.f32 %v5123_v43, %v17375_v40  ;;  %v17382_v40 = vld [vmem:[#allocation217_spill] sm:$0xff] }
 0x8db   :  { %5393 = vmatmul.f32.gmra.mxu0 %v15022_v5 }
 0x8dc   :  { %5446 = vmatmul.f32.gmra.mxu1 %v14548_v1  ;;  %5543 = vmatmul.f32.gmra.mxu2 %v14099_v53 }
 0x8dd   :  { %5608 = vmatmul.f32.gmra.mxu3 %v14099_v53 }
 0x8df   :  { %v5220_v11 = vpop.f32.mrf.mxu2 }
 0x8e0   :  { %v15033_v50 = vadd.f32 %v5220_v11, %v5162_v42  ;;  %v5285_v39 = vpop.f32.mrf.mxu3  ;;  %v5073_v32 = vpop.f32.mrf.mxu0  ;;  %v5166_v42 = vadd.f32 %v14985_v52, %v17381_v56 }
 0x8e1   :  { %v15035_v12 = vadd.f32 %v5285_v39, %v5163_v44  ;;  %v5126_v4 = vpop.f32.mrf.mxu1 }
 0x8e2   :  { %v5165_v17 = vadd.f32 %v5126_v4, %v17379_v55  ;;  %v17384_v55 = vld [vmem:[#allocation30_spill] sm:$0xff] }
 0x8e3   :  { %5396 = vmatmul.f32.gmra.mxu0 %v15037_v3  ;;  %v5168_v52 = vadd.f32 %v5067_v22, %v17384_v55  ;;  %v5170_v22 = vadd.f32 %v5070_v0, %v14706_v2  ;;  %v5172_v2 = vadd.f32 %v5073_v32, %v14742_v58  ;;  %v17389_v0 = vld [vmem:[#allocation221_spill] sm:$0xff] }
 0x8e4   :  { %5449 = vmatmul.f32.gmra.mxu1 %v14578_v48  ;;  %5546 = vmatmul.f32.gmra.mxu2 %v14156_v45 }
 0x8e5   :  { %5611 = vmatmul.f32.gmra.mxu3 %v14156_v45 }
 0x8e7   :  { %v5223_v16 = vpop.f32.mrf.mxu2 }
 0x8e8   :  { %v15048_v7 = vadd.f32 %v5223_v16, %v5164_v63  ;;  %v5288_v29 = vpop.f32.mrf.mxu3  ;;  %v5076_v43 = vpop.f32.mrf.mxu0  ;;  %v17383_v63 = vld [vmem:[#allocation76_spill] sm:$0xff] }
 0x8e9   :  { %v15050_v25 = vadd.f32 %v5288_v29, %v5165_v17  ;;  %v5129_v13 = vpop.f32.mrf.mxu1  ;;  %v17385_v17 = vld [vmem:[#allocation198_spill] sm:$0xff]  ;;  %v5174_v58 = vadd.f32 %v5076_v43, %v14776_v41  ;;  %v17398_v41 = vld [vmem:[#allocation81_spill] sm:$0xff] }
 0x8ea   :  { %v5167_v44 = vadd.f32 %v5129_v13, %v17382_v40 }
 0x8eb   :  { %5399 = vmatmul.f32.gmra.mxu0 %v15052_v6 }
 0x8ec   :  { %5452 = vmatmul.f32.gmra.mxu1 %v14608_v47  ;;  %5549 = vmatmul.f32.gmra.mxu2 %v14208_v9 }
 0x8ed   :  { %5614 = vmatmul.f32.gmra.mxu3 %v14208_v9 }
 0x8ef   :  { %v5226_v11 = vpop.f32.mrf.mxu2 }
 0x8f0   :  { %v15061_v39 = vadd.f32 %v5226_v11, %v5166_v42  ;;  %v5291_v4 = vpop.f32.mrf.mxu3  ;;  %v5355_v24 = vpop.f32.mrf.mxu0  ;;  %v17386_v11 = vld [vmem:[#allocation77_spill] sm:$0xff] }
 0x8f1   :  { %v15063_v30 = vadd.f32 %v5291_v4, %v5167_v44  ;;  %v5132_v59 = vpop.f32.mrf.mxu1  ;;  %v17387_v4 = vld [vmem:[#allocation219_spill] sm:$0xff] }
 0x8f2   :  { %v5169_v16 = vadd.f32 %v5132_v59, %v17385_v17 }
 0x8f3   :  { %5646 = vmatmul.f32.vlgmr.msra.gmra.mxu0 %v17383_v63 }
 0x8f4   :  { %5455 = vmatmul.f32.gmra.mxu1 %v15007_v35  ;;  %5552 = vmatmul.f32.gmra.mxu2 %v14511_v62  ;;  %v17390_v35 = vld [vmem:[#allocation200_spill] sm:$0xff] }
 0x8f5   :  { %5617 = vmatmul.f32.gmra.mxu3 %v14511_v62 }
 0x8f7   :  { %v5229_v29 = vpop.f32.mrf.mxu2 }
 0x8f8   :  { %v15071_v13 = vadd.f32 %v5229_v29, %v5168_v52  ;;  %v5294_v56 = vpop.f32.mrf.mxu3  ;;  %v5358_v42 = vpop.f32.mrf.mxu0 }
 0x8f9   :  { %v15073_v40 = vadd.f32 %v5294_v56, %v5169_v16  ;;  %v5135_v44 = vpop.f32.mrf.mxu1 }
 0x8fa   :  { %v5171_v59 = vadd.f32 %v5135_v44, %v17387_v4 }
 0x8fb   :  { %5649 = vmatmul.f32.gmra.mxu0 %v17386_v11 }
 0x8fc   :  { %5458 = vmatmul.f32.gmra.mxu1 %v15022_v5  ;;  %5555 = vmatmul.f32.gmra.mxu2 %v14548_v1 }
 0x8fd   :  { %5620 = vmatmul.f32.gmra.mxu3 %v14548_v1 }
 0x8ff   :  { %v5232_v55 = vpop.f32.mrf.mxu2 }
 0x900   :  { %v15081_v52 = vadd.f32 %v5232_v55, %v5170_v22  ;;  %v5297_v17 = vpop.f32.mrf.mxu3  ;;  %v5361_v29 = vpop.f32.mrf.mxu0 }
 0x901   :  { %v15083_v16 = vadd.f32 %v5297_v17, %v5171_v59  ;;  %v5138_v56 = vpop.f32.mrf.mxu1 }
 0x902   :  { %v5173_v44 = vadd.f32 %v5138_v56, %v17389_v0 }
 0x903   :  { %5652 = vmatmul.f32.gmra.mxu0 %v17388_v19 }
 0x904   :  { %5461 = vmatmul.f32.gmra.mxu1 %v15037_v3  ;;  %5558 = vmatmul.f32.gmra.mxu2 %v14578_v48  ;;  %v15106_v3 = vadd.f32 %v5355_v24, %v14807_v15 }
 0x905   :  { %5623 = vmatmul.f32.gmra.mxu3 %v14578_v48  ;;  %v17391_v48 = vld [vmem:[#allocation185_spill] sm:$0xff] }
 0x907   :  { %v5235_v4 = vpop.f32.mrf.mxu2 }
 0x908   :  { %v15091_v22 = vadd.f32 %v5235_v4, %v5172_v2  ;;  %v5300_v55 = vpop.f32.mrf.mxu3  ;;  %v5364_v5 = vpop.f32.mrf.mxu0 }
 0x909   :  { %v15093_v59 = vadd.f32 %v5300_v55, %v5173_v44  ;;  %v5141_v17 = vpop.f32.mrf.mxu1 }
 0x90a   :  { %v5175_v32 = vadd.f32 %v5141_v17, %v14783_v20 }
 0x90b   :  { %5655 = vmatmul.f32.gmra.mxu0 %v17390_v35 }
 0x90c   :  { %5464 = vmatmul.f32.gmra.mxu1 %v15052_v6  ;;  %5561 = vmatmul.f32.gmra.mxu2 %v14608_v47 }
 0x90d   :  { %5626 = vmatmul.f32.gmra.mxu3 %v14608_v47 }
 0x90f   :  { %v5238_v56 = vpop.f32.mrf.mxu2 }
 0x910   :  { %v15101_v2 = vadd.f32 %v5238_v56, %v5174_v58  ;;  %v5303_v0 = vpop.f32.mrf.mxu3  ;;  %v5367_v4 = vpop.f32.mrf.mxu0  ;;  %v17392_v58 = vld [vmem:[#allocation72_spill] sm:$0xff] }
 0x911   :  { %v15103_v44 = vadd.f32 %v5303_v0, %v5175_v32  ;;  %v5420_v55 = vpop.f32.mrf.mxu1 }
 0x912   :  { %v15109_v6 = vadd.f32 %v5420_v55, %v14815_v61  ;;  %v15122_v61 = vadd.f32 %v5358_v42, %v14844_v33  ;;  %v17395_v55 = vld [vmem:[#allocation2_spill] sm:$0xff] }
 0x913   :  { %5658 = vmatmul.f32.gmra.mxu0 %v17391_v48 }
 0x914   :  { %5711 = vmatmul.f32.vlgmr.msrb.gmra.mxu1 %v17383_v63  ;;  %5776 = vmatmul.f32.vlgmr.msrb.gmra.mxu2 %v17391_v48 }
 0x915   :  { %5841 = vmatmul.f32.vlgmr.msrb.gmra.mxu3 %v17391_v48 }
 0x917   :  { %v15117_v20 = vpop.f32.mrf.mxu2 }
 0x918   :  { %v15119_v43 = vpop.f32.mrf.mxu3  ;;  %v5370_v15 = vpop.f32.mrf.mxu0 }
 0x919   :  { %v5423_v24 = vpop.f32.mrf.mxu1 }
 0x91a   :  { %v15125_v17 = vadd.f32 %v5423_v24, %v14850_v18  ;;  %v15138_v18 = vadd.f32 %v5361_v29, %v14879_v21 }
 0x91b   :  { %5661 = vmatmul.f32.gmra.mxu0 %v17392_v58 }
 0x91c   :  { %5714 = vmatmul.f32.gmra.mxu1 %v17386_v11  ;;  %5779 = vmatmul.f32.gmra.mxu2 %v17392_v58  ;;  %17393 = vst [vmem:[#allocation224_spill] sm:$0xff] %v15138_v18  ;;  %v17401_v18 = vld [vmem:[#allocation188_spill] sm:$0xff] }
 0x91d   :  { %5844 = vmatmul.f32.gmra.mxu3 %v17392_v58 }
 0x91f   :  { %v15133_v32 = vpop.f32.mrf.mxu2 }
 0x920   :  { %v15135_v56 = vpop.f32.mrf.mxu3  ;;  %v5373_v33 = vpop.f32.mrf.mxu0 }
 0x921   :  { %v5426_v42 = vpop.f32.mrf.mxu1 }
 0x922   :  { %v15141_v0 = vadd.f32 %v5426_v42, %v14887_v37  ;;  %v15154_v37 = vadd.f32 %v5364_v5, %v14916_v60 }
 0x923   :  { %5664 = vmatmul.f32.gmra.mxu0 %v17395_v55 }
 0x924   :  { %17394 = vst [vmem:[#allocation225_spill] sm:$0xff] %v15141_v0  ;;  %5717 = vmatmul.f32.gmra.mxu1 %v17388_v19  ;;  %5782 = vmatmul.f32.gmra.mxu2 %v17395_v55 }
 0x925   :  { %5847 = vmatmul.f32.gmra.mxu3 %v17395_v55  ;;  %17396 = vst [vmem:[#allocation12_spill] sm:$0xff] %v15154_v37  ;;  %v17404_v37 = vld [vmem:[#allocation189_spill] sm:$0xff] }
 0x927   :  { %v15149_v24 = vpop.f32.mrf.mxu2 }
 0x928   :  { %v15151_v63 = vpop.f32.mrf.mxu3  ;;  %v5376_v21 = vpop.f32.mrf.mxu0 }
 0x929   :  { %v5429_v29 = vpop.f32.mrf.mxu1 }
 0x92a   :  { %v15157_v42 = vadd.f32 %v5429_v29, %v14922_v14  ;;  %v15170_v14 = vadd.f32 %v5367_v4, %v14950_v28 }
 0x92b   :  { %5667 = vmatmul.f32.gmra.mxu0 %v17398_v41 }
 0x92c   :  { %17397 = vst [vmem:[#allocation13_spill] sm:$0xff] %v15157_v42  ;;  %5720 = vmatmul.f32.gmra.mxu1 %v17390_v35  ;;  %5785 = vmatmul.f32.gmra.mxu2 %v17398_v41 }
 0x92d   :  { %5850 = vmatmul.f32.gmra.mxu3 %v17398_v41  ;;  %17399 = vst [vmem:[#allocation35_spill] sm:$0xff] %v15170_v14  ;;  %v17407_v14 = vld [vmem:[#allocation75_spill] sm:$0xff] }
 0x92f   :  { %v15165_v11 = vpop.f32.mrf.mxu2 }
 0x930   :  { %v15167_v0 = vpop.f32.mrf.mxu3  ;;  %v5379_v60 = vpop.f32.mrf.mxu0 }
 0x931   :  { %v5432_v5 = vpop.f32.mrf.mxu1 }
 0x932   :  { %v15173_v29 = vadd.f32 %v5432_v5, %v14956_v51  ;;  %v15186_v51 = vadd.f32 %v5370_v15, %v14970_v26 }
 0x933   :  { %5670 = vmatmul.f32.gmra.mxu0 %v17401_v18 }
 0x934   :  { %17400 = vst [vmem:[#allocation208_spill] sm:$0xff] %v15173_v29  ;;  %5723 = vmatmul.f32.gmra.mxu1 %v17391_v48  ;;  %5788 = vmatmul.f32.gmra.mxu2 %v17401_v18 }
 0x935   :  { %5853 = vmatmul.f32.gmra.mxu3 %v17401_v18  ;;  %17402 = vst [vmem:[#allocation94_spill] sm:$0xff] %v15186_v51  ;;  %v17411_v51 = vld [vmem:[#allocation181_spill] sm:$0xff] }
 0x937   :  { %v15181_v19 = vpop.f32.mrf.mxu2 }
 0x938   :  { %v15183_v42 = vpop.f32.mrf.mxu3  ;;  %v5382_v28 = vpop.f32.mrf.mxu0 }
 0x939   :  { %v5435_v4 = vpop.f32.mrf.mxu1 }
 0x93a   :  { %v15189_v5 = vadd.f32 %v5435_v4, %v14974_v54  ;;  %v15202_v54 = vadd.f32 %v5373_v33, %v14983_v46 }
 0x93b   :  { %5673 = vmatmul.f32.gmra.mxu0 %v17404_v37 }
 0x93c   :  { %17403 = vst [vmem:[#allocation227_spill] sm:$0xff] %v15189_v5  ;;  %5726 = vmatmul.f32.gmra.mxu1 %v17392_v58  ;;  %5791 = vmatmul.f32.gmra.mxu2 %v17404_v37 }
 0x93d   :  { %5856 = vmatmul.f32.gmra.mxu3 %v17404_v37  ;;  %17405 = vst [vmem:[#allocation228_spill] sm:$0xff] %v15202_v54  ;;  %v17416_v54 = vld [vmem:[#allocation78_spill] sm:$0xff] }
 0x93f   :  { %v15197_v35 = vpop.f32.mrf.mxu2 }
 0x940   :  { %v15199_v29 = vpop.f32.mrf.mxu3  ;;  %v5385_v26 = vpop.f32.mrf.mxu0 }
 0x941   :  { %v5438_v15 = vpop.f32.mrf.mxu1 }
 0x942   :  { %v15205_v4 = vadd.f32 %v5438_v15, %v14987_v8  ;;  %v15218_v8 = vadd.f32 %v5376_v21, %v15003_v36 }
 0x943   :  { %5676 = vmatmul.f32.gmra.mxu0 %v17407_v14 }
 0x944   :  { %17406 = vst [vmem:[#allocation229_spill] sm:$0xff] %v15205_v4  ;;  %5729 = vmatmul.f32.gmra.mxu1 %v17395_v55  ;;  %5794 = vmatmul.f32.gmra.mxu2 %v17407_v14 }
 0x945   :  { %5859 = vmatmul.f32.gmra.mxu3 %v17407_v14  ;;  %17409 = vst [vmem:[#allocation15_spill] sm:$0xff] %v15218_v8  ;;  %v17421_v8 = vld [vmem:[#allocation21_spill] sm:$0xff] }
 0x947   :  { %v15213_v48 = vpop.f32.mrf.mxu2 }
 0x948   :  { %v15215_v5 = vpop.f32.mrf.mxu3  ;;  %v5388_v46 = vpop.f32.mrf.mxu0 }
 0x949   :  { %17408 = vst [vmem:[#allocation14_spill] sm:$0xff] %v15215_v5  ;;  %v5441_v33 = vpop.f32.mrf.mxu1 }
 0x94a   :  { %v15221_v15 = vadd.f32 %v5441_v33, %v15005_v23  ;;  %v15234_v23 = vadd.f32 %v5379_v60, %v15018_v57 }
 0x94b   :  { %5679 = vmatmul.f32.gmra.mxu0 %v17411_v51 }
 0x94c   :  { %17410 = vst [vmem:[#allocation37_spill] sm:$0xff] %v15221_v15  ;;  %5732 = vmatmul.f32.gmra.mxu1 %v17398_v41  ;;  %5797 = vmatmul.f32.gmra.mxu2 %v17411_v51 }
 0x94d   :  { %5862 = vmatmul.f32.gmra.mxu3 %v17411_v51  ;;  %17414 = vst [vmem:[#allocation231_spill] sm:$0xff] %v15234_v23 }
 0x94f   :  { %v15229_v58 = vpop.f32.mrf.mxu2 }
 0x950   :  { %17412 = vst [vmem:[#allocation213_spill] sm:$0xff] %v15229_v58  ;;  %v15231_v4 = vpop.f32.mrf.mxu3  ;;  %v5391_v36 = vpop.f32.mrf.mxu0  ;;  %v17455_v58 = vld [vmem:[#allocation7_spill] sm:$0xff] }
 0x951   :  { %17413 = vst [vmem:[#allocation95_spill] sm:$0xff] %v15231_v4  ;;  %v5444_v21 = vpop.f32.mrf.mxu1 }
 0x952   :  { %v15237_v33 = vadd.f32 %v5444_v21, %v15020_v49  ;;  %v15250_v49 = vadd.f32 %v5382_v28, %v15033_v50 }
 0x953   :  { %5682 = vmatmul.f32.gmra.mxu0 %v17416_v54 }
 0x954   :  { %17415 = vst [vmem:[#allocation232_spill] sm:$0xff] %v15237_v33  ;;  %5735 = vmatmul.f32.gmra.mxu1 %v17401_v18  ;;  %5800 = vmatmul.f32.gmra.mxu2 %v17416_v54 }
 0x955   :  { %5865 = vmatmul.f32.gmra.mxu3 %v17416_v54  ;;  %17419 = vst [vmem:[#allocation17_spill] sm:$0xff] %v15250_v49 }
 0x957   :  { %v15245_v55 = vpop.f32.mrf.mxu2 }
 0x958   :  { %17417 = vst [vmem:[#allocation233_spill] sm:$0xff] %v15245_v55  ;;  %v15247_v15 = vpop.f32.mrf.mxu3  ;;  %v5394_v57 = vpop.f32.mrf.mxu0 }
 0x959   :  { %17418 = vst [vmem:[#allocation16_spill] sm:$0xff] %v15247_v15  ;;  %v5447_v60 = vpop.f32.mrf.mxu1  ;;  %v17426_v15 = vld [vmem:[#allocation215_spill] sm:$0xff] }
 0x95a   :  { %v15253_v21 = vadd.f32 %v5447_v60, %v15035_v12  ;;  %v15266_v12 = vadd.f32 %v5385_v26, %v15048_v7 }
 0x95b   :  { %5685 = vmatmul.f32.gmra.mxu0 %v17421_v8 }
 0x95c   :  { %17420 = vst [vmem:[#allocation39_spill] sm:$0xff] %v15253_v21  ;;  %5738 = vmatmul.f32.gmra.mxu1 %v17404_v37  ;;  %5803 = vmatmul.f32.gmra.mxu2 %v17421_v8 }
 0x95d   :  { %5868 = vmatmul.f32.gmra.mxu3 %v17421_v8  ;;  %17424 = vst [vmem:[#allocation235_spill] sm:$0xff] %v15266_v12 }
 0x95f   :  { %v15261_v33 = vpop.f32.mrf.mxu2 }
 0x960   :  { %17422 = vst [vmem:[#allocation218_spill] sm:$0xff] %v15261_v33  ;;  %v15263_v23 = vpop.f32.mrf.mxu3  ;;  %v5397_v50 = vpop.f32.mrf.mxu0 }
 0x961   :  { %17423 = vst [vmem:[#allocation96_spill] sm:$0xff] %v15263_v23  ;;  %v5450_v28 = vpop.f32.mrf.mxu1  ;;  %v17431_v23 = vld [vmem:[#allocation82_spill] sm:$0xff] }
 0x962   :  { %v15269_v60 = vadd.f32 %v5450_v28, %v15050_v25  ;;  %v15282_v25 = vadd.f32 %v5388_v46, %v15061_v39 }
 0x963   :  { %5688 = vmatmul.f32.gmra.mxu0 %v17426_v15 }
 0x964   :  { %17425 = vst [vmem:[#allocation236_spill] sm:$0xff] %v15269_v60  ;;  %5741 = vmatmul.f32.gmra.mxu1 %v17407_v14  ;;  %5806 = vmatmul.f32.gmra.mxu2 %v17426_v15 }
 0x965   :  { %5871 = vmatmul.f32.gmra.mxu3 %v17426_v15  ;;  %17429 = vst [vmem:[#allocation19_spill] sm:$0xff] %v15282_v25 }
 0x967   :  { %v15277_v21 = vpop.f32.mrf.mxu2 }
 0x968   :  { %17427 = vst [vmem:[#allocation237_spill] sm:$0xff] %v15277_v21  ;;  %v15279_v49 = vpop.f32.mrf.mxu3  ;;  %v5400_v7 = vpop.f32.mrf.mxu0 }
 0x969   :  { %17428 = vst [vmem:[#allocation18_spill] sm:$0xff] %v15279_v49  ;;  %v5453_v26 = vpop.f32.mrf.mxu1 }
 0x96a   :  { %v15285_v28 = vadd.f32 %v5453_v26, %v15063_v30  ;;  %v15300_v30 = vadd.f32 %v5391_v36, %v15071_v13 }
 0x96b   :  { %5691 = vmatmul.f32.gmra.mxu0 %v17431_v23 }
 0x96c   :  { %17430 = vst [vmem:[#allocation43_spill] sm:$0xff] %v15285_v28  ;;  %5744 = vmatmul.f32.gmra.mxu1 %v17411_v51  ;;  %5809 = vmatmul.f32.gmra.mxu2 %v17431_v23  ;;  %v17436_v28 = vld [vmem:[#allocation9_spill] sm:$0xff] }
 0x96d   :  { %5874 = vmatmul.f32.gmra.mxu3 %v17431_v23  ;;  %17434 = vst [vmem:[#allocation239_spill] sm:$0xff] %v15300_v30 }
 0x96f   :  { %v15293_v60 = vpop.f32.mrf.mxu2 }
 0x970   :  { %17432 = vst [vmem:[#allocation222_spill] sm:$0xff] %v15293_v60  ;;  %v15295_v12 = vpop.f32.mrf.mxu3  ;;  %v15297_v39 = vpop.f32.mrf.mxu0 }
 0x971   :  { %17433 = vst [vmem:[#allocation97_spill] sm:$0xff] %v15295_v12  ;;  %v5456_v46 = vpop.f32.mrf.mxu1 }
 0x972   :  { %v15303_v26 = vadd.f32 %v5456_v46, %v15073_v40  ;;  %v15318_v40 = vadd.f32 %v5394_v57, %v15081_v52 }
 0x973   :  { %5938 = vmatmul.f32.vlgmr.msrb.gmra.mxu0 %v13874_v27 }
 0x974   :  { %17435 = vst [vmem:[#allocation240_spill] sm:$0xff] %v15303_v26  ;;  %5747 = vmatmul.f32.gmra.mxu1 %v17416_v54  ;;  %5812 = vmatmul.f32.gmra.mxu2 %v17436_v28  ;;  %v17440_v26 = vld [vmem:[#allocation92_spill] sm:$0xff] }
 0x975   :  { %5877 = vmatmul.f32.gmra.mxu3 %v17436_v28  ;;  %17438 = vst [vmem:[#allocation20_spill] sm:$0xff] %v15318_v40 }
 0x977   :  { %v15311_v25 = vpop.f32.mrf.mxu2 }
 0x978   :  { %17437 = vst [vmem:[#allocation241_spill] sm:$0xff] %v15311_v25  ;;  %v15313_v12 = vpop.f32.mrf.mxu3  ;;  %v15315_v13 = vpop.f32.mrf.mxu0 }
 0x979   :  { %v5459_v36 = vpop.f32.mrf.mxu1 }
 0x97a   :  { %v15321_v46 = vadd.f32 %v5459_v36, %v15083_v16  ;;  %v15336_v16 = vadd.f32 %v5397_v50, %v15091_v22 }
 0x97b   :  { %5941 = vmatmul.f32.gmra.mxu0 %v13924_v38 }
 0x97c   :  { %17439 = vst [vmem:[#allocation22_spill] sm:$0xff] %v15321_v46  ;;  %5750 = vmatmul.f32.gmra.mxu1 %v17421_v8  ;;  %5815 = vmatmul.f32.gmra.mxu2 %v17440_v26  ;;  %v17444_v46 = vld [vmem:[#allocation220_spill] sm:$0xff] }
 0x97d   :  { %5880 = vmatmul.f32.gmra.mxu3 %v17440_v26  ;;  %17442 = vst [vmem:[#allocation226_spill] sm:$0xff] %v15336_v16 }
 0x97f   :  { %v15329_v30 = vpop.f32.mrf.mxu2 }
 0x980   :  { %17441 = vst [vmem:[#allocation47_spill] sm:$0xff] %v15329_v30  ;;  %v15331_v25 = vpop.f32.mrf.mxu3  ;;  %v15333_v52 = vpop.f32.mrf.mxu0 }
 0x981   :  { %v5462_v57 = vpop.f32.mrf.mxu1 }
 0x982   :  { %v15339_v36 = vadd.f32 %v5462_v57, %v15093_v59  ;;  %v15354_v59 = vadd.f32 %v5400_v7, %v15101_v2 }
 0x983   :  { %5944 = vmatmul.f32.gmra.mxu0 %v13962_v34 }
 0x984   :  { %17443 = vst [vmem:[#allocation98_spill] sm:$0xff] %v15339_v36  ;;  %5753 = vmatmul.f32.gmra.mxu1 %v17426_v15  ;;  %5818 = vmatmul.f32.gmra.mxu2 %v17444_v46  ;;  %v17448_v36 = vld [vmem:[#allocation10_spill] sm:$0xff] }
 0x985   :  { %5883 = vmatmul.f32.gmra.mxu3 %v17444_v46  ;;  %17446 = vst [vmem:[#allocation244_spill] sm:$0xff] %v15354_v59 }
 0x987   :  { %v15347_v40 = vpop.f32.mrf.mxu2 }
 0x988   :  { %17445 = vst [vmem:[#allocation243_spill] sm:$0xff] %v15347_v40  ;;  %v15349_v30 = vpop.f32.mrf.mxu3  ;;  %v15351_v22 = vpop.f32.mrf.mxu0 }
 0x989   :  { %v5465_v50 = vpop.f32.mrf.mxu1 }
 0x98a   :  { %v15357_v57 = vadd.f32 %v5465_v50, %v15103_v44 }
 0x98b   :  { %5947 = vmatmul.f32.gmra.mxu0 %v14000_v10 }
 0x98c   :  { %17447 = vst [vmem:[#allocation245_spill] sm:$0xff] %v15357_v57  ;;  %5756 = vmatmul.f32.gmra.mxu1 %v17431_v23  ;;  %5821 = vmatmul.f32.gmra.mxu2 %v17448_v36 }
 0x98d   :  { %5886 = vmatmul.f32.gmra.mxu3 %v17448_v36 }
 0x98f   :  { %v15365_v16 = vpop.f32.mrf.mxu2 }
 0x990   :  { %17449 = vst [vmem:[#allocation23_spill] sm:$0xff] %v15365_v16  ;;  %v15367_v40 = vpop.f32.mrf.mxu3  ;;  %v15369_v2 = vpop.f32.mrf.mxu0 }
 0x991   :  { %v15371_v7 = vpop.f32.mrf.mxu1 }
 0x993   :  { %5950 = vmatmul.f32.gmra.mxu0 %v14043_v31 }
 0x994   :  { %6003 = vmatmul.f32.vlgmr.msra.gmra.mxu1 %v13874_v27  ;;  %6100 = vmatmul.f32.vlgmr.msra.gmra.mxu2 %v17401_v18 }
 0x995   :  { %6165 = vmatmul.f32.vlgmr.msra.gmra.mxu3 %v17401_v18 }
 0x997   :  { %v15377_v44 = vpop.f32.mrf.mxu2 }
 0x998   :  { %v15379_v50 = vpop.f32.mrf.mxu3  ;;  %v15381_v41 = vpop.f32.mrf.mxu0 }
 0x999   :  { %v15383_v57 = vpop.f32.mrf.mxu1 }
 0x99b   :  { %5953 = vmatmul.f32.gmra.mxu0 %v14099_v53 }
 0x99c   :  { %6006 = vmatmul.f32.gmra.mxu1 %v13924_v38  ;;  %6103 = vmatmul.f32.gmra.mxu2 %v17404_v37 }
 0x99d   :  { %6168 = vmatmul.f32.gmra.mxu3 %v17404_v37 }
 0x99f   :  { %v15389_v27 = vpop.f32.mrf.mxu2 }
 0x9a0   :  { %v15391_v59 = vpop.f32.mrf.mxu3  ;;  %v15393_v18 = vpop.f32.mrf.mxu0 }
 0x9a1   :  { %v15395_v16 = vpop.f32.mrf.mxu1 }
 0x9a3   :  { %5956 = vmatmul.f32.gmra.mxu0 %v14156_v45 }
 0x9a4   :  { %6009 = vmatmul.f32.gmra.mxu1 %v13962_v34  ;;  %6106 = vmatmul.f32.gmra.mxu2 %v17407_v14 }
 0x9a5   :  { %6171 = vmatmul.f32.gmra.mxu3 %v17407_v14 }
 0x9a7   :  { %v15401_v38 = vpop.f32.mrf.mxu2 }
 0x9a8   :  { %v15403_v60 = vpop.f32.mrf.mxu3  ;;  %v15405_v37 = vpop.f32.mrf.mxu0 }
 0x9a9   :  { %17450 = vst [vmem:[#allocation42_spill] sm:$0xff] %v15405_v37  ;;  %v15407_v49 = vpop.f32.mrf.mxu1 }
 0x9ab   :  { %5959 = vmatmul.f32.gmra.mxu0 %v14208_v9 }
 0x9ac   :  { %6012 = vmatmul.f32.gmra.mxu1 %v14000_v10  ;;  %6109 = vmatmul.f32.gmra.mxu2 %v17411_v51 }
 0x9ad   :  { %6174 = vmatmul.f32.gmra.mxu3 %v17411_v51 }
 0x9af   :  { %v15413_v34 = vpop.f32.mrf.mxu2 }
 0x9b0   :  { %v15415_v21 = vpop.f32.mrf.mxu3  ;;  %v15417_v14 = vpop.f32.mrf.mxu0 }
 0x9b1   :  { %17451 = vst [vmem:[#allocation52_spill] sm:$0xff] %v15417_v14  ;;  %v15419_v33 = vpop.f32.mrf.mxu1 }
 0x9b3   :  { %5962 = vmatmul.f32.gmra.mxu0 %v14511_v62 }
 0x9b4   :  { %6015 = vmatmul.f32.gmra.mxu1 %v14043_v31  ;;  %6112 = vmatmul.f32.gmra.mxu2 %v17416_v54 }
 0x9b5   :  { %6177 = vmatmul.f32.gmra.mxu3 %v17416_v54 }
 0x9b7   :  { %v15425_v10 = vpop.f32.mrf.mxu2 }
 0x9b8   :  { %v15427_v55 = vpop.f32.mrf.mxu3  ;;  %v15429_v51 = vpop.f32.mrf.mxu0 }
 0x9b9   :  { %17452 = vst [vmem:[#allocation230_spill] sm:$0xff] %v15429_v51  ;;  %v15431_v4 = vpop.f32.mrf.mxu1 }
 0x9bb   :  { %5965 = vmatmul.f32.gmra.mxu0 %v14548_v1 }
 0x9bc   :  { %6018 = vmatmul.f32.gmra.mxu1 %v14099_v53  ;;  %6115 = vmatmul.f32.gmra.mxu2 %v17421_v8 }
 0x9bd   :  { %6180 = vmatmul.f32.gmra.mxu3 %v17421_v8 }
 0x9bf   :  { %v15437_v31 = vpop.f32.mrf.mxu2 }
 0x9c0   :  { %v15439_v14 = vpop.f32.mrf.mxu3  ;;  %v15441_v54 = vpop.f32.mrf.mxu0 }
 0x9c1   :  { %17453 = vst [vmem:[#allocation99_spill] sm:$0xff] %v15441_v54  ;;  %v15443_v37 = vpop.f32.mrf.mxu1 }
 0x9c2   :  { %17454 = vst [vmem:[#allocation247_spill] sm:$0xff] %v15443_v37 }
 0x9c3   :  { %5968 = vmatmul.f32.gmra.mxu0 %v17455_v58 }
 0x9c4   :  { %6021 = vmatmul.f32.gmra.mxu1 %v14156_v45  ;;  %6118 = vmatmul.f32.gmra.mxu2 %v17426_v15 }
 0x9c5   :  { %6183 = vmatmul.f32.gmra.mxu3 %v17426_v15 }
 0x9c7   :  { %v15449_v53 = vpop.f32.mrf.mxu2 }
 0x9c8   :  { %17456 = vst [vmem:[#allocation248_spill] sm:$0xff] %v15449_v53  ;;  %v15451_v51 = vpop.f32.mrf.mxu3  ;;  %v15453_v8 = vpop.f32.mrf.mxu0 }
 0x9c9   :  { %17457 = vst [vmem:[#allocation249_spill] sm:$0xff] %v15451_v51  ;;  %v15455_v5 = vpop.f32.mrf.mxu1  ;;  %v17464_v51 = vld [vmem:[#allocation32_spill] sm:$0xff] }
 0x9ca   :  { %17458 = vst [vmem:[#allocation26_spill] sm:$0xff] %v15453_v8 }
 0x9cb   :  { %17459 = vst [vmem:[#allocation45_spill] sm:$0xff] %v15455_v5  ;;  %5971 = vmatmul.f32.gmra.mxu0 %v14608_v47 }
 0x9cc   :  { %6024 = vmatmul.f32.gmra.mxu1 %v14208_v9  ;;  %6121 = vmatmul.f32.gmra.mxu2 %v17431_v23 }
 0x9cd   :  { %6186 = vmatmul.f32.gmra.mxu3 %v17431_v23 }
 0x9cf   :  { %v15461_v45 = vpop.f32.mrf.mxu2 }
 0x9d0   :  { %17460 = vst [vmem:[#allocation100_spill] sm:$0xff] %v15461_v45  ;;  %v15463_v54 = vpop.f32.mrf.mxu3  ;;  %v15465_v15 = vpop.f32.mrf.mxu0 }
 0x9d1   :  { %17461 = vst [vmem:[#allocation234_spill] sm:$0xff] %v15463_v54  ;;  %v15467_v53 = vpop.f32.mrf.mxu1  ;;  %v17469_v54 = vld [vmem:[#allocation203_spill] sm:$0xff] }
 0x9d2   :  { %17462 = vst [vmem:[#allocation101_spill] sm:$0xff] %v15465_v15 }
 0x9d3   :  { %17463 = vst [vmem:[#allocation251_spill] sm:$0xff] %v15467_v53  ;;  %5974 = vmatmul.f32.gmra.mxu0 %v17464_v51 }
 0x9d4   :  { %6027 = vmatmul.f32.gmra.mxu1 %v14511_v62  ;;  %6124 = vmatmul.f32.gmra.mxu2 %v17436_v28 }
 0x9d5   :  { %6189 = vmatmul.f32.gmra.mxu3 %v17436_v28 }
 0x9d7   :  { %v15473_v9 = vpop.f32.mrf.mxu2 }
 0x9d8   :  { %17465 = vst [vmem:[#allocation252_spill] sm:$0xff] %v15473_v9  ;;  %v15475_v8 = vpop.f32.mrf.mxu3  ;;  %v15477_v23 = vpop.f32.mrf.mxu0 }
 0x9d9   :  { %17466 = vst [vmem:[#allocation253_spill] sm:$0xff] %v15475_v8  ;;  %v15479_v45 = vpop.f32.mrf.mxu1  ;;  %v6375_v8 = vld [vmem:[%s15988_s5 + $0x168] sm:$0xff] }
 0x9da   :  { %17467 = vst [vmem:[#allocation29_spill] sm:$0xff] %v15477_v23  ;;  %v6377_v23 = vld [vmem:[%s15988_s5 + $0x178] sm:$0xff] }
 0x9db   :  { %17468 = vst [vmem:[#allocation48_spill] sm:$0xff] %v15479_v45  ;;  %5977 = vmatmul.f32.gmra.mxu0 %v17469_v54  ;;  %6452 = vmatpush.msrb.mxu2 %v6377_v23  ;;  %v6361_v23 = vld [vmem:[%s15988_s5 + $0xf8] sm:$0xff] }
 0x9dc   :  { %6030 = vmatmul.f32.gmra.mxu1 %v14548_v1  ;;  %6127 = vmatmul.f32.gmra.mxu2 %v17440_v26  ;;  %v6393_v1 = vld [vmem:[%s15988_s5 + $0x1f8] sm:$0xff] }
 0x9dd   :  { %6192 = vmatmul.f32.gmra.mxu3 %v17440_v26  ;;  %v6345_v26 = vld [vmem:[%s15988_s5 + $0x78] sm:$0xff]  ;;  %6394 = vmatpush.msra.mxu0 %v6361_v23  ;;  %v6342_v23 = vld [vmem:[%s15988_s5 + $0x60] sm:$0xff] }
 0x9de   :  { %6485 = vmatpush.msrb.mxu3 %v6393_v1  ;;  %6423 = vmatpush.msrb.mxu1 %v6345_v26  ;;  %v6376_v26 = vld [vmem:[%s15988_s5 + $0x170] sm:$0xff] }
 0x9df   :  { %v15485_v62 = vpop.f32.mrf.mxu2  ;;  %6453 = vmatpush.msrb.mxu2 %v6376_v26  ;;  %v6360_v26 = vld [vmem:[%s15988_s5 + $0xf0] sm:$0xff] }
 0x9e0   :  { %17470 = vst [vmem:[#allocation102_spill] sm:$0xff] %v15485_v62  ;;  %v15487_v15 = vpop.f32.mrf.mxu3  ;;  %v15489_v28 = vpop.f32.mrf.mxu0  ;;  %v17474_v62 = vld [vmem:[#allocation93_spill] sm:$0xff]  ;;  %6395 = vmatpush.msra.mxu0 %v6360_v26 }
 0x9e1   :  { %17471 = vst [vmem:[#allocation238_spill] sm:$0xff] %v15487_v15  ;;  %v15491_v9 = vpop.f32.mrf.mxu1  ;;  %v17479_v15 = vld [vmem:[#allocation223_spill] sm:$0xff]  ;;  %6454 = vmatpush.msrb.mxu2 %v6375_v8  ;;  %v6336_v8 = vld [vmem:[%s15988_s5 + $0x30] sm:$0xff] }
 0x9e2   :  { %17472 = vst [vmem:[#allocation103_spill] sm:$0xff] %v15489_v28  ;;  %v6344_v28 = vld [vmem:[%s15988_s5 + $0x70] sm:$0xff] }
 0x9e3   :  { %17473 = vst [vmem:[#allocation255_spill] sm:$0xff] %v15491_v9  ;;  %5980 = vmatmul.f32.gmra.mxu0 %v17474_v62  ;;  %6424 = vmatpush.msrb.mxu1 %v6344_v28  ;;  %v6341_v28 = vld [vmem:[%s15988_s5 + $0x58] sm:$0xff] }
 0x9e4   :  { %6033 = vmatmul.f32.gmra.mxu1 %v17455_v58  ;;  %6130 = vmatmul.f32.gmra.mxu2 %v17444_v46  ;;  %v6343_v58 = vld [vmem:[%s15988_s5 + $0x68] sm:$0xff] }
 0x9e5   :  { %6195 = vmatmul.f32.gmra.mxu3 %v17444_v46  ;;  %6425 = vmatpush.msrb.mxu1 %v6343_v58  ;;  %v6392_v58 = vld [vmem:[%s15988_s5 + $0x1f0] sm:$0xff] }
 0x9e6   :  { %6486 = vmatpush.msrb.mxu3 %v6392_v58  ;;  %v6338_v58 = vld [vmem:[%s15988_s5 + $0x40] sm:$0xff] }
 0x9e7   :  { %v15512_v9 = vpop.f32.mrf.mxu2  ;;  %6426 = vmatpush.msrb.mxu1 %v6342_v23  ;;  %v17480_v23 = vld [vmem:[#allocation87_spill] sm:$0xff] }
 0x9e8   :  { %17475 = vst [vmem:[#allocation256_spill] sm:$0xff] %v15512_v9  ;;  %v15517_v1 = vpop.f32.mrf.mxu3  ;;  %v15530_v9 = vpop.f32.mrf.mxu0 }
 0x9e9   :  { %17476 = vst [vmem:[#allocation257_spill] sm:$0xff] %v15517_v1  ;;  %v15519_v46 = vpop.f32.mrf.mxu1  ;;  %6427 = vmatpush.msrb.mxu1 %v6341_v28 }
 0x9ea   :  { %17477 = vst [vmem:[#allocation31_spill] sm:$0xff] %v15519_v46  ;;  %v17481_v46 = vld [vmem:[#allocation11_spill] sm:$0xff] }
 0x9eb   :  { %17478 = vst [vmem:[#allocation51_spill] sm:$0xff] %v15530_v9  ;;  %5983 = vmatmul.f32.gmra.mxu0 %v17479_v15  ;;  %v6340_v9 = vld [vmem:[%s15988_s5 + $0x50] sm:$0xff]  ;;  %v4542_v1 = vadd.f32 %v17481_v46, %v17480_v23  ;;  %v6337_v23 = vld [vmem:[%s15988_s5 + $0x38] sm:$0xff] }
 0x9ec   :  { %6036 = vmatmul.f32.gmra.mxu1 %v14608_v47  ;;  %6133 = vmatmul.f32.gmra.mxu2 %v17448_v36  ;;  %v6339_v47 = vld [vmem:[%s15988_s5 + $0x48] sm:$0xff] }
 0x9ed   :  { %6198 = vmatmul.f32.gmra.mxu3 %v17448_v36  ;;  %6428 = vmatpush.msrb.mxu1 %v6340_v9  ;;  %v4590_v26 = vmax.f32 %v4542_v1, 0.0  ;;  %v6391_v9 = vld [vmem:[%s15988_s5 + $0x1e8] sm:$0xff] }
 0x9ee   :  { %6487 = vmatpush.msrb.mxu3 %v6391_v9 }
 0x9ef   :  { %v15547_v45 = vpop.f32.mrf.mxu2  ;;  %6429 = vmatpush.msrb.mxu1 %v6339_v47  ;;  %v6359_v47 = vld [vmem:[%s15988_s5 + $0xe8] sm:$0xff] }
 0x9f0   :  { %17482 = vst [vmem:[#allocation104_spill] sm:$0xff] %v15547_v45  ;;  %v15552_v36 = vpop.f32.mrf.mxu3  ;;  %v15573_v1 = vpop.f32.mrf.mxu0  ;;  %6396 = vmatpush.msra.mxu0 %v6359_v47 }
 0x9f1   :  { %17483 = vst [vmem:[#allocation242_spill] sm:$0xff] %v15552_v36  ;;  %v5748_v28 = vpop.f32.mrf.mxu1  ;;  %6430 = vmatpush.msrb.mxu1 %v6338_v58  ;;  %v17484_v36 = vld [vmem:[#allocation202_spill] sm:$0xff] }
 0x9f2   :  { %v4543_v45 = vadd.f32 %v17481_v46, %v17484_v36  ;;  %v5749_v58 = vadd.f32 %v5748_v28, %v15313_v12  ;;  %v6333_v12 = vld [vmem:[%s15988_s5 + $0x18] sm:$0xff]  ;;  %v17485_v28 = vld [vmem:[#allocation88_spill] sm:$0xff] }
 0x9f3   :  { %6431 = vmatpush.msrb.mxu1 %v6337_v23  ;;  %v4544_v23 = vadd.f32 %v17481_v46, %v17485_v28  ;;  %v6373_v28 = vld [vmem:[%s15988_s5 + $0x158] sm:$0xff] }
 0x9f4   :  { %6039 = vmatmul.f32.gmra.mxu1 %v17464_v51  ;;  %6136 = vmatmul.f32.gmra.mxu2 %v4590_v26  ;;  %v6335_v51 = vld [vmem:[%s15988_s5 + $0x28] sm:$0xff]  ;;  %v4591_v36 = vmax.f32 %v4543_v45, 0.0 }
 0x9f5   :  { %6201 = vmatmul.f32.gmra.mxu3 %v4590_v26  ;;  %6432 = vmatpush.msrb.mxu1 %v6336_v8  ;;  %v6334_v26 = vld [vmem:[%s15988_s5 + $0x20] sm:$0xff] }
 0x9f7   :  { %v15578_v9 = vpop.f32.mrf.mxu2  ;;  %6433 = vmatpush.msrb.mxu1 %v6335_v51 }
 0x9f8   :  { %v5878_v53 = vpop.f32.mrf.mxu3  ;;  %v15598_v45 = vpop.f32.mrf.mxu0 }
 0x9f9   :  { %v15583_v5 = vadd.f32 %v5878_v53, %v5749_v58  ;;  %v5751_v37 = vpop.f32.mrf.mxu1  ;;  %6434 = vmatpush.msrb.mxu1 %v6334_v26  ;;  %v6332_v53 = vld [vmem:[%s15988_s5 + $0x10] sm:$0xff] }
 0x9fa   :  { %v5752_v47 = vadd.f32 %v5751_v37, %v15331_v25  ;;  %v6390_v25 = vld [vmem:[%s15988_s5 + $0x1e0] sm:$0xff] }
 0x9fb   :  { %6435 = vmatpush.msrb.mxu1 %v6333_v12  ;;  %v6358_v37 = vld [vmem:[%s15988_s5 + $0xe0] sm:$0xff]  ;;  %v4592_v12 = vmax.f32 %v4544_v23, 0.0  ;;  %6488 = vmatpush.msrb.mxu3 %v6390_v25  ;;  %v6389_v23 = vld [vmem:[%s15988_s5 + $0x1d8] sm:$0xff] }
 0x9fc   :  { %6042 = vmatmul.f32.gmra.mxu1 %v17469_v54  ;;  %6139 = vmatmul.f32.gmra.mxu2 %v4591_v36  ;;  %v6331_v54 = vld [vmem:[%s15988_s5 + $0x8] sm:$0xff] }
 0x9fd   :  { %6204 = vmatmul.f32.gmra.mxu3 %v4591_v36  ;;  %6436 = vmatpush.msrb.mxu1 %v6332_v53  ;;  %v6374_v36 = vld [vmem:[%s15988_s5 + $0x160] sm:$0xff] }
 0x9fe   :  { %6455 = vmatpush.msrb.mxu2 %v6374_v36  ;;  %v6330_v53 = vld [vmem:[%s15988_s5] sm:$0xff]  ;;  %6397 = vmatpush.msra.mxu0 %v6358_v37 }
 0x9ff   :  { %v15600_v8 = vpop.f32.mrf.mxu2  ;;  %6437 = vmatpush.msrb.mxu1 %v6331_v54  ;;  %v17487_v54 = vld [vmem:[#allocation186_spill] sm:$0xff]  ;;  %6489 = vmatpush.msrb.mxu3 %v6389_v23 }
 0xa00   :  { %v5881_v58 = vpop.f32.mrf.mxu3  ;;  %6456 = vmatpush.msrb.mxu2 %v6373_v28  ;;  %v15634_v37 = vpop.f32.mrf.mxu0 }
 0xa01   :  { %v15605_v51 = vadd.f32 %v5881_v58, %v5752_v47  ;;  %v5754_v26 = vpop.f32.mrf.mxu1  ;;  %6438 = vmatpush.msrb.mxu1 %v6330_v53  ;;  %v6357_v47 = vld [vmem:[%s15988_s5 + $0xd8] sm:$0xff]  ;;  %v4545_v58 = vadd.f32 %v17481_v46, %v17487_v54  ;;  %v6372_v46 = vld [vmem:[%s15988_s5 + $0x150] sm:$0xff] }
 0xa02   :  { %6398 = vmatpush.msra.mxu0 %v6357_v47  ;;  %6457 = vmatpush.msrb.mxu2 %v6372_v46 }
 0xa03   :  { %17486 = vst [vmem:[#allocation105_spill] sm:$0xff] %v15605_v51  ;;  %v4593_v51 = vmax.f32 %v4545_v58, 0.0  ;;  %v6354_v58 = vld [vmem:[%s15988_s5 + $0xc0] sm:$0xff] }
 0xa04   :  { %6045 = vmatmul.f32.gmra.mxu1 %v17474_v62  ;;  %6142 = vmatmul.f32.gmra.mxu2 %v4592_v12  ;;  %v5755_v62 = vadd.f32 %v5754_v26, %v15349_v30  ;;  %v6388_v30 = vld [vmem:[%s15988_s5 + $0x1d0] sm:$0xff] }
 0xa05   :  { %6207 = vmatmul.f32.gmra.mxu3 %v4592_v12  ;;  %v6356_v26 = vld [vmem:[%s15988_s5 + $0xd0] sm:$0xff] }
 0xa06   :  { %6490 = vmatpush.msrb.mxu3 %v6388_v30  ;;  %6399 = vmatpush.msra.mxu0 %v6356_v26  ;;  %v6371_v26 = vld [vmem:[%s15988_s5 + $0x148] sm:$0xff] }
 0xa07   :  { %v15632_v36 = vpop.f32.mrf.mxu2  ;;  %6458 = vmatpush.msrb.mxu2 %v6371_v26 }
 0xa08   :  { %v5884_v25 = vpop.f32.mrf.mxu3 }
 0xa09   :  { %v15636_v12 = vadd.f32 %v5884_v25, %v5755_v62  ;;  %v5757_v53 = vpop.f32.mrf.mxu1  ;;  %v5648_v62 = vadd.f32 %v15297_v39, %v15117_v20  ;;  %v15663_v25 = vpop.f32.mrf.mxu0  ;;  %v6387_v20 = vld [vmem:[%s15988_s5 + $0x1c8] sm:$0xff] }
 0xa0a   :  { %v5758_v28 = vadd.f32 %v5757_v53, %v15367_v40  ;;  %v5713_v40 = vadd.f32 %v15371_v7, %v15119_v43  ;;  %v6353_v53 = vld [vmem:[%s15988_s5 + $0xb8] sm:$0xff]  ;;  %v6352_v43 = vld [vmem:[%s15988_s5 + $0xb0] sm:$0xff]  ;;  %6491 = vmatpush.msrb.mxu3 %v6387_v20 }
 0xa0b   :  { %v5890_v46 = vadd.f32 %v15377_v44, %v5648_v62  ;;  %v6350_v62 = vld [vmem:[%s15988_s5 + $0xa0] sm:$0xff] }
 0xa0c   :  { %6048 = vmatmul.f32.gmra.mxu1 %v17479_v15  ;;  %6145 = vmatmul.f32.gmra.mxu2 %v4593_v51  ;;  %v6355_v15 = vld [vmem:[%s15988_s5 + $0xc8] sm:$0xff]  ;;  %v5891_v30 = vadd.f32 %v15379_v50, %v5713_v40 }
 0xa0d   :  { %6210 = vmatmul.f32.gmra.mxu3 %v4593_v51  ;;  %6400 = vmatpush.msra.mxu0 %v6355_v15  ;;  %v6052_v39 = vadd.f32 %v15573_v1, %v5890_v46  ;;  %v6351_v50 = vld [vmem:[%s15988_s5 + $0xa8] sm:$0xff]  ;;  %v5651_v1 = vadd.f32 %v15315_v13, %v15133_v32  ;;  %v6349_v46 = vld [vmem:[%s15988_s5 + $0x98] sm:$0xff]  ;;  %v17488_v32 = vmax.f32 %v15106_v3, %v15109_v6  ;;  %v6348_v13 = vld [vmem:[%s15988_s5 + $0x90] sm:$0xff] }
 0xa0f   :  { %v15649_v23 = vpop.f32.mrf.mxu2  ;;  %6401 = vmatpush.msra.mxu0 %v6354_v58 }
 0xa10   :  { %v5887_v51 = vpop.f32.mrf.mxu3 }
 0xa11   :  { %v15654_v47 = vadd.f32 %v5887_v51, %v5758_v28  ;;  %v6004_v54 = vpop.f32.mrf.mxu1  ;;  %6402 = vmatpush.msra.mxu0 %v6353_v53  ;;  %v15693_v53 = vld [vmem:[%s15987_s4] ss:$0 sm:$0xff]  ;;  %v15700_v20 = vpop.f32.mrf.mxu0 }
 0xa12   :  { %v6053_v7 = vadd.f32 %v6004_v54, %v5891_v30  ;;  %v5716_v54 = vadd.f32 %v15383_v57, %v15135_v56  ;;  %v5892_v30 = vadd.f32 %v15389_v27, %v5651_v1 }
 0xa13   :  { %6403 = vmatpush.msra.mxu0 %v6352_v43 }
 0xa14   :  { %v5893_v26 = vadd.f32 %v15391_v59, %v5716_v54  ;;  %v6054_v57 = vadd.f32 %v15598_v45, %v5892_v30  ;;  %v6347_v59 = vld [vmem:[%s15988_s5 + $0x88] sm:$0xff]  ;;  %v6386_v45 = vld [vmem:[%s15988_s5 + $0x1c0] sm:$0xff] }
 0xa15   :  { %6404 = vmatpush.msra.mxu0 %v6351_v50  ;;  %6492 = vmatpush.msrb.mxu3 %v6386_v45 }
 0xa17   :  { %v6101_v44 = vpop.f32.mrf.mxu2  ;;  %6405 = vmatpush.msra.mxu0 %v6350_v62 }
 0xa18   :  { %v6214_v28 = vadd.f32 %v6101_v44, %v6052_v39  ;;  %v6166_v15 = vpop.f32.mrf.mxu3 }
 0xa19   :  { %v6215_v51 = vadd.f32 %v6166_v15, %v6053_v7  ;;  %v6007_v58 = vpop.f32.mrf.mxu1  ;;  %6406 = vmatpush.msra.mxu0 %v6349_v46  ;;  %v6346_v15 = vld [vmem:[%s15988_s5 + $0x80] sm:$0xff] }
 0xa1a   :  { %v6055_v39 = vadd.f32 %v6007_v58, %v5893_v26  ;;  %v5719_v58 = vadd.f32 %v15395_v16, %v15151_v63  ;;  %v15738_v16 = vpop.f32.mrf.mxu0 }
 0xa1b   :  { %v6262_v40 = vmax.f32 %v6214_v28, %v6215_v51  ;;  %6407 = vmatpush.msra.mxu0 %v6348_v13  ;;  %v6370_v28 = vld [vmem:[%s15988_s5 + $0x140] sm:$0xff]  ;;  %v5654_v51 = vadd.f32 %v15333_v52, %v15149_v24  ;;  %v6369_v24 = vld [vmem:[%s15988_s5 + $0x138] sm:$0xff]  ;;  %v5657_v13 = vadd.f32 %v15351_v22, %v15165_v11  ;;  %v6384_v11 = vld [vmem:[%s15988_s5 + $0x1b0] sm:$0xff] }
 0xa1c   :  { %6459 = vmatpush.msrb.mxu2 %v6370_v28  ;;  %v5895_v54 = vadd.f32 %v15403_v60, %v5719_v58  ;;  %v6385_v52 = vld [vmem:[%s15988_s5 + $0x1b8] sm:$0xff]  ;;  %v5725_v58 = vadd.f32 %v15419_v33, %v15183_v42 }
 0xa1d   :  { %v6278_v56 = vmax.f32 %v17488_v32, %v6262_v40  ;;  %6408 = vmatpush.msra.mxu0 %v6347_v59  ;;  %v5894_v1 = vadd.f32 %v15401_v38, %v5654_v51  ;;  %v17489_v40 = vmax.f32 %v15122_v61, %v15125_v17  ;;  %6493 = vmatpush.msrb.mxu3 %v6385_v52  ;;  %v17491_v59 = vld [vmem:[#allocation225_spill] sm:$0xff]  ;;  %v6367_v52 = vld [vmem:[%s15988_s5 + $0x128] sm:$0xff] }
 0xa1e   :  { %6460 = vmatpush.msrb.mxu2 %v6369_v24  ;;  %v5660_v51 = vadd.f32 %v15369_v2, %v15181_v19  ;;  %v6383_v19 = vld [vmem:[%s15988_s5 + $0x1a8] sm:$0xff] }
 0xa1f   :  { %v6298_v43 = vadd.f32 %v15693_v53, %v6278_v56  ;;  %v6104_v7 = vpop.f32.mrf.mxu2  ;;  %6409 = vmatpush.msra.mxu0 %v6346_v15  ;;  %v6056_v63 = vadd.f32 %v15634_v37, %v5894_v1  ;;  %6494 = vmatpush.msrb.mxu3 %v6384_v11  ;;  %v5899_v1 = vadd.f32 %v15427_v55, %v5725_v58 }
 0xa20   :  { %v6216_v27 = vadd.f32 %v6104_v7, %v6054_v57  ;;  %v6169_v44 = vpop.f32.mrf.mxu3  ;;  %v5722_v57 = vadd.f32 %v15407_v49, %v15167_v0  ;;  %v17490_v7 = vld [vmem:[#allocation224_spill] sm:$0xff] }
 0xa21   :  { %v6314_v3 = vmax.f32 %v6298_v43, 0.0  ;;  %v6217_v6 = vadd.f32 %v6169_v44, %v6055_v39  ;;  %v6010_v50 = vpop.f32.mrf.mxu1  ;;  %v5896_v43 = vadd.f32 %v15413_v34, %v5657_v13  ;;  %6495 = vmatpush.msrb.mxu3 %v6383_v19 }
 0xa22   :  { %v6057_v38 = vadd.f32 %v6010_v50, %v5895_v54  ;;  %v5897_v39 = vadd.f32 %v15415_v21, %v5722_v57  ;;  %v5957_v50 = vpop.f32.mrf.mxu0  ;;  %v17493_v54 = vld [vmem:[#allocation12_spill] sm:$0xff] }
 0xa23   :  { %v6263_v62 = vmax.f32 %v6216_v27, %v6217_v6  ;;  %6439 = vmatmul.f32.vlgmr.msrb.gmra.mxu1 %v6314_v3  ;;  %v17492_v27 = vmax.f32 %v17490_v7, %v17491_v59  ;;  %v6368_v3 = vld [vmem:[%s15988_s5 + $0x130] sm:$0xff]  ;;  %v6058_v0 = vadd.f32 %v15663_v25, %v5896_v43  ;;  %v5898_v25 = vadd.f32 %v15425_v10, %v5660_v51 }
 0xa24   :  { %6461 = vmatpush.msrb.mxu2 %v6368_v3  ;;  %v17497_v43 = vld [vmem:[#allocation208_spill] sm:$0xff] }
 0xa25   :  { %v6279_v46 = vmax.f32 %v17489_v40, %v6263_v62  ;;  %v17494_v40 = vld [vmem:[#allocation13_spill] sm:$0xff]  ;;  %v6060_v42 = vadd.f32 %v15700_v20, %v5898_v25  ;;  %v5728_v20 = vadd.f32 %v15431_v4, %v15199_v29  ;;  %v6364_v29 = vld [vmem:[%s15988_s5 + $0x110] sm:$0xff]  ;;  %v17504_v25 = vld [vmem:[#allocation227_spill] sm:$0xff] }
 0xa26   :  { %6462 = vmatpush.msrb.mxu2 %v6367_v52 }
 0xa27   :  { %v6107_v60 = vpop.f32.mrf.mxu2  ;;  %v6299_v30 = vadd.f32 %v15693_v53, %v6279_v46  ;;  %v17495_v46 = vmax.f32 %v17493_v54, %v17494_v40  ;;  %v5901_v57 = vadd.f32 %v15439_v14, %v5728_v20  ;;  %v17511_v20 = vld [vmem:[#allocation234_spill] sm:$0xff] }
 0xa28   :  { %v6218_v61 = vadd.f32 %v6107_v60, %v6056_v63  ;;  %v6172_v17 = vpop.f32.mrf.mxu3 }
 0xa29   :  { %v6219_v26 = vadd.f32 %v6172_v17, %v6057_v38  ;;  %v6013_v32 = vpop.f32.mrf.mxu1  ;;  %v6315_v56 = vmax.f32 %v6299_v30, 0.0  ;;  %v5663_v17 = vadd.f32 %v15381_v41, %v15197_v35 }
 0xa2a   :  { %v6059_v49 = vadd.f32 %v6013_v32, %v5897_v39 }
 0xa2b   :  { %v6264_v37 = vmax.f32 %v6218_v61, %v6219_v26  ;;  %6442 = vmatmul.f32.gmra.mxu1 %v6315_v56  ;;  %v6366_v61 = vld [vmem:[%s15988_s5 + $0x120] sm:$0xff]  ;;  %v5960_v26 = vpop.f32.mrf.mxu0  ;;  %v6365_v56 = vld [vmem:[%s15988_s5 + $0x118] sm:$0xff]  ;;  %v5900_v13 = vadd.f32 %v15437_v31, %v5663_v17  ;;  %v6363_v31 = vld [vmem:[%s15988_s5 + $0x108] sm:$0xff] }
 0xa2c   :  { %6463 = vmatpush.msrb.mxu2 %v6366_v61  ;;  %v17510_v17 = vld [vmem:[#allocation100_spill] sm:$0xff] }
 0xa2d   :  { %v6280_v44 = vmax.f32 %v17492_v27, %v6264_v37  ;;  %v17496_v37 = vld [vmem:[#allocation35_spill] sm:$0xff]  ;;  %v6062_v4 = vadd.f32 %v15738_v16, %v5900_v13  ;;  %v6362_v16 = vld [vmem:[%s15988_s5 + $0x100] sm:$0xff]  ;;  %v17513_v13 = vld [vmem:[#allocation229_spill] sm:$0xff] }
 0xa2e   :  { %6464 = vmatpush.msrb.mxu2 %v6365_v56  ;;  %v17498_v39 = vmax.f32 %v17496_v37, %v17497_v43  ;;  %v17512_v56 = vld [vmem:[#allocation228_spill] sm:$0xff] }
 0xa2f   :  { %v6110_v22 = vpop.f32.mrf.mxu2  ;;  %v6300_v21 = vadd.f32 %v15693_v53, %v6280_v44  ;;  %v6380_v43 = vld [vmem:[%s15988_s5 + $0x190] sm:$0xff] }
 0xa30   :  { %v6220_v34 = vadd.f32 %v6110_v22, %v6058_v0  ;;  %v6175_v6 = vpop.f32.mrf.mxu3  ;;  %6465 = vmatpush.msrb.mxu2 %v6364_v29  ;;  %v6382_v0 = vld [vmem:[%s15988_s5 + $0x1a0] sm:$0xff] }
 0xa31   :  { %v6221_v28 = vadd.f32 %v6175_v6, %v6059_v49  ;;  %v6016_v45 = vpop.f32.mrf.mxu1  ;;  %v6316_v15 = vmax.f32 %v6300_v21, 0.0  ;;  %v5666_v49 = vadd.f32 %v15393_v18, %v15213_v48  ;;  %6496 = vmatpush.msrb.mxu3 %v6382_v0  ;;  %v17499_v22 = vld [vmem:[#allocation14_spill] sm:$0xff]  ;;  %v17500_v21 = vld [vmem:[#allocation247_spill] sm:$0xff]  ;;  %v6381_v48 = vld [vmem:[%s15988_s5 + $0x198] sm:$0xff] }
 0xa32   :  { %v6061_v33 = vadd.f32 %v6016_v45, %v5899_v1  ;;  %6466 = vmatpush.msrb.mxu2 %v6363_v31  ;;  %v17517_v0 = vld [vmem:[#allocation16_spill] sm:$0xff] }
 0xa33   :  { %v6265_v62 = vmax.f32 %v6220_v34, %v6221_v28  ;;  %6445 = vmatmul.f32.gmra.mxu1 %v6316_v15  ;;  %v5731_v34 = vadd.f32 %v17500_v21, %v17499_v22  ;;  %v17501_v28 = vld [vmem:[#allocation248_spill] sm:$0xff]  ;;  %v17502_v15 = vld [vmem:[#allocation249_spill] sm:$0xff]  ;;  %v5963_v58 = vpop.f32.mrf.mxu0  ;;  %6497 = vmatpush.msrb.mxu3 %v6381_v48 }
 0xa34   :  { %6467 = vmatpush.msrb.mxu2 %v6362_v16  ;;  %v5902_v45 = vadd.f32 %v17501_v28, %v5666_v49  ;;  %v17518_v16 = vld [vmem:[#allocation251_spill] sm:$0xff] }
 0xa35   :  { %v6281_v24 = vmax.f32 %v17495_v46, %v6265_v62  ;;  %v5903_v51 = vadd.f32 %v17502_v15, %v5731_v34  ;;  %v17503_v62 = vld [vmem:[#allocation94_spill] sm:$0xff]  ;;  %6498 = vmatpush.msrb.mxu3 %v6380_v43  ;;  %v5737_v49 = vadd.f32 %v17518_v16, %v17517_v0  ;;  %v17520_v34 = vld [vmem:[#allocation253_spill] sm:$0xff]  ;;  %v17521_v28 = vld [vmem:[#allocation15_spill] sm:$0xff] }
 0xa36   :  { %v17505_v1 = vmax.f32 %v17503_v62, %v17504_v25  ;;  %v6064_v18 = vadd.f32 %v5957_v50, %v5902_v45  ;;  %v17522_v45 = vld [vmem:[#allocation37_spill] sm:$0xff]  ;;  %v6379_v62 = vld [vmem:[%s15988_s5 + $0x188] sm:$0xff]  ;;  %v17537_v0 = vld [vmem:[#allocation256_spill] sm:$0xff] }
 0xa37   :  { %v6113_v2 = vpop.f32.mrf.mxu2  ;;  %v6301_v55 = vadd.f32 %v15693_v53, %v6281_v24  ;;  %v17523_v15 = vmax.f32 %v17521_v28, %v17522_v45  ;;  %6499 = vmatpush.msrb.mxu3 %v6379_v62 }
 0xa38   :  { %v6222_v10 = vadd.f32 %v6113_v2, %v6060_v42  ;;  %v6178_v63 = vpop.f32.mrf.mxu3 }
 0xa39   :  { %v6223_v38 = vadd.f32 %v6178_v63, %v6061_v33  ;;  %v6019_v60 = vpop.f32.mrf.mxu1  ;;  %v6317_v30 = vmax.f32 %v6301_v55, 0.0  ;;  %v17506_v55 = vld [vmem:[#allocation213_spill] sm:$0xff] }
 0xa3a   :  { %v6063_v7 = vadd.f32 %v6019_v60, %v5901_v57  ;;  %v17509_v60 = vld [vmem:[#allocation45_spill] sm:$0xff]  ;;  %v17514_v57 = vmax.f32 %v17512_v56, %v17513_v13 }
 0xa3b   :  { %v6266_v32 = vmax.f32 %v6222_v10, %v6223_v38  ;;  %6448 = vmatmul.f32.gmra.mxu1 %v6317_v30  ;;  %v17507_v10 = vld [vmem:[#allocation42_spill] sm:$0xff]  ;;  %v17508_v38 = vld [vmem:[#allocation95_spill] sm:$0xff] }
 0xa3c   :  { %v5669_v63 = vadd.f32 %v17507_v10, %v17506_v55  ;;  %v5734_v30 = vadd.f32 %v17509_v60, %v17508_v38  ;;  %v17526_v55 = vld [vmem:[#allocation96_spill] sm:$0xff] }
 0xa3d   :  { %v6282_v35 = vmax.f32 %v17498_v39, %v6266_v32  ;;  %v17527_v10 = vld [vmem:[#allocation48_spill] sm:$0xff] }
 0xa3e   :  { %v5904_v50 = vadd.f32 %v17510_v17, %v5669_v63  ;;  %v5905_v32 = vadd.f32 %v17511_v20, %v5734_v30  ;;  %v5740_v63 = vadd.f32 %v17527_v10, %v17526_v55  ;;  %v17529_v30 = vld [vmem:[#allocation238_spill] sm:$0xff]  ;;  %v17530_v17 = vld [vmem:[#allocation231_spill] sm:$0xff] }
 0xa3f   :  { %v6302_v41 = vadd.f32 %v15693_v53, %v6282_v35  ;;  %v6116_v59 = vpop.f32.mrf.mxu2  ;;  %v5966_v35 = vpop.f32.mrf.mxu0 }
 0xa40   :  { %v6224_v14 = vadd.f32 %v6116_v59, %v6062_v4  ;;  %v6181_v27 = vpop.f32.mrf.mxu3  ;;  %v6066_v39 = vadd.f32 %v5960_v26, %v5904_v50  ;;  %v17519_v26 = vld [vmem:[#allocation252_spill] sm:$0xff] }
 0xa41   :  { %v6318_v44 = vmax.f32 %v6302_v41, 0.0  ;;  %v6225_v3 = vadd.f32 %v6181_v27, %v6063_v7  ;;  %v6022_v11 = vpop.f32.mrf.mxu1  ;;  %v17531_v50 = vld [vmem:[#allocation232_spill] sm:$0xff] }
 0xa42   :  { %v6065_v40 = vadd.f32 %v6022_v11, %v5903_v51  ;;  %v17532_v20 = vmax.f32 %v17530_v17, %v17531_v50 }
 0xa43   :  { %v6267_v6 = vmax.f32 %v6224_v14, %v6225_v3  ;;  %6410 = vmatmul.f32.vlgmr.msra.gmra.mxu0 %v6318_v44  ;;  %v17515_v44 = vld [vmem:[#allocation233_spill] sm:$0xff]  ;;  %v17516_v3 = vld [vmem:[#allocation52_spill] sm:$0xff] }
 0xa44   :  { %v5672_v11 = vadd.f32 %v17516_v3, %v17515_v44  ;;  %v17536_v44 = vld [vmem:[#allocation255_spill] sm:$0xff] }
 0xa45   :  { %v6283_v54 = vmax.f32 %v17505_v1, %v6267_v6  ;;  %v5907_v6 = vadd.f32 %v17520_v34, %v5737_v49  ;;  %v17538_v49 = vld [vmem:[#allocation257_spill] sm:$0xff] }
 0xa46   :  { %v5906_v21 = vadd.f32 %v17519_v26, %v5672_v11  ;;  %v17539_v26 = vld [vmem:[#allocation17_spill] sm:$0xff] }
 0xa47   :  { %v6119_v46 = vpop.f32.mrf.mxu2  ;;  %v6303_v24 = vadd.f32 %v15693_v53, %v6283_v54 }
 0xa48   :  { %v6226_v52 = vadd.f32 %v6119_v46, %v6064_v18  ;;  %v6184_v19 = vpop.f32.mrf.mxu3  ;;  %v6068_v25 = vadd.f32 %v5963_v58, %v5906_v21  ;;  %v5969_v46 = vpop.f32.mrf.mxu0  ;;  %v17528_v58 = vld [vmem:[#allocation102_spill] sm:$0xff]  ;;  %v17540_v21 = vld [vmem:[#allocation39_spill] sm:$0xff] }
 0xa49   :  { %v6227_v42 = vadd.f32 %v6184_v19, %v6065_v40  ;;  %v6025_v33 = vpop.f32.mrf.mxu1  ;;  %v6319_v2 = vmax.f32 %v6303_v24, 0.0  ;;  %v17541_v34 = vmax.f32 %v17539_v26, %v17540_v21  ;;  %v17556_v21 = vld [vmem:[#allocation47_spill] sm:$0xff] }
 0xa4a   :  { %v6067_v29 = vadd.f32 %v6025_v33, %v5905_v32  ;;  %v17525_v33 = vld [vmem:[#allocation230_spill] sm:$0xff] }
 0xa4b   :  { %v6268_v61 = vmax.f32 %v6226_v52, %v6227_v42  ;;  %6413 = vmatmul.f32.gmra.mxu0 %v6319_v2  ;;  %v17524_v42 = vld [vmem:[#allocation218_spill] sm:$0xff] }
 0xa4c   :  { %v5675_v2 = vadd.f32 %v17525_v33, %v17524_v42 }
 0xa4d   :  { %v6284_v37 = vmax.f32 %v17514_v57, %v6268_v61  ;;  %v5909_v61 = vadd.f32 %v17529_v30, %v5740_v63 }
 0xa4e   :  { %v5908_v60 = vadd.f32 %v17528_v58, %v5675_v2  ;;  %v17546_v2 = vld [vmem:[#allocation104_spill] sm:$0xff] }
 0xa4f   :  { %v6122_v4 = vpop.f32.mrf.mxu2  ;;  %v6304_v41 = vadd.f32 %v15693_v53, %v6284_v37  ;;  %v17549_v58 = vld [vmem:[#allocation236_spill] sm:$0xff] }
 0xa50   :  { %v6228_v7 = vadd.f32 %v6122_v4, %v6066_v39  ;;  %v6187_v59 = vpop.f32.mrf.mxu3  ;;  %v6070_v56 = vadd.f32 %v5966_v35, %v5908_v60  ;;  %v5972_v3 = vpop.f32.mrf.mxu0 }
 0xa51   :  { %v6229_v31 = vadd.f32 %v6187_v59, %v6067_v29  ;;  %v6028_v14 = vpop.f32.mrf.mxu1  ;;  %v6320_v27 = vmax.f32 %v6304_v41, 0.0  ;;  %v17533_v59 = vld [vmem:[#allocation237_spill] sm:$0xff] }
 0xa52   :  { %v6069_v1 = vadd.f32 %v6028_v14, %v5907_v6 }
 0xa53   :  { %v6269_v22 = vmax.f32 %v6228_v7, %v6229_v31  ;;  %6416 = vmatmul.f32.gmra.mxu0 %v6320_v27  ;;  %v6378_v7 = vld [vmem:[%s15988_s5 + $0x180] sm:$0xff]  ;;  %v17534_v31 = vld [vmem:[#allocation99_spill] sm:$0xff] }
 0xa54   :  { %v5678_v14 = vadd.f32 %v17534_v31, %v17533_v59  ;;  %6500 = vmatpush.msrb.mxu3 %v6378_v7  ;;  %v17535_v27 = vld [vmem:[#allocation18_spill] sm:$0xff]  ;;  %v17553_v7 = vld [vmem:[#allocation19_spill] sm:$0xff] }
 0xa55   :  { %v6285_v51 = vmax.f32 %v17523_v15, %v6269_v22  ;;  %v5743_v35 = vadd.f32 %v17536_v44, %v17535_v27  ;;  %v17554_v59 = vld [vmem:[#allocation43_spill] sm:$0xff] }
 0xa56   :  { %v5910_v16 = vadd.f32 %v17537_v0, %v5678_v14  ;;  %v17555_v31 = vmax.f32 %v17553_v7, %v17554_v59 }
 0xa57   :  { %v6125_v54 = vpop.f32.mrf.mxu2  ;;  %v6305_v48 = vadd.f32 %v15693_v53, %v6285_v51  ;;  %v5911_v22 = vadd.f32 %v17538_v49, %v5743_v35 }
 0xa58   :  { %v6230_v18 = vadd.f32 %v6125_v54, %v6068_v25  ;;  %v6190_v40 = vpop.f32.mrf.mxu3  ;;  %v6072_v28 = vadd.f32 %v5969_v46, %v5910_v16  ;;  %v17547_v46 = vld [vmem:[#allocation242_spill] sm:$0xff]  ;;  %v5975_v63 = vpop.f32.mrf.mxu0 }
 0xa59   :  { %v6231_v24 = vadd.f32 %v6190_v40, %v6069_v1  ;;  %v6031_v52 = vpop.f32.mrf.mxu1  ;;  %v6321_v19 = vmax.f32 %v6305_v48, 0.0  ;;  %v17543_v40 = vld [vmem:[#allocation26_spill] sm:$0xff] }
 0xa5a   :  { %v6071_v57 = vadd.f32 %v6031_v52, %v5909_v61  ;;  %v17544_v52 = vld [vmem:[#allocation97_spill] sm:$0xff] }
 0xa5b   :  { %v6270_v38 = vmax.f32 %v6230_v18, %v6231_v24  ;;  %6419 = vmatmul.f32.gmra.mxu0 %v6321_v19  ;;  %v17542_v18 = vld [vmem:[#allocation222_spill] sm:$0xff]  ;;  %v17545_v19 = vld [vmem:[#allocation31_spill] sm:$0xff] }
 0xa5c   :  { %v5681_v24 = vadd.f32 %v17543_v40, %v17542_v18  ;;  %v5746_v42 = vadd.f32 %v17545_v19, %v17544_v52 }
 0xa5d   :  { %v6286_v32 = vmax.f32 %v17532_v20, %v6270_v38  ;;  %v17548_v38 = vld [vmem:[#allocation235_spill] sm:$0xff] }
 0xa5e   :  { %v5912_v55 = vadd.f32 %v17546_v2, %v5681_v24  ;;  %v5913_v10 = vadd.f32 %v17547_v46, %v5746_v42  ;;  %v17550_v60 = vmax.f32 %v17548_v38, %v17549_v58  ;;  %v17562_v42 = vld [vmem:[#allocation243_spill] sm:$0xff] }
 0xa5f   :  { %v6306_v13 = vadd.f32 %v15693_v53, %v6286_v32  ;;  %v6128_v37 = vpop.f32.mrf.mxu2 }
 0xa60   :  { %v6232_v43 = vadd.f32 %v6128_v37, %v6070_v56  ;;  %v6193_v39 = vpop.f32.mrf.mxu3  ;;  %v6074_v61 = vadd.f32 %v5972_v3, %v5912_v55  ;;  %v5978_v44 = vpop.f32.mrf.mxu0 }
 0xa61   :  { %v6322_v29 = vmax.f32 %v6306_v13, 0.0  ;;  %v6233_v4 = vadd.f32 %v6193_v39, %v6071_v57  ;;  %v6034_v41 = vpop.f32.mrf.mxu1  ;;  %v17552_v39 = vld [vmem:[#allocation101_spill] sm:$0xff] }
 0xa62   :  { %v6073_v45 = vadd.f32 %v6034_v41, %v5911_v22 }
 0xa63   :  { %v6271_v11 = vmax.f32 %v6232_v43, %v6233_v4  ;;  %6468 = vmatmul.f32.vlgmr.msrb.gmra.mxu2 %v6322_v29  ;;  %v17551_v43 = vld [vmem:[#allocation241_spill] sm:$0xff] }
 0xa64   :  { %v5684_v29 = vadd.f32 %v17552_v39, %v17551_v43 }
 0xa65   :  { %v6287_v6 = vmax.f32 %v17541_v34, %v6271_v11  ;;  %v17557_v34 = vld [vmem:[#allocation29_spill] sm:$0xff] }
 0xa66   :  { %v5914_v41 = vadd.f32 %v15578_v9, %v5684_v29 }
 0xa67   :  { %v6131_v15 = vpop.f32.mrf.mxu2  ;;  %v6307_v51 = vadd.f32 %v15693_v53, %v6287_v6  ;;  %v5687_v6 = vadd.f32 %v17557_v34, %v17556_v21  ;;  %v6540_v34 = vld [vmem:[%s15991_s7 + $0x28] sm:$0xff] }
 0xa68   :  { %v6234_v62 = vadd.f32 %v6131_v15, %v6072_v28  ;;  %v6196_v25 = vpop.f32.mrf.mxu3  ;;  %v6076_v27 = vadd.f32 %v5975_v63, %v5914_v41  ;;  %v17559_v15 = vld [vmem:[#allocation240_spill] sm:$0xff]  ;;  %v5981_v24 = vpop.f32.mrf.mxu0  ;;  %v17565_v63 = vld [vmem:[#allocation22_spill] sm:$0xff] }
 0xa69   :  { %v6235_v1 = vadd.f32 %v6196_v25, %v6073_v45  ;;  %v6037_v54 = vpop.f32.mrf.mxu1  ;;  %v6323_v48 = vmax.f32 %v6307_v51, 0.0  ;;  %v5916_v28 = vadd.f32 %v15600_v8, %v5687_v6  ;;  %v17558_v45 = vld [vmem:[#allocation239_spill] sm:$0xff]  ;;  %v17570_v41 = vld [vmem:[#allocation98_spill] sm:$0xff] }
 0xa6a   :  { %v6075_v17 = vadd.f32 %v6037_v54, %v5913_v10  ;;  %v17560_v51 = vmax.f32 %v17558_v45, %v17559_v15  ;;  %v17564_v10 = vld [vmem:[#allocation20_spill] sm:$0xff]  ;;  %v6539_v6 = vld [vmem:[%s15991_s7 + $0x20] sm:$0xff] }
 0xa6b   :  { %v6272_v33 = vmax.f32 %v6234_v62, %v6235_v1  ;;  %6471 = vmatmul.f32.gmra.mxu2 %v6323_v48  ;;  %v17561_v1 = vld [vmem:[#allocation105_spill] sm:$0xff]  ;;  %v17566_v38 = vmax.f32 %v17564_v10, %v17565_v63  ;;  %v6535_v45 = vld [vmem:[%s15991_s7] sm:$0xff] }
 0xa6d   :  { %v6288_v30 = vmax.f32 %v17550_v60, %v6272_v33  ;;  %v17563_v33 = vld [vmem:[#allocation103_spill] sm:$0xff] }
 0xa6e   :  { %v5690_v2 = vadd.f32 %v17563_v33, %v17562_v42 }
 0xa6f   :  { %v6134_v50 = vpop.f32.mrf.mxu2  ;;  %v6308_v20 = vadd.f32 %v15693_v53, %v6288_v30 }
 0xa70   :  { %v6236_v32 = vadd.f32 %v6134_v50, %v6074_v61  ;;  %v6199_v56 = vpop.f32.mrf.mxu3  ;;  %v5918_v46 = vadd.f32 %v15632_v36, %v5690_v2  ;;  %v5984_v43 = vpop.f32.mrf.mxu0 }
 0xa71   :  { %v6237_v13 = vadd.f32 %v6199_v56, %v6075_v17  ;;  %v6040_v57 = vpop.f32.mrf.mxu1  ;;  %v6324_v37 = vmax.f32 %v6308_v20, 0.0 }
 0xa72   :  { %v6077_v35 = vadd.f32 %v6040_v57, %v15583_v5  ;;  %v6078_v5 = vadd.f32 %v5978_v44, %v5916_v28  ;;  %v6080_v60 = vadd.f32 %v5981_v24, %v5918_v46  ;;  %v17568_v57 = vld [vmem:[#allocation51_spill] sm:$0xff] }
 0xa73   :  { %v6273_v4 = vmax.f32 %v6236_v32, %v6237_v13  ;;  %6474 = vmatmul.f32.gmra.mxu2 %v6324_v37  ;;  %v17567_v13 = vld [vmem:[#allocation23_spill] sm:$0xff] }
 0xa74   :  { %v5693_v37 = vadd.f32 %v17568_v57, %v17567_v13  ;;  %v6536_v28 = vld [vmem:[%s15991_s7 + $0x8] sm:$0xff] }
 0xa75   :  { %v6289_v14 = vmax.f32 %v17555_v31, %v6273_v4  ;;  %v17569_v4 = vld [vmem:[#allocation226_spill] sm:$0xff] }
 0xa76   :  { %v5920_v36 = vadd.f32 %v15649_v23, %v5693_v37  ;;  %v17571_v7 = vmax.f32 %v17569_v4, %v17570_v41 }
 0xa77   :  { %v6137_v3 = vpop.f32.mrf.mxu2  ;;  %v6309_v11 = vadd.f32 %v15693_v53, %v6289_v14 }
 0xa78   :  { %v6238_v0 = vadd.f32 %v6137_v3, %v6076_v27  ;;  %v6202_v16 = vpop.f32.mrf.mxu3  ;;  %v6082_v59 = vadd.f32 %v5984_v43, %v5920_v36 }
 0xa79   :  { %v6239_v49 = vadd.f32 %v6202_v16, %v6077_v35  ;;  %v6043_v22 = vpop.f32.mrf.mxu1  ;;  %v6325_v26 = vmax.f32 %v6309_v11, 0.0  ;;  %v17572_v16 = vld [vmem:[#allocation244_spill] sm:$0xff] }
 0xa7a   :  { %v6079_v54 = vadd.f32 %v6043_v22, %v17561_v1 }
 0xa7b   :  { %v6274_v9 = vmax.f32 %v6238_v0, %v6239_v49  ;;  %6477 = vmatmul.f32.gmra.mxu2 %v6325_v26  ;;  %v17573_v49 = vld [vmem:[#allocation245_spill] sm:$0xff] }
 0xa7c   :  { %v17574_v23 = vmax.f32 %v17572_v16, %v17573_v49 }
 0xa7d   :  { %v6290_v62 = vmax.f32 %v17560_v51, %v6274_v9  ;;  %v6537_v9 = vld [vmem:[%s15991_s7 + $0x10] sm:$0xff] }
 0xa7f   :  { %v6310_v25 = vadd.f32 %v15693_v53, %v6290_v62  ;;  %v6140_v48 = vpop.f32.mrf.mxu2 }
 0xa80   :  { %v6240_v18 = vadd.f32 %v6140_v48, %v6078_v5  ;;  %v6205_v40 = vpop.f32.mrf.mxu3  ;;  %v7651_v48 = vld [vmem:[%s15989_s6] ss:$0 sm:$0xff] }
 0xa81   :  { %v6326_v52 = vmax.f32 %v6310_v25, 0.0  ;;  %v6241_v19 = vadd.f32 %v6205_v40, %v6079_v54  ;;  %v6046_v55 = vpop.f32.mrf.mxu1 }
 0xa82   :  { %v6081_v30 = vadd.f32 %v6046_v55, %v15636_v12 }
 0xa83   :  { %v6275_v8 = vmax.f32 %v6240_v18, %v6241_v19  ;;  %6501 = vmatmul.f32.vlgmr.msrb.gmra.mxu3 %v6326_v52 }
 0xa85   :  { %v6291_v58 = vmax.f32 %v17566_v38, %v6275_v8 }
 0xa87   :  { %v6143_v61 = vpop.f32.mrf.mxu2  ;;  %v6311_v17 = vadd.f32 %v15693_v53, %v6291_v58 }
 0xa88   :  { %v6242_v50 = vadd.f32 %v6143_v61, %v6080_v60  ;;  %v6208_v20 = vpop.f32.mrf.mxu3 }
 0xa89   :  { %v6243_v32 = vadd.f32 %v6208_v20, %v6081_v30  ;;  %v6327_v56 = vmax.f32 %v6311_v17, 0.0  ;;  %v6049_v29 = vpop.f32.mrf.mxu1 }
 0xa8a   :  { %v6083_v31 = vadd.f32 %v6049_v29, %v15654_v47  ;;  %v6541_v47 = vld [vmem:[%s15991_s7 + $0x30] sm:$0x3]  ;;  %v7652_v29 = vld [vmem:[%s15990_s8] ss:$0 sm:$0xff] }
 0xa8b   :  { %v6276_v39 = vmax.f32 %v6242_v50, %v6243_v32  ;;  %6504 = vmatmul.f32.gmra.mxu3 %v6327_v56  ;;  %7632 = vmatpush.msk.msrb.mxu0 %vm6558_vm2, %v6541_v47 }
 0xa8d   :  { %v6292_v12 = vmax.f32 %v17571_v7, %v6276_v39  ;;  %6572 = vmatpush.msrb.mxu0 %v6540_v34 }
 0xa8f   :  { %v6146_v14 = vpop.f32.mrf.mxu2  ;;  %v6312_v27 = vadd.f32 %v15693_v53, %v6292_v12  ;;  %6573 = vmatpush.msrb.mxu0 %v6539_v6 }
 0xa90   :  { %v6244_v44 = vadd.f32 %v6146_v14, %v6082_v59  ;;  %v6211_v35 = vpop.f32.mrf.mxu3 }
 0xa91   :  { %v6245_v3 = vadd.f32 %v6211_v35, %v6083_v31  ;;  %v6328_v11 = vmax.f32 %v6312_v27, 0.0 }
 0xa93   :  { %v6277_v0 = vmax.f32 %v6244_v44, %v6245_v3  ;;  %6507 = vmatmul.f32.gmra.mxu3 %v6328_v11 }
 0xa95   :  { %v6293_v22 = vmax.f32 %v17574_v23, %v6277_v0 }
 0xa97   :  { %v6313_v26 = vadd.f32 %v15693_v53, %v6293_v22  ;;  %v6538_v53 = vld [vmem:[%s15991_s7 + $0x18] sm:$0xff] }
 0xa98   :  { %6574 = vmatpush.msrb.mxu0 %v6538_v53 }
 0xa99   :  { %v6329_v21 = vmax.f32 %v6313_v26, 0.0 }
 0xa9a   :  { %6575 = vmatpush.msrb.mxu0 %v6537_v9 }
 0xa9b   :  { %6510 = vmatmul.f32.gmra.mxu3 %v6329_v21 }
 0xa9c   :  { %6576 = vmatpush.msrb.mxu0 %v6536_v28 }
 0xa9e   :  { %6577 = vmatpush.msrb.mxu0 %v6535_v45 }
 0xaa0   :  { %v6440_v51 = vpop.f32.mrf.mxu1 }
 0xaa8   :  { %v6443_v1 = vpop.f32.mrf.mxu1 }
 0xab0   :  { %v6446_v46 = vpop.f32.mrf.mxu1 }
 0xab8   :  { %v6449_v20 = vpop.f32.mrf.mxu1 }
 0xac0   :  { %v6411_v15 = vpop.f32.mrf.mxu0 }
 0xac1   :  { %v6441_v5 = vadd.f32 %v6440_v51, %v6411_v15 }
 0xac8   :  { %v6414_v25 = vpop.f32.mrf.mxu0 }
 0xac9   :  { %v6444_v19 = vadd.f32 %v6443_v1, %v6414_v25 }
 0xad0   :  { %v6417_v2 = vpop.f32.mrf.mxu0 }
 0xad1   :  { %v6447_v38 = vadd.f32 %v6446_v46, %v6417_v2 }
 0xad8   :  { %v6420_v17 = vpop.f32.mrf.mxu0 }
 0xad9   :  { %v6450_v56 = vadd.f32 %v6449_v20, %v6420_v17 }
 0xae6   :  { %v6469_v62 = vpop.f32.mrf.mxu2 }
 0xae7   :  { %v6481_v54 = vadd.f32 %v6469_v62, %v6441_v5 }
 0xaee   :  { %v6472_v18 = vpop.f32.mrf.mxu2 }
 0xaef   :  { %v6482_v33 = vadd.f32 %v6472_v18, %v6444_v19 }
 0xaf6   :  { %v6475_v10 = vpop.f32.mrf.mxu2 }
 0xaf7   :  { %v6483_v60 = vadd.f32 %v6475_v10, %v6447_v38 }
 0xafe   :  { %v6478_v32 = vpop.f32.mrf.mxu2 }
 0xaff   :  { %v6484_v57 = vadd.f32 %v6478_v32, %v6450_v56 }
 0xb06   :  { %v6502_v40 = vpop.f32.mrf.mxu3 }
 0xb07   :  { %v6514_v24 = vadd.f32 %v6502_v40, %v6481_v54 }
 0xb09   :  { %v6522_v52 = vadd.f32 %v7651_v48, %v6514_v24 }
 0xb0b   :  { %v6526_v42 = vmax.f32 %v6522_v52, 0.0 }
 0xb0d   :  { %6531 = vst.msk [vmem:[%s15992_s10] sm:$0xff] %vm6530_vm3, %v6526_v42  ;;  %7633 = vmatmul.msk.f32.vlgmr.msrb.gmra.mxu0 %vm6530_vm3, %v6526_v42 }
 0xb0e   :  { %v6505_v55 = vpop.f32.mrf.mxu3 }
 0xb0f   :  { %v6515_v8 = vadd.f32 %v6505_v55, %v6482_v33 }
 0xb11   :  { %v6523_v63 = vadd.f32 %v7651_v48, %v6515_v8 }
 0xb13   :  { %v6527_v58 = vmax.f32 %v6523_v63, 0.0 }
 0xb15   :  { %6532 = vst.msk [vmem:[%s15992_s10 + $0x8] sm:$0xff] %vm6530_vm3, %v6527_v58  ;;  %7634 = vmatmul.msk.f32.gmra.mxu0 %vm6530_vm3, %v6527_v58 }
 0xb16   :  { %v6508_v30 = vpop.f32.mrf.mxu3 }
 0xb17   :  { %v6516_v61 = vadd.f32 %v6508_v30, %v6483_v60 }
 0xb19   :  { %v6524_v50 = vadd.f32 %v7651_v48, %v6516_v61 }
 0xb1b   :  { %v6528_v13 = vmax.f32 %v6524_v50, 0.0 }
 0xb1d   :  { %6533 = vst.msk [vmem:[%s15992_s10 + $0x10] sm:$0xff] %vm6530_vm3, %v6528_v13  ;;  %7635 = vmatmul.msk.f32.gmra.mxu0 %vm6530_vm3, %v6528_v13 }
 0xb1e   :  { %v6511_v37 = vpop.f32.mrf.mxu3 }
 0xb1f   :  { %v6517_v43 = vadd.f32 %v6511_v37, %v6484_v57 }
 0xb21   :  { %v6525_v39 = vadd.f32 %v7651_v48, %v6517_v43 }
 0xb23   :  { %v6529_v36 = vmax.f32 %v6525_v39, 0.0 }
 0xb25   :  { %6534 = vst.msk [vmem:[%s15992_s10 + $0x18] sm:$0xff] %vm6530_vm3, %v6529_v36  ;;  %7636 = vmatmul.msk.f32.gmra.mxu0 %vm6530_vm3, %v6529_v36 }
 0xb8a   :  { %v6579_v4 = vpop.f32.mrf.mxu0 }
 0xb8b   :  { %v6580_v41 = vadd.f32 %v7652_v29, %v6579_v4 }
 0xb8d   :  { %v6592_v7 = vsel %vm6591_vm4, %v6580_v41, -inf }
 0xb8e   :  { %6593 = vmax.xlane.f32.xlu0 %v6592_v7 }
 0xb92   :  { %v6582_v12 = vpop.f32.mrf.mxu0 }
 0xb93   :  { %v6583_v59 = vadd.f32 %v7652_v29, %v6582_v12 }
 0xb95   :  { %v6595_v31 = vsel %vm6591_vm4, %v6583_v59, -inf }
 0xb96   :  { %6596 = vmax.xlane.f32.xlu0 %v6595_v31 }
 0xb9a   :  { %v6585_v14 = vpop.f32.mrf.mxu0 }
 0xb9b   :  { %v6586_v27 = vadd.f32 %v7652_v29, %v6585_v14 }
 0xb9d   :  { %v6598_v44 = vsel %vm6591_vm4, %v6586_v27, -inf }
 0xb9e   :  { %6599 = vmax.xlane.f32.xlu1 %v6598_v44 }
 0xba2   :  { %v6588_v35 = vpop.f32.mrf.mxu0 }
 0xba3   :  { %v6589_v3 = vadd.f32 %v7652_v29, %v6588_v35 }
 0xba5   :  { %v6601_v11 = vsel %vm6591_vm4, %v6589_v3, -inf }
 0xba6   :  { %6602 = vmax.xlane.f32.xlu1 %v6601_v11 }
 0xc01   :  { %v6594_v0 = vpop.xlane.xlu0 %6593 }
 0xc02   :  { %v6604_v16 = vsub.f32 %v6580_v41, %v6594_v0 }
 0xc04   :  { %v6608_v49 = vmul.f32 1.442695, %v6604_v16 }
 0xc06   :  { %7653 = vpow2.f32 %v6608_v49 }
 0xc09   :  { %v6597_v23 = vpop.xlane.xlu0 %6596 }
 0xc0a   :  { %v6605_v22 = vsub.f32 %v6583_v59, %v6597_v23 }
 0xc0c   :  { %v7654_v26 = vpop.eup %7653  ;;  %v6610_v21 = vmul.f32 1.442695, %v6605_v22 }
 0xc0d   :  { %v6616_v47 = vsel %vm6591_vm4, %v7654_v26, 0.0 }
 0xc0e   :  { %7655 = vpow2.f32 %v6610_v21  ;;  %6617 = vadd.xlane.f32.xlu2 %v6616_v47 }
 0xc11   :  { %v6600_v34 = vpop.xlane.xlu1 %6599 }
 0xc12   :  { %v6606_v6 = vsub.f32 %v6586_v27, %v6600_v34 }
 0xc14   :  { %v7656_v53 = vpop.eup %7655  ;;  %v6612_v9 = vmul.f32 1.442695, %v6606_v6 }
 0xc15   :  { %v6619_v28 = vsel %vm6591_vm4, %v7656_v53, 0.0 }
 0xc16   :  { %7657 = vpow2.f32 %v6612_v9  ;;  %6620 = vadd.xlane.f32.xlu2 %v6619_v28 }
 0xc19   :  { %v6603_v45 = vpop.xlane.xlu1 %6602 }
 0xc1a   :  { %v6607_v15 = vsub.f32 %v6589_v3, %v6603_v45 }
 0xc1c   :  { %v7658_v51 = vpop.eup %7657  ;;  %v6614_v62 = vmul.f32 1.442695, %v6607_v15 }
 0xc1d   :  { %v6622_v5 = vsel %vm6591_vm4, %v7658_v51, 0.0 }
 0xc1e   :  { %7659 = vpow2.f32 %v6614_v62  ;;  %6623 = vadd.xlane.f32.xlu0 %v6622_v5 }
 0xc24   :  { %v7660_v25 = vpop.eup %7659 }
 0xc25   :  { %v6625_v1 = vsel %vm6591_vm4, %v7660_v25, 0.0 }
 0xc26   :  { %6626 = vadd.xlane.f32.xlu1 %v6625_v1 }
 0xc81   :  { %v6618_v54 = vpop.xlane.xlu2 %6617 }
 0xc82   :  { %7661 = vlog2.f32 %v6618_v54 }
 0xc88   :  { %v7662_v48 = vpop.eup %7661 }
 0xc89   :  { %v6629_v18 = vmul.f32 0.6931472, %v7662_v48  ;;  %v6621_v40 = vpop.xlane.xlu2 %6620 }
 0xc8a   :  { %7663 = vlog2.f32 %v6621_v40 }
 0xc8b   :  { %v6636_v24 = vsub.f32 %v6604_v16, %v6629_v18 }
 0xc8d   :  { %6640 = vst.msk [vmem:[%s15993_s9] sm:$0xff] %vm6591_vm4, %v6636_v24 }
 0xc90   :  { %v7664_v52 = vpop.eup %7663 }
 0xc91   :  { %v6631_v19 = vmul.f32 0.6931472, %v7664_v52  ;;  %v6624_v42 = vpop.xlane.xlu0 %6623 }
 0xc92   :  { %7665 = vlog2.f32 %v6624_v42 }
 0xc93   :  { %v6637_v33 = vsub.f32 %v6605_v22, %v6631_v19 }
 0xc95   :  { %6641 = vst.msk [vmem:[%s15993_s9 + $0x8] sm:$0xff] %vm6591_vm4, %v6637_v33 }
 0xc98   :  { %v7666_v2 = vpop.eup %7665 }
 0xc99   :  { %v6633_v55 = vmul.f32 0.6931472, %v7666_v2  ;;  %v6627_v8 = vpop.xlane.xlu1 %6626 }
 0xc9a   :  { %7667 = vlog2.f32 %v6627_v8 }
 0xc9b   :  { %v6638_v46 = vsub.f32 %v6606_v6, %v6633_v55 }
 0xc9d   :  { %6642 = vst.msk [vmem:[%s15993_s9 + $0x10] sm:$0xff] %vm6591_vm4, %v6638_v46 }
 0xca0   :  { %v7668_v10 = vpop.eup %7667 }
 0xca1   :  { %v6635_v63 = vmul.f32 0.6931472, %v7668_v10 }
 0xca3   :  { %v6639_v38 = vsub.f32 %v6607_v15, %v6635_v63 }
 0xca5   :  { %6643 = vst.msk [vmem:[%s15993_s9 + $0x18] sm:$0xff] %vm6591_vm4, %v6639_v38 }

</bundles_post_ra>
